<compile_context>
chip_gen: v5e
topology: v5e:2x2
jax: 0.10.0
libtpu: 0.0.40
codegen_flags: <defaults>
</compile_context>

<pallas_src>
import functools

import jax
import jax.numpy as jnp
from jax import lax
from jax.experimental import pallas as pl
from jax.experimental.pallas import tpu as pltpu


def _round_up(x, m):
    return ((x + m - 1) // m) * m


def _pad2d(x, rows, cols):
    pr = rows - x.shape[0]
    pc = cols - x.shape[1]
    if pr or pc:
        x = jnp.pad(x, ((0, pr), (0, pc)))
    return x


def _detect_v5e():
    try:
        kind = jax.devices()[0].device_kind.lower()
        return ("v5 lite" in kind) or ("v5e" in kind) or ("v5litepod" in kind)
    except Exception:
        return False


_IS_V5E = _detect_v5e()


# --------------------------------------------------------------------------
# Pallas kernels:  o = [relu]( sum_k(A_k @ B_k) + bias [+ residual] )
#   bf16 operands, f32 accumulation in a VMEM scratch across the K grid axis.
# --------------------------------------------------------------------------
def _conv_kernel(a_ref, b_ref, bias_ref, o_ref, acc_ref, *, relu):
    @pl.when(pl.program_id(2) == 0)
    def _():
        acc_ref[...] = jnp.zeros_like(acc_ref)

    acc_ref[...] += jnp.dot(a_ref[...], b_ref[...],
                            preferred_element_type=jnp.float32)

    @pl.when(pl.program_id(2) == pl.num_programs(2) - 1)
    def _():
        out = acc_ref[...] + bias_ref[...]
        if relu:
            out = jnp.maximum(out, 0.0)
        o_ref[...] = out.astype(o_ref.dtype)


def _conv_res_kernel(a_ref, b_ref, bias_ref, r_ref, o_ref, acc_ref, *, relu):
    @pl.when(pl.program_id(2) == 0)
    def _():
        acc_ref[...] = jnp.zeros_like(acc_ref)

    acc_ref[...] += jnp.dot(a_ref[...], b_ref[...],
                            preferred_element_type=jnp.float32)

    @pl.when(pl.program_id(2) == pl.num_programs(2) - 1)
    def _():
        out = acc_ref[...] + bias_ref[...] + r_ref[...].astype(jnp.float32)
        if relu:
            out = jnp.maximum(out, 0.0)
        o_ref[...] = out.astype(o_ref.dtype)


def fused_matmul(a, b, bias, residual=None, relu=False, out_dtype=jnp.bfloat16):
    """[relu]((a @ b) + bias [+ residual]).

    a: (M, K) bf16, K % 128 == 0.     b: (K, N) bf16 (BN-scale pre-folded),
    bias: (1, N) f32, N % 128 == 0.   residual: (M, N) bf16 or None.
    """
    M, K = a.shape
    Kb, N = b.shape
    assert Kb == K and K % 128 == 0 and N % 128 == 0, (a.shape, b.shape)

    # --- tile selection -----------------------------------------------------
    # Lane (N) tile: v5e's MXU is 128x128 and has a single vst slot -> 128;
    # v6e/v7x benefit from wide lanes when C_out is large.
    TN = 256 if (N >= 512 and not _IS_V5E) else 128

    # Sublane (M) tile: multiples of 16 (bf16 sublane packing); floor of 8.
    if M >= 128:
        TM = 128
    elif M >= 16:
        TM = _round_up(M, 16)
    else:
        TM = 8

    # K tile: single block up to 1024, otherwise the largest 128-multiple
    # divisor <= 1024 so the weight stream is pipelined across K grid steps.
    if K <= 1024:
        TK = K
    else:
        kd = K // 128
        d = max(dd for dd in range(1, kd + 1) if kd % dd == 0 and 128 * dd <= 1024)
        TK = 128 * d
    nk = K // TK

    Mp = _round_up(M, TM)
    # Guarantee >=2 blocks on a parallel axis whenever M allows (v7x megacore,
    # and gives the pipeline steps to overlap DMA with MXU work).
    if (Mp // TM) * (N // TN) == 1 and M >= 32:
        TM = _round_up(M // 2, 16)
        Mp = _round_up(M, TM)

    a_p = _pad2d(a.astype(jnp.bfloat16), Mp, K)

    in_specs = [
        pl.BlockSpec((TM, TK), lambda i, j, k: (i, k)),
        pl.BlockSpec((TK, TN), lambda i, j, k: (k, j)),
        pl.BlockSpec((1, TN), lambda i, j, k: (0, j)),
    ]
    args = [a_p, b, bias]
    if residual is None:
        kernel = functools.partial(_conv_kernel, relu=relu)
    else:
        r_p = _pad2d(residual.astype(jnp.bfloat16), Mp, N)
        in_specs.append(pl.BlockSpec((TM, TN), lambda i, j, k: (i, j)))
        args.append(r_p)
        kernel = functools.partial(_conv_res_kernel, relu=relu)

    # Explicit VMEM budget (double-buffered inputs + output + f32 accumulator);
    # worst case here is well under 2 MiB, safe on v7x's 64 MiB.
    out_bytes = jnp.dtype(out_dtype).itemsize
    vmem = 2 * (TM * TK * 2 + TK * TN * 2 + TN * 4) + 2 * TM * TN * out_bytes + TM * TN * 4
    if residual is not None:
        vmem += 2 * TM * TN * 2
    vmem_limit = int(min(max(2 * vmem + (4 << 20), 16 << 20), 48 << 20))

    out = pl.pallas_call(
        kernel,
        out_shape=jax.ShapeDtypeStruct((Mp, N), out_dtype),
        grid_spec=pltpu.PrefetchScalarGridSpec(
            num_scalar_prefetch=0,
            grid=(Mp // TM, N // TN, nk),
            in_specs=in_specs,
            out_specs=pl.BlockSpec((TM, TN), lambda i, j, k: (i, j)),
            scratch_shapes=[pltpu.VMEM((TM, TN), jnp.float32)],
        ),
        compiler_params=pltpu.CompilerParams(
            dimension_semantics=("parallel", "parallel", "arbitrary"),
            vmem_limit_bytes=vmem_limit),
    )(*args)
    if Mp != M:
        out = out[:M, :]
    return out


# --------------------------------------------------------------------------
# Glue: im2col (single XLA op), pooling
# --------------------------------------------------------------------------
def conv_bn(x, wmat, bias, kh, kw, stride, padding, relu=True, residual=None):
    """Conv2d(no bias) + folded eval-mode BN (+residual)(+relu).  x: NHWC bf16.

    wmat: (Kp, Np) bf16 prepared at init (channel-major (c, kh, kw) rows,
    BN scale folded, zero rows/cols for padded channels).  bias: (1, Np) f32.
    Output keeps its channel dim padded to Np (multiple of 128).
    """
    n = x.shape[0]
    kp, np_ = wmat.shape
    if kh == 1 and kw == 1 and padding == 0:
        patches4 = x[:, ::stride, ::stride, :]
    else:
        patches4 = lax.conv_general_dilated_patches(
            x, (kh, kw), (stride, stride),
            ((padding, padding), (padding, padding)),
            dimension_numbers=("NHWC", "HWIO", "NHWC"))
    _, ho, wo, kdim = patches4.shape
    a = patches4.astype(jnp.bfloat16).reshape(n * ho * wo, kdim)
    if kdim < kp:                      # only conv1 (3*49 = 147 -> 256)
        a = jnp.pad(a, ((0, 0), (0, kp - kdim)))
    res2d = None if residual is None else residual.reshape(n * ho * wo, np_)
    out = fused_matmul(a, wmat, bias, residual=res2d, relu=relu,
                       out_dtype=jnp.bfloat16)
    return out.reshape(n, ho, wo, np_)


def maxpool2d(x, k=3, stride=2, padding=1):
    return lax.reduce_window(
        x, jnp.asarray(-jnp.inf, dtype=x.dtype), lax.max,
        window_dimensions=(1, k, k, 1),
        window_strides=(1, stride, stride, 1),
        padding=((0, 0), (padding, padding), (padding, padding), (0, 0)))


# --------------------------------------------------------------------------
# Parameters: deterministic synthetic weights (pretrained weights not loaded),
# eval-mode BN folded into weights, everything pre-padded / pre-composed.
# --------------------------------------------------------------------------
def _prep_conv(w, bn_scale, bn_bias, cin_store):
    """(cout, cin, kh, kw) torch-layout weight -> lane-aligned (Kp, Np) matrix."""
    cout, cin, kh, kw = w.shape
    wmat = jnp.transpose(w, (1, 2, 3, 0)).reshape(cin * kh * kw, cout)
    wmat = wmat * bn_scale[None, :]                       # fold BN scale
    kp = _round_up(cin_store * kh * kw, 128)
    npad = _round_up(cout, 128)
    wmat = _pad2d(wmat, kp, npad).astype(jnp.bfloat16)
    bias = _pad2d(bn_bias.reshape(1, cout).astype(jnp.float32), 1, npad)
    return wmat, bias


def init_params(key, class_num):
    # TODO(synk): torchvision pretrained weights cannot be loaded in-script;
    # deterministic He-style init with identity-stat eval BN is used instead.
    cnt = [0]

    def _winit(shape, fan_in):
        cnt[0] += 1
        k = jax.random.fold_in(key, cnt[0])
        return jax.random.normal(k, shape, jnp.float32) * jnp.sqrt(2.0 / fan_in)

    eps = 1e-5
    p = {}

    def add_conv(name, cout, cin, kh, kw, cin_store):
        w = _winit((cout, cin, kh, kw), cin * kh * kw)
        # eval-mode BN: gamma=1, beta=0, running_mean=0, running_var=1
        scale = jnp.full((cout,), 1.0 / jnp.sqrt(1.0 + eps), jnp.float32)
        bias = jnp.zeros((cout,), jnp.float32)
        wm, bm = _prep_conv(w, scale, bias, cin_store)
        p[name + "_w"] = wm
        p[name + "_b"] = bm

    add_conv("conv1", 64, 3, 7, 7, cin_store=3)
    in_c = 64
    for li, out_c in enumerate([64, 128, 256, 512], start=1):
        for bi in range(2):
            stride = 2 if (li > 1 and bi == 0) else 1
            pre = f"layer{li}_{bi}_"
            in_store = _round_up(in_c, 128)
            out_store = _round_up(out_c, 128)
            add_conv(pre + "conv1", out_c, in_c, 3, 3, in_store)
            add_conv(pre + "conv2", out_c, out_c, 3, 3, out_store)
            if stride != 1 or in_c != out_c:
                add_conv(pre + "down", out_c, in_c, 1, 1, in_store)
            in_c = out_c

    # resnet18.fc (512->1000) composed with self.fc (1000->class_num); no
    # nonlinearity between them, so y = x @ (W1^T W2^T) + (b1 W2^T + b2).
    fc1_w = _winit((1000, 512), 512)
    fc1_b = jnp.zeros((1000,), jnp.float32)
    fc2_w = _winit((class_num, 1000), 1000)
    fc2_b = jnp.zeros((class_num,), jnp.float32)
    wc = fc1_w.T @ fc2_w.T                                # (512, class_num)
    bc = fc1_b @ fc2_w.T + fc2_b                          # (class_num,)
    ncp = _round_up(class_num, 128)
    p["fc_w"] = _pad2d(wc, 512, ncp).astype(jnp.bfloat16)
    p["fc_b"] = _pad2d(bc.reshape(1, class_num).astype(jnp.float32), 1, ncp)
    return p


# --------------------------------------------------------------------------
# Forward pass (ResNet-18 eval mode, then extra fc)
# --------------------------------------------------------------------------
def forward(p, x, class_num):
    # single NCHW(f32) -> NHWC(bf16) conversion; NHWC + bf16 from here on
    x = jnp.transpose(x, (0, 2, 3, 1)).astype(jnp.bfloat16)
    x = conv_bn(x, p["conv1_w"], p["conv1_b"], 7, 7, stride=2, padding=3,
                relu=True)                                # (n,16,16,128)
    x = maxpool2d(x, 3, 2, 1)                             # (n, 8, 8,128)
    in_c = 64
    for li, out_c in enumerate([64, 128, 256, 512], start=1):
        for bi in range(2):
            stride = 2 if (li > 1 and bi == 0) else 1
            pre = f"layer{li}_{bi}_"
            downsample = (stride != 1 or in_c != out_c)
            identity = x
            out = conv_bn(x, p[pre + "conv1_w"], p[pre + "conv1_b"], 3, 3,
                          stride, 1, relu=True)
            if downsample:
                identity = conv_bn(x, p[pre + "down_w"], p[pre + "down_b"],
                                   1, 1, stride, 0, relu=False)
            # conv2 + bn2 + residual add + relu fused in one Pallas call
            x = conv_bn(out, p[pre + "conv2_w"], p[pre + "conv2_b"], 3, 3,
                        1, 1, relu=True, residual=identity)
            in_c = out_c
    x = jnp.mean(x.astype(jnp.float32), axis=(1, 2))      # (n, 512)
    y = fused_matmul(x.astype(jnp.bfloat16), p["fc_w"], p["fc_b"],
                     relu=False, out_dtype=jnp.float32)   # (n, 128-padded)
    return y[:, :class_num]


if __name__ == "__main__":
    class_num = 10
    key = jax.random.PRNGKey(0)
    params = init_params(key, class_num)
    x = jax.random.normal(jax.random.fold_in(key, 12345),
                          (2, 3, 32, 32), jnp.float32)    # NCHW, like PyTorch

    fwd = jax.jit(functools.partial(forward, class_num=class_num))
    out = fwd(params, x)
    out = jax.block_until_ready(out)

    assert out.shape == (2, class_num), out.shape
    assert bool(jnp.all(jnp.isfinite(out)))
    print("KERNEL_OK")
</pallas_src>

<mosaic_0001>
module attributes {stable_mosaic.version = 11 : i64} {
  func.func @_conv_kernel(%arg0: i32, %arg1: i32, %arg2: i32, %arg3: memref<128x256xbf16, #tpu.memory_space<vmem>>, %arg4: memref<256x128xbf16, #tpu.memory_space<vmem>>, %arg5: memref<1x128xf32, #tpu.memory_space<vmem>>, %arg6: memref<128x128xbf16, #tpu.memory_space<vmem>>, %arg7: memref<128x128xf32, #tpu.memory_space<vmem>>) attributes {dimension_semantics = [#tpu.dimension_semantics<parallel>, #tpu.dimension_semantics<parallel>, #tpu.dimension_semantics<arbitrary>], iteration_bounds = array<i64: 4, 1, 1>, scalar_prefetch = 0 : i64, scratch_operands = 1 : i64, tpu.core_type = #tpu.core_type<tc>, window_params = [{transform_indices = @transform_0, window_bounds = array<i64: 128, 256>}, {transform_indices = @transform_1, window_bounds = array<i64: 256, 128>}, {transform_indices = @transform_2, window_bounds = array<i64: 1, 128>}, {transform_indices = @transform_3, window_bounds = array<i64: 128, 128>}]} {
    %c0_i32 = arith.constant 0 : i32
    %0 = arith.cmpi eq, %arg2, %c0_i32 : i32
    %1 = arith.extui %0 : i1 to i32
    %c0_i32_0 = arith.constant 0 : i32
    %2 = arith.cmpi ne, %1, %c0_i32_0 : i32
    scf.if %2 {
      %cst_10 = arith.constant 0.000000e+00 : f32
      %12 = vector.broadcast %cst_10 : f32 to vector<128x128xf32>
      %c0_11 = arith.constant 0 : index
      %c0_12 = arith.constant 0 : index
      %13 = vector.load %arg7[%c0_11, %c0_12] : memref<128x128xf32, #tpu.memory_space<vmem>>, vector<128x128xf32>
      tpu.vector_store %arg7[%c0_11, %c0_12], %12 {strides = array<i32>} : memref<128x128xf32, #tpu.memory_space<vmem>>, vector<128x128xf32>,
    } else {
    }
    %c0 = arith.constant 0 : index
    %c0_1 = arith.constant 0 : index
    %3 = vector.load %arg7[%c0, %c0_1] : memref<128x128xf32, #tpu.memory_space<vmem>>, vector<128x128xf32>
    %c0_2 = arith.constant 0 : index
    %c0_3 = arith.constant 0 : index
    %4 = vector.load %arg3[%c0_2, %c0_3] : memref<128x256xbf16, #tpu.memory_space<vmem>>, vector<128x256xbf16>
    %c0_4 = arith.constant 0 : index
    %c0_5 = arith.constant 0 : index
    %5 = vector.load %arg4[%c0_4, %c0_5] : memref<256x128xbf16, #tpu.memory_space<vmem>>, vector<256x128xbf16>
    %cst = arith.constant dense<0.000000e+00> : vector<128x128xf32>
    %6 = tpu.matmul %4, %5, %cst {dimension_numbers = #tpu.dot_dimension_numbers<[1], [0], [0], [1], [0, 0, 1, 1], [], []>} : vector<128x256xbf16>, vector<256x128xbf16>, vector<128x128xf32> -> vector<128x128xf32>
    %7 = arith.addf %3, %6 : vector<128x128xf32>
    %c0_6 = arith.constant 0 : index
    %c0_7 = arith.constant 0 : index
    %8 = vector.load %arg7[%c0_6, %c0_7] : memref<128x128xf32, #tpu.memory_space<vmem>>, vector<128x128xf32>
    tpu.vector_store %arg7[%c0_6, %c0_7], %7 {strides = array<i32>} : memref<128x128xf32, #tpu.memory_space<vmem>>, vector<128x128xf32>,
    %c0_i32_8 = arith.constant 0 : i32
    %9 = arith.cmpi eq, %arg2, %c0_i32_8 : i32
    %10 = arith.extui %9 : i1 to i32
    %c0_i32_9 = arith.constant 0 : i32
    %11 = arith.cmpi ne, %10, %c0_i32_9 : i32
    scf.if %11 {
      %c0_10 = arith.constant 0 : index
      %c0_11 = arith.constant 0 : index
      %12 = vector.load %arg7[%c0_10, %c0_11] : memref<128x128xf32, #tpu.memory_space<vmem>>, vector<128x128xf32>
      %c0_12 = arith.constant 0 : index
      %c0_13 = arith.constant 0 : index
      %13 = vector.load %arg5[%c0_12, %c0_13] : memref<1x128xf32, #tpu.memory_space<vmem>>, vector<1x128xf32>
      %14 = vector.broadcast %13 : vector<1x128xf32> to vector<128x128xf32>
      %15 = arith.addf %12, %14 : vector<128x128xf32>
      %cst_14 = arith.constant 0.000000e+00 : f32
      %16 = vector.broadcast %cst_14 : f32 to vector<128x128xf32>
      %17 = arith.maximumf %15, %16 : vector<128x128xf32>
      %18 = arith.truncf %17 : vector<128x128xf32> to vector<128x128xbf16>
      %c0_15 = arith.constant 0 : index
      %c0_16 = arith.constant 0 : index
      %19 = vector.load %arg6[%c0_15, %c0_16] : memref<128x128xbf16, #tpu.memory_space<vmem>>, vector<128x128xbf16>
      tpu.vector_store %arg6[%c0_15, %c0_16], %18 {strides = array<i32>} : memref<128x128xbf16, #tpu.memory_space<vmem>>, vector<128x128xbf16>,
    } else {
    }
    return
  }
  func.func @transform_0(%arg0: i32, %arg1: i32, %arg2: i32) -> (i32, i32) {
    %c0_i32 = arith.constant 0 : i32
    return %arg0, %arg2 : i32, i32
  }
  func.func @transform_1(%arg0: i32, %arg1: i32, %arg2: i32) -> (i32, i32) {
    %c0_i32 = arith.constant 0 : i32
    return %arg2, %arg1 : i32, i32
  }
  func.func @transform_2(%arg0: i32, %arg1: i32, %arg2: i32) -> (i32, i32) {
    %c0_i32 = arith.constant 0 : i32
    %c0_i32_0 = arith.constant 0 : i32
    return %c0_i32, %arg1 : i32, i32
  }
  func.func @transform_3(%arg0: i32, %arg1: i32, %arg2: i32) -> (i32, i32) {
    %c0_i32 = arith.constant 0 : i32
    return %arg0, %arg1 : i32, i32
  }
}

module attributes {stable_mosaic.version = 11 : i64} {
  func.func @_conv_kernel(%arg0: i32, %arg1: i32, %arg2: i32, %arg3: memref<64x384xbf16, #tpu.memory_space<vmem>>, %arg4: memref<384x128xbf16, #tpu.memory_space<vmem>>, %arg5: memref<1x128xf32, #tpu.memory_space<vmem>>, %arg6: memref<64x128xbf16, #tpu.memory_space<vmem>>, %arg7: memref<64x128xf32, #tpu.memory_space<vmem>>) attributes {dimension_semantics = [#tpu.dimension_semantics<parallel>, #tpu.dimension_semantics<parallel>, #tpu.dimension_semantics<arbitrary>], iteration_bounds = array<i64: 2, 1, 3>, scalar_prefetch = 0 : i64, scratch_operands = 1 : i64, tpu.core_type = #tpu.core_type<tc>, window_params = [{transform_indices = @transform_0, window_bounds = array<i64: 64, 384>}, {transform_indices = @transform_1, window_bounds = array<i64: 384, 128>}, {transform_indices = @transform_2, window_bounds = array<i64: 1, 128>}, {transform_indices = @transform_3, window_bounds = array<i64: 64, 128>}]} {
    %c0_i32 = arith.constant 0 : i32
    %0 = arith.cmpi eq, %arg2, %c0_i32 : i32
    %1 = arith.extui %0 : i1 to i32
    %c0_i32_0 = arith.constant 0 : i32
    %2 = arith.cmpi ne, %1, %c0_i32_0 : i32
    scf.if %2 {
      %cst_9 = arith.constant 0.000000e+00 : f32
      %12 = vector.broadcast %cst_9 : f32 to vector<64x128xf32>
      %c0_10 = arith.constant 0 : index
      %c0_11 = arith.constant 0 : index
      %13 = vector.load %arg7[%c0_10, %c0_11] : memref<64x128xf32, #tpu.memory_space<vmem>>, vector<64x128xf32>
      tpu.vector_store %arg7[%c0_10, %c0_11], %12 {strides = array<i32>} : memref<64x128xf32, #tpu.memory_space<vmem>>, vector<64x128xf32>,
    } else {
    }
    %c0 = arith.constant 0 : index
    %c0_1 = arith.constant 0 : index
    %3 = vector.load %arg7[%c0, %c0_1] : memref<64x128xf32, #tpu.memory_space<vmem>>, vector<64x128xf32>
    %c0_2 = arith.constant 0 : index
    %c0_3 = arith.constant 0 : index
    %4 = vector.load %arg3[%c0_2, %c0_3] : memref<64x384xbf16, #tpu.memory_space<vmem>>, vector<64x384xbf16>
    %c0_4 = arith.constant 0 : index
    %c0_5 = arith.constant 0 : index
    %5 = vector.load %arg4[%c0_4, %c0_5] : memref<384x128xbf16, #tpu.memory_space<vmem>>, vector<384x128xbf16>
    %cst = arith.constant dense<0.000000e+00> : vector<64x128xf32>
    %6 = tpu.matmul %4, %5, %cst {dimension_numbers = #tpu.dot_dimension_numbers<[1], [0], [0], [1], [0, 0, 1, 1], [], []>} : vector<64x384xbf16>, vector<384x128xbf16>, vector<64x128xf32> -> vector<64x128xf32>
    %7 = arith.addf %3, %6 : vector<64x128xf32>
    %c0_6 = arith.constant 0 : index
    %c0_7 = arith.constant 0 : index
    %8 = vector.load %arg7[%c0_6, %c0_7] : memref<64x128xf32, #tpu.memory_space<vmem>>, vector<64x128xf32>
    tpu.vector_store %arg7[%c0_6, %c0_7], %7 {strides = array<i32>} : memref<64x128xf32, #tpu.memory_space<vmem>>, vector<64x128xf32>,
    %c2_i32 = arith.constant 2 : i32
    %9 = arith.cmpi eq, %arg2, %c2_i32 : i32
    %10 = arith.extui %9 : i1 to i32
    %c0_i32_8 = arith.constant 0 : i32
    %11 = arith.cmpi ne, %10, %c0_i32_8 : i32
    scf.if %11 {
      %c0_9 = arith.constant 0 : index
      %c0_10 = arith.constant 0 : index
      %12 = vector.load %arg7[%c0_9, %c0_10] : memref<64x128xf32, #tpu.memory_space<vmem>>, vector<64x128xf32>
      %c0_11 = arith.constant 0 : index
      %c0_12 = arith.constant 0 : index
      %13 = vector.load %arg5[%c0_11, %c0_12] : memref<1x128xf32, #tpu.memory_space<vmem>>, vector<1x128xf32>
      %14 = vector.broadcast %13 : vector<1x128xf32> to vector<64x128xf32>
      %15 = arith.addf %12, %14 : vector<64x128xf32>
      %cst_13 = arith.constant 0.000000e+00 : f32
      %16 = vector.broadcast %cst_13 : f32 to vector<64x128xf32>
      %17 = arith.maximumf %15, %16 : vector<64x128xf32>
      %18 = arith.truncf %17 : vector<64x128xf32> to vector<64x128xbf16>
      %c0_14 = arith.constant 0 : index
      %c0_15 = arith.constant 0 : index
      %19 = vector.load %arg6[%c0_14, %c0_15] : memref<64x128xbf16, #tpu.memory_space<vmem>>, vector<64x128xbf16>
      tpu.vector_store %arg6[%c0_14, %c0_15], %18 {strides = array<i32>} : memref<64x128xbf16, #tpu.memory_space<vmem>>, vector<64x128xbf16>,
    } else {
    }
    return
  }
  func.func @transform_0(%arg0: i32, %arg1: i32, %arg2: i32) -> (i32, i32) {
    %c0_i32 = arith.constant 0 : i32
    return %arg0, %arg2 : i32, i32
  }
  func.func @transform_1(%arg0: i32, %arg1: i32, %arg2: i32) -> (i32, i32) {
    %c0_i32 = arith.constant 0 : i32
    return %arg2, %arg1 : i32, i32
  }
  func.func @transform_2(%arg0: i32, %arg1: i32, %arg2: i32) -> (i32, i32) {
    %c0_i32 = arith.constant 0 : i32
    %c0_i32_0 = arith.constant 0 : i32
    return %c0_i32, %arg1 : i32, i32
  }
  func.func @transform_3(%arg0: i32, %arg1: i32, %arg2: i32) -> (i32, i32) {
    %c0_i32 = arith.constant 0 : i32
    return %arg0, %arg1 : i32, i32
  }
}

module attributes {stable_mosaic.version = 11 : i64} {
  func.func @_conv_res_kernel(%arg0: i32, %arg1: i32, %arg2: i32, %arg3: memref<64x384xbf16, #tpu.memory_space<vmem>>, %arg4: memref<384x128xbf16, #tpu.memory_space<vmem>>, %arg5: memref<1x128xf32, #tpu.memory_space<vmem>>, %arg6: memref<64x128xbf16, #tpu.memory_space<vmem>>, %arg7: memref<64x128xbf16, #tpu.memory_space<vmem>>, %arg8: memref<64x128xf32, #tpu.memory_space<vmem>>) attributes {dimension_semantics = [#tpu.dimension_semantics<parallel>, #tpu.dimension_semantics<parallel>, #tpu.dimension_semantics<arbitrary>], iteration_bounds = array<i64: 2, 1, 3>, scalar_prefetch = 0 : i64, scratch_operands = 1 : i64, tpu.core_type = #tpu.core_type<tc>, window_params = [{transform_indices = @transform_0, window_bounds = array<i64: 64, 384>}, {transform_indices = @transform_1, window_bounds = array<i64: 384, 128>}, {transform_indices = @transform_2, window_bounds = array<i64: 1, 128>}, {transform_indices = @transform_3, window_bounds = array<i64: 64, 128>}, {transform_indices = @transform_4, window_bounds = array<i64: 64, 128>}]} {
    %c0_i32 = arith.constant 0 : i32
    %0 = arith.cmpi eq, %arg2, %c0_i32 : i32
    %1 = arith.extui %0 : i1 to i32
    %c0_i32_0 = arith.constant 0 : i32
    %2 = arith.cmpi ne, %1, %c0_i32_0 : i32
    scf.if %2 {
      %cst_9 = arith.constant 0.000000e+00 : f32
      %12 = vector.broadcast %cst_9 : f32 to vector<64x128xf32>
      %c0_10 = arith.constant 0 : index
      %c0_11 = arith.constant 0 : index
      %13 = vector.load %arg8[%c0_10, %c0_11] : memref<64x128xf32, #tpu.memory_space<vmem>>, vector<64x128xf32>
      tpu.vector_store %arg8[%c0_10, %c0_11], %12 {strides = array<i32>} : memref<64x128xf32, #tpu.memory_space<vmem>>, vector<64x128xf32>,
    } else {
    }
    %c0 = arith.constant 0 : index
    %c0_1 = arith.constant 0 : index
    %3 = vector.load %arg8[%c0, %c0_1] : memref<64x128xf32, #tpu.memory_space<vmem>>, vector<64x128xf32>
    %c0_2 = arith.constant 0 : index
    %c0_3 = arith.constant 0 : index
    %4 = vector.load %arg3[%c0_2, %c0_3] : memref<64x384xbf16, #tpu.memory_space<vmem>>, vector<64x384xbf16>
    %c0_4 = arith.constant 0 : index
    %c0_5 = arith.constant 0 : index
    %5 = vector.load %arg4[%c0_4, %c0_5] : memref<384x128xbf16, #tpu.memory_space<vmem>>, vector<384x128xbf16>
    %cst = arith.constant dense<0.000000e+00> : vector<64x128xf32>
    %6 = tpu.matmul %4, %5, %cst {dimension_numbers = #tpu.dot_dimension_numbers<[1], [0], [0], [1], [0, 0, 1, 1], [], []>} : vector<64x384xbf16>, vector<384x128xbf16>, vector<64x128xf32> -> vector<64x128xf32>
    %7 = arith.addf %3, %6 : vector<64x128xf32>
    %c0_6 = arith.constant 0 : index
    %c0_7 = arith.constant 0 : index
    %8 = vector.load %arg8[%c0_6, %c0_7] : memref<64x128xf32, #tpu.memory_space<vmem>>, vector<64x128xf32>
    tpu.vector_store %arg8[%c0_6, %c0_7], %7 {strides = array<i32>} : memref<64x128xf32, #tpu.memory_space<vmem>>, vector<64x128xf32>,
    %c2_i32 = arith.constant 2 : i32
    %9 = arith.cmpi eq, %arg2, %c2_i32 : i32
    %10 = arith.extui %9 : i1 to i32
    %c0_i32_8 = arith.constant 0 : i32
    %11 = arith.cmpi ne, %10, %c0_i32_8 : i32
    scf.if %11 {
      %c0_9 = arith.constant 0 : index
      %c0_10 = arith.constant 0 : index
      %12 = vector.load %arg8[%c0_9, %c0_10] : memref<64x128xf32, #tpu.memory_space<vmem>>, vector<64x128xf32>
      %c0_11 = arith.constant 0 : index
      %c0_12 = arith.constant 0 : index
      %13 = vector.load %arg5[%c0_11, %c0_12] : memref<1x128xf32, #tpu.memory_space<vmem>>, vector<1x128xf32>
      %14 = vector.broadcast %13 : vector<1x128xf32> to vector<64x128xf32>
      %15 = arith.addf %12, %14 : vector<64x128xf32>
      %c0_13 = arith.constant 0 : index
      %c0_14 = arith.constant 0 : index
      %16 = vector.load %arg6[%c0_13, %c0_14] : memref<64x128xbf16, #tpu.memory_space<vmem>>, vector<64x128xbf16>
      %17 = arith.extf %16 : vector<64x128xbf16> to vector<64x128xf32>
      %18 = arith.addf %15, %17 : vector<64x128xf32>
      %cst_15 = arith.constant 0.000000e+00 : f32
      %19 = vector.broadcast %cst_15 : f32 to vector<64x128xf32>
      %20 = arith.maximumf %18, %19 : vector<64x128xf32>
      %21 = arith.truncf %20 : vector<64x128xf32> to vector<64x128xbf16>
      %c0_16 = arith.constant 0 : index
      %c0_17 = arith.constant 0 : index
      %22 = vector.load %arg7[%c0_16, %c0_17] : memref<64x128xbf16, #tpu.memory_space<vmem>>, vector<64x128xbf16>
      tpu.vector_store %arg7[%c0_16, %c0_17], %21 {strides = array<i32>} : memref<64x128xbf16, #tpu.memory_space<vmem>>, vector<64x128xbf16>,
    } else {
    }
    return
  }
  func.func @transform_0(%arg0: i32, %arg1: i32, %arg2: i32) -> (i32, i32) {
    %c0_i32 = arith.constant 0 : i32
    return %arg0, %arg2 : i32, i32
  }
  func.func @transform_1(%arg0: i32, %arg1: i32, %arg2: i32) -> (i32, i32) {
    %c0_i32 = arith.constant 0 : i32
    return %arg2, %arg1 : i32, i32
  }
  func.func @transform_2(%arg0: i32, %arg1: i32, %arg2: i32) -> (i32, i32) {
    %c0_i32 = arith.constant 0 : i32
    %c0_i32_0 = arith.constant 0 : i32
    return %c0_i32, %arg1 : i32, i32
  }
  func.func @transform_3(%arg0: i32, %arg1: i32, %arg2: i32) -> (i32, i32) {
    %c0_i32 = arith.constant 0 : i32
    return %arg0, %arg1 : i32, i32
  }
  func.func @transform_4(%arg0: i32, %arg1: i32, %arg2: i32) -> (i32, i32) {
    %c0_i32 = arith.constant 0 : i32
    return %arg0, %arg1 : i32, i32
  }
}

module attributes {stable_mosaic.version = 11 : i64} {
  func.func @_conv_kernel(%arg0: i32, %arg1: i32, %arg2: i32, %arg3: memref<16x384xbf16, #tpu.memory_space<vmem>>, %arg4: memref<384x128xbf16, #tpu.memory_space<vmem>>, %arg5: memref<1x128xf32, #tpu.memory_space<vmem>>, %arg6: memref<16x128xbf16, #tpu.memory_space<vmem>>, %arg7: memref<16x128xf32, #tpu.memory_space<vmem>>) attributes {dimension_semantics = [#tpu.dimension_semantics<parallel>, #tpu.dimension_semantics<parallel>, #tpu.dimension_semantics<arbitrary>], iteration_bounds = array<i64: 2, 1, 3>, scalar_prefetch = 0 : i64, scratch_operands = 1 : i64, tpu.core_type = #tpu.core_type<tc>, window_params = [{transform_indices = @transform_0, window_bounds = array<i64: 16, 384>}, {transform_indices = @transform_1, window_bounds = array<i64: 384, 128>}, {transform_indices = @transform_2, window_bounds = array<i64: 1, 128>}, {transform_indices = @transform_3, window_bounds = array<i64: 16, 128>}]} {
    %c0_i32 = arith.constant 0 : i32
    %0 = arith.cmpi eq, %arg2, %c0_i32 : i32
    %1 = arith.extui %0 : i1 to i32
    %c0_i32_0 = arith.constant 0 : i32
    %2 = arith.cmpi ne, %1, %c0_i32_0 : i32
    scf.if %2 {
      %cst_9 = arith.constant 0.000000e+00 : f32
      %12 = vector.broadcast %cst_9 : f32 to vector<16x128xf32>
      %c0_10 = arith.constant 0 : index
      %c0_11 = arith.constant 0 : index
      %13 = vector.load %arg7[%c0_10, %c0_11] : memref<16x128xf32, #tpu.memory_space<vmem>>, vector<16x128xf32>
      tpu.vector_store %arg7[%c0_10, %c0_11], %12 {strides = array<i32>} : memref<16x128xf32, #tpu.memory_space<vmem>>, vector<16x128xf32>,
    } else {
    }
    %c0 = arith.constant 0 : index
    %c0_1 = arith.constant 0 : index
    %3 = vector.load %arg7[%c0, %c0_1] : memref<16x128xf32, #tpu.memory_space<vmem>>, vector<16x128xf32>
    %c0_2 = arith.constant 0 : index
    %c0_3 = arith.constant 0 : index
    %4 = vector.load %arg3[%c0_2, %c0_3] : memref<16x384xbf16, #tpu.memory_space<vmem>>, vector<16x384xbf16>
    %c0_4 = arith.constant 0 : index
    %c0_5 = arith.constant 0 : index
    %5 = vector.load %arg4[%c0_4, %c0_5] : memref<384x128xbf16, #tpu.memory_space<vmem>>, vector<384x128xbf16>
    %cst = arith.constant dense<0.000000e+00> : vector<16x128xf32>
    %6 = tpu.matmul %4, %5, %cst {dimension_numbers = #tpu.dot_dimension_numbers<[1], [0], [0], [1], [0, 0, 1, 1], [], []>} : vector<16x384xbf16>, vector<384x128xbf16>, vector<16x128xf32> -> vector<16x128xf32>
    %7 = arith.addf %3, %6 : vector<16x128xf32>
    %c0_6 = arith.constant 0 : index
    %c0_7 = arith.constant 0 : index
    %8 = vector.load %arg7[%c0_6, %c0_7] : memref<16x128xf32, #tpu.memory_space<vmem>>, vector<16x128xf32>
    tpu.vector_store %arg7[%c0_6, %c0_7], %7 {strides = array<i32>} : memref<16x128xf32, #tpu.memory_space<vmem>>, vector<16x128xf32>,
    %c2_i32 = arith.constant 2 : i32
    %9 = arith.cmpi eq, %arg2, %c2_i32 : i32
    %10 = arith.extui %9 : i1 to i32
    %c0_i32_8 = arith.constant 0 : i32
    %11 = arith.cmpi ne, %10, %c0_i32_8 : i32
    scf.if %11 {
      %c0_9 = arith.constant 0 : index
      %c0_10 = arith.constant 0 : index
      %12 = vector.load %arg7[%c0_9, %c0_10] : memref<16x128xf32, #tpu.memory_space<vmem>>, vector<16x128xf32>
      %c0_11 = arith.constant 0 : index
      %c0_12 = arith.constant 0 : index
      %13 = vector.load %arg5[%c0_11, %c0_12] : memref<1x128xf32, #tpu.memory_space<vmem>>, vector<1x128xf32>
      %14 = vector.broadcast %13 : vector<1x128xf32> to vector<16x128xf32>
      %15 = arith.addf %12, %14 : vector<16x128xf32>
      %cst_13 = arith.constant 0.000000e+00 : f32
      %16 = vector.broadcast %cst_13 : f32 to vector<16x128xf32>
      %17 = arith.maximumf %15, %16 : vector<16x128xf32>
      %18 = arith.truncf %17 : vector<16x128xf32> to vector<16x128xbf16>
      %c0_14 = arith.constant 0 : index
      %c0_15 = arith.constant 0 : index
      %19 = vector.load %arg6[%c0_14, %c0_15] : memref<16x128xbf16, #tpu.memory_space<vmem>>, vector<16x128xbf16>
      tpu.vector_store %arg6[%c0_14, %c0_15], %18 {strides = array<i32>} : memref<16x128xbf16, #tpu.memory_space<vmem>>, vector<16x128xbf16>,
    } else {
    }
    return
  }
  func.func @transform_0(%arg0: i32, %arg1: i32, %arg2: i32) -> (i32, i32) {
    %c0_i32 = arith.constant 0 : i32
    return %arg0, %arg2 : i32, i32
  }
  func.func @transform_1(%arg0: i32, %arg1: i32, %arg2: i32) -> (i32, i32) {
    %c0_i32 = arith.constant 0 : i32
    return %arg2, %arg1 : i32, i32
  }
  func.func @transform_2(%arg0: i32, %arg1: i32, %arg2: i32) -> (i32, i32) {
    %c0_i32 = arith.constant 0 : i32
    %c0_i32_0 = arith.constant 0 : i32
    return %c0_i32, %arg1 : i32, i32
  }
  func.func @transform_3(%arg0: i32, %arg1: i32, %arg2: i32) -> (i32, i32) {
    %c0_i32 = arith.constant 0 : i32
    return %arg0, %arg1 : i32, i32
  }
}

module attributes {stable_mosaic.version = 11 : i64} {
  func.func @_conv_kernel(%arg0: i32, %arg1: i32, %arg2: i32, %arg3: memref<16x128xbf16, #tpu.memory_space<vmem>>, %arg4: memref<128x128xbf16, #tpu.memory_space<vmem>>, %arg5: memref<1x128xf32, #tpu.memory_space<vmem>>, %arg6: memref<16x128xbf16, #tpu.memory_space<vmem>>, %arg7: memref<16x128xf32, #tpu.memory_space<vmem>>) attributes {dimension_semantics = [#tpu.dimension_semantics<parallel>, #tpu.dimension_semantics<parallel>, #tpu.dimension_semantics<arbitrary>], iteration_bounds = array<i64: 2, 1, 1>, scalar_prefetch = 0 : i64, scratch_operands = 1 : i64, tpu.core_type = #tpu.core_type<tc>, window_params = [{transform_indices = @transform_0, window_bounds = array<i64: 16, 128>}, {transform_indices = @transform_1, window_bounds = array<i64: 128, 128>}, {transform_indices = @transform_2, window_bounds = array<i64: 1, 128>}, {transform_indices = @transform_3, window_bounds = array<i64: 16, 128>}]} {
    %c0_i32 = arith.constant 0 : i32
    %0 = arith.cmpi eq, %arg2, %c0_i32 : i32
    %1 = arith.extui %0 : i1 to i32
    %c0_i32_0 = arith.constant 0 : i32
    %2 = arith.cmpi ne, %1, %c0_i32_0 : i32
    scf.if %2 {
      %cst_10 = arith.constant 0.000000e+00 : f32
      %12 = vector.broadcast %cst_10 : f32 to vector<16x128xf32>
      %c0_11 = arith.constant 0 : index
      %c0_12 = arith.constant 0 : index
      %13 = vector.load %arg7[%c0_11, %c0_12] : memref<16x128xf32, #tpu.memory_space<vmem>>, vector<16x128xf32>
      tpu.vector_store %arg7[%c0_11, %c0_12], %12 {strides = array<i32>} : memref<16x128xf32, #tpu.memory_space<vmem>>, vector<16x128xf32>,
    } else {
    }
    %c0 = arith.constant 0 : index
    %c0_1 = arith.constant 0 : index
    %3 = vector.load %arg7[%c0, %c0_1] : memref<16x128xf32, #tpu.memory_space<vmem>>, vector<16x128xf32>
    %c0_2 = arith.constant 0 : index
    %c0_3 = arith.constant 0 : index
    %4 = vector.load %arg3[%c0_2, %c0_3] : memref<16x128xbf16, #tpu.memory_space<vmem>>, vector<16x128xbf16>
    %c0_4 = arith.constant 0 : index
    %c0_5 = arith.constant 0 : index
    %5 = vector.load %arg4[%c0_4, %c0_5] : memref<128x128xbf16, #tpu.memory_space<vmem>>, vector<128x128xbf16>
    %cst = arith.constant dense<0.000000e+00> : vector<16x128xf32>
    %6 = tpu.matmul %4, %5, %cst {dimension_numbers = #tpu.dot_dimension_numbers<[1], [0], [0], [1], [0, 0, 1, 1], [], []>} : vector<16x128xbf16>, vector<128x128xbf16>, vector<16x128xf32> -> vector<16x128xf32>
    %7 = arith.addf %3, %6 : vector<16x128xf32>
    %c0_6 = arith.constant 0 : index
    %c0_7 = arith.constant 0 : index
    %8 = vector.load %arg7[%c0_6, %c0_7] : memref<16x128xf32, #tpu.memory_space<vmem>>, vector<16x128xf32>
    tpu.vector_store %arg7[%c0_6, %c0_7], %7 {strides = array<i32>} : memref<16x128xf32, #tpu.memory_space<vmem>>, vector<16x128xf32>,
    %c0_i32_8 = arith.constant 0 : i32
    %9 = arith.cmpi eq, %arg2, %c0_i32_8 : i32
    %10 = arith.extui %9 : i1 to i32
    %c0_i32_9 = arith.constant 0 : i32
    %11 = arith.cmpi ne, %10, %c0_i32_9 : i32
    scf.if %11 {
      %c0_10 = arith.constant 0 : index
      %c0_11 = arith.constant 0 : index
      %12 = vector.load %arg7[%c0_10, %c0_11] : memref<16x128xf32, #tpu.memory_space<vmem>>, vector<16x128xf32>
      %c0_12 = arith.constant 0 : index
      %c0_13 = arith.constant 0 : index
      %13 = vector.load %arg5[%c0_12, %c0_13] : memref<1x128xf32, #tpu.memory_space<vmem>>, vector<1x128xf32>
      %14 = vector.broadcast %13 : vector<1x128xf32> to vector<16x128xf32>
      %15 = arith.addf %12, %14 : vector<16x128xf32>
      %16 = arith.truncf %15 : vector<16x128xf32> to vector<16x128xbf16>
      %c0_14 = arith.constant 0 : index
      %c0_15 = arith.constant 0 : index
      %17 = vector.load %arg6[%c0_14, %c0_15] : memref<16x128xbf16, #tpu.memory_space<vmem>>, vector<16x128xbf16>
      tpu.vector_store %arg6[%c0_14, %c0_15], %16 {strides = array<i32>} : memref<16x128xbf16, #tpu.memory_space<vmem>>, vector<16x128xbf16>,
    } else {
    }
    return
  }
  func.func @transform_0(%arg0: i32, %arg1: i32, %arg2: i32) -> (i32, i32) {
    %c0_i32 = arith.constant 0 : i32
    return %arg0, %arg2 : i32, i32
  }
  func.func @transform_1(%arg0: i32, %arg1: i32, %arg2: i32) -> (i32, i32) {
    %c0_i32 = arith.constant 0 : i32
    return %arg2, %arg1 : i32, i32
  }
  func.func @transform_2(%arg0: i32, %arg1: i32, %arg2: i32) -> (i32, i32) {
    %c0_i32 = arith.constant 0 : i32
    %c0_i32_0 = arith.constant 0 : i32
    return %c0_i32, %arg1 : i32, i32
  }
  func.func @transform_3(%arg0: i32, %arg1: i32, %arg2: i32) -> (i32, i32) {
    %c0_i32 = arith.constant 0 : i32
    return %arg0, %arg1 : i32, i32
  }
}

module attributes {stable_mosaic.version = 11 : i64} {
  func.func @_conv_res_kernel(%arg0: i32, %arg1: i32, %arg2: i32, %arg3: memref<16x384xbf16, #tpu.memory_space<vmem>>, %arg4: memref<384x128xbf16, #tpu.memory_space<vmem>>, %arg5: memref<1x128xf32, #tpu.memory_space<vmem>>, %arg6: memref<16x128xbf16, #tpu.memory_space<vmem>>, %arg7: memref<16x128xbf16, #tpu.memory_space<vmem>>, %arg8: memref<16x128xf32, #tpu.memory_space<vmem>>) attributes {dimension_semantics = [#tpu.dimension_semantics<parallel>, #tpu.dimension_semantics<parallel>, #tpu.dimension_semantics<arbitrary>], iteration_bounds = array<i64: 2, 1, 3>, scalar_prefetch = 0 : i64, scratch_operands = 1 : i64, tpu.core_type = #tpu.core_type<tc>, window_params = [{transform_indices = @transform_0, window_bounds = array<i64: 16, 384>}, {transform_indices = @transform_1, window_bounds = array<i64: 384, 128>}, {transform_indices = @transform_2, window_bounds = array<i64: 1, 128>}, {transform_indices = @transform_3, window_bounds = array<i64: 16, 128>}, {transform_indices = @transform_4, window_bounds = array<i64: 16, 128>}]} {
    %c0_i32 = arith.constant 0 : i32
    %0 = arith.cmpi eq, %arg2, %c0_i32 : i32
    %1 = arith.extui %0 : i1 to i32
    %c0_i32_0 = arith.constant 0 : i32
    %2 = arith.cmpi ne, %1, %c0_i32_0 : i32
    scf.if %2 {
      %cst_9 = arith.constant 0.000000e+00 : f32
      %12 = vector.broadcast %cst_9 : f32 to vector<16x128xf32>
      %c0_10 = arith.constant 0 : index
      %c0_11 = arith.constant 0 : index
      %13 = vector.load %arg8[%c0_10, %c0_11] : memref<16x128xf32, #tpu.memory_space<vmem>>, vector<16x128xf32>
      tpu.vector_store %arg8[%c0_10, %c0_11], %12 {strides = array<i32>} : memref<16x128xf32, #tpu.memory_space<vmem>>, vector<16x128xf32>,
    } else {
    }
    %c0 = arith.constant 0 : index
    %c0_1 = arith.constant 0 : index
    %3 = vector.load %arg8[%c0, %c0_1] : memref<16x128xf32, #tpu.memory_space<vmem>>, vector<16x128xf32>
    %c0_2 = arith.constant 0 : index
    %c0_3 = arith.constant 0 : index
    %4 = vector.load %arg3[%c0_2, %c0_3] : memref<16x384xbf16, #tpu.memory_space<vmem>>, vector<16x384xbf16>
    %c0_4 = arith.constant 0 : index
    %c0_5 = arith.constant 0 : index
    %5 = vector.load %arg4[%c0_4, %c0_5] : memref<384x128xbf16, #tpu.memory_space<vmem>>, vector<384x128xbf16>
    %cst = arith.constant dense<0.000000e+00> : vector<16x128xf32>
    %6 = tpu.matmul %4, %5, %cst {dimension_numbers = #tpu.dot_dimension_numbers<[1], [0], [0], [1], [0, 0, 1, 1], [], []>} : vector<16x384xbf16>, vector<384x128xbf16>, vector<16x128xf32> -> vector<16x128xf32>
    %7 = arith.addf %3, %6 : vector<16x128xf32>
    %c0_6 = arith.constant 0 : index
    %c0_7 = arith.constant 0 : index
    %8 = vector.load %arg8[%c0_6, %c0_7] : memref<16x128xf32, #tpu.memory_space<vmem>>, vector<16x128xf32>
    tpu.vector_store %arg8[%c0_6, %c0_7], %7 {strides = array<i32>} : memref<16x128xf32, #tpu.memory_space<vmem>>, vector<16x128xf32>,
    %c2_i32 = arith.constant 2 : i32
    %9 = arith.cmpi eq, %arg2, %c2_i32 : i32
    %10 = arith.extui %9 : i1 to i32
    %c0_i32_8 = arith.constant 0 : i32
    %11 = arith.cmpi ne, %10, %c0_i32_8 : i32
    scf.if %11 {
      %c0_9 = arith.constant 0 : index
      %c0_10 = arith.constant 0 : index
      %12 = vector.load %arg8[%c0_9, %c0_10] : memref<16x128xf32, #tpu.memory_space<vmem>>, vector<16x128xf32>
      %c0_11 = arith.constant 0 : index
      %c0_12 = arith.constant 0 : index
      %13 = vector.load %arg5[%c0_11, %c0_12] : memref<1x128xf32, #tpu.memory_space<vmem>>, vector<1x128xf32>
      %14 = vector.broadcast %13 : vector<1x128xf32> to vector<16x128xf32>
      %15 = arith.addf %12, %14 : vector<16x128xf32>
      %c0_13 = arith.constant 0 : index
      %c0_14 = arith.constant 0 : index
      %16 = vector.load %arg6[%c0_13, %c0_14] : memref<16x128xbf16, #tpu.memory_space<vmem>>, vector<16x128xbf16>
      %17 = arith.extf %16 : vector<16x128xbf16> to vector<16x128xf32>
      %18 = arith.addf %15, %17 : vector<16x128xf32>
      %cst_15 = arith.constant 0.000000e+00 : f32
      %19 = vector.broadcast %cst_15 : f32 to vector<16x128xf32>
      %20 = arith.maximumf %18, %19 : vector<16x128xf32>
      %21 = arith.truncf %20 : vector<16x128xf32> to vector<16x128xbf16>
      %c0_16 = arith.constant 0 : index
      %c0_17 = arith.constant 0 : index
      %22 = vector.load %arg7[%c0_16, %c0_17] : memref<16x128xbf16, #tpu.memory_space<vmem>>, vector<16x128xbf16>
      tpu.vector_store %arg7[%c0_16, %c0_17], %21 {strides = array<i32>} : memref<16x128xbf16, #tpu.memory_space<vmem>>, vector<16x128xbf16>,
    } else {
    }
    return
  }
  func.func @transform_0(%arg0: i32, %arg1: i32, %arg2: i32) -> (i32, i32) {
    %c0_i32 = arith.constant 0 : i32
    return %arg0, %arg2 : i32, i32
  }
  func.func @transform_1(%arg0: i32, %arg1: i32, %arg2: i32) -> (i32, i32) {
    %c0_i32 = arith.constant 0 : i32
    return %arg2, %arg1 : i32, i32
  }
  func.func @transform_2(%arg0: i32, %arg1: i32, %arg2: i32) -> (i32, i32) {
    %c0_i32 = arith.constant 0 : i32
    %c0_i32_0 = arith.constant 0 : i32
    return %c0_i32, %arg1 : i32, i32
  }
  func.func @transform_3(%arg0: i32, %arg1: i32, %arg2: i32) -> (i32, i32) {
    %c0_i32 = arith.constant 0 : i32
    return %arg0, %arg1 : i32, i32
  }
  func.func @transform_4(%arg0: i32, %arg1: i32, %arg2: i32) -> (i32, i32) {
    %c0_i32 = arith.constant 0 : i32
    return %arg0, %arg1 : i32, i32
  }
}

module attributes {stable_mosaic.version = 11 : i64} {
  func.func @_conv_kernel(%arg0: i32, %arg1: i32, %arg2: i32, %arg3: memref<8x384xbf16, #tpu.memory_space<vmem>>, %arg4: memref<384x128xbf16, #tpu.memory_space<vmem>>, %arg5: memref<1x128xf32, #tpu.memory_space<vmem>>, %arg6: memref<8x128xbf16, #tpu.memory_space<vmem>>, %arg7: memref<8x128xf32, #tpu.memory_space<vmem>>) attributes {dimension_semantics = [#tpu.dimension_semantics<parallel>, #tpu.dimension_semantics<parallel>, #tpu.dimension_semantics<arbitrary>], iteration_bounds = array<i64: 1, 2, 3>, scalar_prefetch = 0 : i64, scratch_operands = 1 : i64, tpu.core_type = #tpu.core_type<tc>, window_params = [{transform_indices = @transform_0, window_bounds = array<i64: 8, 384>}, {transform_indices = @transform_1, window_bounds = array<i64: 384, 128>}, {transform_indices = @transform_2, window_bounds = array<i64: 1, 128>}, {transform_indices = @transform_3, window_bounds = array<i64: 8, 128>}]} {
    %c0_i32 = arith.constant 0 : i32
    %0 = arith.cmpi eq, %arg2, %c0_i32 : i32
    %1 = arith.extui %0 : i1 to i32
    %c0_i32_0 = arith.constant 0 : i32
    %2 = arith.cmpi ne, %1, %c0_i32_0 : i32
    scf.if %2 {
      %cst_9 = arith.constant 0.000000e+00 : f32
      %12 = vector.broadcast %cst_9 : f32 to vector<8x128xf32>
      %c0_10 = arith.constant 0 : index
      %c0_11 = arith.constant 0 : index
      %13 = vector.load %arg7[%c0_10, %c0_11] : memref<8x128xf32, #tpu.memory_space<vmem>>, vector<8x128xf32>
      tpu.vector_store %arg7[%c0_10, %c0_11], %12 {strides = array<i32>} : memref<8x128xf32, #tpu.memory_space<vmem>>, vector<8x128xf32>,
    } else {
    }
    %c0 = arith.constant 0 : index
    %c0_1 = arith.constant 0 : index
    %3 = vector.load %arg7[%c0, %c0_1] : memref<8x128xf32, #tpu.memory_space<vmem>>, vector<8x128xf32>
    %c0_2 = arith.constant 0 : index
    %c0_3 = arith.constant 0 : index
    %4 = vector.load %arg3[%c0_2, %c0_3] : memref<8x384xbf16, #tpu.memory_space<vmem>>, vector<8x384xbf16>
    %c0_4 = arith.constant 0 : index
    %c0_5 = arith.constant 0 : index
    %5 = vector.load %arg4[%c0_4, %c0_5] : memref<384x128xbf16, #tpu.memory_space<vmem>>, vector<384x128xbf16>
    %cst = arith.constant dense<0.000000e+00> : vector<8x128xf32>
    %6 = tpu.matmul %4, %5, %cst {dimension_numbers = #tpu.dot_dimension_numbers<[1], [0], [0], [1], [0, 0, 1, 1], [], []>} : vector<8x384xbf16>, vector<384x128xbf16>, vector<8x128xf32> -> vector<8x128xf32>
    %7 = arith.addf %3, %6 : vector<8x128xf32>
    %c0_6 = arith.constant 0 : index
    %c0_7 = arith.constant 0 : index
    %8 = vector.load %arg7[%c0_6, %c0_7] : memref<8x128xf32, #tpu.memory_space<vmem>>, vector<8x128xf32>
    tpu.vector_store %arg7[%c0_6, %c0_7], %7 {strides = array<i32>} : memref<8x128xf32, #tpu.memory_space<vmem>>, vector<8x128xf32>,
    %c2_i32 = arith.constant 2 : i32
    %9 = arith.cmpi eq, %arg2, %c2_i32 : i32
    %10 = arith.extui %9 : i1 to i32
    %c0_i32_8 = arith.constant 0 : i32
    %11 = arith.cmpi ne, %10, %c0_i32_8 : i32
    scf.if %11 {
      %c0_9 = arith.constant 0 : index
      %c0_10 = arith.constant 0 : index
      %12 = vector.load %arg7[%c0_9, %c0_10] : memref<8x128xf32, #tpu.memory_space<vmem>>, vector<8x128xf32>
      %c0_11 = arith.constant 0 : index
      %c0_12 = arith.constant 0 : index
      %13 = vector.load %arg5[%c0_11, %c0_12] : memref<1x128xf32, #tpu.memory_space<vmem>>, vector<1x128xf32>
      %14 = vector.broadcast %13 : vector<1x128xf32> to vector<8x128xf32>
      %15 = arith.addf %12, %14 : vector<8x128xf32>
      %cst_13 = arith.constant 0.000000e+00 : f32
      %16 = vector.broadcast %cst_13 : f32 to vector<8x128xf32>
      %17 = arith.maximumf %15, %16 : vector<8x128xf32>
      %18 = arith.truncf %17 : vector<8x128xf32> to vector<8x128xbf16>
      %c0_14 = arith.constant 0 : index
      %c0_15 = arith.constant 0 : index
      %19 = vector.load %arg6[%c0_14, %c0_15] : memref<8x128xbf16, #tpu.memory_space<vmem>>, vector<8x128xbf16>
      tpu.vector_store %arg6[%c0_14, %c0_15], %18 {strides = array<i32>} : memref<8x128xbf16, #tpu.memory_space<vmem>>, vector<8x128xbf16>,
    } else {
    }
    return
  }
  func.func @transform_0(%arg0: i32, %arg1: i32, %arg2: i32) -> (i32, i32) {
    %c0_i32 = arith.constant 0 : i32
    return %arg0, %arg2 : i32, i32
  }
  func.func @transform_1(%arg0: i32, %arg1: i32, %arg2: i32) -> (i32, i32) {
    %c0_i32 = arith.constant 0 : i32
    return %arg2, %arg1 : i32, i32
  }
  func.func @transform_2(%arg0: i32, %arg1: i32, %arg2: i32) -> (i32, i32) {
    %c0_i32 = arith.constant 0 : i32
    %c0_i32_0 = arith.constant 0 : i32
    return %c0_i32, %arg1 : i32, i32
  }
  func.func @transform_3(%arg0: i32, %arg1: i32, %arg2: i32) -> (i32, i32) {
    %c0_i32 = arith.constant 0 : i32
    return %arg0, %arg1 : i32, i32
  }
}

module attributes {stable_mosaic.version = 11 : i64} {
  func.func @_conv_kernel(%arg0: i32, %arg1: i32, %arg2: i32, %arg3: memref<8x128xbf16, #tpu.memory_space<vmem>>, %arg4: memref<128x128xbf16, #tpu.memory_space<vmem>>, %arg5: memref<1x128xf32, #tpu.memory_space<vmem>>, %arg6: memref<8x128xbf16, #tpu.memory_space<vmem>>, %arg7: memref<8x128xf32, #tpu.memory_space<vmem>>) attributes {dimension_semantics = [#tpu.dimension_semantics<parallel>, #tpu.dimension_semantics<parallel>, #tpu.dimension_semantics<arbitrary>], iteration_bounds = array<i64: 1, 2, 1>, scalar_prefetch = 0 : i64, scratch_operands = 1 : i64, tpu.core_type = #tpu.core_type<tc>, window_params = [{transform_indices = @transform_0, window_bounds = array<i64: 8, 128>}, {transform_indices = @transform_1, window_bounds = array<i64: 128, 128>}, {transform_indices = @transform_2, window_bounds = array<i64: 1, 128>}, {transform_indices = @transform_3, window_bounds = array<i64: 8, 128>}]} {
    %c0_i32 = arith.constant 0 : i32
    %0 = arith.cmpi eq, %arg2, %c0_i32 : i32
    %1 = arith.extui %0 : i1 to i32
    %c0_i32_0 = arith.constant 0 : i32
    %2 = arith.cmpi ne, %1, %c0_i32_0 : i32
    scf.if %2 {
      %cst_10 = arith.constant 0.000000e+00 : f32
      %12 = vector.broadcast %cst_10 : f32 to vector<8x128xf32>
      %c0_11 = arith.constant 0 : index
      %c0_12 = arith.constant 0 : index
      %13 = vector.load %arg7[%c0_11, %c0_12] : memref<8x128xf32, #tpu.memory_space<vmem>>, vector<8x128xf32>
      tpu.vector_store %arg7[%c0_11, %c0_12], %12 {strides = array<i32>} : memref<8x128xf32, #tpu.memory_space<vmem>>, vector<8x128xf32>,
    } else {
    }
    %c0 = arith.constant 0 : index
    %c0_1 = arith.constant 0 : index
    %3 = vector.load %arg7[%c0, %c0_1] : memref<8x128xf32, #tpu.memory_space<vmem>>, vector<8x128xf32>
    %c0_2 = arith.constant 0 : index
    %c0_3 = arith.constant 0 : index
    %4 = vector.load %arg3[%c0_2, %c0_3] : memref<8x128xbf16, #tpu.memory_space<vmem>>, vector<8x128xbf16>
    %c0_4 = arith.constant 0 : index
    %c0_5 = arith.constant 0 : index
    %5 = vector.load %arg4[%c0_4, %c0_5] : memref<128x128xbf16, #tpu.memory_space<vmem>>, vector<128x128xbf16>
    %cst = arith.constant dense<0.000000e+00> : vector<8x128xf32>
    %6 = tpu.matmul %4, %5, %cst {dimension_numbers = #tpu.dot_dimension_numbers<[1], [0], [0], [1], [0, 0, 1, 1], [], []>} : vector<8x128xbf16>, vector<128x128xbf16>, vector<8x128xf32> -> vector<8x128xf32>
    %7 = arith.addf %3, %6 : vector<8x128xf32>
    %c0_6 = arith.constant 0 : index
    %c0_7 = arith.constant 0 : index
    %8 = vector.load %arg7[%c0_6, %c0_7] : memref<8x128xf32, #tpu.memory_space<vmem>>, vector<8x128xf32>
    tpu.vector_store %arg7[%c0_6, %c0_7], %7 {strides = array<i32>} : memref<8x128xf32, #tpu.memory_space<vmem>>, vector<8x128xf32>,
    %c0_i32_8 = arith.constant 0 : i32
    %9 = arith.cmpi eq, %arg2, %c0_i32_8 : i32
    %10 = arith.extui %9 : i1 to i32
    %c0_i32_9 = arith.constant 0 : i32
    %11 = arith.cmpi ne, %10, %c0_i32_9 : i32
    scf.if %11 {
      %c0_10 = arith.constant 0 : index
      %c0_11 = arith.constant 0 : index
      %12 = vector.load %arg7[%c0_10, %c0_11] : memref<8x128xf32, #tpu.memory_space<vmem>>, vector<8x128xf32>
      %c0_12 = arith.constant 0 : index
      %c0_13 = arith.constant 0 : index
      %13 = vector.load %arg5[%c0_12, %c0_13] : memref<1x128xf32, #tpu.memory_space<vmem>>, vector<1x128xf32>
      %14 = vector.broadcast %13 : vector<1x128xf32> to vector<8x128xf32>
      %15 = arith.addf %12, %14 : vector<8x128xf32>
      %16 = arith.truncf %15 : vector<8x128xf32> to vector<8x128xbf16>
      %c0_14 = arith.constant 0 : index
      %c0_15 = arith.constant 0 : index
      %17 = vector.load %arg6[%c0_14, %c0_15] : memref<8x128xbf16, #tpu.memory_space<vmem>>, vector<8x128xbf16>
      tpu.vector_store %arg6[%c0_14, %c0_15], %16 {strides = array<i32>} : memref<8x128xbf16, #tpu.memory_space<vmem>>, vector<8x128xbf16>,
    } else {
    }
    return
  }
  func.func @transform_0(%arg0: i32, %arg1: i32, %arg2: i32) -> (i32, i32) {
    %c0_i32 = arith.constant 0 : i32
    return %arg0, %arg2 : i32, i32
  }
  func.func @transform_1(%arg0: i32, %arg1: i32, %arg2: i32) -> (i32, i32) {
    %c0_i32 = arith.constant 0 : i32
    return %arg2, %arg1 : i32, i32
  }
  func.func @transform_2(%arg0: i32, %arg1: i32, %arg2: i32) -> (i32, i32) {
    %c0_i32 = arith.constant 0 : i32
    %c0_i32_0 = arith.constant 0 : i32
    return %c0_i32, %arg1 : i32, i32
  }
  func.func @transform_3(%arg0: i32, %arg1: i32, %arg2: i32) -> (i32, i32) {
    %c0_i32 = arith.constant 0 : i32
    return %arg0, %arg1 : i32, i32
  }
}

module attributes {stable_mosaic.version = 11 : i64} {
  func.func @_conv_res_kernel(%arg0: i32, %arg1: i32, %arg2: i32, %arg3: memref<8x768xbf16, #tpu.memory_space<vmem>>, %arg4: memref<768x128xbf16, #tpu.memory_space<vmem>>, %arg5: memref<1x128xf32, #tpu.memory_space<vmem>>, %arg6: memref<8x128xbf16, #tpu.memory_space<vmem>>, %arg7: memref<8x128xbf16, #tpu.memory_space<vmem>>, %arg8: memref<8x128xf32, #tpu.memory_space<vmem>>) attributes {dimension_semantics = [#tpu.dimension_semantics<parallel>, #tpu.dimension_semantics<parallel>, #tpu.dimension_semantics<arbitrary>], iteration_bounds = array<i64: 1, 2, 3>, scalar_prefetch = 0 : i64, scratch_operands = 1 : i64, tpu.core_type = #tpu.core_type<tc>, window_params = [{transform_indices = @transform_0, window_bounds = array<i64: 8, 768>}, {transform_indices = @transform_1, window_bounds = array<i64: 768, 128>}, {transform_indices = @transform_2, window_bounds = array<i64: 1, 128>}, {transform_indices = @transform_3, window_bounds = array<i64: 8, 128>}, {transform_indices = @transform_4, window_bounds = array<i64: 8, 128>}]} {
    %c0_i32 = arith.constant 0 : i32
    %0 = arith.cmpi eq, %arg2, %c0_i32 : i32
    %1 = arith.extui %0 : i1 to i32
    %c0_i32_0 = arith.constant 0 : i32
    %2 = arith.cmpi ne, %1, %c0_i32_0 : i32
    scf.if %2 {
      %cst_9 = arith.constant 0.000000e+00 : f32
      %12 = vector.broadcast %cst_9 : f32 to vector<8x128xf32>
      %c0_10 = arith.constant 0 : index
      %c0_11 = arith.constant 0 : index
      %13 = vector.load %arg8[%c0_10, %c0_11] : memref<8x128xf32, #tpu.memory_space<vmem>>, vector<8x128xf32>
      tpu.vector_store %arg8[%c0_10, %c0_11], %12 {strides = array<i32>} : memref<8x128xf32, #tpu.memory_space<vmem>>, vector<8x128xf32>,
    } else {
    }
    %c0 = arith.constant 0 : index
    %c0_1 = arith.constant 0 : index
    %3 = vector.load %arg8[%c0, %c0_1] : memref<8x128xf32, #tpu.memory_space<vmem>>, vector<8x128xf32>
    %c0_2 = arith.constant 0 : index
    %c0_3 = arith.constant 0 : index
    %4 = vector.load %arg3[%c0_2, %c0_3] : memref<8x768xbf16, #tpu.memory_space<vmem>>, vector<8x768xbf16>
    %c0_4 = arith.constant 0 : index
    %c0_5 = arith.constant 0 : index
    %5 = vector.load %arg4[%c0_4, %c0_5] : memref<768x128xbf16, #tpu.memory_space<vmem>>, vector<768x128xbf16>
    %cst = arith.constant dense<0.000000e+00> : vector<8x128xf32>
    %6 = tpu.matmul %4, %5, %cst {dimension_numbers = #tpu.dot_dimension_numbers<[1], [0], [0], [1], [0, 0, 1, 1], [], []>} : vector<8x768xbf16>, vector<768x128xbf16>, vector<8x128xf32> -> vector<8x128xf32>
    %7 = arith.addf %3, %6 : vector<8x128xf32>
    %c0_6 = arith.constant 0 : index
    %c0_7 = arith.constant 0 : index
    %8 = vector.load %arg8[%c0_6, %c0_7] : memref<8x128xf32, #tpu.memory_space<vmem>>, vector<8x128xf32>
    tpu.vector_store %arg8[%c0_6, %c0_7], %7 {strides = array<i32>} : memref<8x128xf32, #tpu.memory_space<vmem>>, vector<8x128xf32>,
    %c2_i32 = arith.constant 2 : i32
    %9 = arith.cmpi eq, %arg2, %c2_i32 : i32
    %10 = arith.extui %9 : i1 to i32
    %c0_i32_8 = arith.constant 0 : i32
    %11 = arith.cmpi ne, %10, %c0_i32_8 : i32
    scf.if %11 {
      %c0_9 = arith.constant 0 : index
      %c0_10 = arith.constant 0 : index
      %12 = vector.load %arg8[%c0_9, %c0_10] : memref<8x128xf32, #tpu.memory_space<vmem>>, vector<8x128xf32>
      %c0_11 = arith.constant 0 : index
      %c0_12 = arith.constant 0 : index
      %13 = vector.load %arg5[%c0_11, %c0_12] : memref<1x128xf32, #tpu.memory_space<vmem>>, vector<1x128xf32>
      %14 = vector.broadcast %13 : vector<1x128xf32> to vector<8x128xf32>
      %15 = arith.addf %12, %14 : vector<8x128xf32>
      %c0_13 = arith.constant 0 : index
      %c0_14 = arith.constant 0 : index
      %16 = vector.load %arg6[%c0_13, %c0_14] : memref<8x128xbf16, #tpu.memory_space<vmem>>, vector<8x128xbf16>
      %17 = arith.extf %16 : vector<8x128xbf16> to vector<8x128xf32>
      %18 = arith.addf %15, %17 : vector<8x128xf32>
      %cst_15 = arith.constant 0.000000e+00 : f32
      %19 = vector.broadcast %cst_15 : f32 to vector<8x128xf32>
      %20 = arith.maximumf %18, %19 : vector<8x128xf32>
      %21 = arith.truncf %20 : vector<8x128xf32> to vector<8x128xbf16>
      %c0_16 = arith.constant 0 : index
      %c0_17 = arith.constant 0 : index
      %22 = vector.load %arg7[%c0_16, %c0_17] : memref<8x128xbf16, #tpu.memory_space<vmem>>, vector<8x128xbf16>
      tpu.vector_store %arg7[%c0_16, %c0_17], %21 {strides = array<i32>} : memref<8x128xbf16, #tpu.memory_space<vmem>>, vector<8x128xbf16>,
    } else {
    }
    return
  }
  func.func @transform_0(%arg0: i32, %arg1: i32, %arg2: i32) -> (i32, i32) {
    %c0_i32 = arith.constant 0 : i32
    return %arg0, %arg2 : i32, i32
  }
  func.func @transform_1(%arg0: i32, %arg1: i32, %arg2: i32) -> (i32, i32) {
    %c0_i32 = arith.constant 0 : i32
    return %arg2, %arg1 : i32, i32
  }
  func.func @transform_2(%arg0: i32, %arg1: i32, %arg2: i32) -> (i32, i32) {
    %c0_i32 = arith.constant 0 : i32
    %c0_i32_0 = arith.constant 0 : i32
    return %c0_i32, %arg1 : i32, i32
  }
  func.func @transform_3(%arg0: i32, %arg1: i32, %arg2: i32) -> (i32, i32) {
    %c0_i32 = arith.constant 0 : i32
    return %arg0, %arg1 : i32, i32
  }
  func.func @transform_4(%arg0: i32, %arg1: i32, %arg2: i32) -> (i32, i32) {
    %c0_i32 = arith.constant 0 : i32
    return %arg0, %arg1 : i32, i32
  }
}

module attributes {stable_mosaic.version = 11 : i64} {
  func.func @_conv_kernel(%arg0: i32, %arg1: i32, %arg2: i32, %arg3: memref<8x768xbf16, #tpu.memory_space<vmem>>, %arg4: memref<768x128xbf16, #tpu.memory_space<vmem>>, %arg5: memref<1x128xf32, #tpu.memory_space<vmem>>, %arg6: memref<8x128xbf16, #tpu.memory_space<vmem>>, %arg7: memref<8x128xf32, #tpu.memory_space<vmem>>) attributes {dimension_semantics = [#tpu.dimension_semantics<parallel>, #tpu.dimension_semantics<parallel>, #tpu.dimension_semantics<arbitrary>], iteration_bounds = array<i64: 1, 2, 3>, scalar_prefetch = 0 : i64, scratch_operands = 1 : i64, tpu.core_type = #tpu.core_type<tc>, window_params = [{transform_indices = @transform_0, window_bounds = array<i64: 8, 768>}, {transform_indices = @transform_1, window_bounds = array<i64: 768, 128>}, {transform_indices = @transform_2, window_bounds = array<i64: 1, 128>}, {transform_indices = @transform_3, window_bounds = array<i64: 8, 128>}]} {
    %c0_i32 = arith.constant 0 : i32
    %0 = arith.cmpi eq, %arg2, %c0_i32 : i32
    %1 = arith.extui %0 : i1 to i32
    %c0_i32_0 = arith.constant 0 : i32
    %2 = arith.cmpi ne, %1, %c0_i32_0 : i32
    scf.if %2 {
      %cst_9 = arith.constant 0.000000e+00 : f32
      %12 = vector.broadcast %cst_9 : f32 to vector<8x128xf32>
      %c0_10 = arith.constant 0 : index
      %c0_11 = arith.constant 0 : index
      %13 = vector.load %arg7[%c0_10, %c0_11] : memref<8x128xf32, #tpu.memory_space<vmem>>, vector<8x128xf32>
      tpu.vector_store %arg7[%c0_10, %c0_11], %12 {strides = array<i32>} : memref<8x128xf32, #tpu.memory_space<vmem>>, vector<8x128xf32>,
    } else {
    }
    %c0 = arith.constant 0 : index
    %c0_1 = arith.constant 0 : index
    %3 = vector.load %arg7[%c0, %c0_1] : memref<8x128xf32, #tpu.memory_space<vmem>>, vector<8x128xf32>
    %c0_2 = arith.constant 0 : index
    %c0_3 = arith.constant 0 : index
    %4 = vector.load %arg3[%c0_2, %c0_3] : memref<8x768xbf16, #tpu.memory_space<vmem>>, vector<8x768xbf16>
    %c0_4 = arith.constant 0 : index
    %c0_5 = arith.constant 0 : index
    %5 = vector.load %arg4[%c0_4, %c0_5] : memref<768x128xbf16, #tpu.memory_space<vmem>>, vector<768x128xbf16>
    %cst = arith.constant dense<0.000000e+00> : vector<8x128xf32>
    %6 = tpu.matmul %4, %5, %cst {dimension_numbers = #tpu.dot_dimension_numbers<[1], [0], [0], [1], [0, 0, 1, 1], [], []>} : vector<8x768xbf16>, vector<768x128xbf16>, vector<8x128xf32> -> vector<8x128xf32>
    %7 = arith.addf %3, %6 : vector<8x128xf32>
    %c0_6 = arith.constant 0 : index
    %c0_7 = arith.constant 0 : index
    %8 = vector.load %arg7[%c0_6, %c0_7] : memref<8x128xf32, #tpu.memory_space<vmem>>, vector<8x128xf32>
    tpu.vector_store %arg7[%c0_6, %c0_7], %7 {strides = array<i32>} : memref<8x128xf32, #tpu.memory_space<vmem>>, vector<8x128xf32>,
    %c2_i32 = arith.constant 2 : i32
    %9 = arith.cmpi eq, %arg2, %c2_i32 : i32
    %10 = arith.extui %9 : i1 to i32
    %c0_i32_8 = arith.constant 0 : i32
    %11 = arith.cmpi ne, %10, %c0_i32_8 : i32
    scf.if %11 {
      %c0_9 = arith.constant 0 : index
      %c0_10 = arith.constant 0 : index
      %12 = vector.load %arg7[%c0_9, %c0_10] : memref<8x128xf32, #tpu.memory_space<vmem>>, vector<8x128xf32>
      %c0_11 = arith.constant 0 : index
      %c0_12 = arith.constant 0 : index
      %13 = vector.load %arg5[%c0_11, %c0_12] : memref<1x128xf32, #tpu.memory_space<vmem>>, vector<1x128xf32>
      %14 = vector.broadcast %13 : vector<1x128xf32> to vector<8x128xf32>
      %15 = arith.addf %12, %14 : vector<8x128xf32>
      %cst_13 = arith.constant 0.000000e+00 : f32
      %16 = vector.broadcast %cst_13 : f32 to vector<8x128xf32>
      %17 = arith.maximumf %15, %16 : vector<8x128xf32>
      %18 = arith.truncf %17 : vector<8x128xf32> to vector<8x128xbf16>
      %c0_14 = arith.constant 0 : index
      %c0_15 = arith.constant 0 : index
      %19 = vector.load %arg6[%c0_14, %c0_15] : memref<8x128xbf16, #tpu.memory_space<vmem>>, vector<8x128xbf16>
      tpu.vector_store %arg6[%c0_14, %c0_15], %18 {strides = array<i32>} : memref<8x128xbf16, #tpu.memory_space<vmem>>, vector<8x128xbf16>,
    } else {
    }
    return
  }
  func.func @transform_0(%arg0: i32, %arg1: i32, %arg2: i32) -> (i32, i32) {
    %c0_i32 = arith.constant 0 : i32
    return %arg0, %arg2 : i32, i32
  }
  func.func @transform_1(%arg0: i32, %arg1: i32, %arg2: i32) -> (i32, i32) {
    %c0_i32 = arith.constant 0 : i32
    return %arg2, %arg1 : i32, i32
  }
  func.func @transform_2(%arg0: i32, %arg1: i32, %arg2: i32) -> (i32, i32) {
    %c0_i32 = arith.constant 0 : i32
    %c0_i32_0 = arith.constant 0 : i32
    return %c0_i32, %arg1 : i32, i32
  }
  func.func @transform_3(%arg0: i32, %arg1: i32, %arg2: i32) -> (i32, i32) {
    %c0_i32 = arith.constant 0 : i32
    return %arg0, %arg1 : i32, i32
  }
}

module attributes {stable_mosaic.version = 11 : i64} {
  func.func @_conv_kernel(%arg0: i32, %arg1: i32, %arg2: i32, %arg3: memref<8x768xbf16, #tpu.memory_space<vmem>>, %arg4: memref<768x256xbf16, #tpu.memory_space<vmem>>, %arg5: memref<1x256xf32, #tpu.memory_space<vmem>>, %arg6: memref<8x256xbf16, #tpu.memory_space<vmem>>, %arg7: memref<8x256xf32, #tpu.memory_space<vmem>>) attributes {dimension_semantics = [#tpu.dimension_semantics<parallel>, #tpu.dimension_semantics<parallel>, #tpu.dimension_semantics<arbitrary>], iteration_bounds = array<i64: 1, 2, 3>, scalar_prefetch = 0 : i64, scratch_operands = 1 : i64, tpu.core_type = #tpu.core_type<tc>, window_params = [{transform_indices = @transform_0, window_bounds = array<i64: 8, 768>}, {transform_indices = @transform_1, window_bounds = array<i64: 768, 256>}, {transform_indices = @transform_2, window_bounds = array<i64: 1, 256>}, {transform_indices = @transform_3, window_bounds = array<i64: 8, 256>}]} {
    %c0_i32 = arith.constant 0 : i32
    %0 = arith.cmpi eq, %arg2, %c0_i32 : i32
    %1 = arith.extui %0 : i1 to i32
    %c0_i32_0 = arith.constant 0 : i32
    %2 = arith.cmpi ne, %1, %c0_i32_0 : i32
    scf.if %2 {
      %cst_9 = arith.constant 0.000000e+00 : f32
      %12 = vector.broadcast %cst_9 : f32 to vector<8x256xf32>
      %c0_10 = arith.constant 0 : index
      %c0_11 = arith.constant 0 : index
      %13 = vector.load %arg7[%c0_10, %c0_11] : memref<8x256xf32, #tpu.memory_space<vmem>>, vector<8x256xf32>
      tpu.vector_store %arg7[%c0_10, %c0_11], %12 {strides = array<i32>} : memref<8x256xf32, #tpu.memory_space<vmem>>, vector<8x256xf32>,
    } else {
    }
    %c0 = arith.constant 0 : index
    %c0_1 = arith.constant 0 : index
    %3 = vector.load %arg7[%c0, %c0_1] : memref<8x256xf32, #tpu.memory_space<vmem>>, vector<8x256xf32>
    %c0_2 = arith.constant 0 : index
    %c0_3 = arith.constant 0 : index
    %4 = vector.load %arg3[%c0_2, %c0_3] : memref<8x768xbf16, #tpu.memory_space<vmem>>, vector<8x768xbf16>
    %c0_4 = arith.constant 0 : index
    %c0_5 = arith.constant 0 : index
    %5 = vector.load %arg4[%c0_4, %c0_5] : memref<768x256xbf16, #tpu.memory_space<vmem>>, vector<768x256xbf16>
    %cst = arith.constant dense<0.000000e+00> : vector<8x256xf32>
    %6 = tpu.matmul %4, %5, %cst {dimension_numbers = #tpu.dot_dimension_numbers<[1], [0], [0], [1], [0, 0, 1, 1], [], []>} : vector<8x768xbf16>, vector<768x256xbf16>, vector<8x256xf32> -> vector<8x256xf32>
    %7 = arith.addf %3, %6 : vector<8x256xf32>
    %c0_6 = arith.constant 0 : index
    %c0_7 = arith.constant 0 : index
    %8 = vector.load %arg7[%c0_6, %c0_7] : memref<8x256xf32, #tpu.memory_space<vmem>>, vector<8x256xf32>
    tpu.vector_store %arg7[%c0_6, %c0_7], %7 {strides = array<i32>} : memref<8x256xf32, #tpu.memory_space<vmem>>, vector<8x256xf32>,
    %c2_i32 = arith.constant 2 : i32
    %9 = arith.cmpi eq, %arg2, %c2_i32 : i32
    %10 = arith.extui %9 : i1 to i32
    %c0_i32_8 = arith.constant 0 : i32
    %11 = arith.cmpi ne, %10, %c0_i32_8 : i32
    scf.if %11 {
      %c0_9 = arith.constant 0 : index
      %c0_10 = arith.constant 0 : index
      %12 = vector.load %arg7[%c0_9, %c0_10] : memref<8x256xf32, #tpu.memory_space<vmem>>, vector<8x256xf32>
      %c0_11 = arith.constant 0 : index
      %c0_12 = arith.constant 0 : index
      %13 = vector.load %arg5[%c0_11, %c0_12] : memref<1x256xf32, #tpu.memory_space<vmem>>, vector<1x256xf32>
      %14 = vector.broadcast %13 : vector<1x256xf32> to vector<8x256xf32>
      %15 = arith.addf %12, %14 : vector<8x256xf32>
      %cst_13 = arith.constant 0.000000e+00 : f32
      %16 = vector.broadcast %cst_13 : f32 to vector<8x256xf32>
      %17 = arith.maximumf %15, %16 : vector<8x256xf32>
      %18 = arith.truncf %17 : vector<8x256xf32> to vector<8x256xbf16>
      %c0_14 = arith.constant 0 : index
      %c0_15 = arith.constant 0 : index
      %19 = vector.load %arg6[%c0_14, %c0_15] : memref<8x256xbf16, #tpu.memory_space<vmem>>, vector<8x256xbf16>
      tpu.vector_store %arg6[%c0_14, %c0_15], %18 {strides = array<i32>} : memref<8x256xbf16, #tpu.memory_space<vmem>>, vector<8x256xbf16>,
    } else {
    }
    return
  }
  func.func @transform_0(%arg0: i32, %arg1: i32, %arg2: i32) -> (i32, i32) {
    %c0_i32 = arith.constant 0 : i32
    return %arg0, %arg2 : i32, i32
  }
  func.func @transform_1(%arg0: i32, %arg1: i32, %arg2: i32) -> (i32, i32) {
    %c0_i32 = arith.constant 0 : i32
    return %arg2, %arg1 : i32, i32
  }
  func.func @transform_2(%arg0: i32, %arg1: i32, %arg2: i32) -> (i32, i32) {
    %c0_i32 = arith.constant 0 : i32
    %c0_i32_0 = arith.constant 0 : i32
    return %c0_i32, %arg1 : i32, i32
  }
  func.func @transform_3(%arg0: i32, %arg1: i32, %arg2: i32) -> (i32, i32) {
    %c0_i32 = arith.constant 0 : i32
    return %arg0, %arg1 : i32, i32
  }
}

module attributes {stable_mosaic.version = 11 : i64} {
  func.func @_conv_kernel(%arg0: i32, %arg1: i32, %arg2: i32, %arg3: memref<8x256xbf16, #tpu.memory_space<vmem>>, %arg4: memref<256x256xbf16, #tpu.memory_space<vmem>>, %arg5: memref<1x256xf32, #tpu.memory_space<vmem>>, %arg6: memref<8x256xbf16, #tpu.memory_space<vmem>>, %arg7: memref<8x256xf32, #tpu.memory_space<vmem>>) attributes {dimension_semantics = [#tpu.dimension_semantics<parallel>, #tpu.dimension_semantics<parallel>, #tpu.dimension_semantics<arbitrary>], iteration_bounds = array<i64: 1, 2, 1>, scalar_prefetch = 0 : i64, scratch_operands = 1 : i64, tpu.core_type = #tpu.core_type<tc>, window_params = [{transform_indices = @transform_0, window_bounds = array<i64: 8, 256>}, {transform_indices = @transform_1, window_bounds = array<i64: 256, 256>}, {transform_indices = @transform_2, window_bounds = array<i64: 1, 256>}, {transform_indices = @transform_3, window_bounds = array<i64: 8, 256>}]} {
    %c0_i32 = arith.constant 0 : i32
    %0 = arith.cmpi eq, %arg2, %c0_i32 : i32
    %1 = arith.extui %0 : i1 to i32
    %c0_i32_0 = arith.constant 0 : i32
    %2 = arith.cmpi ne, %1, %c0_i32_0 : i32
    scf.if %2 {
      %cst_10 = arith.constant 0.000000e+00 : f32
      %12 = vector.broadcast %cst_10 : f32 to vector<8x256xf32>
      %c0_11 = arith.constant 0 : index
      %c0_12 = arith.constant 0 : index
      %13 = vector.load %arg7[%c0_11, %c0_12] : memref<8x256xf32, #tpu.memory_space<vmem>>, vector<8x256xf32>
      tpu.vector_store %arg7[%c0_11, %c0_12], %12 {strides = array<i32>} : memref<8x256xf32, #tpu.memory_space<vmem>>, vector<8x256xf32>,
    } else {
    }
    %c0 = arith.constant 0 : index
    %c0_1 = arith.constant 0 : index
    %3 = vector.load %arg7[%c0, %c0_1] : memref<8x256xf32, #tpu.memory_space<vmem>>, vector<8x256xf32>
    %c0_2 = arith.constant 0 : index
    %c0_3 = arith.constant 0 : index
    %4 = vector.load %arg3[%c0_2, %c0_3] : memref<8x256xbf16, #tpu.memory_space<vmem>>, vector<8x256xbf16>
    %c0_4 = arith.constant 0 : index
    %c0_5 = arith.constant 0 : index
    %5 = vector.load %arg4[%c0_4, %c0_5] : memref<256x256xbf16, #tpu.memory_space<vmem>>, vector<256x256xbf16>
    %cst = arith.constant dense<0.000000e+00> : vector<8x256xf32>
    %6 = tpu.matmul %4, %5, %cst {dimension_numbers = #tpu.dot_dimension_numbers<[1], [0], [0], [1], [0, 0, 1, 1], [], []>} : vector<8x256xbf16>, vector<256x256xbf16>, vector<8x256xf32> -> vector<8x256xf32>
    %7 = arith.addf %3, %6 : vector<8x256xf32>
    %c0_6 = arith.constant 0 : index
    %c0_7 = arith.constant 0 : index
    %8 = vector.load %arg7[%c0_6, %c0_7] : memref<8x256xf32, #tpu.memory_space<vmem>>, vector<8x256xf32>
    tpu.vector_store %arg7[%c0_6, %c0_7], %7 {strides = array<i32>} : memref<8x256xf32, #tpu.memory_space<vmem>>, vector<8x256xf32>,
    %c0_i32_8 = arith.constant 0 : i32
    %9 = arith.cmpi eq, %arg2, %c0_i32_8 : i32
    %10 = arith.extui %9 : i1 to i32
    %c0_i32_9 = arith.constant 0 : i32
    %11 = arith.cmpi ne, %10, %c0_i32_9 : i32
    scf.if %11 {
      %c0_10 = arith.constant 0 : index
      %c0_11 = arith.constant 0 : index
      %12 = vector.load %arg7[%c0_10, %c0_11] : memref<8x256xf32, #tpu.memory_space<vmem>>, vector<8x256xf32>
      %c0_12 = arith.constant 0 : index
      %c0_13 = arith.constant 0 : index
      %13 = vector.load %arg5[%c0_12, %c0_13] : memref<1x256xf32, #tpu.memory_space<vmem>>, vector<1x256xf32>
      %14 = vector.broadcast %13 : vector<1x256xf32> to vector<8x256xf32>
      %15 = arith.addf %12, %14 : vector<8x256xf32>
      %16 = arith.truncf %15 : vector<8x256xf32> to vector<8x256xbf16>
      %c0_14 = arith.constant 0 : index
      %c0_15 = arith.constant 0 : index
      %17 = vector.load %arg6[%c0_14, %c0_15] : memref<8x256xbf16, #tpu.memory_space<vmem>>, vector<8x256xbf16>
      tpu.vector_store %arg6[%c0_14, %c0_15], %16 {strides = array<i32>} : memref<8x256xbf16, #tpu.memory_space<vmem>>, vector<8x256xbf16>,
    } else {
    }
    return
  }
  func.func @transform_0(%arg0: i32, %arg1: i32, %arg2: i32) -> (i32, i32) {
    %c0_i32 = arith.constant 0 : i32
    return %arg0, %arg2 : i32, i32
  }
  func.func @transform_1(%arg0: i32, %arg1: i32, %arg2: i32) -> (i32, i32) {
    %c0_i32 = arith.constant 0 : i32
    return %arg2, %arg1 : i32, i32
  }
  func.func @transform_2(%arg0: i32, %arg1: i32, %arg2: i32) -> (i32, i32) {
    %c0_i32 = arith.constant 0 : i32
    %c0_i32_0 = arith.constant 0 : i32
    return %c0_i32, %arg1 : i32, i32
  }
  func.func @transform_3(%arg0: i32, %arg1: i32, %arg2: i32) -> (i32, i32) {
    %c0_i32 = arith.constant 0 : i32
    return %arg0, %arg1 : i32, i32
  }
}

module attributes {stable_mosaic.version = 11 : i64} {
  func.func @_conv_res_kernel(%arg0: i32, %arg1: i32, %arg2: i32, %arg3: memref<8x768xbf16, #tpu.memory_space<vmem>>, %arg4: memref<768x256xbf16, #tpu.memory_space<vmem>>, %arg5: memref<1x256xf32, #tpu.memory_space<vmem>>, %arg6: memref<8x256xbf16, #tpu.memory_space<vmem>>, %arg7: memref<8x256xbf16, #tpu.memory_space<vmem>>, %arg8: memref<8x256xf32, #tpu.memory_space<vmem>>) attributes {dimension_semantics = [#tpu.dimension_semantics<parallel>, #tpu.dimension_semantics<parallel>, #tpu.dimension_semantics<arbitrary>], iteration_bounds = array<i64: 1, 2, 6>, scalar_prefetch = 0 : i64, scratch_operands = 1 : i64, tpu.core_type = #tpu.core_type<tc>, window_params = [{transform_indices = @transform_0, window_bounds = array<i64: 8, 768>}, {transform_indices = @transform_1, window_bounds = array<i64: 768, 256>}, {transform_indices = @transform_2, window_bounds = array<i64: 1, 256>}, {transform_indices = @transform_3, window_bounds = array<i64: 8, 256>}, {transform_indices = @transform_4, window_bounds = array<i64: 8, 256>}]} {
    %c0_i32 = arith.constant 0 : i32
    %0 = arith.cmpi eq, %arg2, %c0_i32 : i32
    %1 = arith.extui %0 : i1 to i32
    %c0_i32_0 = arith.constant 0 : i32
    %2 = arith.cmpi ne, %1, %c0_i32_0 : i32
    scf.if %2 {
      %cst_9 = arith.constant 0.000000e+00 : f32
      %12 = vector.broadcast %cst_9 : f32 to vector<8x256xf32>
      %c0_10 = arith.constant 0 : index
      %c0_11 = arith.constant 0 : index
      %13 = vector.load %arg8[%c0_10, %c0_11] : memref<8x256xf32, #tpu.memory_space<vmem>>, vector<8x256xf32>
      tpu.vector_store %arg8[%c0_10, %c0_11], %12 {strides = array<i32>} : memref<8x256xf32, #tpu.memory_space<vmem>>, vector<8x256xf32>,
    } else {
    }
    %c0 = arith.constant 0 : index
    %c0_1 = arith.constant 0 : index
    %3 = vector.load %arg8[%c0, %c0_1] : memref<8x256xf32, #tpu.memory_space<vmem>>, vector<8x256xf32>
    %c0_2 = arith.constant 0 : index
    %c0_3 = arith.constant 0 : index
    %4 = vector.load %arg3[%c0_2, %c0_3] : memref<8x768xbf16, #tpu.memory_space<vmem>>, vector<8x768xbf16>
    %c0_4 = arith.constant 0 : index
    %c0_5 = arith.constant 0 : index
    %5 = vector.load %arg4[%c0_4, %c0_5] : memref<768x256xbf16, #tpu.memory_space<vmem>>, vector<768x256xbf16>
    %cst = arith.constant dense<0.000000e+00> : vector<8x256xf32>
    %6 = tpu.matmul %4, %5, %cst {dimension_numbers = #tpu.dot_dimension_numbers<[1], [0], [0], [1], [0, 0, 1, 1], [], []>} : vector<8x768xbf16>, vector<768x256xbf16>, vector<8x256xf32> -> vector<8x256xf32>
    %7 = arith.addf %3, %6 : vector<8x256xf32>
    %c0_6 = arith.constant 0 : index
    %c0_7 = arith.constant 0 : index
    %8 = vector.load %arg8[%c0_6, %c0_7] : memref<8x256xf32, #tpu.memory_space<vmem>>, vector<8x256xf32>
    tpu.vector_store %arg8[%c0_6, %c0_7], %7 {strides = array<i32>} : memref<8x256xf32, #tpu.memory_space<vmem>>, vector<8x256xf32>,
    %c5_i32 = arith.constant 5 : i32
    %9 = arith.cmpi eq, %arg2, %c5_i32 : i32
    %10 = arith.extui %9 : i1 to i32
    %c0_i32_8 = arith.constant 0 : i32
    %11 = arith.cmpi ne, %10, %c0_i32_8 : i32
    scf.if %11 {
      %c0_9 = arith.constant 0 : index
      %c0_10 = arith.constant 0 : index
      %12 = vector.load %arg8[%c0_9, %c0_10] : memref<8x256xf32, #tpu.memory_space<vmem>>, vector<8x256xf32>
      %c0_11 = arith.constant 0 : index
      %c0_12 = arith.constant 0 : index
      %13 = vector.load %arg5[%c0_11, %c0_12] : memref<1x256xf32, #tpu.memory_space<vmem>>, vector<1x256xf32>
      %14 = vector.broadcast %13 : vector<1x256xf32> to vector<8x256xf32>
      %15 = arith.addf %12, %14 : vector<8x256xf32>
      %c0_13 = arith.constant 0 : index
      %c0_14 = arith.constant 0 : index
      %16 = vector.load %arg6[%c0_13, %c0_14] : memref<8x256xbf16, #tpu.memory_space<vmem>>, vector<8x256xbf16>
      %17 = arith.extf %16 : vector<8x256xbf16> to vector<8x256xf32>
      %18 = arith.addf %15, %17 : vector<8x256xf32>
      %cst_15 = arith.constant 0.000000e+00 : f32
      %19 = vector.broadcast %cst_15 : f32 to vector<8x256xf32>
      %20 = arith.maximumf %18, %19 : vector<8x256xf32>
      %21 = arith.truncf %20 : vector<8x256xf32> to vector<8x256xbf16>
      %c0_16 = arith.constant 0 : index
      %c0_17 = arith.constant 0 : index
      %22 = vector.load %arg7[%c0_16, %c0_17] : memref<8x256xbf16, #tpu.memory_space<vmem>>, vector<8x256xbf16>
      tpu.vector_store %arg7[%c0_16, %c0_17], %21 {strides = array<i32>} : memref<8x256xbf16, #tpu.memory_space<vmem>>, vector<8x256xbf16>,
    } else {
    }
    return
  }
  func.func @transform_0(%arg0: i32, %arg1: i32, %arg2: i32) -> (i32, i32) {
    %c0_i32 = arith.constant 0 : i32
    return %arg0, %arg2 : i32, i32
  }
  func.func @transform_1(%arg0: i32, %arg1: i32, %arg2: i32) -> (i32, i32) {
    %c0_i32 = arith.constant 0 : i32
    return %arg2, %arg1 : i32, i32
  }
  func.func @transform_2(%arg0: i32, %arg1: i32, %arg2: i32) -> (i32, i32) {
    %c0_i32 = arith.constant 0 : i32
    %c0_i32_0 = arith.constant 0 : i32
    return %c0_i32, %arg1 : i32, i32
  }
  func.func @transform_3(%arg0: i32, %arg1: i32, %arg2: i32) -> (i32, i32) {
    %c0_i32 = arith.constant 0 : i32
    return %arg0, %arg1 : i32, i32
  }
  func.func @transform_4(%arg0: i32, %arg1: i32, %arg2: i32) -> (i32, i32) {
    %c0_i32 = arith.constant 0 : i32
    return %arg0, %arg1 : i32, i32
  }
}

module attributes {stable_mosaic.version = 11 : i64} {
  func.func @_conv_kernel(%arg0: i32, %arg1: i32, %arg2: i32, %arg3: memref<8x768xbf16, #tpu.memory_space<vmem>>, %arg4: memref<768x256xbf16, #tpu.memory_space<vmem>>, %arg5: memref<1x256xf32, #tpu.memory_space<vmem>>, %arg6: memref<8x256xbf16, #tpu.memory_space<vmem>>, %arg7: memref<8x256xf32, #tpu.memory_space<vmem>>) attributes {dimension_semantics = [#tpu.dimension_semantics<parallel>, #tpu.dimension_semantics<parallel>, #tpu.dimension_semantics<arbitrary>], iteration_bounds = array<i64: 1, 2, 6>, scalar_prefetch = 0 : i64, scratch_operands = 1 : i64, tpu.core_type = #tpu.core_type<tc>, window_params = [{transform_indices = @transform_0, window_bounds = array<i64: 8, 768>}, {transform_indices = @transform_1, window_bounds = array<i64: 768, 256>}, {transform_indices = @transform_2, window_bounds = array<i64: 1, 256>}, {transform_indices = @transform_3, window_bounds = array<i64: 8, 256>}]} {
    %c0_i32 = arith.constant 0 : i32
    %0 = arith.cmpi eq, %arg2, %c0_i32 : i32
    %1 = arith.extui %0 : i1 to i32
    %c0_i32_0 = arith.constant 0 : i32
    %2 = arith.cmpi ne, %1, %c0_i32_0 : i32
    scf.if %2 {
      %cst_9 = arith.constant 0.000000e+00 : f32
      %12 = vector.broadcast %cst_9 : f32 to vector<8x256xf32>
      %c0_10 = arith.constant 0 : index
      %c0_11 = arith.constant 0 : index
      %13 = vector.load %arg7[%c0_10, %c0_11] : memref<8x256xf32, #tpu.memory_space<vmem>>, vector<8x256xf32>
      tpu.vector_store %arg7[%c0_10, %c0_11], %12 {strides = array<i32>} : memref<8x256xf32, #tpu.memory_space<vmem>>, vector<8x256xf32>,
    } else {
    }
    %c0 = arith.constant 0 : index
    %c0_1 = arith.constant 0 : index
    %3 = vector.load %arg7[%c0, %c0_1] : memref<8x256xf32, #tpu.memory_space<vmem>>, vector<8x256xf32>
    %c0_2 = arith.constant 0 : index
    %c0_3 = arith.constant 0 : index
    %4 = vector.load %arg3[%c0_2, %c0_3] : memref<8x768xbf16, #tpu.memory_space<vmem>>, vector<8x768xbf16>
    %c0_4 = arith.constant 0 : index
    %c0_5 = arith.constant 0 : index
    %5 = vector.load %arg4[%c0_4, %c0_5] : memref<768x256xbf16, #tpu.memory_space<vmem>>, vector<768x256xbf16>
    %cst = arith.constant dense<0.000000e+00> : vector<8x256xf32>
    %6 = tpu.matmul %4, %5, %cst {dimension_numbers = #tpu.dot_dimension_numbers<[1], [0], [0], [1], [0, 0, 1, 1], [], []>} : vector<8x768xbf16>, vector<768x256xbf16>, vector<8x256xf32> -> vector<8x256xf32>
    %7 = arith.addf %3, %6 : vector<8x256xf32>
    %c0_6 = arith.constant 0 : index
    %c0_7 = arith.constant 0 : index
    %8 = vector.load %arg7[%c0_6, %c0_7] : memref<8x256xf32, #tpu.memory_space<vmem>>, vector<8x256xf32>
    tpu.vector_store %arg7[%c0_6, %c0_7], %7 {strides = array<i32>} : memref<8x256xf32, #tpu.memory_space<vmem>>, vector<8x256xf32>,
    %c5_i32 = arith.constant 5 : i32
    %9 = arith.cmpi eq, %arg2, %c5_i32 : i32
    %10 = arith.extui %9 : i1 to i32
    %c0_i32_8 = arith.constant 0 : i32
    %11 = arith.cmpi ne, %10, %c0_i32_8 : i32
    scf.if %11 {
      %c0_9 = arith.constant 0 : index
      %c0_10 = arith.constant 0 : index
      %12 = vector.load %arg7[%c0_9, %c0_10] : memref<8x256xf32, #tpu.memory_space<vmem>>, vector<8x256xf32>
      %c0_11 = arith.constant 0 : index
      %c0_12 = arith.constant 0 : index
      %13 = vector.load %arg5[%c0_11, %c0_12] : memref<1x256xf32, #tpu.memory_space<vmem>>, vector<1x256xf32>
      %14 = vector.broadcast %13 : vector<1x256xf32> to vector<8x256xf32>
      %15 = arith.addf %12, %14 : vector<8x256xf32>
      %cst_13 = arith.constant 0.000000e+00 : f32
      %16 = vector.broadcast %cst_13 : f32 to vector<8x256xf32>
      %17 = arith.maximumf %15, %16 : vector<8x256xf32>
      %18 = arith.truncf %17 : vector<8x256xf32> to vector<8x256xbf16>
      %c0_14 = arith.constant 0 : index
      %c0_15 = arith.constant 0 : index
      %19 = vector.load %arg6[%c0_14, %c0_15] : memref<8x256xbf16, #tpu.memory_space<vmem>>, vector<8x256xbf16>
      tpu.vector_store %arg6[%c0_14, %c0_15], %18 {strides = array<i32>} : memref<8x256xbf16, #tpu.memory_space<vmem>>, vector<8x256xbf16>,
    } else {
    }
    return
  }
  func.func @transform_0(%arg0: i32, %arg1: i32, %arg2: i32) -> (i32, i32) {
    %c0_i32 = arith.constant 0 : i32
    return %arg0, %arg2 : i32, i32
  }
  func.func @transform_1(%arg0: i32, %arg1: i32, %arg2: i32) -> (i32, i32) {
    %c0_i32 = arith.constant 0 : i32
    return %arg2, %arg1 : i32, i32
  }
  func.func @transform_2(%arg0: i32, %arg1: i32, %arg2: i32) -> (i32, i32) {
    %c0_i32 = arith.constant 0 : i32
    %c0_i32_0 = arith.constant 0 : i32
    return %c0_i32, %arg1 : i32, i32
  }
  func.func @transform_3(%arg0: i32, %arg1: i32, %arg2: i32) -> (i32, i32) {
    %c0_i32 = arith.constant 0 : i32
    return %arg0, %arg1 : i32, i32
  }
}

module attributes {stable_mosaic.version = 11 : i64} {
  func.func @_conv_kernel(%arg0: i32, %arg1: i32, %arg2: i32, %arg3: memref<8x512xbf16, #tpu.memory_space<vmem>>, %arg4: memref<512x128xbf16, #tpu.memory_space<vmem>>, %arg5: memref<1x128xf32, #tpu.memory_space<vmem>>, %arg6: memref<8x128xf32, #tpu.memory_space<vmem>>, %arg7: memref<8x128xf32, #tpu.memory_space<vmem>>) attributes {dimension_semantics = [#tpu.dimension_semantics<parallel>, #tpu.dimension_semantics<parallel>, #tpu.dimension_semantics<arbitrary>], iteration_bounds = array<i64: 1, 1, 1>, scalar_prefetch = 0 : i64, scratch_operands = 1 : i64, tpu.core_type = #tpu.core_type<tc>, window_params = [{transform_indices = @transform_0, window_bounds = array<i64: 8, 512>}, {transform_indices = @transform_1, window_bounds = array<i64: 512, 128>}, {transform_indices = @transform_2, window_bounds = array<i64: 1, 128>}, {transform_indices = @transform_3, window_bounds = array<i64: 8, 128>}]} {
    %c0_i32 = arith.constant 0 : i32
    %0 = arith.cmpi eq, %arg2, %c0_i32 : i32
    %1 = arith.extui %0 : i1 to i32
    %c0_i32_0 = arith.constant 0 : i32
    %2 = arith.cmpi ne, %1, %c0_i32_0 : i32
    scf.if %2 {
      %cst_10 = arith.constant 0.000000e+00 : f32
      %12 = vector.broadcast %cst_10 : f32 to vector<8x128xf32>
      %c0_11 = arith.constant 0 : index
      %c0_12 = arith.constant 0 : index
      %13 = vector.load %arg7[%c0_11, %c0_12] : memref<8x128xf32, #tpu.memory_space<vmem>>, vector<8x128xf32>
      tpu.vector_store %arg7[%c0_11, %c0_12], %12 {strides = array<i32>} : memref<8x128xf32, #tpu.memory_space<vmem>>, vector<8x128xf32>,
    } else {
    }
    %c0 = arith.constant 0 : index
    %c0_1 = arith.constant 0 : index
    %3 = vector.load %arg7[%c0, %c0_1] : memref<8x128xf32, #tpu.memory_space<vmem>>, vector<8x128xf32>
    %c0_2 = arith.constant 0 : index
    %c0_3 = arith.constant 0 : index
    %4 = vector.load %arg3[%c0_2, %c0_3] : memref<8x512xbf16, #tpu.memory_space<vmem>>, vector<8x512xbf16>
    %c0_4 = arith.constant 0 : index
    %c0_5 = arith.constant 0 : index
    %5 = vector.load %arg4[%c0_4, %c0_5] : memref<512x128xbf16, #tpu.memory_space<vmem>>, vector<512x128xbf16>
    %cst = arith.constant dense<0.000000e+00> : vector<8x128xf32>
    %6 = tpu.matmul %4, %5, %cst {dimension_numbers = #tpu.dot_dimension_numbers<[1], [0], [0], [1], [0, 0, 1, 1], [], []>} : vector<8x512xbf16>, vector<512x128xbf16>, vector<8x128xf32> -> vector<8x128xf32>
    %7 = arith.addf %3, %6 : vector<8x128xf32>
    %c0_6 = arith.constant 0 : index
    %c0_7 = arith.constant 0 : index
    %8 = vector.load %arg7[%c0_6, %c0_7] : memref<8x128xf32, #tpu.memory_space<vmem>>, vector<8x128xf32>
    tpu.vector_store %arg7[%c0_6, %c0_7], %7 {strides = array<i32>} : memref<8x128xf32, #tpu.memory_space<vmem>>, vector<8x128xf32>,
    %c0_i32_8 = arith.constant 0 : i32
    %9 = arith.cmpi eq, %arg2, %c0_i32_8 : i32
    %10 = arith.extui %9 : i1 to i32
    %c0_i32_9 = arith.constant 0 : i32
    %11 = arith.cmpi ne, %10, %c0_i32_9 : i32
    scf.if %11 {
      %c0_10 = arith.constant 0 : index
      %c0_11 = arith.constant 0 : index
      %12 = vector.load %arg7[%c0_10, %c0_11] : memref<8x128xf32, #tpu.memory_space<vmem>>, vector<8x128xf32>
      %c0_12 = arith.constant 0 : index
      %c0_13 = arith.constant 0 : index
      %13 = vector.load %arg5[%c0_12, %c0_13] : memref<1x128xf32, #tpu.memory_space<vmem>>, vector<1x128xf32>
      %14 = vector.broadcast %13 : vector<1x128xf32> to vector<8x128xf32>
      %15 = arith.addf %12, %14 : vector<8x128xf32>
      %c0_14 = arith.constant 0 : index
      %c0_15 = arith.constant 0 : index
      %16 = vector.load %arg6[%c0_14, %c0_15] : memref<8x128xf32, #tpu.memory_space<vmem>>, vector<8x128xf32>
      tpu.vector_store %arg6[%c0_14, %c0_15], %15 {strides = array<i32>} : memref<8x128xf32, #tpu.memory_space<vmem>>, vector<8x128xf32>,
    } else {
    }
    return
  }
  func.func @transform_0(%arg0: i32, %arg1: i32, %arg2: i32) -> (i32, i32) {
    %c0_i32 = arith.constant 0 : i32
    return %arg0, %arg2 : i32, i32
  }
  func.func @transform_1(%arg0: i32, %arg1: i32, %arg2: i32) -> (i32, i32) {
    %c0_i32 = arith.constant 0 : i32
    return %arg2, %arg1 : i32, i32
  }
  func.func @transform_2(%arg0: i32, %arg1: i32, %arg2: i32) -> (i32, i32) {
    %c0_i32 = arith.constant 0 : i32
    %c0_i32_0 = arith.constant 0 : i32
    return %c0_i32, %arg1 : i32, i32
  }
  func.func @transform_3(%arg0: i32, %arg1: i32, %arg2: i32) -> (i32, i32) {
    %c0_i32 = arith.constant 0 : i32
    return %arg0, %arg1 : i32, i32
  }
}

</mosaic_0001>

<bundles_post_ra>
// kernel: forward.21
= control target key start
LH: loop header
LB: loop body
LE: loop exit
PB: predicated region body
PF: predicated region fallthrough
CT: control target
= control target key end

     0   :  { %8 = vsyncpa [#allocation4], 0  ;;  %s1393_s0 = inlined_call_operand.vmem [shape: bf16[512,256], index: 0, kind: input, shape index: {}]   ;;  %s1394_s1 = inlined_call_operand.hbm [shape: bf16[256,128], index: 1, kind: input, shape index: {}]   ;;  %s1395_s2 = inlined_call_operand.hbm [shape: f32[1,128], index: 2, kind: input, shape index: {}]   ;;  %s1396_s3 = inlined_call_operand.vmem [shape: bf16[512,128], index: 3, kind: output, shape index: {}]  }
   0x1   :  { %9 = vsyncpa [#allocation6], 0  ;;  %s1262_s12 = smov 0   ;;  %s1264_s13 = smov 0  }
   0x2   :  { %s1266_s14 = smov 0  }
   0x3 LB: > { %s858_s15 = sadd.s32 4294967295, %s1236_s14   ;;  %s34_s16 = sadd.s32 1, %s1232_s13  ;;  %s1236_s14 = sphi %s1266_s14, %s15_s14   ;;  %s1232_s13 = sphi %s1264_s13, %s1400_s13   ;;  %s1228_s12 = sphi %s1262_s12, %s1399_s12  }
   0x4   : > { %p36_p0 = scmp.ge.s32.totalorder %s34_s16, 4  ;;  %p860_p1 = scmp.ge.s32.totalorder %s1236_s14, 1 }
   0x5   : > { %p149_p2 = scmp.lt.s32.totalorder %s1236_s14, 5  ;;  %p1287_p4 = scmp.eq.s32.totalorder %s858_s15, 0 }
   0x6   : > { %s1402_s16 = smov (%p36_p0, %s34_s16), 0  ;;  %s164_s21 = sshll.u32 %s1394_s1, 4  ;;  %s165_s21 = int_to_ptr.hbm [resolvable:$true] %s164_s21 }
   0x7   : > { %p1283_p3 = pnand %p860_p1, %p149_p2  ;;  %s1238_s22 = smov [#allocation3]  }
   0x8   : > { %s166_s23 = sshll.u32 %s1238_s22, 4  ;;  %s180_s26 = sshll.u32 %s1395_s2, 4  ;;  %s167_s23 = int_to_ptr.vmem [resolvable:$true] %s166_s23  ;;  %s181_s26 = int_to_ptr.hbm [resolvable:$true] %s180_s26 }
   0x9   : > { %p1106_p5 = pneg %p1283_p3  ;;  %s1239_s27 = smov 64  }
   0xa   : > { %s1240_s28 = smov 4   ;;  %s1241_s29 = smov [#allocation5]  }
   0xb   : > { %p1107_p6 = pnand %p1287_p4, %p1106_p5  ;;  %s182_s30 = sshll.u32 %s1241_s29, 4  ;;  %s183_s30 = int_to_ptr.vmem [resolvable:$true] %s182_s30 }
   0xc   : > { %210 = sbr.rel (%p1283_p3) target bundleno = 250 (0xfa), region = 32 }
   0xd   : > { %1109 = dma.hbm_to_vmem [thread:$0]  (!%p1107_p6), %s165_s21, 2048, %s167_s23, [#allocation4], %s1239_s27, %s1239_s27, %s1240_s28  }
   0xe   : > { %1112 = dma.hbm_to_vmem [thread:$0]  (!%p1107_p6), %s181_s26, 16, %s183_s30, [#allocation6]  }
  0x11   : > { %1219 = dma.done.wait (%p1287_p4), [#allocation4], 2048  }
  0x12   : > { %1221 = vsyncadd (%p1287_p4), [#allocation4], 4294965248 }
  0x13   : > { %1223 = dma.done.wait (%p1287_p4), [#allocation6], 16  }
  0x14   : > { %1225 = vsyncadd (%p1287_p4), [#allocation6], 4294967280  ;;  %v1026_v0 = vld [vmem:[#allocation3 + $0x38] sm:$0xff]  ;;  %v1025_v2 = vld [vmem:[#allocation3 + $0x30] sm:$0xff]  ;;  %s867_s4 = sshll.u32 %s1228_s12, 4 }
  0x15   : > { %v1034_v1 = vld [vmem:[#allocation3 + $0x78] sm:$0xff]  ;;  %530 = vmatpush.bf16.msra.mxu0 %v1026_v0  ;;  %1082 = vmatpush.bf16.msra.mxu2 %v1026_v0  ;;  %v1033_v3 = vld [vmem:[#allocation3 + $0x70] sm:$0xff]  ;;  %v1024_v4 = vld [vmem:[#allocation3 + $0x28] sm:$0xff]  ;;  %p250_p7 = scmp.lt.s32.totalorder %s867_s4, 63 }
  0x16   : > { %579 = vmatpush.bf16.msra.mxu1 %v1034_v1  ;;  %1090 = vmatpush.bf16.msra.mxu3 %v1034_v1  ;;  %v1032_v5 = vld [vmem:[#allocation3 + $0x68] sm:$0xff]  ;;  %v1023_v6 = vld [vmem:[#allocation3 + $0x20] sm:$0xff]  ;;  %v1022_v8 = vld [vmem:[#allocation3 + $0x18] sm:$0xff] }
  0x17   : > { %v1031_v7 = vld [vmem:[#allocation3 + $0x60] sm:$0xff]  ;;  %v1030_v9 = vld [vmem:[#allocation3 + $0x58] sm:$0xff]  ;;  %s1404_s4 = smov (!%p250_p7, %s867_s4), 63  ;;  %v1021_v10 = vld [vmem:[#allocation3 + $0x10] sm:$0xff] }
  0x18   : > { %v1029_v11 = vld [vmem:[#allocation3 + $0x50] sm:$0xff]  ;;  %s1002_s5 = sshll.u32 %s1404_s4, 3  ;;  %v1020_v12 = vld [vmem:[#allocation3 + $0x8] sm:$0xff]  ;;  %v1019_v14 = vld [vmem:[#allocation3] sm:$0xff]  ;;  %s871_s9 = sshll.u32 %s1404_s4, 2 }
  0x19   : > { %531 = vmatpush.bf16.msra.mxu0 %v1025_v2  ;;  %1083 = vmatpush.bf16.msra.mxu2 %v1025_v2  ;;  %s1318_s8 = scalar_lea.vmem %s1393_s0, %s1002_s5  ;;  %v1028_v13 = vld [vmem:[#allocation3 + $0x48] sm:$0xff]  ;;  %v1027_v15 = vld [vmem:[#allocation3 + $0x40] sm:$0xff]  ;;  %s1360_s12 = scalar_lea.vmem %s1396_s3, %s871_s9 }
  0x1a   : > { %580 = vmatpush.bf16.msra.mxu1 %v1033_v3  ;;  %1091 = vmatpush.bf16.msra.mxu3 %v1033_v3  ;;  %v874_v16 = vld [vmem:[%s1318_s8] sm:$0xf]  ;;  %v1004_v17 = vld [vmem:[%s1318_s8 + $0x4] sm:$0xf0]  ;;  %v1003_v20 = vld [vmem:[%s1318_s8 + $0x4] sm:$0xf] }
  0x1b   : > { %v906_v18 = vld [vmem:[%s1318_s8 + $0x40] sm:$0xf]  ;;  %v1012_v19 = vld [vmem:[%s1318_s8 + $0x44] sm:$0xf0]  ;;  %v876_v21 = vld [vmem:[%s1318_s8 + $0x8] sm:$0xf0]  ;;  %v875_v24 = vor.u32 %v1004_v17, %v874_v16 }
  0x1c   : > { %v1011_v22 = vld [vmem:[%s1318_s8 + $0x44] sm:$0xf]  ;;  %v908_v23 = vld [vmem:[%s1318_s8 + $0x48] sm:$0xf0]  ;;  %v907_v25 = vor.u32 %v1012_v19, %v906_v18  ;;  %v879_v26 = vor.u32 %v1003_v20, %v876_v21  ;;  %v882_v28 = vld [vmem:[%s1318_s8 + $0x10] sm:$0xf] }
  0x1d   : > { %532 = vmatpush.bf16.msra.mxu0 %v1024_v4  ;;  %1084 = vmatpush.bf16.msra.mxu2 %v1024_v4  ;;  %v911_v27 = vor.u32 %v1011_v22, %v908_v23  ;;  %v1006_v29 = vld [vmem:[%s1318_s8 + $0x14] sm:$0xf0]  ;;  %v914_v30 = vld [vmem:[%s1318_s8 + $0x50] sm:$0xf]  ;;  %v1005_v32 = vld [vmem:[%s1318_s8 + $0x14] sm:$0xf] }
  0x1e   : > { %581 = vmatpush.bf16.msra.mxu1 %v1032_v5  ;;  %1092 = vmatpush.bf16.msra.mxu3 %v1032_v5  ;;  %v1014_v31 = vld [vmem:[%s1318_s8 + $0x54] sm:$0xf0]  ;;  %v884_v33 = vld [vmem:[%s1318_s8 + $0x18] sm:$0xf0]  ;;  %v1013_v34 = vld [vmem:[%s1318_s8 + $0x54] sm:$0xf]  ;;  %v883_v36 = vor.u32 %v1006_v29, %v882_v28 }
  0x1f   : > { %v916_v35 = vld [vmem:[%s1318_s8 + $0x58] sm:$0xf0]  ;;  %v915_v37 = vor.u32 %v1014_v31, %v914_v30  ;;  %v887_v38 = vor.u32 %v1005_v32, %v884_v33  ;;  %v890_v40 = vld [vmem:[%s1318_s8 + $0x20] sm:$0xf]  ;;  %v1008_v41 = vld [vmem:[%s1318_s8 + $0x24] sm:$0xf0] }
  0x20   : > { %v919_v39 = vor.u32 %v1013_v34, %v916_v35  ;;  %v922_v42 = vld [vmem:[%s1318_s8 + $0x60] sm:$0xf]  ;;  %v1016_v43 = vld [vmem:[%s1318_s8 + $0x64] sm:$0xf0]  ;;  %v1007_v44 = vld [vmem:[%s1318_s8 + $0x24] sm:$0xf]  ;;  %v891_v48 = vor.u32 %v1008_v41, %v890_v40 }
  0x21   : > { %533 = vmatpush.bf16.msra.mxu0 %v1023_v6  ;;  %1085 = vmatpush.bf16.msra.mxu2 %v1023_v6  ;;  %v892_v45 = vld [vmem:[%s1318_s8 + $0x28] sm:$0xf0]  ;;  %v1015_v46 = vld [vmem:[%s1318_s8 + $0x64] sm:$0xf]  ;;  %v923_v49 = vor.u32 %v1016_v43, %v922_v42  ;;  %v898_v52 = vld [vmem:[%s1318_s8 + $0x30] sm:$0xf] }
  0x22   : > { %582 = vmatpush.bf16.msra.mxu1 %v1031_v7  ;;  %1093 = vmatpush.bf16.msra.mxu3 %v1031_v7  ;;  %v924_v47 = vld [vmem:[%s1318_s8 + $0x68] sm:$0xf0]  ;;  %v895_v50 = vor.u32 %v1007_v44, %v892_v45  ;;  %v1010_v53 = vld [vmem:[%s1318_s8 + $0x34] sm:$0xf0]  ;;  %v930_v54 = vld [vmem:[%s1318_s8 + $0x70] sm:$0xf] }
  0x23   : > { %v927_v51 = vor.u32 %v1015_v46, %v924_v47  ;;  %v1018_v55 = vld [vmem:[%s1318_s8 + $0x74] sm:$0xf0]  ;;  %v1009_v56 = vld [vmem:[%s1318_s8 + $0x34] sm:$0xf]  ;;  %v900_v57 = vld [vmem:[%s1318_s8 + $0x38] sm:$0xf0]  ;;  %v899_v60 = vor.u32 %v1010_v53, %v898_v52 }
  0x24   : > { %v1017_v58 = vld [vmem:[%s1318_s8 + $0x74] sm:$0xf]  ;;  %v932_v59 = vld [vmem:[%s1318_s8 + $0x78] sm:$0xf0]  ;;  %v931_v61 = vor.u32 %v1018_v55, %v930_v54  ;;  %v903_v62 = vor.u32 %v1009_v56, %v900_v57  ;;  %v1352_v3 = vld [vmem:[#allocation5] ss:$0 sm:$0xff] }
  0x25   : > { %534 = vmatpush.bf16.msra.mxu0 %v1022_v8  ;;  %1086 = vmatpush.bf16.msra.mxu2 %v1022_v8  ;;  %v935_v63 = vor.u32 %v1017_v58, %v932_v59 }
  0x26   : > { %583 = vmatpush.bf16.msra.mxu1 %v1030_v9  ;;  %1094 = vmatpush.bf16.msra.mxu3 %v1030_v9 }
  0x29   : > { %535 = vmatpush.bf16.msra.mxu0 %v1021_v10  ;;  %1087 = vmatpush.bf16.msra.mxu2 %v1021_v10 }
  0x2a   : > { %584 = vmatpush.bf16.msra.mxu1 %v1029_v11  ;;  %1095 = vmatpush.bf16.msra.mxu3 %v1029_v11 }
  0x2d   : > { %536 = vmatpush.bf16.msra.mxu0 %v1020_v12  ;;  %1088 = vmatpush.bf16.msra.mxu2 %v1020_v12 }
  0x2e   : > { %585 = vmatpush.bf16.msra.mxu1 %v1028_v13  ;;  %1096 = vmatpush.bf16.msra.mxu3 %v1028_v13 }
  0x31   : > { %537 = vmatpush.bf16.msra.mxu0 %v1019_v14  ;;  %1089 = vmatpush.bf16.msra.mxu2 %v1019_v14 }
  0x32   : > { %586 = vmatpush.bf16.msra.mxu1 %v1027_v15  ;;  %1097 = vmatpush.bf16.msra.mxu3 %v1027_v15 }
  0x34   : > { %538 = vmatmul.bf16.vlgmr.msra.gmra.mxu0 %v875_v24  ;;  %558 = vmatmul.bf16.vlgmr.msra.gmra.mxu2 %v907_v25 }
  0x35   : > { %587 = vmatmul.bf16.vlgmr.msra.gmra.mxu1 %v879_v26  ;;  %607 = vmatmul.bf16.vlgmr.msra.gmra.mxu3 %v911_v27 }
  0x44   : > { %543 = vmatmul.bf16.gmra.mxu0 %v883_v36  ;;  %563 = vmatmul.bf16.gmra.mxu2 %v915_v37 }
  0x45   : > { %592 = vmatmul.bf16.gmra.mxu1 %v887_v38  ;;  %612 = vmatmul.bf16.gmra.mxu3 %v919_v39 }
  0x54   : > { %548 = vmatmul.bf16.gmra.mxu0 %v891_v48  ;;  %568 = vmatmul.bf16.gmra.mxu2 %v923_v49 }
  0x55   : > { %597 = vmatmul.bf16.gmra.mxu1 %v895_v50  ;;  %617 = vmatmul.bf16.gmra.mxu3 %v927_v51 }
  0x64   : > { %553 = vmatmul.bf16.gmra.mxu0 %v899_v60  ;;  %573 = vmatmul.bf16.gmra.mxu2 %v931_v61 }
  0x65   : > { %602 = vmatmul.bf16.gmra.mxu1 %v903_v62  ;;  %622 = vmatmul.bf16.gmra.mxu3 %v935_v63 }
  0xb1   : > { %v539_v0 = vpop.f32.mrf.mxu0 }
  0xb2   : > { %v588_v1 = vpop.f32.mrf.mxu1 }
  0xb3   : > { %v589_v2 = vadd.f32 %v588_v1, %v539_v0 }
  0xb5   : > { %v683_v8 = vadd.f32 %v1352_v3, %v589_v2 }
  0xb7   : > { %v559_v4 = vpop.f32.mrf.mxu2  ;;  %v699_v12 = vmax.f32 %v683_v8, 0.0 }
  0xb8   : > { %v608_v5 = vpop.f32.mrf.mxu3 }
  0xb9   : > { %v541_v6 = vpop.f32.mrf.mxu0  ;;  %v609_v10 = vadd.f32 %v608_v5, %v559_v4 }
  0xba   : > { %v590_v7 = vpop.f32.mrf.mxu1 }
  0xbb   : > { %v591_v9 = vadd.f32 %v590_v7, %v541_v6  ;;  %v691_v16 = vadd.f32 %v1352_v3, %v609_v10 }
  0xbd   : > { %v684_v11 = vadd.f32 %v1352_v3, %v591_v9  ;;  %v707_v22 = vmax.f32 %v691_v16, 0.0 }
  0xbf   : > { %v700_v13 = vmax.f32 %v684_v11, 0.0  ;;  %v561_v14 = vpop.f32.mrf.mxu2 }
  0xc0   : > { %v610_v15 = vpop.f32.mrf.mxu3 }
  0xc1   : > { %v1038_v17 = vpack.c.bf16 %v700_v13, %v699_v12  ;;  %v611_v18 = vadd.f32 %v610_v15, %v561_v14  ;;  %v544_v19 = vpop.f32.mrf.mxu0 }
  0xc2   : > { %v593_v20 = vpop.f32.mrf.mxu1 }
  0xc3   : > { %1039 = vst [vmem:[%s1360_s12] sm:$0xff] %v1038_v17   ;;  %v692_v21 = vadd.f32 %v1352_v3, %v611_v18  ;;  %v594_v25 = vadd.f32 %v593_v20, %v544_v19 }
  0xc5   : > { %v708_v23 = vmax.f32 %v692_v21, 0.0  ;;  %v685_v30 = vadd.f32 %v1352_v3, %v594_v25 }
  0xc7   : > { %v1058_v24 = vpack.c.bf16 %v708_v23, %v707_v22  ;;  %v564_v26 = vpop.f32.mrf.mxu2  ;;  %v701_v34 = vmax.f32 %v685_v30, 0.0 }
  0xc8   : > { %v613_v27 = vpop.f32.mrf.mxu3 }
  0xc9   : > { %1078 = vst [vmem:[%s1360_s12 + $0x20] sm:$0xff] %v1058_v24   ;;  %v546_v28 = vpop.f32.mrf.mxu0  ;;  %v614_v32 = vadd.f32 %v613_v27, %v564_v26 }
  0xca   : > { %v595_v29 = vpop.f32.mrf.mxu1 }
  0xcb   : > { %v596_v31 = vadd.f32 %v595_v29, %v546_v28  ;;  %v693_v38 = vadd.f32 %v1352_v3, %v614_v32 }
  0xcd   : > { %v686_v33 = vadd.f32 %v1352_v3, %v596_v31  ;;  %v709_v44 = vmax.f32 %v693_v38, 0.0 }
  0xcf   : > { %v702_v35 = vmax.f32 %v686_v33, 0.0  ;;  %v566_v36 = vpop.f32.mrf.mxu2 }
  0xd0   : > { %v615_v37 = vpop.f32.mrf.mxu3 }
  0xd1   : > { %v1043_v39 = vpack.c.bf16 %v702_v35, %v701_v34  ;;  %v616_v40 = vadd.f32 %v615_v37, %v566_v36  ;;  %v549_v41 = vpop.f32.mrf.mxu0 }
  0xd2   : > { %v598_v42 = vpop.f32.mrf.mxu1 }
  0xd3   : > { %1075 = vst [vmem:[%s1360_s12 + $0x8] sm:$0xff] %v1043_v39   ;;  %v694_v43 = vadd.f32 %v1352_v3, %v616_v40  ;;  %v599_v47 = vadd.f32 %v598_v42, %v549_v41 }
  0xd5   : > { %v710_v45 = vmax.f32 %v694_v43, 0.0  ;;  %v687_v52 = vadd.f32 %v1352_v3, %v599_v47 }
  0xd7   : > { %v1063_v46 = vpack.c.bf16 %v710_v45, %v709_v44  ;;  %v569_v48 = vpop.f32.mrf.mxu2  ;;  %v703_v56 = vmax.f32 %v687_v52, 0.0 }
  0xd8   : > { %v618_v49 = vpop.f32.mrf.mxu3 }
  0xd9   : > { %1079 = vst [vmem:[%s1360_s12 + $0x28] sm:$0xff] %v1063_v46   ;;  %v551_v50 = vpop.f32.mrf.mxu0  ;;  %v619_v54 = vadd.f32 %v618_v49, %v569_v48 }
  0xda   : > { %v600_v51 = vpop.f32.mrf.mxu1 }
  0xdb   : > { %v601_v53 = vadd.f32 %v600_v51, %v551_v50  ;;  %v695_v60 = vadd.f32 %v1352_v3, %v619_v54 }
  0xdd   : > { %v688_v55 = vadd.f32 %v1352_v3, %v601_v53  ;;  %v711_v2 = vmax.f32 %v695_v60, 0.0 }
  0xdf   : > { %v704_v57 = vmax.f32 %v688_v55, 0.0  ;;  %v571_v58 = vpop.f32.mrf.mxu2 }
  0xe0   : > { %v620_v59 = vpop.f32.mrf.mxu3 }
  0xe1   : > { %v1048_v61 = vpack.c.bf16 %v704_v57, %v703_v56  ;;  %v621_v62 = vadd.f32 %v620_v59, %v571_v58  ;;  %v554_v63 = vpop.f32.mrf.mxu0 }
  0xe2   : > { %v603_v0 = vpop.f32.mrf.mxu1 }
  0xe3   : > { %1076 = vst [vmem:[%s1360_s12 + $0x10] sm:$0xff] %v1048_v61   ;;  %v696_v1 = vadd.f32 %v1352_v3, %v621_v62  ;;  %v604_v6 = vadd.f32 %v603_v0, %v554_v63 }
  0xe5   : > { %v712_v4 = vmax.f32 %v696_v1, 0.0  ;;  %v689_v11 = vadd.f32 %v1352_v3, %v604_v6 }
  0xe7   : > { %v1068_v5 = vpack.c.bf16 %v712_v4, %v711_v2  ;;  %v574_v7 = vpop.f32.mrf.mxu2  ;;  %v705_v15 = vmax.f32 %v689_v11, 0.0 }
  0xe8   : > { %v623_v8 = vpop.f32.mrf.mxu3 }
  0xe9   : > { %1080 = vst [vmem:[%s1360_s12 + $0x30] sm:$0xff] %v1068_v5   ;;  %v556_v9 = vpop.f32.mrf.mxu0  ;;  %v624_v13 = vadd.f32 %v623_v8, %v574_v7 }
  0xea   : > { %v605_v10 = vpop.f32.mrf.mxu1 }
  0xeb   : > { %v606_v12 = vadd.f32 %v605_v10, %v556_v9  ;;  %v697_v19 = vadd.f32 %v1352_v3, %v624_v13 }
  0xed   : > { %v690_v14 = vadd.f32 %v1352_v3, %v606_v12  ;;  %v713_v23 = vmax.f32 %v697_v19, 0.0 }
  0xef   : > { %v706_v16 = vmax.f32 %v690_v14, 0.0  ;;  %v576_v17 = vpop.f32.mrf.mxu2 }
  0xf0   : > { %v625_v18 = vpop.f32.mrf.mxu3 }
  0xf1   : > { %v1053_v20 = vpack.c.bf16 %v706_v16, %v705_v15  ;;  %v626_v21 = vadd.f32 %v625_v18, %v576_v17 }
  0xf3   : > { %1077 = vst [vmem:[%s1360_s12 + $0x18] sm:$0xff] %v1053_v20   ;;  %v698_v22 = vadd.f32 %v1352_v3, %v626_v21 }
  0xf5   : > { %v714_v24 = vmax.f32 %v698_v22, 0.0 }
  0xf7   : > { %v1073_v25 = vpack.c.bf16 %v714_v24, %v713_v23 }
  0xf9   : > { %1081 = vst [vmem:[%s1360_s12 + $0x38] sm:$0xff] %v1073_v25  }
  0xfa PF: > { %s15_s14 = sadd.s32 1, %s1236_s14   ;;  %s1399_s12 = smov %s1232_s13 }
  0xfb   : > { %p12_p8 = scmp.ge.s32.totalorder %s15_s14, 6   ;;  %s1400_s13 = smov %s1402_s16 }
  0xfd   :  { %14 = sbr.rel (!%p12_p8) target bundleno = 3 (0x3), region = 81 }
 0x102   :  { %775 = vsyncpa [#allocation4], 1 }
 0x103   :  { %777 = vsyncpa [#allocation4 + $0x1], 1 }
 0x104   :  { %778 = vsyncpa [#allocation6], 1 }

// kernel: forward.22
= control target key start
LH: loop header
LB: loop body
LE: loop exit
PB: predicated region body
PF: predicated region fallthrough
CT: control target
= control target key end

     0   :  { %s1258_s12 = smov 0   ;;  %s1260_s13 = smov 0   ;;  %s1431_s0 = inlined_call_operand.vmem [shape: bf16[128,1152], index: 0, kind: input, shape index: {}]   ;;  %s1432_s1 = inlined_call_operand.vmem [shape: bf16[1152,128], index: 1, kind: input, shape index: {}]   ;;  %s1433_s2 = inlined_call_operand.vmem [shape: f32[1,128], index: 2, kind: input, shape index: {}]   ;;  %s1434_s3 = inlined_call_operand.vmem [shape: bf16[128,128], index: 3, kind: output, shape index: {}]  }
   0x1   :  { %s1262_s14 = smov 0   ;;  %s1264_s15 = smov 0  }
   0x2   :  { %s1266_s16 = smov 0   ;;  %s1268_s17 = smov 0  }
   0x3   :  { %s1270_s18 = smov 0  }
   0x4 LB: > { %s25_s19 = sadd.s32 1, %s1227_s16  ;;  %s32_s20 = sadd.s32 1, %s1231_s17  ;;  %s1235_s18 = sphi %s1270_s18, %s13_s18   ;;  %s1231_s17 = sphi %s1268_s17, %s1440_s17   ;;  %s1227_s16 = sphi %s1266_s16, %s1439_s16   ;;  %s1223_s15 = sphi %s1264_s15, %s1438_s15   ;;  %s1219_s14 = sphi %s1262_s14, %s1437_s14   ;;  %s1215_s13 = sphi %s1260_s13, %s1436_s13   ;;  %s1211_s12 = sphi %s1258_s12, %s1435_s12  }
   0x5   : > { %p26_p0 = scmp.ge.s32.totalorder %s25_s19, 3  ;;  %p48_p1 = scmp.ne.s32.totalorder %s1215_s13, %s1211_s12 }
   0x6   : > { %p49_p2 = scmp.eq.s32.totalorder %s1235_s18, 0  ;;  %s41_s24 = sadd.s32 1, %s1215_s13 }
   0x7   : > { %s1442_s19 = smov (%p26_p0, %s25_s19), 0  ;;  %s1444_s20 = smov (!%p26_p0, %s32_s20), %s1231_s17 }
   0x8   : > { %p50_p3 = por %p49_p2, %p48_p1  ;;  %p34_p4 = scmp.ge.s32.totalorder %s1444_s20, 2 }
   0x9   : > { %s37_s21 = ssub.s32 %s1227_s16, %s1442_s19  ;;  %p881_p6 = scmp.ge.s32.totalorder %s1235_s18, 6 }
   0xa   : > { %s1446_s20 = smov (%p34_p4, %s1444_s20), 0 }
   0xb   : > { %s36_s22 = ssub.s32 %s1231_s17, %s1446_s20  ;;  %162 = sbr.rel (%p881_p6) target bundleno = 41 (0x29), region = 20 }
   0xc   : > { %s38_s23 = sor.u32 %s37_s21, %s36_s22 }
   0xd   : > { %p39_p5 = scmp.eq.s32.totalorder %s38_s23, 0 }
   0xf   : > { %s1309_s25 = scalar_select %p39_p5, %s1215_s13, %s41_s24  }
  0x10   : > { %165 = sbr.rel (!%p50_p3) target bundleno = 41 (0x29), region = 24  ;;  %s167_s26 = sand.u32 (%p50_p3), 1, %s1215_s13  }
  0x11   : > { %s171_s27 = smul.u32 (%p50_p3), 3, %s1227_s16 }
  0x12   : > { %s1120_s28 = smul.u32 (%p50_p3), 96, %s167_s26 }
  0x13   : > { %s1121_s29 = smul.u32 (%p50_p3), 72, %s1231_s17 }
  0x14   : > { %s169_s8 = scalar_lea.vmem (%p50_p3), [#allocation3], %s1120_s28 }
  0x15   : > { %s173_s30 = sadd.s32 %s1121_s29, %s171_s27 }
  0x16   : > { %s884_s4 = sshll.u32 %s173_s30, 2 }
  0x17   : > { %s1318_s7 = scalar_lea.vmem %s1431_s0, %s884_s4 }
  0x18   : > { %v190_v0 = vld [vmem:[%s1318_s7] sm:$0xff]  ;;  %v194_v2 = vld [vmem:[%s1318_s7 + $0x48] sm:$0xff]  ;;  %v198_v4 = vld [vmem:[%s1318_s7 + $0x90] sm:$0xff] }
  0x19   : > { %v192_v1 = vld [vmem:[%s1318_s7 + $0x24] sm:$0xff]  ;;  %191 = vst [vmem:[%s169_s8] sm:$0xff] %v190_v0  ;;  %v196_v3 = vld [vmem:[%s1318_s7 + $0x6c] sm:$0xff]  ;;  %v200_v5 = vld [vmem:[%s1318_s7 + $0xb4] sm:$0xff] }
  0x1a   : > { %193 = vst [vmem:[%s169_s8 + $0xc] sm:$0xff] %v192_v1  ;;  %v202_v6 = vld [vmem:[%s1318_s7 + $0xd8] sm:$0xff]  ;;  %v885_v8 = vld [vmem:[%s1318_s7 + $0x8] sm:$0xf]  ;;  %v887_v9 = vld [vmem:[%s1318_s7 + $0x2c] sm:$0xf] }
  0x1b   : > { %195 = vst [vmem:[%s169_s8 + $0x18] sm:$0xff] %v194_v2  ;;  %v204_v7 = vld [vmem:[%s1318_s7 + $0xfc] sm:$0xff]  ;;  %v889_v10 = vld [vmem:[%s1318_s7 + $0x50] sm:$0xf]  ;;  %v891_v11 = vld [vmem:[%s1318_s7 + $0x74] sm:$0xf] }
  0x1c   : > { %197 = vst [vmem:[%s169_s8 + $0x24] sm:$0xff] %v196_v3  ;;  %v893_v12 = vld [vmem:[%s1318_s7 + $0x98] sm:$0xf]  ;;  %v895_v13 = vld [vmem:[%s1318_s7 + $0xbc] sm:$0xf] }
  0x1d   : > { %199 = vst [vmem:[%s169_s8 + $0x30] sm:$0xff] %v198_v4  ;;  %v897_v14 = vld [vmem:[%s1318_s7 + $0xe0] sm:$0xf]  ;;  %v899_v15 = vld [vmem:[%s1318_s7 + $0x104] sm:$0xf] }
  0x1e   : > { %201 = vst [vmem:[%s169_s8 + $0x3c] sm:$0xff] %v200_v5 }
  0x1f   : > { %203 = vst [vmem:[%s169_s8 + $0x48] sm:$0xff] %v202_v6 }
  0x20   : > { %205 = vst [vmem:[%s169_s8 + $0x54] sm:$0xff] %v204_v7 }
  0x21   : > { %886 = vst [vmem:[%s169_s8 + $0x8] sm:$0xf] %v885_v8 }
  0x22   : > { %888 = vst [vmem:[%s169_s8 + $0x14] sm:$0xf] %v887_v9 }
  0x23   : > { %890 = vst [vmem:[%s169_s8 + $0x20] sm:$0xf] %v889_v10 }
  0x24   : > { %892 = vst [vmem:[%s169_s8 + $0x2c] sm:$0xf] %v891_v11 }
  0x25   : > { %894 = vst [vmem:[%s169_s8 + $0x38] sm:$0xf] %v893_v12 }
  0x26   : > { %896 = vst [vmem:[%s169_s8 + $0x44] sm:$0xf] %v895_v13 }
  0x27   : > { %898 = vst [vmem:[%s169_s8 + $0x50] sm:$0xf] %v897_v14 }
  0x28   : > { %900 = vst [vmem:[%s169_s8 + $0x5c] sm:$0xf] %v899_v15 }
  0x29 PF: > { %p901_p7 = scmp.ge.s32.totalorder %s1235_s18, 1  ;;  %p246_p8 = scmp.lt.s32.totalorder %s1235_s18, 7 }
  0x2b   : > { %p247_p9 = pnand %p901_p7, %p246_p8 }
  0x2c   : > { %s253_s9 = sand.u32 (!%p247_p9), 1, %s1211_s12   ;;  %s292_s10 = smul.u32 (!%p247_p9), 48, %s1219_s14 }
  0x2d   : > { %250 = sbr.rel (%p247_p9) target bundleno = 308 (0x134), region = 54  ;;  %s903_s21 = sshll.u32 (!%p247_p9), %s1223_s15, 3 }
  0x2e   : > { %s1122_s11 = smul.u32 (!%p247_p9), 96, %s253_s9  ;;  %p293_p10 = scmp.lt.s32.totalorder (!%p247_p9), %s292_s10, 143 }
  0x2f   : > { %p305_p11 = scmp.lt.s32.totalorder (!%p247_p9), %s903_s21, 15  ;;  %p905_p12 = scmp.ne.s32.totalorder (!%p247_p9), %s1219_s14, 0 }
  0x30   : > { %s1351_s12 = scalar_lea.vmem (!%p247_p9), [#allocation3], %s1122_s11 }
  0x32   : > { %s1448_s10 = smov (!%p293_p10, %s292_s10), 143  ;;  %s1450_s21 = smov (!%p305_p11, %s903_s21), 15 }
  0x33   : > { %s902_s22 = sshll.u32 %s1448_s10, 2  ;;  %s904_s27 = sshll.u32 %s1450_s21, 2 }
  0x34   : > { %s1344_s26 = scalar_lea.vmem %s1432_s1, %s902_s22  ;;  %s1349_s30 = scalar_lea.vmem %s1434_s3, %s904_s27 }
  0x35   : > { %316 = sbr.rel (%p905_p12) target bundleno = 67 (0x43), region = 62 }
  0x3a   : > { %v1237_v16 = vmov 0.0  }
  0x3b   : > { %317 = vst [vmem:[#allocation2 + $0x30] sm:$0xff] %v1237_v16 }
  0x3c   : > { %318 = vst [vmem:[#allocation2] sm:$0xff] %v1237_v16 }
  0x3d   : > { %319 = vst [vmem:[#allocation2 + $0x18] sm:$0xff] %v1237_v16 }
  0x3e   : > { %320 = vst [vmem:[#allocation2 + $0x10] sm:$0xff] %v1237_v16 }
  0x3f   : > { %321 = vst [vmem:[#allocation2 + $0x8] sm:$0xff] %v1237_v16 }
  0x40   : > { %322 = vst [vmem:[#allocation2 + $0x20] sm:$0xff] %v1237_v16 }
  0x41   : > { %323 = vst [vmem:[#allocation2 + $0x28] sm:$0xff] %v1237_v16 }
  0x42   : > { %324 = vst [vmem:[#allocation2 + $0x38] sm:$0xff] %v1237_v16 }
  0x43 PF: > { %v1072_v17 = vld [vmem:[%s1344_s26 + $0x38] sm:$0xff]  ;;  %v1071_v20 = vld [vmem:[%s1344_s26 + $0x30] sm:$0xff]  ;;  %v1070_v23 = vld [vmem:[%s1344_s26 + $0x28] sm:$0xff]  ;;  %p1050_p13 = scmp.ne.s32.totalorder %s1219_s14, 2 }
  0x44   : > { %v1080_v18 = vld [vmem:[%s1344_s26 + $0x78] sm:$0xff]  ;;  %605 = vmatpush.bf16.msra.mxu0 %v1072_v17  ;;  %v1079_v21 = vld [vmem:[%s1344_s26 + $0x70] sm:$0xff]  ;;  %1112 = vmatpush.bf16.msra.mxu3 %v1072_v17  ;;  %v1078_v24 = vld [vmem:[%s1344_s26 + $0x68] sm:$0xff] }
  0x45   : > { %v1088_v19 = vld [vmem:[%s1344_s26 + $0xb8] sm:$0xff]  ;;  %634 = vmatpush.bf16.msra.mxu1 %v1080_v18  ;;  %v1087_v22 = vld [vmem:[%s1344_s26 + $0xb0] sm:$0xff]  ;;  %v1086_v25 = vld [vmem:[%s1344_s26 + $0xa8] sm:$0xff] }
  0x46   : > { %663 = vmatpush.bf16.msra.mxu2 %v1088_v19  ;;  %v1069_v26 = vld [vmem:[%s1344_s26 + $0x20] sm:$0xff]  ;;  %v1068_v29 = vld [vmem:[%s1344_s26 + $0x18] sm:$0xff]  ;;  %v1067_v32 = vld [vmem:[%s1344_s26 + $0x10] sm:$0xff] }
  0x47   : > { %v1077_v27 = vld [vmem:[%s1344_s26 + $0x60] sm:$0xff]  ;;  %v1076_v30 = vld [vmem:[%s1344_s26 + $0x58] sm:$0xff]  ;;  %v1075_v33 = vld [vmem:[%s1344_s26 + $0x50] sm:$0xff] }
  0x48   : > { %606 = vmatpush.bf16.msra.mxu0 %v1071_v20  ;;  %1113 = vmatpush.bf16.msra.mxu3 %v1071_v20  ;;  %v1085_v28 = vld [vmem:[%s1344_s26 + $0xa0] sm:$0xff]  ;;  %v1084_v31 = vld [vmem:[%s1344_s26 + $0x98] sm:$0xff]  ;;  %v1083_v34 = vld [vmem:[%s1344_s26 + $0x90] sm:$0xff] }
  0x49   : > { %635 = vmatpush.bf16.msra.mxu1 %v1079_v21  ;;  %v1066_v35 = vld [vmem:[%s1344_s26 + $0x8] sm:$0xff]  ;;  %v1065_v38 = vld [vmem:[%s1344_s26] sm:$0xff]  ;;  %v910_v44 = vld [vmem:[%s1351_s12 + $0xc] sm:$0xf0] }
  0x4a   : > { %664 = vmatpush.bf16.msra.mxu2 %v1087_v22  ;;  %v1074_v36 = vld [vmem:[%s1344_s26 + $0x48] sm:$0xff]  ;;  %v1073_v39 = vld [vmem:[%s1344_s26 + $0x40] sm:$0xff]  ;;  %v1055_v46 = vld [vmem:[%s1351_s12 + $0x10] sm:$0xf0] }
  0x4b   : > { %v1082_v37 = vld [vmem:[%s1344_s26 + $0x88] sm:$0xff]  ;;  %v1081_v40 = vld [vmem:[%s1344_s26 + $0x80] sm:$0xff]  ;;  %v920_v47 = vld [vmem:[%s1351_s12 + $0x18] sm:$0xf] }
  0x4c   : > { %607 = vmatpush.bf16.msra.mxu0 %v1070_v23  ;;  %1114 = vmatpush.bf16.msra.mxu3 %v1070_v23  ;;  %v908_v41 = vld [vmem:[%s1351_s12] sm:$0xf]  ;;  %v1054_v42 = vld [vmem:[%s1351_s12 + $0x8] sm:$0xf0]  ;;  %v1053_v43 = vld [vmem:[%s1351_s12 + $0x4] sm:$0xf] }
  0x4d   : > { %636 = vmatpush.bf16.msra.mxu1 %v1078_v24  ;;  %v916_v45 = vld [vmem:[%s1351_s12 + $0x8] sm:$0xf]  ;;  %v1057_v48 = vld [vmem:[%s1351_s12 + $0x20] sm:$0xf0]  ;;  %v909_v49 = vor.u32 %v1054_v42, %v908_v41  ;;  %v913_v50 = vor.u32 %v1053_v43, %v910_v44  ;;  %v1056_v53 = vld [vmem:[%s1351_s12 + $0x1c] sm:$0xf] }
  0x4e   : > { %665 = vmatpush.bf16.msra.mxu2 %v1086_v25  ;;  %v917_v51 = vor.u32 %v1055_v46, %v916_v45  ;;  %v921_v52 = vor.u32 %v1057_v48, %v920_v47  ;;  %v922_v54 = vld [vmem:[%s1351_s12 + $0x24] sm:$0xf0]  ;;  %v928_v55 = vld [vmem:[%s1351_s12 + $0x20] sm:$0xf]  ;;  %v1058_v56 = vld [vmem:[%s1351_s12 + $0x28] sm:$0xf0] }
  0x4f   : > { %v932_v57 = vld [vmem:[%s1351_s12 + $0x30] sm:$0xf]  ;;  %v1060_v58 = vld [vmem:[%s1351_s12 + $0x38] sm:$0xf0]  ;;  %v925_v59 = vor.u32 %v1056_v53, %v922_v54  ;;  %v929_v60 = vor.u32 %v1058_v56, %v928_v55  ;;  %v1059_v62 = vld [vmem:[%s1351_s12 + $0x34] sm:$0xf] }
  0x50   : > { %608 = vmatpush.bf16.msra.mxu0 %v1069_v26  ;;  %1115 = vmatpush.bf16.msra.mxu3 %v1069_v26  ;;  %v933_v61 = vor.u32 %v1060_v58, %v932_v57  ;;  %v934_v63 = vld [vmem:[%s1351_s12 + $0x3c] sm:$0xf0]  ;;  %v940_v0 = vld [vmem:[%s1351_s12 + $0x38] sm:$0xf]  ;;  %v1061_v1 = vld [vmem:[%s1351_s12 + $0x40] sm:$0xf0] }
  0x51   : > { %637 = vmatpush.bf16.msra.mxu1 %v1077_v27  ;;  %v944_v2 = vld [vmem:[%s1351_s12 + $0x48] sm:$0xf]  ;;  %v1063_v3 = vld [vmem:[%s1351_s12 + $0x50] sm:$0xf0]  ;;  %v937_v4 = vor.u32 %v1059_v62, %v934_v63  ;;  %v941_v5 = vor.u32 %v1061_v1, %v940_v0  ;;  %v1062_v7 = vld [vmem:[%s1351_s12 + $0x4c] sm:$0xf] }
  0x52   : > { %666 = vmatpush.bf16.msra.mxu2 %v1085_v28  ;;  %v945_v6 = vor.u32 %v1063_v3, %v944_v2  ;;  %v946_v8 = vld [vmem:[%s1351_s12 + $0x54] sm:$0xf0]  ;;  %v952_v9 = vld [vmem:[%s1351_s12 + $0x50] sm:$0xf]  ;;  %v1064_v10 = vld [vmem:[%s1351_s12 + $0x58] sm:$0xf0] }
  0x53   : > { %v949_v11 = vor.u32 %v1062_v7, %v946_v8  ;;  %v953_v12 = vor.u32 %v1064_v10, %v952_v9  ;;  %v325_v16 = vld [vmem:[#allocation2 + $0x30] sm:$0xff]  ;;  %v326_v24 = vld [vmem:[#allocation2] sm:$0xff]  ;;  %v329_v44 = vld [vmem:[#allocation2 + $0x8] sm:$0xff] }
  0x54   : > { %609 = vmatpush.bf16.msra.mxu0 %v1068_v29  ;;  %1116 = vmatpush.bf16.msra.mxu3 %v1068_v29  ;;  %v331_v58 = vld [vmem:[#allocation2 + $0x28] sm:$0xff]  ;;  %v332_v1 = vld [vmem:[#allocation2 + $0x38] sm:$0xff] }
  0x55   : > { %638 = vmatpush.bf16.msra.mxu1 %v1076_v30 }
  0x56   : > { %667 = vmatpush.bf16.msra.mxu2 %v1084_v31  ;;  %v327_v31 = vld [vmem:[#allocation2 + $0x18] sm:$0xff] }
  0x58   : > { %610 = vmatpush.bf16.msra.mxu0 %v1067_v32  ;;  %1117 = vmatpush.bf16.msra.mxu3 %v1067_v32 }
  0x59   : > { %639 = vmatpush.bf16.msra.mxu1 %v1075_v33 }
  0x5a   : > { %668 = vmatpush.bf16.msra.mxu2 %v1083_v34 }
  0x5c   : > { %611 = vmatpush.bf16.msra.mxu0 %v1066_v35  ;;  %1118 = vmatpush.bf16.msra.mxu3 %v1066_v35 }
  0x5d   : > { %640 = vmatpush.bf16.msra.mxu1 %v1074_v36 }
  0x5e   : > { %669 = vmatpush.bf16.msra.mxu2 %v1082_v37 }
  0x60   : > { %612 = vmatpush.bf16.msra.mxu0 %v1065_v38  ;;  %1119 = vmatpush.bf16.msra.mxu3 %v1065_v38  ;;  %v328_v38 = vld [vmem:[#allocation2 + $0x10] sm:$0xff] }
  0x61   : > { %641 = vmatpush.bf16.msra.mxu1 %v1073_v39 }
  0x62   : > { %670 = vmatpush.bf16.msra.mxu2 %v1081_v40 }
  0x63   : > { %613 = vmatmul.bf16.vlgmr.msra.gmra.mxu0 %v909_v49  ;;  %618 = vmatmul.bf16.vlgmr.msra.gmra.mxu3 %v921_v52 }
  0x64   : > { %642 = vmatmul.bf16.vlgmr.msra.gmra.mxu1 %v913_v50 }
  0x65   : > { %671 = vmatmul.bf16.vlgmr.msra.gmra.mxu2 %v917_v51  ;;  %v330_v51 = vld [vmem:[#allocation2 + $0x20] sm:$0xff] }
  0x73   : > { %623 = vmatmul.bf16.gmra.mxu3 %v933_v61 }
  0x74   : > { %647 = vmatmul.bf16.gmra.mxu1 %v925_v59 }
  0x75   : > { %676 = vmatmul.bf16.gmra.mxu2 %v929_v60 }
  0x83   : > { %628 = vmatmul.bf16.gmra.mxu3 %v945_v6 }
  0x84   : > { %652 = vmatmul.bf16.gmra.mxu1 %v937_v4 }
  0x85   : > { %681 = vmatmul.bf16.gmra.mxu2 %v941_v5 }
  0x94   : > { %657 = vmatmul.bf16.gmra.mxu1 %v949_v11 }
  0x95   : > { %686 = vmatmul.bf16.gmra.mxu2 %v953_v12 }
  0xe0   : > { %v614_v14 = vpop.f32.mrf.mxu0 }
  0xe1   : > { %v643_v13 = vpop.f32.mrf.mxu1 }
  0xe2   : > { %v644_v15 = vadd.f32 %v643_v13, %v614_v14 }
  0xe6   : > { %v619_v22 = vpop.f32.mrf.mxu3 }
  0xe8   : > { %v672_v17 = vpop.f32.mrf.mxu2  ;;  %v616_v21 = vpop.f32.mrf.mxu0 }
  0xe9   : > { %v673_v18 = vadd.f32 %v672_v17, %v644_v15  ;;  %v645_v19 = vpop.f32.mrf.mxu1 }
  0xea   : > { %v646_v23 = vadd.f32 %v645_v19, %v616_v21 }
  0xeb   : > { %v692_v20 = vadd.f32 %v673_v18, %v325_v16 }
  0xed   : > { %700 = vst [vmem:[#allocation2 + $0x30] sm:$0xff] %v692_v20 }
  0xee   : > { %v621_v30 = vpop.f32.mrf.mxu3 }
  0xf0   : > { %v674_v25 = vpop.f32.mrf.mxu2 }
  0xf1   : > { %v675_v26 = vadd.f32 %v674_v25, %v646_v23  ;;  %v648_v27 = vpop.f32.mrf.mxu1 }
  0xf2   : > { %v649_v29 = vadd.f32 %v648_v27, %v619_v22 }
  0xf3   : > { %v693_v28 = vadd.f32 %v675_v26, %v326_v24 }
  0xf5   : > { %701 = vst [vmem:[#allocation2] sm:$0xff] %v693_v28 }
  0xf6   : > { %v624_v37 = vpop.f32.mrf.mxu3 }
  0xf8   : > { %v677_v32 = vpop.f32.mrf.mxu2 }
  0xf9   : > { %v678_v33 = vadd.f32 %v677_v32, %v649_v29  ;;  %v650_v34 = vpop.f32.mrf.mxu1 }
  0xfa   : > { %v651_v36 = vadd.f32 %v650_v34, %v621_v30 }
  0xfb   : > { %v694_v35 = vadd.f32 %v678_v33, %v327_v31 }
  0xfd   : > { %702 = vst [vmem:[#allocation2 + $0x18] sm:$0xff] %v694_v35 }
  0xfe   : > { %v626_v48 = vpop.f32.mrf.mxu3 }
 0x100   : > { %v679_v39 = vpop.f32.mrf.mxu2 }
 0x101   : > { %v680_v40 = vadd.f32 %v679_v39, %v651_v36  ;;  %v653_v41 = vpop.f32.mrf.mxu1 }
 0x102   : > { %v654_v43 = vadd.f32 %v653_v41, %v624_v37 }
 0x103   : > { %v695_v42 = vadd.f32 %v680_v40, %v328_v38 }
 0x105   : > { %703 = vst [vmem:[#allocation2 + $0x10] sm:$0xff] %v695_v42 }
 0x106   : > { %v629_v56 = vpop.f32.mrf.mxu3 }
 0x108   : > { %v682_v45 = vpop.f32.mrf.mxu2 }
 0x109   : > { %v683_v46 = vadd.f32 %v682_v45, %v654_v43  ;;  %v655_v47 = vpop.f32.mrf.mxu1 }
 0x10a   : > { %v656_v50 = vadd.f32 %v655_v47, %v626_v48 }
 0x10b   : > { %v696_v49 = vadd.f32 %v683_v46, %v329_v44 }
 0x10d   : > { %704 = vst [vmem:[#allocation2 + $0x8] sm:$0xff] %v696_v49 }
 0x10e   : > { %v631_v63 = vpop.f32.mrf.mxu3 }
 0x110   : > { %v684_v52 = vpop.f32.mrf.mxu2 }
 0x111   : > { %v685_v53 = vadd.f32 %v684_v52, %v656_v50  ;;  %v658_v54 = vpop.f32.mrf.mxu1 }
 0x112   : > { %v659_v57 = vadd.f32 %v658_v54, %v629_v56 }
 0x113   : > { %v697_v55 = vadd.f32 %v685_v53, %v330_v51 }
 0x115   : > { %705 = vst [vmem:[#allocation2 + $0x20] sm:$0xff] %v697_v55 }
 0x118   : > { %v687_v59 = vpop.f32.mrf.mxu2 }
 0x119   : > { %v688_v60 = vadd.f32 %v687_v59, %v659_v57  ;;  %v660_v62 = vpop.f32.mrf.mxu1 }
 0x11a   : > { %v661_v0 = vadd.f32 %v660_v62, %v631_v63 }
 0x11b   : > { %v698_v61 = vadd.f32 %v688_v60, %v331_v58 }
 0x11d   : > { %706 = vst [vmem:[#allocation2 + $0x28] sm:$0xff] %v698_v61 }
 0x120   : > { %v689_v2 = vpop.f32.mrf.mxu2 }
 0x121   : > { %v690_v3 = vadd.f32 %v689_v2, %v661_v0  ;;  %711 = sbr.rel (%p1050_p13) target bundleno = 308 (0x134), region = 66 }
 0x123   : > { %v699_v4 = vadd.f32 %v690_v3, %v332_v1 }
 0x125   : > { %707 = vst [vmem:[#allocation2 + $0x38] sm:$0xff] %v699_v4 }
 0x126   : > { %v712_v5 = vld [vmem:[#allocation2 + $0x30] sm:$0xff]  ;;  %v713_v6 = vld [vmem:[#allocation2] sm:$0xff]  ;;  %v714_v8 = vld [vmem:[#allocation2 + $0x18] sm:$0xff] }
 0x127   : > { %v1180_v7 = vld [vmem:[%s1433_s2] ss:$0 sm:$0xff]  ;;  %v715_v9 = vld [vmem:[#allocation2 + $0x10] sm:$0xff]  ;;  %v716_v10 = vld [vmem:[#allocation2 + $0x8] sm:$0xff] }
 0x128   : > { %v717_v11 = vld [vmem:[#allocation2 + $0x20] sm:$0xff]  ;;  %v718_v12 = vld [vmem:[#allocation2 + $0x28] sm:$0xff]  ;;  %v724_v13 = vadd.f32 %v1180_v7, %v712_v5  ;;  %v725_v14 = vadd.f32 %v1180_v7, %v713_v6  ;;  %v726_v15 = vadd.f32 %v1180_v7, %v714_v8  ;;  %v727_v16 = vadd.f32 %v1180_v7, %v715_v9 }
 0x129   : > { %v728_v18 = vadd.f32 %v1180_v7, %v716_v10  ;;  %v729_v19 = vadd.f32 %v1180_v7, %v717_v11  ;;  %v730_v20 = vadd.f32 %v1180_v7, %v718_v12 }
 0x12a   : > { %v732_v22 = vmax.f32 %v724_v13, 0.0  ;;  %v733_v23 = vmax.f32 %v725_v14, 0.0  ;;  %v734_v24 = vmax.f32 %v726_v15, 0.0  ;;  %v735_v25 = vmax.f32 %v727_v16, 0.0 }
 0x12b   : > { %v736_v26 = vmax.f32 %v728_v18, 0.0  ;;  %v737_v27 = vmax.f32 %v729_v19, 0.0  ;;  %v738_v28 = vmax.f32 %v730_v20, 0.0 }
 0x12c   : > { %v719_v17 = vld [vmem:[#allocation2 + $0x38] sm:$0xff]  ;;  %v1092_v30 = vpack.c.bf16 %v733_v23, %v732_v22  ;;  %v1097_v31 = vpack.c.bf16 %v735_v25, %v734_v24 }
 0x12d   : > { %v731_v21 = vadd.f32 %v1180_v7, %v719_v17  ;;  %v1102_v32 = vpack.c.bf16 %v737_v27, %v736_v26 }
 0x12e   : > { %1093 = vst [vmem:[%s1349_s30] sm:$0xff] %v1092_v30  }
 0x12f   : > { %v739_v29 = vmax.f32 %v731_v21, 0.0  ;;  %1109 = vst [vmem:[%s1349_s30 + $0x8] sm:$0xff] %v1097_v31  }
 0x130   : > { %1110 = vst [vmem:[%s1349_s30 + $0x10] sm:$0xff] %v1102_v32  }
 0x131   : > { %v1107_v33 = vpack.c.bf16 %v739_v29, %v738_v28 }
 0x133   : > { %1111 = vst [vmem:[%s1349_s30 + $0x18] sm:$0xff] %v1107_v33  }
 0x134 PF: > { %s13_s18 = sadd.s32 1, %s1235_s18   ;;  %s1435_s12 = smov %s1215_s13 }
 0x135   : > { %p10_p0 = scmp.ge.s32.totalorder %s13_s18, 8   ;;  %s1436_s13 = smov %s1309_s25 }
 0x136   : > { %s1437_s14 = smov %s1227_s16  ;;  %s1438_s15 = smov %s1231_s17 }
 0x137   : > { %s1439_s16 = smov %s1442_s19  ;;  %s1440_s17 = smov %s1446_s20 }
 0x138   :  { %12 = sbr.rel (!%p10_p0) target bundleno = 4 (0x4), region = 113 }

// kernel: forward.23
= control target key start
LH: loop header
LB: loop body
LE: loop exit
PB: predicated region body
PF: predicated region fallthrough
CT: control target
= control target key end

     0   :  { %s1383_s15 = smov 0   ;;  %s1385_s16 = smov 0   ;;  %s1565_s0 = inlined_call_operand.vmem [shape: bf16[128,1152], index: 0, kind: input, shape index: {}]   ;;  %s1566_s1 = inlined_call_operand.vmem [shape: bf16[1152,128], index: 1, kind: input, shape index: {}]   ;;  %s1567_s2 = inlined_call_operand.vmem [shape: f32[1,128], index: 2, kind: input, shape index: {}]   ;;  %s1568_s3 = inlined_call_operand.vmem [shape: bf16[128,128], index: 3, kind: input, shape index: {}]   ;;  %s1569_s4 = inlined_call_operand.vmem [shape: bf16[128,128], index: 4, kind: output, shape index: {}]  }
   0x1   :  { %s1387_s17 = smov 0   ;;  %s1389_s18 = smov 0  }
   0x2   :  { %s1391_s19 = smov 0   ;;  %s1393_s20 = smov 0  }
   0x3   :  { %s1395_s21 = smov 0  }
   0x4 LB: > { %s26_s22 = sadd.s32 1, %s1347_s19  ;;  %s33_s23 = sadd.s32 1, %s1351_s20  ;;  %s1355_s21 = sphi %s1395_s21, %s14_s21   ;;  %s1351_s20 = sphi %s1393_s20, %s1575_s20   ;;  %s1347_s19 = sphi %s1391_s19, %s1574_s19   ;;  %s1343_s18 = sphi %s1389_s18, %s1573_s18   ;;  %s1339_s17 = sphi %s1387_s17, %s1572_s17   ;;  %s1335_s16 = sphi %s1385_s16, %s1571_s16   ;;  %s1331_s15 = sphi %s1383_s15, %s1570_s15  }
   0x5   : > { %p27_p0 = scmp.ge.s32.totalorder %s26_s22, 3  ;;  %p49_p1 = scmp.ne.s32.totalorder %s1335_s16, %s1331_s15 }
   0x6   : > { %p50_p2 = scmp.eq.s32.totalorder %s1355_s21, 0  ;;  %s42_s27 = sadd.s32 1, %s1335_s16 }
   0x7   : > { %s1577_s22 = smov (%p27_p0, %s26_s22), 0  ;;  %s1579_s23 = smov (!%p27_p0, %s33_s23), %s1351_s20 }
   0x8   : > { %p51_p3 = por %p50_p2, %p49_p1  ;;  %p35_p4 = scmp.ge.s32.totalorder %s1579_s23, 2 }
   0x9   : > { %s38_s24 = ssub.s32 %s1347_s19, %s1577_s22  ;;  %p980_p6 = scmp.ge.s32.totalorder %s1355_s21, 6 }
   0xa   : > { %s1581_s23 = smov (%p35_p4, %s1579_s23), 0 }
   0xb   : > { %s37_s25 = ssub.s32 %s1351_s20, %s1581_s23  ;;  %191 = sbr.rel (%p980_p6) target bundleno = 41 (0x29), region = 20 }
   0xc   : > { %s39_s26 = sor.u32 %s38_s24, %s37_s25 }
   0xd   : > { %p40_p5 = scmp.eq.s32.totalorder %s39_s26, 0 }
   0xf   : > { %s1434_s28 = scalar_select %p40_p5, %s1335_s16, %s42_s27  }
  0x10   : > { %194 = sbr.rel (!%p51_p3) target bundleno = 41 (0x29), region = 24  ;;  %s196_s29 = sand.u32 (%p51_p3), 1, %s1335_s16  }
  0x11   : > { %s200_s30 = smul.u32 (%p51_p3), 3, %s1347_s19 }
  0x12   : > { %s1240_s5 = smul.u32 (%p51_p3), 96, %s196_s29 }
  0x13   : > { %s1241_s6 = smul.u32 (%p51_p3), 72, %s1351_s20 }
  0x14   : > { %s198_s12 = scalar_lea.vmem (%p51_p3), [#allocation3], %s1240_s5 }
  0x15   : > { %s202_s7 = sadd.s32 %s1241_s6, %s200_s30 }
  0x16   : > { %s983_s8 = sshll.u32 %s202_s7, 2 }
  0x17   : > { %s1443_s11 = scalar_lea.vmem %s1565_s0, %s983_s8 }
  0x18   : > { %v219_v0 = vld [vmem:[%s1443_s11] sm:$0xff]  ;;  %v223_v2 = vld [vmem:[%s1443_s11 + $0x48] sm:$0xff]  ;;  %v227_v4 = vld [vmem:[%s1443_s11 + $0x90] sm:$0xff] }
  0x19   : > { %v221_v1 = vld [vmem:[%s1443_s11 + $0x24] sm:$0xff]  ;;  %220 = vst [vmem:[%s198_s12] sm:$0xff] %v219_v0  ;;  %v225_v3 = vld [vmem:[%s1443_s11 + $0x6c] sm:$0xff]  ;;  %v229_v5 = vld [vmem:[%s1443_s11 + $0xb4] sm:$0xff] }
  0x1a   : > { %222 = vst [vmem:[%s198_s12 + $0xc] sm:$0xff] %v221_v1  ;;  %v231_v6 = vld [vmem:[%s1443_s11 + $0xd8] sm:$0xff]  ;;  %v984_v8 = vld [vmem:[%s1443_s11 + $0x8] sm:$0xf]  ;;  %v986_v9 = vld [vmem:[%s1443_s11 + $0x2c] sm:$0xf] }
  0x1b   : > { %224 = vst [vmem:[%s198_s12 + $0x18] sm:$0xff] %v223_v2  ;;  %v233_v7 = vld [vmem:[%s1443_s11 + $0xfc] sm:$0xff]  ;;  %v988_v10 = vld [vmem:[%s1443_s11 + $0x50] sm:$0xf]  ;;  %v990_v11 = vld [vmem:[%s1443_s11 + $0x74] sm:$0xf] }
  0x1c   : > { %226 = vst [vmem:[%s198_s12 + $0x24] sm:$0xff] %v225_v3  ;;  %v992_v12 = vld [vmem:[%s1443_s11 + $0x98] sm:$0xf]  ;;  %v994_v13 = vld [vmem:[%s1443_s11 + $0xbc] sm:$0xf] }
  0x1d   : > { %228 = vst [vmem:[%s198_s12 + $0x30] sm:$0xff] %v227_v4  ;;  %v996_v14 = vld [vmem:[%s1443_s11 + $0xe0] sm:$0xf]  ;;  %v998_v15 = vld [vmem:[%s1443_s11 + $0x104] sm:$0xf] }
  0x1e   : > { %230 = vst [vmem:[%s198_s12 + $0x3c] sm:$0xff] %v229_v5 }
  0x1f   : > { %232 = vst [vmem:[%s198_s12 + $0x48] sm:$0xff] %v231_v6 }
  0x20   : > { %234 = vst [vmem:[%s198_s12 + $0x54] sm:$0xff] %v233_v7 }
  0x21   : > { %985 = vst [vmem:[%s198_s12 + $0x8] sm:$0xf] %v984_v8 }
  0x22   : > { %987 = vst [vmem:[%s198_s12 + $0x14] sm:$0xf] %v986_v9 }
  0x23   : > { %989 = vst [vmem:[%s198_s12 + $0x20] sm:$0xf] %v988_v10 }
  0x24   : > { %991 = vst [vmem:[%s198_s12 + $0x2c] sm:$0xf] %v990_v11 }
  0x25   : > { %993 = vst [vmem:[%s198_s12 + $0x38] sm:$0xf] %v992_v12 }
  0x26   : > { %995 = vst [vmem:[%s198_s12 + $0x44] sm:$0xf] %v994_v13 }
  0x27   : > { %997 = vst [vmem:[%s198_s12 + $0x50] sm:$0xf] %v996_v14 }
  0x28   : > { %999 = vst [vmem:[%s198_s12 + $0x5c] sm:$0xf] %v998_v15 }
  0x29 PF: > { %p1000_p7 = scmp.ge.s32.totalorder %s1355_s21, 1  ;;  %p287_p8 = scmp.lt.s32.totalorder %s1355_s21, 7 }
  0x2b   : > { %p288_p9 = pnand %p1000_p7, %p287_p8 }
  0x2c   : > { %s294_s13 = sand.u32 (!%p288_p9), 1, %s1331_s15   ;;  %s343_s14 = smul.u32 (!%p288_p9), 48, %s1339_s17 }
  0x2d   : > { %291 = sbr.rel (%p288_p9) target bundleno = 311 (0x137), region = 58  ;;  %s1002_s25 = sshll.u32 (!%p288_p9), %s1343_s18, 3 }
  0x2e   : > { %s1242_s24 = smul.u32 (!%p288_p9), 96, %s294_s13  ;;  %p344_p10 = scmp.lt.s32.totalorder (!%p288_p9), %s343_s14, 143 }
  0x2f   : > { %p356_p11 = scmp.lt.s32.totalorder (!%p288_p9), %s1002_s25, 15  ;;  %p1006_p12 = scmp.ne.s32.totalorder (!%p288_p9), %s1339_s17, 0 }
  0x30   : > { %s1481_s10 = scalar_lea.vmem (!%p288_p9), [#allocation3], %s1242_s24 }
  0x32   : > { %s1583_s14 = smov (!%p344_p10, %s343_s14), 143  ;;  %s1585_s25 = smov (!%p356_p11, %s1002_s25), 15 }
  0x33   : > { %s1001_s26 = sshll.u32 %s1583_s14, 2  ;;  %s1003_s5 = sshll.u32 %s1585_s25, 2 }
  0x34   : > { %s1469_s30 = scalar_lea.vmem %s1566_s1, %s1001_s26  ;;  %s1474_s8 = scalar_lea.vmem %s1568_s3, %s1003_s5 }
  0x35   : > { %s1479_s18 = scalar_lea.vmem %s1569_s4, %s1003_s5  ;;  %376 = sbr.rel (%p1006_p12) target bundleno = 67 (0x43), region = 66 }
  0x3a   : > { %v1357_v16 = vmov 0.0  }
  0x3b   : > { %377 = vst [vmem:[#allocation2 + $0x30] sm:$0xff] %v1357_v16 }
  0x3c   : > { %378 = vst [vmem:[#allocation2] sm:$0xff] %v1357_v16 }
  0x3d   : > { %379 = vst [vmem:[#allocation2 + $0x18] sm:$0xff] %v1357_v16 }
  0x3e   : > { %380 = vst [vmem:[#allocation2 + $0x10] sm:$0xff] %v1357_v16 }
  0x3f   : > { %381 = vst [vmem:[#allocation2 + $0x8] sm:$0xff] %v1357_v16 }
  0x40   : > { %382 = vst [vmem:[#allocation2 + $0x20] sm:$0xff] %v1357_v16 }
  0x41   : > { %383 = vst [vmem:[#allocation2 + $0x28] sm:$0xff] %v1357_v16 }
  0x42   : > { %384 = vst [vmem:[#allocation2 + $0x38] sm:$0xff] %v1357_v16 }
  0x43 PF: > { %v1173_v17 = vld [vmem:[%s1469_s30 + $0x38] sm:$0xff]  ;;  %v1172_v20 = vld [vmem:[%s1469_s30 + $0x30] sm:$0xff]  ;;  %v1171_v23 = vld [vmem:[%s1469_s30 + $0x28] sm:$0xff]  ;;  %p1151_p13 = scmp.ne.s32.totalorder %s1339_s17, 2 }
  0x44   : > { %v1181_v18 = vld [vmem:[%s1469_s30 + $0x78] sm:$0xff]  ;;  %665 = vmatpush.bf16.msra.mxu0 %v1173_v17  ;;  %v1180_v21 = vld [vmem:[%s1469_s30 + $0x70] sm:$0xff]  ;;  %1232 = vmatpush.bf16.msra.mxu3 %v1173_v17  ;;  %v1179_v24 = vld [vmem:[%s1469_s30 + $0x68] sm:$0xff] }
  0x45   : > { %v1189_v19 = vld [vmem:[%s1469_s30 + $0xb8] sm:$0xff]  ;;  %694 = vmatpush.bf16.msra.mxu1 %v1181_v18  ;;  %v1188_v22 = vld [vmem:[%s1469_s30 + $0xb0] sm:$0xff]  ;;  %v1187_v25 = vld [vmem:[%s1469_s30 + $0xa8] sm:$0xff] }
  0x46   : > { %723 = vmatpush.bf16.msra.mxu2 %v1189_v19  ;;  %v1170_v26 = vld [vmem:[%s1469_s30 + $0x20] sm:$0xff]  ;;  %v1169_v29 = vld [vmem:[%s1469_s30 + $0x18] sm:$0xff]  ;;  %v1168_v32 = vld [vmem:[%s1469_s30 + $0x10] sm:$0xff] }
  0x47   : > { %v1178_v27 = vld [vmem:[%s1469_s30 + $0x60] sm:$0xff]  ;;  %v1177_v30 = vld [vmem:[%s1469_s30 + $0x58] sm:$0xff]  ;;  %v1176_v33 = vld [vmem:[%s1469_s30 + $0x50] sm:$0xff] }
  0x48   : > { %666 = vmatpush.bf16.msra.mxu0 %v1172_v20  ;;  %1233 = vmatpush.bf16.msra.mxu3 %v1172_v20  ;;  %v1186_v28 = vld [vmem:[%s1469_s30 + $0xa0] sm:$0xff]  ;;  %v1185_v31 = vld [vmem:[%s1469_s30 + $0x98] sm:$0xff]  ;;  %v1184_v34 = vld [vmem:[%s1469_s30 + $0x90] sm:$0xff] }
  0x49   : > { %695 = vmatpush.bf16.msra.mxu1 %v1180_v21  ;;  %v1167_v35 = vld [vmem:[%s1469_s30 + $0x8] sm:$0xff]  ;;  %v1166_v38 = vld [vmem:[%s1469_s30] sm:$0xff]  ;;  %v1011_v44 = vld [vmem:[%s1481_s10 + $0xc] sm:$0xf0] }
  0x4a   : > { %724 = vmatpush.bf16.msra.mxu2 %v1188_v22  ;;  %v1175_v36 = vld [vmem:[%s1469_s30 + $0x48] sm:$0xff]  ;;  %v1174_v39 = vld [vmem:[%s1469_s30 + $0x40] sm:$0xff]  ;;  %v1156_v46 = vld [vmem:[%s1481_s10 + $0x10] sm:$0xf0] }
  0x4b   : > { %v1183_v37 = vld [vmem:[%s1469_s30 + $0x88] sm:$0xff]  ;;  %v1182_v40 = vld [vmem:[%s1469_s30 + $0x80] sm:$0xff]  ;;  %v1021_v47 = vld [vmem:[%s1481_s10 + $0x18] sm:$0xf] }
  0x4c   : > { %667 = vmatpush.bf16.msra.mxu0 %v1171_v23  ;;  %1234 = vmatpush.bf16.msra.mxu3 %v1171_v23  ;;  %v1009_v41 = vld [vmem:[%s1481_s10] sm:$0xf]  ;;  %v1155_v42 = vld [vmem:[%s1481_s10 + $0x8] sm:$0xf0]  ;;  %v1154_v43 = vld [vmem:[%s1481_s10 + $0x4] sm:$0xf] }
  0x4d   : > { %696 = vmatpush.bf16.msra.mxu1 %v1179_v24  ;;  %v1017_v45 = vld [vmem:[%s1481_s10 + $0x8] sm:$0xf]  ;;  %v1158_v48 = vld [vmem:[%s1481_s10 + $0x20] sm:$0xf0]  ;;  %v1010_v49 = vor.u32 %v1155_v42, %v1009_v41  ;;  %v1014_v50 = vor.u32 %v1154_v43, %v1011_v44  ;;  %v1157_v53 = vld [vmem:[%s1481_s10 + $0x1c] sm:$0xf] }
  0x4e   : > { %725 = vmatpush.bf16.msra.mxu2 %v1187_v25  ;;  %v1018_v51 = vor.u32 %v1156_v46, %v1017_v45  ;;  %v1022_v52 = vor.u32 %v1158_v48, %v1021_v47  ;;  %v1023_v54 = vld [vmem:[%s1481_s10 + $0x24] sm:$0xf0]  ;;  %v1029_v55 = vld [vmem:[%s1481_s10 + $0x20] sm:$0xf]  ;;  %v1159_v56 = vld [vmem:[%s1481_s10 + $0x28] sm:$0xf0] }
  0x4f   : > { %v1033_v57 = vld [vmem:[%s1481_s10 + $0x30] sm:$0xf]  ;;  %v1161_v58 = vld [vmem:[%s1481_s10 + $0x38] sm:$0xf0]  ;;  %v1026_v59 = vor.u32 %v1157_v53, %v1023_v54  ;;  %v1030_v60 = vor.u32 %v1159_v56, %v1029_v55  ;;  %v1160_v62 = vld [vmem:[%s1481_s10 + $0x34] sm:$0xf] }
  0x50   : > { %668 = vmatpush.bf16.msra.mxu0 %v1170_v26  ;;  %1235 = vmatpush.bf16.msra.mxu3 %v1170_v26  ;;  %v1034_v61 = vor.u32 %v1161_v58, %v1033_v57  ;;  %v1035_v63 = vld [vmem:[%s1481_s10 + $0x3c] sm:$0xf0]  ;;  %v1041_v0 = vld [vmem:[%s1481_s10 + $0x38] sm:$0xf]  ;;  %v1162_v1 = vld [vmem:[%s1481_s10 + $0x40] sm:$0xf0] }
  0x51   : > { %697 = vmatpush.bf16.msra.mxu1 %v1178_v27  ;;  %v1045_v2 = vld [vmem:[%s1481_s10 + $0x48] sm:$0xf]  ;;  %v1164_v3 = vld [vmem:[%s1481_s10 + $0x50] sm:$0xf0]  ;;  %v1038_v4 = vor.u32 %v1160_v62, %v1035_v63  ;;  %v1042_v5 = vor.u32 %v1162_v1, %v1041_v0  ;;  %v1163_v7 = vld [vmem:[%s1481_s10 + $0x4c] sm:$0xf] }
  0x52   : > { %726 = vmatpush.bf16.msra.mxu2 %v1186_v28  ;;  %v1046_v6 = vor.u32 %v1164_v3, %v1045_v2  ;;  %v1047_v8 = vld [vmem:[%s1481_s10 + $0x54] sm:$0xf0]  ;;  %v1053_v9 = vld [vmem:[%s1481_s10 + $0x50] sm:$0xf]  ;;  %v1165_v10 = vld [vmem:[%s1481_s10 + $0x58] sm:$0xf0] }
  0x53   : > { %v1050_v11 = vor.u32 %v1163_v7, %v1047_v8  ;;  %v1054_v12 = vor.u32 %v1165_v10, %v1053_v9  ;;  %v385_v16 = vld [vmem:[#allocation2 + $0x30] sm:$0xff]  ;;  %v386_v24 = vld [vmem:[#allocation2] sm:$0xff]  ;;  %v389_v44 = vld [vmem:[#allocation2 + $0x8] sm:$0xff] }
  0x54   : > { %669 = vmatpush.bf16.msra.mxu0 %v1169_v29  ;;  %1236 = vmatpush.bf16.msra.mxu3 %v1169_v29  ;;  %v391_v58 = vld [vmem:[#allocation2 + $0x28] sm:$0xff]  ;;  %v392_v1 = vld [vmem:[#allocation2 + $0x38] sm:$0xff] }
  0x55   : > { %698 = vmatpush.bf16.msra.mxu1 %v1177_v30 }
  0x56   : > { %727 = vmatpush.bf16.msra.mxu2 %v1185_v31  ;;  %v387_v31 = vld [vmem:[#allocation2 + $0x18] sm:$0xff] }
  0x58   : > { %670 = vmatpush.bf16.msra.mxu0 %v1168_v32  ;;  %1237 = vmatpush.bf16.msra.mxu3 %v1168_v32 }
  0x59   : > { %699 = vmatpush.bf16.msra.mxu1 %v1176_v33 }
  0x5a   : > { %728 = vmatpush.bf16.msra.mxu2 %v1184_v34 }
  0x5c   : > { %671 = vmatpush.bf16.msra.mxu0 %v1167_v35  ;;  %1238 = vmatpush.bf16.msra.mxu3 %v1167_v35 }
  0x5d   : > { %700 = vmatpush.bf16.msra.mxu1 %v1175_v36 }
  0x5e   : > { %729 = vmatpush.bf16.msra.mxu2 %v1183_v37 }
  0x60   : > { %672 = vmatpush.bf16.msra.mxu0 %v1166_v38  ;;  %1239 = vmatpush.bf16.msra.mxu3 %v1166_v38  ;;  %v388_v38 = vld [vmem:[#allocation2 + $0x10] sm:$0xff] }
  0x61   : > { %701 = vmatpush.bf16.msra.mxu1 %v1174_v39 }
  0x62   : > { %730 = vmatpush.bf16.msra.mxu2 %v1182_v40 }
  0x63   : > { %673 = vmatmul.bf16.vlgmr.msra.gmra.mxu0 %v1010_v49  ;;  %678 = vmatmul.bf16.vlgmr.msra.gmra.mxu3 %v1022_v52 }
  0x64   : > { %702 = vmatmul.bf16.vlgmr.msra.gmra.mxu1 %v1014_v50 }
  0x65   : > { %731 = vmatmul.bf16.vlgmr.msra.gmra.mxu2 %v1018_v51  ;;  %v390_v51 = vld [vmem:[#allocation2 + $0x20] sm:$0xff] }
  0x73   : > { %683 = vmatmul.bf16.gmra.mxu3 %v1034_v61 }
  0x74   : > { %707 = vmatmul.bf16.gmra.mxu1 %v1026_v59 }
  0x75   : > { %736 = vmatmul.bf16.gmra.mxu2 %v1030_v60 }
  0x83   : > { %688 = vmatmul.bf16.gmra.mxu3 %v1046_v6 }
  0x84   : > { %712 = vmatmul.bf16.gmra.mxu1 %v1038_v4 }
  0x85   : > { %741 = vmatmul.bf16.gmra.mxu2 %v1042_v5 }
  0x94   : > { %717 = vmatmul.bf16.gmra.mxu1 %v1050_v11 }
  0x95   : > { %746 = vmatmul.bf16.gmra.mxu2 %v1054_v12 }
  0xe0   : > { %v674_v14 = vpop.f32.mrf.mxu0 }
  0xe1   : > { %v703_v13 = vpop.f32.mrf.mxu1 }
  0xe2   : > { %v704_v15 = vadd.f32 %v703_v13, %v674_v14 }
  0xe6   : > { %v679_v22 = vpop.f32.mrf.mxu3 }
  0xe8   : > { %v732_v17 = vpop.f32.mrf.mxu2  ;;  %v676_v21 = vpop.f32.mrf.mxu0 }
  0xe9   : > { %v733_v18 = vadd.f32 %v732_v17, %v704_v15  ;;  %v705_v19 = vpop.f32.mrf.mxu1 }
  0xea   : > { %v706_v23 = vadd.f32 %v705_v19, %v676_v21 }
  0xeb   : > { %v752_v20 = vadd.f32 %v733_v18, %v385_v16 }
  0xed   : > { %760 = vst [vmem:[#allocation2 + $0x30] sm:$0xff] %v752_v20 }
  0xee   : > { %v681_v30 = vpop.f32.mrf.mxu3 }
  0xf0   : > { %v734_v25 = vpop.f32.mrf.mxu2 }
  0xf1   : > { %v735_v26 = vadd.f32 %v734_v25, %v706_v23  ;;  %v708_v27 = vpop.f32.mrf.mxu1 }
  0xf2   : > { %v709_v29 = vadd.f32 %v708_v27, %v679_v22 }
  0xf3   : > { %v753_v28 = vadd.f32 %v735_v26, %v386_v24 }
  0xf5   : > { %761 = vst [vmem:[#allocation2] sm:$0xff] %v753_v28 }
  0xf6   : > { %v684_v37 = vpop.f32.mrf.mxu3 }
  0xf8   : > { %v737_v32 = vpop.f32.mrf.mxu2 }
  0xf9   : > { %v738_v33 = vadd.f32 %v737_v32, %v709_v29  ;;  %v710_v34 = vpop.f32.mrf.mxu1 }
  0xfa   : > { %v711_v36 = vadd.f32 %v710_v34, %v681_v30 }
  0xfb   : > { %v754_v35 = vadd.f32 %v738_v33, %v387_v31 }
  0xfd   : > { %762 = vst [vmem:[#allocation2 + $0x18] sm:$0xff] %v754_v35 }
  0xfe   : > { %v686_v48 = vpop.f32.mrf.mxu3 }
 0x100   : > { %v739_v39 = vpop.f32.mrf.mxu2 }
 0x101   : > { %v740_v40 = vadd.f32 %v739_v39, %v711_v36  ;;  %v713_v41 = vpop.f32.mrf.mxu1 }
 0x102   : > { %v714_v43 = vadd.f32 %v713_v41, %v684_v37 }
 0x103   : > { %v755_v42 = vadd.f32 %v740_v40, %v388_v38 }
 0x105   : > { %763 = vst [vmem:[#allocation2 + $0x10] sm:$0xff] %v755_v42 }
 0x106   : > { %v689_v56 = vpop.f32.mrf.mxu3 }
 0x108   : > { %v742_v45 = vpop.f32.mrf.mxu2 }
 0x109   : > { %v743_v46 = vadd.f32 %v742_v45, %v714_v43  ;;  %v715_v47 = vpop.f32.mrf.mxu1 }
 0x10a   : > { %v716_v50 = vadd.f32 %v715_v47, %v686_v48 }
 0x10b   : > { %v756_v49 = vadd.f32 %v743_v46, %v389_v44 }
 0x10d   : > { %764 = vst [vmem:[#allocation2 + $0x8] sm:$0xff] %v756_v49 }
 0x10e   : > { %v691_v63 = vpop.f32.mrf.mxu3 }
 0x110   : > { %v744_v52 = vpop.f32.mrf.mxu2 }
 0x111   : > { %v745_v53 = vadd.f32 %v744_v52, %v716_v50  ;;  %v718_v54 = vpop.f32.mrf.mxu1 }
 0x112   : > { %v719_v57 = vadd.f32 %v718_v54, %v689_v56 }
 0x113   : > { %v757_v55 = vadd.f32 %v745_v53, %v390_v51 }
 0x115   : > { %765 = vst [vmem:[#allocation2 + $0x20] sm:$0xff] %v757_v55 }
 0x118   : > { %v747_v59 = vpop.f32.mrf.mxu2 }
 0x119   : > { %v748_v60 = vadd.f32 %v747_v59, %v719_v57  ;;  %v720_v62 = vpop.f32.mrf.mxu1 }
 0x11a   : > { %v721_v0 = vadd.f32 %v720_v62, %v691_v63 }
 0x11b   : > { %v758_v61 = vadd.f32 %v748_v60, %v391_v58 }
 0x11d   : > { %766 = vst [vmem:[#allocation2 + $0x28] sm:$0xff] %v758_v61 }
 0x120   : > { %v749_v2 = vpop.f32.mrf.mxu2 }
 0x121   : > { %v750_v3 = vadd.f32 %v749_v2, %v721_v0  ;;  %771 = sbr.rel (%p1151_p13) target bundleno = 311 (0x137), region = 70 }
 0x123   : > { %v759_v4 = vadd.f32 %v750_v3, %v392_v1 }
 0x125   : > { %767 = vst [vmem:[#allocation2 + $0x38] sm:$0xff] %v759_v4 }
 0x126   : > { %v772_v5 = vld [vmem:[#allocation2 + $0x30] sm:$0xff]  ;;  %v773_v6 = vld [vmem:[#allocation2] sm:$0xff]  ;;  %v774_v9 = vld [vmem:[#allocation2 + $0x18] sm:$0xff] }
 0x127   : > { %v1300_v7 = vld [vmem:[%s1567_s2] ss:$0 sm:$0xff]  ;;  %v775_v12 = vld [vmem:[#allocation2 + $0x10] sm:$0xff]  ;;  %v1226_v13 = vld [vmem:[%s1474_s8 + $0x8] sm:$0xff]  }
 0x128   : > { %v1191_v8 = vld [vmem:[%s1474_s8] sm:$0xff]   ;;  %v776_v14 = vld [vmem:[#allocation2 + $0x8] sm:$0xff]  ;;  %v784_v15 = vadd.f32 %v1300_v7, %v772_v5  ;;  %v785_v16 = vadd.f32 %v1300_v7, %v773_v6  ;;  %v786_v17 = vadd.f32 %v1300_v7, %v774_v9  ;;  %v787_v18 = vadd.f32 %v1300_v7, %v775_v12  ;;  %v1227_v20 = vld [vmem:[%s1474_s8 + $0x10] sm:$0xff]  }
 0x129   : > { %v1192_v10 = vunpack.c.l.bf16 %v1191_v8  ;;  %v1193_v11 = vunpack.c.h.bf16 %v1191_v8  ;;  %v777_v19 = vld [vmem:[#allocation2 + $0x20] sm:$0xff]  ;;  %v778_v21 = vld [vmem:[#allocation2 + $0x28] sm:$0xff]  ;;  %v1196_v22 = vunpack.c.l.bf16 %v1226_v13  ;;  %v1197_v23 = vunpack.c.h.bf16 %v1226_v13  ;;  %v1228_v31 = vld [vmem:[%s1474_s8 + $0x18] sm:$0xff]  }
 0x12a   : > { %v788_v24 = vadd.f32 %v1300_v7, %v776_v14  ;;  %v789_v25 = vadd.f32 %v1300_v7, %v777_v19  ;;  %v1200_v29 = vunpack.c.l.bf16 %v1227_v20  ;;  %v1201_v30 = vunpack.c.h.bf16 %v1227_v20 }
 0x12b   : > { %v808_v27 = vadd.f32 %v1192_v10, %v784_v15  ;;  %v809_v28 = vadd.f32 %v1193_v11, %v785_v16  ;;  %v810_v32 = vadd.f32 %v1196_v22, %v786_v17  ;;  %v811_v33 = vadd.f32 %v1197_v23, %v787_v18 }
 0x12c   : > { %v779_v26 = vld [vmem:[#allocation2 + $0x38] sm:$0xff]  ;;  %v790_v34 = vadd.f32 %v1300_v7, %v778_v21  ;;  %v812_v38 = vadd.f32 %v1200_v29, %v788_v24  ;;  %v813_v39 = vadd.f32 %v1201_v30, %v789_v25  ;;  %v1204_v42 = vunpack.c.l.bf16 %v1228_v31 }
 0x12d   : > { %v791_v35 = vadd.f32 %v1300_v7, %v779_v26  ;;  %v816_v36 = vmax.f32 %v808_v27, 0.0  ;;  %v817_v37 = vmax.f32 %v809_v28, 0.0  ;;  %v818_v40 = vmax.f32 %v810_v32, 0.0 }
 0x12e   : > { %v819_v41 = vmax.f32 %v811_v33, 0.0  ;;  %v1205_v43 = vunpack.c.h.bf16 %v1228_v31  ;;  %v820_v45 = vmax.f32 %v812_v38, 0.0  ;;  %v821_v46 = vmax.f32 %v813_v39, 0.0 }
 0x12f   : > { %v1209_v44 = vpack.c.bf16 %v817_v37, %v816_v36  ;;  %v814_v48 = vadd.f32 %v1204_v42, %v790_v34 }
 0x130   : > { %v1214_v47 = vpack.c.bf16 %v819_v41, %v818_v40  ;;  %v815_v49 = vadd.f32 %v1205_v43, %v791_v35  ;;  %v1219_v50 = vpack.c.bf16 %v821_v46, %v820_v45 }
 0x131   : > { %1210 = vst [vmem:[%s1479_s18] sm:$0xff] %v1209_v44   ;;  %v822_v51 = vmax.f32 %v814_v48, 0.0 }
 0x132   : > { %1229 = vst [vmem:[%s1479_s18 + $0x8] sm:$0xff] %v1214_v47   ;;  %v823_v52 = vmax.f32 %v815_v49, 0.0 }
 0x133   : > { %1230 = vst [vmem:[%s1479_s18 + $0x10] sm:$0xff] %v1219_v50  }
 0x134   : > { %v1224_v53 = vpack.c.bf16 %v823_v52, %v822_v51 }
 0x136   : > { %1231 = vst [vmem:[%s1479_s18 + $0x18] sm:$0xff] %v1224_v53  }
 0x137 PF: > { %s14_s21 = sadd.s32 1, %s1355_s21   ;;  %s1570_s15 = smov %s1335_s16 }
 0x138   : > { %p11_p0 = scmp.ge.s32.totalorder %s14_s21, 8   ;;  %s1571_s16 = smov %s1434_s28 }
 0x139   : > { %s1572_s17 = smov %s1347_s19  ;;  %s1573_s18 = smov %s1351_s20 }
 0x13a   : > { %s1574_s19 = smov %s1577_s22  ;;  %s1575_s20 = smov %s1581_s23 }
 0x13b   :  { %13 = sbr.rel (!%p11_p0) target bundleno = 4 (0x4), region = 120 }

// kernel: forward.26
= control target key start
LH: loop header
LB: loop body
LE: loop exit
PB: predicated region body
PF: predicated region fallthrough
CT: control target
= control target key end

     0   :  { %s992_s12 = smov 0   ;;  %s994_s13 = smov 0   ;;  %s1126_s0 = inlined_call_operand.vmem [shape: bf16[32,1152], index: 0, kind: input, shape index: {}]   ;;  %s1127_s1 = inlined_call_operand.vmem [shape: bf16[1152,128], index: 1, kind: input, shape index: {}]   ;;  %s1128_s2 = inlined_call_operand.vmem [shape: f32[1,128], index: 2, kind: input, shape index: {}]   ;;  %s1129_s3 = inlined_call_operand.vmem [shape: bf16[32,128], index: 3, kind: output, shape index: {}]  }
   0x1   :  { %s996_s14 = smov 0   ;;  %s998_s15 = smov 0  }
   0x2   :  { %s1000_s16 = smov 0   ;;  %s1002_s17 = smov 0  }
   0x3   :  { %s1004_s18 = smov 0  }
   0x4 LB: > { %s25_s19 = sadd.s32 1, %s961_s16  ;;  %s32_s20 = sadd.s32 1, %s965_s17  ;;  %s969_s18 = sphi %s1004_s18, %s13_s18   ;;  %s965_s17 = sphi %s1002_s17, %s1135_s17   ;;  %s961_s16 = sphi %s1000_s16, %s1134_s16   ;;  %s957_s15 = sphi %s998_s15, %s1133_s15   ;;  %s953_s14 = sphi %s996_s14, %s1132_s14   ;;  %s949_s13 = sphi %s994_s13, %s1131_s13   ;;  %s945_s12 = sphi %s992_s12, %s1130_s12  }
   0x5   : > { %p26_p0 = scmp.ge.s32.totalorder %s25_s19, 3  ;;  %p48_p1 = scmp.ne.s32.totalorder %s949_s13, %s945_s12 }
   0x6   : > { %p49_p2 = scmp.eq.s32.totalorder %s969_s18, 0  ;;  %s41_s24 = sadd.s32 1, %s949_s13 }
   0x7   : > { %s1137_s19 = smov (%p26_p0, %s25_s19), 0  ;;  %s1139_s20 = smov (!%p26_p0, %s32_s20), %s965_s17 }
   0x8   : > { %p50_p3 = por %p49_p2, %p48_p1  ;;  %p34_p4 = scmp.ge.s32.totalorder %s1139_s20, 2 }
   0x9   : > { %s37_s21 = ssub.s32 %s961_s16, %s1137_s19  ;;  %p698_p6 = scmp.ge.s32.totalorder %s969_s18, 6 }
   0xa   : > { %s1141_s20 = smov (%p34_p4, %s1139_s20), 0 }
   0xb   : > { %s36_s22 = ssub.s32 %s965_s17, %s1141_s20  ;;  %162 = sbr.rel (%p698_p6) target bundleno = 29 (0x1d), region = 20 }
   0xc   : > { %s38_s23 = sor.u32 %s37_s21, %s36_s22 }
   0xd   : > { %p39_p5 = scmp.eq.s32.totalorder %s38_s23, 0 }
   0xf   : > { %s1043_s25 = scalar_select %p39_p5, %s949_s13, %s41_s24  }
  0x10   : > { %165 = sbr.rel (!%p50_p3) target bundleno = 29 (0x1d), region = 24  ;;  %s167_s26 = sand.u32 (%p50_p3), 1, %s949_s13  }
  0x11   : > { %s171_s27 = smul.u32 (%p50_p3), 3, %s961_s16 }
  0x12   : > { %s854_s28 = smul.u32 (%p50_p3), 24, %s167_s26 }
  0x13   : > { %s855_s29 = smul.u32 (%p50_p3), 18, %s965_s17 }
  0x14   : > { %s169_s8 = scalar_lea.vmem (%p50_p3), [#allocation3], %s854_s28 }
  0x15   : > { %s173_s30 = sadd.s32 %s855_s29, %s171_s27 }
  0x16   : > { %s701_s4 = sshll.u32 %s173_s30, 2 }
  0x17   : > { %s175_s7 = scalar_lea.vmem %s1126_s0, %s701_s4 }
  0x18   : > { %v190_v0 = vld [vmem:[%s175_s7] sm:$0xff]  ;;  %v702_v2 = vld [vmem:[%s175_s7 + $0x8] sm:$0xf]  ;;  %v704_v3 = vld [vmem:[%s175_s7 + $0x2c] sm:$0xf] }
  0x19   : > { %v192_v1 = vld [vmem:[%s175_s7 + $0x24] sm:$0xff]  ;;  %191 = vst [vmem:[%s169_s8] sm:$0xff] %v190_v0 }
  0x1a   : > { %193 = vst [vmem:[%s169_s8 + $0xc] sm:$0xff] %v192_v1 }
  0x1b   : > { %703 = vst [vmem:[%s169_s8 + $0x8] sm:$0xf] %v702_v2 }
  0x1c   : > { %705 = vst [vmem:[%s169_s8 + $0x14] sm:$0xf] %v704_v3 }
  0x1d PF: > { %p706_p7 = scmp.ge.s32.totalorder %s969_s18, 1  ;;  %p222_p8 = scmp.lt.s32.totalorder %s969_s18, 7 }
  0x1f   : > { %p223_p9 = pnand %p706_p7, %p222_p8 }
  0x20   : > { %s229_s9 = sand.u32 (!%p223_p9), 1, %s945_s12   ;;  %s268_s10 = smul.u32 (!%p223_p9), 48, %s953_s14 }
  0x21   : > { %226 = sbr.rel (%p223_p9) target bundleno = 242 (0xf2), region = 54  ;;  %s708_s21 = sshll.u32 (!%p223_p9), %s957_s15, 1 }
  0x22   : > { %s856_s11 = smul.u32 (!%p223_p9), 24, %s229_s9  ;;  %p269_p10 = scmp.lt.s32.totalorder (!%p223_p9), %s268_s10, 143 }
  0x23   : > { %p281_p11 = scmp.lt.s32.totalorder (!%p223_p9), %s708_s21, 3  ;;  %p710_p12 = scmp.ne.s32.totalorder (!%p223_p9), %s953_s14, 0 }
  0x24   : > { %s1067_s12 = scalar_lea.vmem (!%p223_p9), [#allocation3], %s856_s11 }
  0x26   : > { %s1143_s10 = smov (!%p269_p10, %s268_s10), 143  ;;  %s1145_s21 = smov (!%p281_p11, %s708_s21), 3 }
  0x27   : > { %s707_s22 = sshll.u32 %s1143_s10, 2  ;;  %s709_s27 = sshll.u32 %s1145_s21, 2 }
  0x28   : > { %s1060_s26 = scalar_lea.vmem %s1127_s1, %s707_s22  ;;  %s1065_s30 = scalar_lea.vmem %s1129_s3, %s709_s27 }
  0x29   : > { %292 = sbr.rel (%p710_p12) target bundleno = 49 (0x31), region = 62 }
  0x2e   : > { %v971_v4 = vmov 0.0  }
  0x2f   : > { %293 = vst [vmem:[#allocation2] sm:$0xff] %v971_v4 }
  0x30   : > { %294 = vst [vmem:[#allocation2 + $0x8] sm:$0xff] %v971_v4 }
  0x31 PF: > { %v832_v5 = vld [vmem:[%s1060_s26 + $0x38] sm:$0xff]  ;;  %v831_v8 = vld [vmem:[%s1060_s26 + $0x30] sm:$0xff]  ;;  %v830_v11 = vld [vmem:[%s1060_s26 + $0x28] sm:$0xff]  ;;  %p819_p13 = scmp.ne.s32.totalorder %s953_s14, 2 }
  0x32   : > { %v840_v6 = vld [vmem:[%s1060_s26 + $0x78] sm:$0xff]  ;;  %509 = vmatpush.bf16.msra.mxu0 %v832_v5  ;;  %v839_v9 = vld [vmem:[%s1060_s26 + $0x70] sm:$0xff]  ;;  %v838_v12 = vld [vmem:[%s1060_s26 + $0x68] sm:$0xff] }
  0x33   : > { %v848_v7 = vld [vmem:[%s1060_s26 + $0xb8] sm:$0xff]  ;;  %523 = vmatpush.bf16.msra.mxu1 %v840_v6  ;;  %v847_v10 = vld [vmem:[%s1060_s26 + $0xb0] sm:$0xff]  ;;  %v846_v13 = vld [vmem:[%s1060_s26 + $0xa8] sm:$0xff] }
  0x34   : > { %537 = vmatpush.bf16.msra.mxu2 %v848_v7  ;;  %v829_v14 = vld [vmem:[%s1060_s26 + $0x20] sm:$0xff]  ;;  %v828_v17 = vld [vmem:[%s1060_s26 + $0x18] sm:$0xff]  ;;  %v827_v20 = vld [vmem:[%s1060_s26 + $0x10] sm:$0xff] }
  0x35   : > { %v837_v15 = vld [vmem:[%s1060_s26 + $0x60] sm:$0xff]  ;;  %v836_v18 = vld [vmem:[%s1060_s26 + $0x58] sm:$0xff]  ;;  %v835_v21 = vld [vmem:[%s1060_s26 + $0x50] sm:$0xff] }
  0x36   : > { %510 = vmatpush.bf16.msra.mxu0 %v831_v8  ;;  %v845_v16 = vld [vmem:[%s1060_s26 + $0xa0] sm:$0xff]  ;;  %v844_v19 = vld [vmem:[%s1060_s26 + $0x98] sm:$0xff]  ;;  %v843_v22 = vld [vmem:[%s1060_s26 + $0x90] sm:$0xff] }
  0x37   : > { %524 = vmatpush.bf16.msra.mxu1 %v839_v9  ;;  %v826_v23 = vld [vmem:[%s1060_s26 + $0x8] sm:$0xff]  ;;  %v825_v26 = vld [vmem:[%s1060_s26] sm:$0xff]  ;;  %v823_v29 = vld [vmem:[%s1067_s12 + $0x8] sm:$0xf0] }
  0x38   : > { %538 = vmatpush.bf16.msra.mxu2 %v847_v10  ;;  %v834_v24 = vld [vmem:[%s1060_s26 + $0x48] sm:$0xff]  ;;  %v833_v27 = vld [vmem:[%s1060_s26 + $0x40] sm:$0xff]  ;;  %v721_v33 = vld [vmem:[%s1067_s12 + $0x8] sm:$0xf] }
  0x39   : > { %v842_v25 = vld [vmem:[%s1060_s26 + $0x88] sm:$0xff]  ;;  %v715_v31 = vld [vmem:[%s1067_s12 + $0xc] sm:$0xf0]  ;;  %v824_v34 = vld [vmem:[%s1067_s12 + $0x10] sm:$0xf0] }
  0x3a   : > { %511 = vmatpush.bf16.msra.mxu0 %v830_v11  ;;  %v713_v28 = vld [vmem:[%s1067_s12] sm:$0xf]  ;;  %v822_v30 = vld [vmem:[%s1067_s12 + $0x4] sm:$0xf]  ;;  %v841_v32 = vld [vmem:[%s1060_s26 + $0x80] sm:$0xff]  ;;  %v722_v37 = vor.u32 %v824_v34, %v721_v33 }
  0x3b   : > { %525 = vmatpush.bf16.msra.mxu1 %v838_v12  ;;  %v714_v35 = vor.u32 %v823_v29, %v713_v28  ;;  %v718_v36 = vor.u32 %v822_v30, %v715_v31  ;;  %v295_v41 = vld [vmem:[#allocation2] sm:$0xff]  ;;  %v296_v48 = vld [vmem:[#allocation2 + $0x8] sm:$0xff] }
  0x3c   : > { %539 = vmatpush.bf16.msra.mxu2 %v846_v13 }
  0x3e   : > { %512 = vmatpush.bf16.msra.mxu0 %v829_v14 }
  0x3f   : > { %526 = vmatpush.bf16.msra.mxu1 %v837_v15 }
  0x40   : > { %540 = vmatpush.bf16.msra.mxu2 %v845_v16 }
  0x42   : > { %513 = vmatpush.bf16.msra.mxu0 %v828_v17 }
  0x43   : > { %527 = vmatpush.bf16.msra.mxu1 %v836_v18 }
  0x44   : > { %541 = vmatpush.bf16.msra.mxu2 %v844_v19 }
  0x46   : > { %514 = vmatpush.bf16.msra.mxu0 %v827_v20 }
  0x47   : > { %528 = vmatpush.bf16.msra.mxu1 %v835_v21 }
  0x48   : > { %542 = vmatpush.bf16.msra.mxu2 %v843_v22 }
  0x4a   : > { %515 = vmatpush.bf16.msra.mxu0 %v826_v23 }
  0x4b   : > { %529 = vmatpush.bf16.msra.mxu1 %v834_v24 }
  0x4c   : > { %543 = vmatpush.bf16.msra.mxu2 %v842_v25 }
  0x4e   : > { %516 = vmatpush.bf16.msra.mxu0 %v825_v26 }
  0x4f   : > { %530 = vmatpush.bf16.msra.mxu1 %v833_v27 }
  0x50   : > { %544 = vmatpush.bf16.msra.mxu2 %v841_v32 }
  0x51   : > { %517 = vmatmul.bf16.vlgmr.msra.gmra.mxu0 %v714_v35 }
  0x52   : > { %531 = vmatmul.bf16.vlgmr.msra.gmra.mxu1 %v718_v36 }
  0x53   : > { %545 = vmatmul.bf16.vlgmr.msra.gmra.mxu2 %v722_v37 }
  0xce   : > { %v518_v38 = vpop.f32.mrf.mxu0 }
  0xcf   : > { %v532_v39 = vpop.f32.mrf.mxu1 }
  0xd0   : > { %v533_v40 = vadd.f32 %v532_v39, %v518_v38 }
  0xd6   : > { %v546_v42 = vpop.f32.mrf.mxu2  ;;  %v520_v45 = vpop.f32.mrf.mxu0 }
  0xd7   : > { %v547_v43 = vadd.f32 %v546_v42, %v533_v40  ;;  %v534_v46 = vpop.f32.mrf.mxu1 }
  0xd8   : > { %v535_v47 = vadd.f32 %v534_v46, %v520_v45 }
  0xd9   : > { %v551_v44 = vadd.f32 %v547_v43, %v295_v41 }
  0xdb   : > { %553 = vst [vmem:[#allocation2] sm:$0xff] %v551_v44 }
  0xde   : > { %v548_v49 = vpop.f32.mrf.mxu2 }
  0xdf   : > { %v549_v50 = vadd.f32 %v548_v49, %v535_v47  ;;  %558 = sbr.rel (%p819_p13) target bundleno = 242 (0xf2), region = 66 }
  0xe1   : > { %v552_v51 = vadd.f32 %v549_v50, %v296_v48 }
  0xe3   : > { %554 = vst [vmem:[#allocation2 + $0x8] sm:$0xff] %v552_v51 }
  0xe4   : > { %v559_v52 = vld [vmem:[#allocation2] sm:$0xff] }
  0xe5   : > { %v914_v54 = vld [vmem:[%s1128_s2] ss:$0 sm:$0xff] }
  0xe6   : > { %v565_v55 = vadd.f32 %v914_v54, %v559_v52 }
  0xe8   : > { %v567_v57 = vmax.f32 %v565_v55, 0.0 }
  0xea   : > { %v560_v53 = vld [vmem:[#allocation2 + $0x8] sm:$0xff] }
  0xeb   : > { %v566_v56 = vadd.f32 %v914_v54, %v560_v53 }
  0xed   : > { %v568_v58 = vmax.f32 %v566_v56, 0.0 }
  0xef   : > { %v852_v59 = vpack.c.bf16 %v568_v58, %v567_v57 }
  0xf1   : > { %853 = vst [vmem:[%s1065_s30] sm:$0xff] %v852_v59  }
  0xf2 PF: > { %s13_s18 = sadd.s32 1, %s969_s18   ;;  %s1130_s12 = smov %s949_s13 }
  0xf3   : > { %p10_p0 = scmp.ge.s32.totalorder %s13_s18, 8   ;;  %s1131_s13 = smov %s1043_s25 }
  0xf4   : > { %s1132_s14 = smov %s961_s16  ;;  %s1133_s15 = smov %s965_s17 }
  0xf5   : > { %s1134_s16 = smov %s1137_s19  ;;  %s1135_s17 = smov %s1141_s20 }
  0xf6   :  { %12 = sbr.rel (!%p10_p0) target bundleno = 4 (0x4), region = 113 }

// kernel: forward.27
= control target key start
LH: loop header
LB: loop body
LE: loop exit
PB: predicated region body
PF: predicated region fallthrough
CT: control target
= control target key end

     0   :  { %s615_s12 = smov 0   ;;  %s617_s13 = smov 0   ;;  %s675_s0 = inlined_call_operand.vmem [shape: bf16[32,128], index: 0, kind: input, shape index: {}]   ;;  %s676_s1 = inlined_call_operand.vmem [shape: bf16[128,128], index: 1, kind: input, shape index: {}]   ;;  %s677_s2 = inlined_call_operand.vmem [shape: f32[1,128], index: 2, kind: input, shape index: {}]   ;;  %s678_s3 = inlined_call_operand.vmem [shape: bf16[32,128], index: 3, kind: output, shape index: {}]  }
   0x1   :  { %s619_s14 = smov 0  }
   0x2 LB: > { %s32_s15 = sadd.s32 1, %s589_s13  ;;  %p489_p0 = scmp.ge.s32.totalorder %s593_s14, 1  ;;  %s593_s14 = sphi %s619_s14, %s13_s14   ;;  %s589_s13 = sphi %s617_s13, %s680_s13   ;;  %s585_s12 = sphi %s615_s12, %s679_s12  }
   0x3   : > { %p34_p1 = scmp.ge.s32.totalorder %s32_s15, 2  ;;  %p188_p2 = scmp.lt.s32.totalorder %s593_s14, 3 }
   0x5   : > { %s682_s15 = smov (%p34_p1, %s32_s15), 0  ;;  %p189_p3 = pnand %p489_p0, %p188_p2 }
   0x6   : > { %s490_s24 = sshll.u32 (!%p189_p3), %s585_s12, 1 }
   0x7   : > { %192 = sbr.rel (%p189_p3) target bundleno = 183 (0xb7), region = 32  ;;  %p230_p4 = scmp.lt.s32.totalorder (!%p189_p3), %s490_s24, 3 }
   0xc   : > { %v540_v0 = vld [vmem:[%s676_s1 + $0x38] sm:$0xff]  ;;  %v539_v1 = vld [vmem:[%s676_s1 + $0x30] sm:$0xff]  ;;  %v538_v2 = vld [vmem:[%s676_s1 + $0x28] sm:$0xff]  ;;  %s684_s24 = smov (!%p230_p4, %s490_s24), 3 }
   0xd   : > { %339 = vmatpush.bf16.msra.mxu0 %v540_v0  ;;  %v537_v3 = vld [vmem:[%s676_s1 + $0x20] sm:$0xff]  ;;  %v536_v4 = vld [vmem:[%s676_s1 + $0x18] sm:$0xff]  ;;  %v535_v5 = vld [vmem:[%s676_s1 + $0x10] sm:$0xff]  ;;  %s491_s4 = sshll.u32 %s684_s24, 2 }
   0xe   : > { %v534_v6 = vld [vmem:[%s676_s1 + $0x8] sm:$0xff]  ;;  %v533_v7 = vld [vmem:[%s676_s1] sm:$0xff]  ;;  %s236_s9 = scalar_lea.vmem %s675_s0, %s491_s4  ;;  %s257_s17 = scalar_lea.vmem %s678_s3, %s491_s4 }
   0xf   : > { %v532_v8 = vld [vmem:[%s236_s9] sm:$0xff] }
  0x10   : > { %v570_v10 = vld [vmem:[%s677_s2] ss:$0 sm:$0xff] }
  0x11   : > { %340 = vmatpush.bf16.msra.mxu0 %v539_v1 }
  0x15   : > { %341 = vmatpush.bf16.msra.mxu0 %v538_v2 }
  0x19   : > { %342 = vmatpush.bf16.msra.mxu0 %v537_v3 }
  0x1d   : > { %343 = vmatpush.bf16.msra.mxu0 %v536_v4 }
  0x21   : > { %344 = vmatpush.bf16.msra.mxu0 %v535_v5 }
  0x25   : > { %345 = vmatpush.bf16.msra.mxu0 %v534_v6 }
  0x29   : > { %346 = vmatpush.bf16.msra.mxu0 %v533_v7 }
  0x2c   : > { %347 = vmatmul.bf16.vlgmr.msra.gmra.mxu0 %v532_v8 }
  0xa9   : > { %v348_v9 = vpop.f32.mrf.mxu0 }
  0xaa   : > { %v366_v12 = vadd.f32 %v570_v10, %v348_v9 }
  0xb1   : > { %v350_v11 = vpop.f32.mrf.mxu0 }
  0xb2   : > { %v367_v13 = vadd.f32 %v570_v10, %v350_v11 }
  0xb4   : > { %v544_v14 = vpack.c.bf16 %v367_v13, %v366_v12 }
  0xb6   : > { %545 = vst [vmem:[%s257_s17] sm:$0xff] %v544_v14  }
  0xb7 PF: > { %s13_s14 = sadd.s32 1, %s593_s14   ;;  %s679_s12 = smov %s589_s13 }
  0xb8   : > { %p10_p5 = scmp.ge.s32.totalorder %s13_s14, 4   ;;  %s680_s13 = smov %s682_s15 }
  0xba   :  { %12 = sbr.rel (!%p10_p5) target bundleno = 2 (0x2), region = 76 }

// kernel: forward.28
= control target key start
LH: loop header
LB: loop body
LE: loop exit
PB: predicated region body
PF: predicated region fallthrough
CT: control target
= control target key end

     0   :  { %s1084_s15 = smov 0   ;;  %s1086_s16 = smov 0   ;;  %s1224_s0 = inlined_call_operand.vmem [shape: bf16[32,1152], index: 0, kind: input, shape index: {}]   ;;  %s1225_s1 = inlined_call_operand.vmem [shape: bf16[1152,128], index: 1, kind: input, shape index: {}]   ;;  %s1226_s2 = inlined_call_operand.vmem [shape: f32[1,128], index: 2, kind: input, shape index: {}]   ;;  %s1227_s3 = inlined_call_operand.vmem [shape: bf16[32,128], index: 3, kind: input, shape index: {}]   ;;  %s1228_s4 = inlined_call_operand.vmem [shape: bf16[32,128], index: 4, kind: output, shape index: {}]  }
   0x1   :  { %s1088_s17 = smov 0   ;;  %s1090_s18 = smov 0  }
   0x2   :  { %s1092_s19 = smov 0   ;;  %s1094_s20 = smov 0  }
   0x3   :  { %s1096_s21 = smov 0  }
   0x4 LB: > { %s26_s22 = sadd.s32 1, %s1048_s19  ;;  %s33_s23 = sadd.s32 1, %s1052_s20  ;;  %s1056_s21 = sphi %s1096_s21, %s14_s21   ;;  %s1052_s20 = sphi %s1094_s20, %s1234_s20   ;;  %s1048_s19 = sphi %s1092_s19, %s1233_s19   ;;  %s1044_s18 = sphi %s1090_s18, %s1232_s18   ;;  %s1040_s17 = sphi %s1088_s17, %s1231_s17   ;;  %s1036_s16 = sphi %s1086_s16, %s1230_s16   ;;  %s1032_s15 = sphi %s1084_s15, %s1229_s15  }
   0x5   : > { %p27_p0 = scmp.ge.s32.totalorder %s26_s22, 3  ;;  %p49_p1 = scmp.ne.s32.totalorder %s1036_s16, %s1032_s15 }
   0x6   : > { %p50_p2 = scmp.eq.s32.totalorder %s1056_s21, 0  ;;  %s42_s27 = sadd.s32 1, %s1036_s16 }
   0x7   : > { %s1236_s22 = smov (%p27_p0, %s26_s22), 0  ;;  %s1238_s23 = smov (!%p27_p0, %s33_s23), %s1052_s20 }
   0x8   : > { %p51_p3 = por %p50_p2, %p49_p1  ;;  %p35_p4 = scmp.ge.s32.totalorder %s1238_s23, 2 }
   0x9   : > { %s38_s24 = ssub.s32 %s1048_s19, %s1236_s22  ;;  %p779_p6 = scmp.ge.s32.totalorder %s1056_s21, 6 }
   0xa   : > { %s1240_s23 = smov (%p35_p4, %s1238_s23), 0 }
   0xb   : > { %s37_s25 = ssub.s32 %s1052_s20, %s1240_s23  ;;  %191 = sbr.rel (%p779_p6) target bundleno = 29 (0x1d), region = 20 }
   0xc   : > { %s39_s26 = sor.u32 %s38_s24, %s37_s25 }
   0xd   : > { %p40_p5 = scmp.eq.s32.totalorder %s39_s26, 0 }
   0xf   : > { %s1135_s28 = scalar_select %p40_p5, %s1036_s16, %s42_s27  }
  0x10   : > { %194 = sbr.rel (!%p51_p3) target bundleno = 29 (0x1d), region = 24  ;;  %s196_s29 = sand.u32 (%p51_p3), 1, %s1036_s16  }
  0x11   : > { %s200_s30 = smul.u32 (%p51_p3), 3, %s1048_s19 }
  0x12   : > { %s941_s5 = smul.u32 (%p51_p3), 24, %s196_s29 }
  0x13   : > { %s942_s6 = smul.u32 (%p51_p3), 18, %s1052_s20 }
  0x14   : > { %s198_s12 = scalar_lea.vmem (%p51_p3), [#allocation3], %s941_s5 }
  0x15   : > { %s202_s7 = sadd.s32 %s942_s6, %s200_s30 }
  0x16   : > { %s782_s8 = sshll.u32 %s202_s7, 2 }
  0x17   : > { %s204_s11 = scalar_lea.vmem %s1224_s0, %s782_s8 }
  0x18   : > { %v219_v0 = vld [vmem:[%s204_s11] sm:$0xff]  ;;  %v783_v2 = vld [vmem:[%s204_s11 + $0x8] sm:$0xf]  ;;  %v785_v3 = vld [vmem:[%s204_s11 + $0x2c] sm:$0xf] }
  0x19   : > { %v221_v1 = vld [vmem:[%s204_s11 + $0x24] sm:$0xff]  ;;  %220 = vst [vmem:[%s198_s12] sm:$0xff] %v219_v0 }
  0x1a   : > { %222 = vst [vmem:[%s198_s12 + $0xc] sm:$0xff] %v221_v1 }
  0x1b   : > { %784 = vst [vmem:[%s198_s12 + $0x8] sm:$0xf] %v783_v2 }
  0x1c   : > { %786 = vst [vmem:[%s198_s12 + $0x14] sm:$0xf] %v785_v3 }
  0x1d PF: > { %p787_p7 = scmp.ge.s32.totalorder %s1056_s21, 1  ;;  %p263_p8 = scmp.lt.s32.totalorder %s1056_s21, 7 }
  0x1f   : > { %p264_p9 = pnand %p787_p7, %p263_p8 }
  0x20   : > { %s270_s13 = sand.u32 (!%p264_p9), 1, %s1032_s15   ;;  %s319_s14 = smul.u32 (!%p264_p9), 48, %s1040_s17 }
  0x21   : > { %267 = sbr.rel (%p264_p9) target bundleno = 244 (0xf4), region = 58  ;;  %s789_s25 = sshll.u32 (!%p264_p9), %s1044_s18, 1 }
  0x22   : > { %s943_s24 = smul.u32 (!%p264_p9), 24, %s270_s13  ;;  %p320_p10 = scmp.lt.s32.totalorder (!%p264_p9), %s319_s14, 143 }
  0x23   : > { %p332_p11 = scmp.lt.s32.totalorder (!%p264_p9), %s789_s25, 3  ;;  %p793_p12 = scmp.ne.s32.totalorder (!%p264_p9), %s1040_s17, 0 }
  0x24   : > { %s1164_s10 = scalar_lea.vmem (!%p264_p9), [#allocation3], %s943_s24 }
  0x26   : > { %s1242_s14 = smov (!%p320_p10, %s319_s14), 143  ;;  %s1244_s25 = smov (!%p332_p11, %s789_s25), 3 }
  0x27   : > { %s788_s26 = sshll.u32 %s1242_s14, 2  ;;  %s790_s5 = sshll.u32 %s1244_s25, 2 }
  0x28   : > { %s1152_s30 = scalar_lea.vmem %s1225_s1, %s788_s26  ;;  %s1157_s8 = scalar_lea.vmem %s1227_s3, %s790_s5 }
  0x29   : > { %s1162_s18 = scalar_lea.vmem %s1228_s4, %s790_s5  ;;  %352 = sbr.rel (%p793_p12) target bundleno = 49 (0x31), region = 66 }
  0x2e   : > { %v1058_v4 = vmov 0.0  }
  0x2f   : > { %353 = vst [vmem:[#allocation2] sm:$0xff] %v1058_v4 }
  0x30   : > { %354 = vst [vmem:[#allocation2 + $0x8] sm:$0xff] %v1058_v4 }
  0x31 PF: > { %v915_v5 = vld [vmem:[%s1152_s30 + $0x38] sm:$0xff]  ;;  %v914_v8 = vld [vmem:[%s1152_s30 + $0x30] sm:$0xff]  ;;  %v913_v11 = vld [vmem:[%s1152_s30 + $0x28] sm:$0xff]  ;;  %p902_p13 = scmp.ne.s32.totalorder %s1040_s17, 2 }
  0x32   : > { %v923_v6 = vld [vmem:[%s1152_s30 + $0x78] sm:$0xff]  ;;  %569 = vmatpush.bf16.msra.mxu0 %v915_v5  ;;  %v922_v9 = vld [vmem:[%s1152_s30 + $0x70] sm:$0xff]  ;;  %v921_v12 = vld [vmem:[%s1152_s30 + $0x68] sm:$0xff] }
  0x33   : > { %v931_v7 = vld [vmem:[%s1152_s30 + $0xb8] sm:$0xff]  ;;  %583 = vmatpush.bf16.msra.mxu1 %v923_v6  ;;  %v930_v10 = vld [vmem:[%s1152_s30 + $0xb0] sm:$0xff]  ;;  %v929_v13 = vld [vmem:[%s1152_s30 + $0xa8] sm:$0xff] }
  0x34   : > { %597 = vmatpush.bf16.msra.mxu2 %v931_v7  ;;  %v912_v14 = vld [vmem:[%s1152_s30 + $0x20] sm:$0xff]  ;;  %v911_v17 = vld [vmem:[%s1152_s30 + $0x18] sm:$0xff]  ;;  %v910_v20 = vld [vmem:[%s1152_s30 + $0x10] sm:$0xff] }
  0x35   : > { %v920_v15 = vld [vmem:[%s1152_s30 + $0x60] sm:$0xff]  ;;  %v919_v18 = vld [vmem:[%s1152_s30 + $0x58] sm:$0xff]  ;;  %v918_v21 = vld [vmem:[%s1152_s30 + $0x50] sm:$0xff] }
  0x36   : > { %570 = vmatpush.bf16.msra.mxu0 %v914_v8  ;;  %v928_v16 = vld [vmem:[%s1152_s30 + $0xa0] sm:$0xff]  ;;  %v927_v19 = vld [vmem:[%s1152_s30 + $0x98] sm:$0xff]  ;;  %v926_v22 = vld [vmem:[%s1152_s30 + $0x90] sm:$0xff] }
  0x37   : > { %584 = vmatpush.bf16.msra.mxu1 %v922_v9  ;;  %v909_v23 = vld [vmem:[%s1152_s30 + $0x8] sm:$0xff]  ;;  %v908_v26 = vld [vmem:[%s1152_s30] sm:$0xff]  ;;  %v906_v29 = vld [vmem:[%s1164_s10 + $0x8] sm:$0xf0] }
  0x38   : > { %598 = vmatpush.bf16.msra.mxu2 %v930_v10  ;;  %v917_v24 = vld [vmem:[%s1152_s30 + $0x48] sm:$0xff]  ;;  %v916_v27 = vld [vmem:[%s1152_s30 + $0x40] sm:$0xff]  ;;  %v804_v33 = vld [vmem:[%s1164_s10 + $0x8] sm:$0xf] }
  0x39   : > { %v925_v25 = vld [vmem:[%s1152_s30 + $0x88] sm:$0xff]  ;;  %v798_v31 = vld [vmem:[%s1164_s10 + $0xc] sm:$0xf0]  ;;  %v907_v34 = vld [vmem:[%s1164_s10 + $0x10] sm:$0xf0] }
  0x3a   : > { %571 = vmatpush.bf16.msra.mxu0 %v913_v11  ;;  %v796_v28 = vld [vmem:[%s1164_s10] sm:$0xf]  ;;  %v905_v30 = vld [vmem:[%s1164_s10 + $0x4] sm:$0xf]  ;;  %v924_v32 = vld [vmem:[%s1152_s30 + $0x80] sm:$0xff]  ;;  %v805_v37 = vor.u32 %v907_v34, %v804_v33 }
  0x3b   : > { %585 = vmatpush.bf16.msra.mxu1 %v921_v12  ;;  %v797_v35 = vor.u32 %v906_v29, %v796_v28  ;;  %v801_v36 = vor.u32 %v905_v30, %v798_v31  ;;  %v355_v41 = vld [vmem:[#allocation2] sm:$0xff]  ;;  %v356_v48 = vld [vmem:[#allocation2 + $0x8] sm:$0xff] }
  0x3c   : > { %599 = vmatpush.bf16.msra.mxu2 %v929_v13 }
  0x3e   : > { %572 = vmatpush.bf16.msra.mxu0 %v912_v14 }
  0x3f   : > { %586 = vmatpush.bf16.msra.mxu1 %v920_v15 }
  0x40   : > { %600 = vmatpush.bf16.msra.mxu2 %v928_v16 }
  0x42   : > { %573 = vmatpush.bf16.msra.mxu0 %v911_v17 }
  0x43   : > { %587 = vmatpush.bf16.msra.mxu1 %v919_v18 }
  0x44   : > { %601 = vmatpush.bf16.msra.mxu2 %v927_v19 }
  0x46   : > { %574 = vmatpush.bf16.msra.mxu0 %v910_v20 }
  0x47   : > { %588 = vmatpush.bf16.msra.mxu1 %v918_v21 }
  0x48   : > { %602 = vmatpush.bf16.msra.mxu2 %v926_v22 }
  0x4a   : > { %575 = vmatpush.bf16.msra.mxu0 %v909_v23 }
  0x4b   : > { %589 = vmatpush.bf16.msra.mxu1 %v917_v24 }
  0x4c   : > { %603 = vmatpush.bf16.msra.mxu2 %v925_v25 }
  0x4e   : > { %576 = vmatpush.bf16.msra.mxu0 %v908_v26 }
  0x4f   : > { %590 = vmatpush.bf16.msra.mxu1 %v916_v27 }
  0x50   : > { %604 = vmatpush.bf16.msra.mxu2 %v924_v32 }
  0x51   : > { %577 = vmatmul.bf16.vlgmr.msra.gmra.mxu0 %v797_v35 }
  0x52   : > { %591 = vmatmul.bf16.vlgmr.msra.gmra.mxu1 %v801_v36 }
  0x53   : > { %605 = vmatmul.bf16.vlgmr.msra.gmra.mxu2 %v805_v37 }
  0xce   : > { %v578_v38 = vpop.f32.mrf.mxu0 }
  0xcf   : > { %v592_v39 = vpop.f32.mrf.mxu1 }
  0xd0   : > { %v593_v40 = vadd.f32 %v592_v39, %v578_v38 }
  0xd6   : > { %v606_v42 = vpop.f32.mrf.mxu2  ;;  %v580_v45 = vpop.f32.mrf.mxu0 }
  0xd7   : > { %v607_v43 = vadd.f32 %v606_v42, %v593_v40  ;;  %v594_v46 = vpop.f32.mrf.mxu1 }
  0xd8   : > { %v595_v47 = vadd.f32 %v594_v46, %v580_v45 }
  0xd9   : > { %v611_v44 = vadd.f32 %v607_v43, %v355_v41 }
  0xdb   : > { %613 = vst [vmem:[#allocation2] sm:$0xff] %v611_v44 }
  0xde   : > { %v608_v49 = vpop.f32.mrf.mxu2 }
  0xdf   : > { %v609_v50 = vadd.f32 %v608_v49, %v595_v47  ;;  %618 = sbr.rel (%p902_p13) target bundleno = 244 (0xf4), region = 70 }
  0xe1   : > { %v612_v51 = vadd.f32 %v609_v50, %v356_v48 }
  0xe3   : > { %614 = vst [vmem:[#allocation2 + $0x8] sm:$0xff] %v612_v51 }
  0xe4   : > { %v619_v52 = vld [vmem:[#allocation2] sm:$0xff] }
  0xe5   : > { %v1001_v54 = vld [vmem:[%s1226_s2] ss:$0 sm:$0xff] }
  0xe6   : > { %v933_v55 = vld [vmem:[%s1157_s8] sm:$0xff]   ;;  %v625_v58 = vadd.f32 %v1001_v54, %v619_v52 }
  0xe7   : > { %v934_v56 = vunpack.c.l.bf16 %v933_v55  ;;  %v935_v57 = vunpack.c.h.bf16 %v933_v55 }
  0xe9   : > { %v631_v60 = vadd.f32 %v934_v56, %v625_v58 }
  0xea   : > { %v620_v53 = vld [vmem:[#allocation2 + $0x8] sm:$0xff] }
  0xeb   : > { %v626_v59 = vadd.f32 %v1001_v54, %v620_v53  ;;  %v633_v62 = vmax.f32 %v631_v60, 0.0 }
  0xed   : > { %v632_v61 = vadd.f32 %v935_v57, %v626_v59 }
  0xef   : > { %v634_v63 = vmax.f32 %v632_v61, 0.0 }
  0xf1   : > { %v939_v0 = vpack.c.bf16 %v634_v63, %v633_v62 }
  0xf3   : > { %940 = vst [vmem:[%s1162_s18] sm:$0xff] %v939_v0  }
  0xf4 PF: > { %s14_s21 = sadd.s32 1, %s1056_s21   ;;  %s1229_s15 = smov %s1036_s16 }
  0xf5   : > { %p11_p0 = scmp.ge.s32.totalorder %s14_s21, 8   ;;  %s1230_s16 = smov %s1135_s28 }
  0xf6   : > { %s1231_s17 = smov %s1048_s19  ;;  %s1232_s18 = smov %s1052_s20 }
  0xf7   : > { %s1233_s19 = smov %s1236_s22  ;;  %s1234_s20 = smov %s1240_s23 }
  0xf8   :  { %13 = sbr.rel (!%p11_p0) target bundleno = 4 (0x4), region = 120 }

// kernel: forward.31
= control target key start
LH: loop header
LB: loop body
LE: loop exit
PB: predicated region body
PF: predicated region fallthrough
CT: control target
= control target key end

     0   :  { %s1139_s12 = smov 0   ;;  %s1141_s13 = smov 0   ;;  %s1379_s0 = inlined_call_operand.vmem [shape: bf16[8,1152], index: 0, kind: input, shape index: {}]   ;;  %s1380_s1 = inlined_call_operand.vmem [shape: bf16[1152,256], index: 1, kind: input, shape index: {}]   ;;  %s1381_s2 = inlined_call_operand.vmem [shape: f32[1,256], index: 2, kind: input, shape index: {}]   ;;  %s1382_s3 = inlined_call_operand.vmem [shape: bf16[8,256], index: 3, kind: output, shape index: {}]  }
   0x1   :  { %s1143_s14 = smov 0   ;;  %s1145_s15 = smov 0  }
   0x2   :  { %s1147_s16 = smov 0   ;;  %s1149_s17 = smov 0  }
   0x3   :  { %s1151_s18 = smov 0  }
   0x4 LB: > { %s25_s19 = sadd.s32 1, %s1108_s16  ;;  %s28_s20 = sadd.s32 1, %s1112_s17  ;;  %s1116_s18 = sphi %s1151_s18, %s13_s18   ;;  %s1112_s17 = sphi %s1149_s17, %s1388_s17   ;;  %s1108_s16 = sphi %s1147_s16, %s1387_s16   ;;  %s1104_s15 = sphi %s1145_s15, %s1386_s15   ;;  %s1100_s14 = sphi %s1143_s14, %s1385_s14   ;;  %s1096_s13 = sphi %s1141_s13, %s1384_s13   ;;  %s1092_s12 = sphi %s1139_s12, %s1383_s12  }
   0x5   : > { %p26_p0 = scmp.ge.s32.totalorder %s25_s19, 3  ;;  %p76_p1 = scmp.ne.s32.totalorder %s1096_s13, %s1092_s12 }
   0x6   : > { %p77_p2 = scmp.eq.s32.totalorder %s1116_s18, 0  ;;  %s69_s24 = sadd.s32 1, %s1096_s13 }
   0x7   : > { %s1390_s19 = smov (%p26_p0, %s25_s19), 0  ;;  %s1392_s20 = smov (!%p26_p0, %s28_s20), %s1112_s17 }
   0x8   : > { %p78_p3 = por %p77_p2, %p76_p1  ;;  %p30_p4 = scmp.ge.s32.totalorder %s1392_s20, 2 }
   0x9   : > { %s64_s21 = ssub.s32 %s1108_s16, %s1390_s19  ;;  %p871_p6 = scmp.ge.s32.totalorder %s1116_s18, 6 }
   0xa   : > { %s1394_s20 = smov (%p30_p4, %s1392_s20), 0 }
   0xb   : > { %s65_s22 = ssub.s32 %s1112_s17, %s1394_s20  ;;  %156 = sbr.rel (%p871_p6) target bundleno = 71 (0x47), region = 16 }
   0xc   : > { %s66_s23 = sor.u32 %s65_s22, %s64_s21 }
   0xd   : > { %p67_p5 = scmp.eq.s32.totalorder %s66_s23, 0 }
   0xf   : > { %s1190_s25 = scalar_select %p67_p5, %s1096_s13, %s69_s24  }
  0x10   : > { %172 = sbr.rel (!%p78_p3) target bundleno = 71 (0x47), region = 24  ;;  %s174_s26 = sand.u32 (%p78_p3), 1, %s1096_s13  }
  0x11   : > { %s977_s27 = smul.u32 (%p78_p3), 96, %s1108_s16 }
  0x12   : > { %s1002_s28 = smul.u32 (%p78_p3), 192, %s174_s26 }
  0x13   : > { %s179_s29 = sadd.s32 (%p78_p3), %s1112_s17, %s977_s27 }
  0x14   : > { %s873_s30 = sshll.u32 (%p78_p3), %s179_s29, 2  ;;  %s1204_s7 = scalar_lea.vmem (%p78_p3), [#allocation3], %s1002_s28 }
  0x15   : > { %s1199_s6 = scalar_lea.vmem %s1380_s1, %s873_s30 }
  0x16   : > { %v198_v0 = vld [vmem:[%s1199_s6] sm:$0xf]  ;;  %v200_v1 = vld [vmem:[%s1199_s6 + $0x8] sm:$0xf]  ;;  %v202_v2 = vld [vmem:[%s1199_s6 + $0x10] sm:$0xf] }
  0x17   : > { %199 = vst [vmem:[%s1204_s7] sm:$0xf] %v198_v0  ;;  %v204_v3 = vld [vmem:[%s1199_s6 + $0x18] sm:$0xf]  ;;  %v206_v4 = vld [vmem:[%s1199_s6 + $0x20] sm:$0xf] }
  0x18   : > { %201 = vst [vmem:[%s1204_s7 + $0x4] sm:$0xf] %v200_v1  ;;  %v208_v5 = vld [vmem:[%s1199_s6 + $0x28] sm:$0xf]  ;;  %v210_v6 = vld [vmem:[%s1199_s6 + $0x30] sm:$0xf] }
  0x19   : > { %203 = vst [vmem:[%s1204_s7 + $0x8] sm:$0xf] %v202_v2  ;;  %v212_v7 = vld [vmem:[%s1199_s6 + $0x38] sm:$0xf]  ;;  %v214_v8 = vld [vmem:[%s1199_s6 + $0x40] sm:$0xf] }
  0x1a   : > { %205 = vst [vmem:[%s1204_s7 + $0xc] sm:$0xf] %v204_v3  ;;  %v216_v9 = vld [vmem:[%s1199_s6 + $0x48] sm:$0xf]  ;;  %v218_v10 = vld [vmem:[%s1199_s6 + $0x50] sm:$0xf] }
  0x1b   : > { %207 = vst [vmem:[%s1204_s7 + $0x10] sm:$0xf] %v206_v4  ;;  %v220_v11 = vld [vmem:[%s1199_s6 + $0x58] sm:$0xf]  ;;  %v222_v12 = vld [vmem:[%s1199_s6 + $0x60] sm:$0xf] }
  0x1c   : > { %209 = vst [vmem:[%s1204_s7 + $0x14] sm:$0xf] %v208_v5  ;;  %v224_v13 = vld [vmem:[%s1199_s6 + $0x68] sm:$0xf]  ;;  %v226_v14 = vld [vmem:[%s1199_s6 + $0x70] sm:$0xf] }
  0x1d   : > { %211 = vst [vmem:[%s1204_s7 + $0x18] sm:$0xf] %v210_v6  ;;  %v228_v15 = vld [vmem:[%s1199_s6 + $0x78] sm:$0xf]  ;;  %v230_v16 = vld [vmem:[%s1199_s6 + $0x80] sm:$0xf] }
  0x1e   : > { %213 = vst [vmem:[%s1204_s7 + $0x1c] sm:$0xf] %v212_v7  ;;  %v232_v17 = vld [vmem:[%s1199_s6 + $0x88] sm:$0xf]  ;;  %v234_v18 = vld [vmem:[%s1199_s6 + $0x90] sm:$0xf] }
  0x1f   : > { %215 = vst [vmem:[%s1204_s7 + $0x20] sm:$0xf] %v214_v8  ;;  %v236_v19 = vld [vmem:[%s1199_s6 + $0x98] sm:$0xf]  ;;  %v238_v20 = vld [vmem:[%s1199_s6 + $0xa0] sm:$0xf] }
  0x20   : > { %217 = vst [vmem:[%s1204_s7 + $0x24] sm:$0xf] %v216_v9  ;;  %v240_v21 = vld [vmem:[%s1199_s6 + $0xa8] sm:$0xf]  ;;  %v242_v22 = vld [vmem:[%s1199_s6 + $0xb0] sm:$0xf] }
  0x21   : > { %219 = vst [vmem:[%s1204_s7 + $0x28] sm:$0xf] %v218_v10  ;;  %v244_v23 = vld [vmem:[%s1199_s6 + $0xb8] sm:$0xf]  ;;  %v246_v24 = vld [vmem:[%s1199_s6 + $0xc0] sm:$0xf] }
  0x22   : > { %221 = vst [vmem:[%s1204_s7 + $0x2c] sm:$0xf] %v220_v11  ;;  %v248_v25 = vld [vmem:[%s1199_s6 + $0xc8] sm:$0xf]  ;;  %v250_v26 = vld [vmem:[%s1199_s6 + $0xd0] sm:$0xf] }
  0x23   : > { %223 = vst [vmem:[%s1204_s7 + $0x30] sm:$0xf] %v222_v12  ;;  %v252_v27 = vld [vmem:[%s1199_s6 + $0xd8] sm:$0xf]  ;;  %v254_v28 = vld [vmem:[%s1199_s6 + $0xe0] sm:$0xf] }
  0x24   : > { %225 = vst [vmem:[%s1204_s7 + $0x34] sm:$0xf] %v224_v13  ;;  %v256_v29 = vld [vmem:[%s1199_s6 + $0xe8] sm:$0xf]  ;;  %v258_v30 = vld [vmem:[%s1199_s6 + $0xf0] sm:$0xf] }
  0x25   : > { %227 = vst [vmem:[%s1204_s7 + $0x38] sm:$0xf] %v226_v14  ;;  %v260_v31 = vld [vmem:[%s1199_s6 + $0xf8] sm:$0xf]  ;;  %v262_v32 = vld [vmem:[%s1199_s6 + $0x100] sm:$0xf] }
  0x26   : > { %229 = vst [vmem:[%s1204_s7 + $0x3c] sm:$0xf] %v228_v15  ;;  %v264_v33 = vld [vmem:[%s1199_s6 + $0x108] sm:$0xf]  ;;  %v266_v34 = vld [vmem:[%s1199_s6 + $0x110] sm:$0xf] }
  0x27   : > { %231 = vst [vmem:[%s1204_s7 + $0x40] sm:$0xf] %v230_v16  ;;  %v268_v35 = vld [vmem:[%s1199_s6 + $0x118] sm:$0xf]  ;;  %v270_v36 = vld [vmem:[%s1199_s6 + $0x120] sm:$0xf] }
  0x28   : > { %233 = vst [vmem:[%s1204_s7 + $0x44] sm:$0xf] %v232_v17  ;;  %v272_v37 = vld [vmem:[%s1199_s6 + $0x128] sm:$0xf]  ;;  %v274_v38 = vld [vmem:[%s1199_s6 + $0x130] sm:$0xf] }
  0x29   : > { %235 = vst [vmem:[%s1204_s7 + $0x48] sm:$0xf] %v234_v18  ;;  %v276_v39 = vld [vmem:[%s1199_s6 + $0x138] sm:$0xf]  ;;  %v278_v40 = vld [vmem:[%s1199_s6 + $0x140] sm:$0xf] }
  0x2a   : > { %237 = vst [vmem:[%s1204_s7 + $0x4c] sm:$0xf] %v236_v19  ;;  %v280_v41 = vld [vmem:[%s1199_s6 + $0x148] sm:$0xf]  ;;  %v282_v42 = vld [vmem:[%s1199_s6 + $0x150] sm:$0xf] }
  0x2b   : > { %239 = vst [vmem:[%s1204_s7 + $0x50] sm:$0xf] %v238_v20  ;;  %v284_v43 = vld [vmem:[%s1199_s6 + $0x158] sm:$0xf]  ;;  %v286_v44 = vld [vmem:[%s1199_s6 + $0x160] sm:$0xf] }
  0x2c   : > { %241 = vst [vmem:[%s1204_s7 + $0x54] sm:$0xf] %v240_v21  ;;  %v288_v45 = vld [vmem:[%s1199_s6 + $0x168] sm:$0xf]  ;;  %v290_v46 = vld [vmem:[%s1199_s6 + $0x170] sm:$0xf] }
  0x2d   : > { %243 = vst [vmem:[%s1204_s7 + $0x58] sm:$0xf] %v242_v22  ;;  %v292_v47 = vld [vmem:[%s1199_s6 + $0x178] sm:$0xf] }
  0x2e   : > { %245 = vst [vmem:[%s1204_s7 + $0x5c] sm:$0xf] %v244_v23 }
  0x2f   : > { %247 = vst [vmem:[%s1204_s7 + $0x60] sm:$0xf] %v246_v24 }
  0x30   : > { %249 = vst [vmem:[%s1204_s7 + $0x64] sm:$0xf] %v248_v25 }
  0x31   : > { %251 = vst [vmem:[%s1204_s7 + $0x68] sm:$0xf] %v250_v26 }
  0x32   : > { %253 = vst [vmem:[%s1204_s7 + $0x6c] sm:$0xf] %v252_v27 }
  0x33   : > { %255 = vst [vmem:[%s1204_s7 + $0x70] sm:$0xf] %v254_v28 }
  0x34   : > { %257 = vst [vmem:[%s1204_s7 + $0x74] sm:$0xf] %v256_v29 }
  0x35   : > { %259 = vst [vmem:[%s1204_s7 + $0x78] sm:$0xf] %v258_v30 }
  0x36   : > { %261 = vst [vmem:[%s1204_s7 + $0x7c] sm:$0xf] %v260_v31 }
  0x37   : > { %263 = vst [vmem:[%s1204_s7 + $0x80] sm:$0xf] %v262_v32 }
  0x38   : > { %265 = vst [vmem:[%s1204_s7 + $0x84] sm:$0xf] %v264_v33 }
  0x39   : > { %267 = vst [vmem:[%s1204_s7 + $0x88] sm:$0xf] %v266_v34 }
  0x3a   : > { %269 = vst [vmem:[%s1204_s7 + $0x8c] sm:$0xf] %v268_v35 }
  0x3b   : > { %271 = vst [vmem:[%s1204_s7 + $0x90] sm:$0xf] %v270_v36 }
  0x3c   : > { %273 = vst [vmem:[%s1204_s7 + $0x94] sm:$0xf] %v272_v37 }
  0x3d   : > { %275 = vst [vmem:[%s1204_s7 + $0x98] sm:$0xf] %v274_v38 }
  0x3e   : > { %277 = vst [vmem:[%s1204_s7 + $0x9c] sm:$0xf] %v276_v39 }
  0x3f   : > { %279 = vst [vmem:[%s1204_s7 + $0xa0] sm:$0xf] %v278_v40 }
  0x40   : > { %281 = vst [vmem:[%s1204_s7 + $0xa4] sm:$0xf] %v280_v41 }
  0x41   : > { %283 = vst [vmem:[%s1204_s7 + $0xa8] sm:$0xf] %v282_v42 }
  0x42   : > { %285 = vst [vmem:[%s1204_s7 + $0xac] sm:$0xf] %v284_v43 }
  0x43   : > { %287 = vst [vmem:[%s1204_s7 + $0xb0] sm:$0xf] %v286_v44 }
  0x44   : > { %289 = vst [vmem:[%s1204_s7 + $0xb4] sm:$0xf] %v288_v45 }
  0x45   : > { %291 = vst [vmem:[%s1204_s7 + $0xb8] sm:$0xf] %v290_v46 }
  0x46   : > { %293 = vst [vmem:[%s1204_s7 + $0xbc] sm:$0xf] %v292_v47 }
  0x47 PF: > { %p874_p7 = scmp.ge.s32.totalorder %s1116_s18, 1  ;;  %p418_p8 = scmp.lt.s32.totalorder %s1116_s18, 7 }
  0x49   : > { %p419_p9 = pnand %p874_p7, %p418_p8 }
  0x4a   : > { %s425_s8 = sand.u32 (!%p419_p9), 1, %s1092_s12   ;;  %s463_s9 = smul.u32 (!%p419_p9), 3, %s1100_s14 }
  0x4b   : > { %422 = sbr.rel (%p419_p9) target bundleno = 275 (0x113), region = 69  ;;  %p474_p10 = scmp.lt.s32.totalorder (!%p419_p9), %s1104_s15, 1 }
  0x4c   : > { %s1003_s10 = smul.u32 (!%p419_p9), 192, %s425_s8  ;;  %p466_p11 = scmp.lt.s32.totalorder (!%p419_p9), %s463_s9, 8 }
  0x4d   : > { %p877_p12 = scmp.ne.s32.totalorder (!%p419_p9), %s1100_s14, 0 }
  0x4e   : > { %s1322_s4 = scalar_lea.vmem (!%p419_p9), [#allocation3], %s1003_s10 }
  0x50   : > { %s1396_s9 = smov (!%p466_p11, %s463_s9), 8  ;;  %s1398_s15 = smov (!%p474_p10, %s1104_s15), 1 }
  0x51   : > { %s875_s11 = sshll.u32 %s1396_s9, 2  ;;  %s476_s27 = scalar_lea.vmem %s1381_s2, %s1398_s15 }
  0x52   : > { %s1310_s23 = scalar_lea.vmem %s1379_s0, %s875_s11  ;;  %s876_s12 = sshll.u32 %s1398_s15, 2 }
  0x53   : > { %s1320_s30 = scalar_lea.vmem %s1382_s3, %s876_s12  ;;  %488 = sbr.rel (%p877_p12) target bundleno = 90 (0x5a), region = 77 }
  0x58   : > { %v1118_v48 = vmov 0.0  }
  0x59   : > { %489 = vst [vmem:[#allocation2] sm:$0xff] %v1118_v48 }
  0x5a PF: > { %v985_v49 = vld [vmem:[%s1322_s4 + $0x38] sm:$0xff]  ;;  %v984_v52 = vld [vmem:[%s1322_s4 + $0x30] sm:$0xff]  ;;  %v983_v55 = vld [vmem:[%s1322_s4 + $0x28] sm:$0xff]  ;;  %p974_p13 = scmp.ne.s32.totalorder %s1100_s14, 2 }
  0x5b   : > { %v993_v50 = vld [vmem:[%s1322_s4 + $0x78] sm:$0xff]  ;;  %696 = vmatpush.bf16.msra.mxu0 %v985_v49  ;;  %v992_v53 = vld [vmem:[%s1322_s4 + $0x70] sm:$0xff]  ;;  %v991_v56 = vld [vmem:[%s1322_s4 + $0x68] sm:$0xff] }
  0x5c   : > { %v1001_v51 = vld [vmem:[%s1322_s4 + $0xb8] sm:$0xff]  ;;  %709 = vmatpush.bf16.msra.mxu1 %v993_v50  ;;  %v1000_v54 = vld [vmem:[%s1322_s4 + $0xb0] sm:$0xff]  ;;  %v999_v57 = vld [vmem:[%s1322_s4 + $0xa8] sm:$0xff] }
  0x5d   : > { %722 = vmatpush.bf16.msra.mxu2 %v1001_v51  ;;  %v982_v58 = vld [vmem:[%s1322_s4 + $0x20] sm:$0xff]  ;;  %v981_v61 = vld [vmem:[%s1322_s4 + $0x18] sm:$0xff]  ;;  %v980_v0 = vld [vmem:[%s1322_s4 + $0x10] sm:$0xff] }
  0x5e   : > { %v990_v59 = vld [vmem:[%s1322_s4 + $0x60] sm:$0xff]  ;;  %v989_v62 = vld [vmem:[%s1322_s4 + $0x58] sm:$0xff]  ;;  %v988_v1 = vld [vmem:[%s1322_s4 + $0x50] sm:$0xff] }
  0x5f   : > { %697 = vmatpush.bf16.msra.mxu0 %v984_v52  ;;  %v998_v60 = vld [vmem:[%s1322_s4 + $0xa0] sm:$0xff]  ;;  %v997_v63 = vld [vmem:[%s1322_s4 + $0x98] sm:$0xff]  ;;  %v996_v2 = vld [vmem:[%s1322_s4 + $0x90] sm:$0xff] }
  0x60   : > { %710 = vmatpush.bf16.msra.mxu1 %v992_v53  ;;  %v979_v3 = vld [vmem:[%s1322_s4 + $0x8] sm:$0xff]  ;;  %v491_v5 = vld [vmem:[%s1310_s23] sm:$0xff]  ;;  %v492_v7 = vld [vmem:[%s1310_s23 + $0x8] sm:$0xf] }
  0x61   : > { %723 = vmatpush.bf16.msra.mxu2 %v1000_v54  ;;  %v987_v4 = vld [vmem:[%s1322_s4 + $0x48] sm:$0xff]  ;;  %v543_v8 = vunpack.c.l.b16 %v491_v5  ;;  %v544_v9 = vunpack.c.h.b16 %v491_v5  ;;  %v978_v10 = vld [vmem:[%s1322_s4] sm:$0xff]  ;;  %v545_v12 = vunpack.c.l.b16 %v492_v7  ;;  %v490_v20 = vld [vmem:[#allocation2] sm:$0xff] }
  0x62   : > { %v995_v6 = vld [vmem:[%s1322_s4 + $0x88] sm:$0xff]  ;;  %v986_v11 = vld [vmem:[%s1322_s4 + $0x40] sm:$0xff] }
  0x63   : > { %698 = vmatpush.bf16.msra.mxu0 %v983_v55  ;;  %v994_v13 = vld [vmem:[%s1322_s4 + $0x80] sm:$0xff]  ;;  %v546_v14 = vpack.c.b16 %v543_v8, %v543_v8  ;;  %v547_v15 = vpack.c.b16 %v544_v9, %v544_v9  ;;  %v548_v16 = vpack.c.b16 %v545_v12, %v545_v12 }
  0x64   : > { %711 = vmatpush.bf16.msra.mxu1 %v991_v56 }
  0x65   : > { %724 = vmatpush.bf16.msra.mxu2 %v999_v57 }
  0x67   : > { %699 = vmatpush.bf16.msra.mxu0 %v982_v58 }
  0x68   : > { %712 = vmatpush.bf16.msra.mxu1 %v990_v59 }
  0x69   : > { %725 = vmatpush.bf16.msra.mxu2 %v998_v60 }
  0x6b   : > { %700 = vmatpush.bf16.msra.mxu0 %v981_v61 }
  0x6c   : > { %713 = vmatpush.bf16.msra.mxu1 %v989_v62 }
  0x6d   : > { %726 = vmatpush.bf16.msra.mxu2 %v997_v63 }
  0x6f   : > { %701 = vmatpush.bf16.msra.mxu0 %v980_v0 }
  0x70   : > { %714 = vmatpush.bf16.msra.mxu1 %v988_v1 }
  0x71   : > { %727 = vmatpush.bf16.msra.mxu2 %v996_v2 }
  0x73   : > { %702 = vmatpush.bf16.msra.mxu0 %v979_v3 }
  0x74   : > { %715 = vmatpush.bf16.msra.mxu1 %v987_v4 }
  0x75   : > { %728 = vmatpush.bf16.msra.mxu2 %v995_v6 }
  0x77   : > { %703 = vmatpush.bf16.msra.mxu0 %v978_v10 }
  0x78   : > { %716 = vmatpush.bf16.msra.mxu1 %v986_v11 }
  0x79   : > { %729 = vmatpush.bf16.msra.mxu2 %v994_v13 }
  0x7a   : > { %704 = vmatmul.bf16.vlgmr.msra.gmra.mxu0 %v546_v14 }
  0x7b   : > { %717 = vmatmul.bf16.vlgmr.msra.gmra.mxu1 %v547_v15 }
  0x7c   : > { %730 = vmatmul.bf16.vlgmr.msra.gmra.mxu2 %v548_v16 }
  0xf7   : > { %v705_v17 = vpop.f32.mrf.mxu0 }
  0xf8   : > { %v718_v18 = vpop.f32.mrf.mxu1 }
  0xf9   : > { %v719_v19 = vadd.f32 %v718_v18, %v705_v17 }
  0xff   : > { %v731_v21 = vpop.f32.mrf.mxu2  ;;  %v707_v23 = vpop.f32.mrf.mxu0 }
 0x100   : > { %v732_v22 = vadd.f32 %v731_v21, %v719_v19  ;;  %v720_v24 = vpop.f32.mrf.mxu1 }
 0x102   : > { %v735_v25 = vadd.f32 %v732_v22, %v490_v20 }
 0x103   : > { %740 = sbr.rel (%p974_p13) target bundleno = 275 (0x113), region = 81 }
 0x104   : > { %736 = vst [vmem:[#allocation2] sm:$0xff] %v735_v25 }
 0x107   : > { %v733_v26 = vpop.f32.mrf.mxu2 }
 0x108   : > { %v1061_v28 = vld [vmem:[%s476_s27] ss:$0 sm:$0xff] }
 0x10b   : > { %v741_v27 = vld [vmem:[#allocation2] sm:$0xff] }
 0x10c   : > { %v746_v29 = vadd.f32 %v1061_v28, %v741_v27 }
 0x10e   : > { %v747_v30 = vmax.f32 %v746_v29, 0.0 }
 0x110   : > { %v748_v31 = vpack.c.bf16 %v747_v30, %v747_v30 }
 0x112   : > { %749 = vst [vmem:[%s1320_s30] sm:$0xf] %v748_v31 }
 0x113 PF: > { %s13_s18 = sadd.s32 1, %s1116_s18   ;;  %s1383_s12 = smov %s1096_s13 }
 0x114   : > { %p10_p0 = scmp.ge.s32.totalorder %s13_s18, 8   ;;  %s1384_s13 = smov %s1190_s25 }
 0x115   : > { %s1385_s14 = smov %s1108_s16  ;;  %s1386_s15 = smov %s1112_s17 }
 0x116   : > { %s1387_s16 = smov %s1390_s19  ;;  %s1388_s17 = smov %s1394_s20 }
 0x117   :  { %12 = sbr.rel (!%p10_p0) target bundleno = 4 (0x4), region = 122 }

// kernel: forward.32
= control target key start
LH: loop header
LB: loop body
LE: loop exit
PB: predicated region body
PF: predicated region fallthrough
CT: control target
= control target key end

     0   :  { %s715_s12 = smov 0   ;;  %s717_s13 = smov 0   ;;  %s805_s0 = inlined_call_operand.vmem [shape: bf16[8,128], index: 0, kind: input, shape index: {}]   ;;  %s806_s1 = inlined_call_operand.vmem [shape: bf16[128,256], index: 1, kind: input, shape index: {}]   ;;  %s807_s2 = inlined_call_operand.vmem [shape: f32[1,256], index: 2, kind: input, shape index: {}]   ;;  %s808_s3 = inlined_call_operand.vmem [shape: bf16[8,256], index: 3, kind: output, shape index: {}]  }
   0x1   :  { %s719_s14 = smov 0   ;;  %s721_s15 = smov 0  }
   0x2   :  { %s723_s16 = smov 0  }
   0x3 LB: > { %s28_s17 = sadd.s32 1, %s689_s15  ;;  %p76_p1 = scmp.ne.s32.totalorder %s681_s13, %s677_s12  ;;  %s693_s16 = sphi %s723_s16, %s13_s16   ;;  %s689_s15 = sphi %s721_s15, %s812_s15   ;;  %s685_s14 = sphi %s719_s14, %s811_s14   ;;  %s681_s13 = sphi %s717_s13, %s810_s13   ;;  %s677_s12 = sphi %s715_s12, %s809_s12  }
   0x4   : > { %p30_p0 = scmp.ge.s32.totalorder %s28_s17, 2  ;;  %p77_p2 = scmp.eq.s32.totalorder %s693_s16, 0 }
   0x5   : > { %s69_s19 = sadd.s32 1, %s681_s13  ;;  %p566_p5 = scmp.ge.s32.totalorder %s693_s16, 2 }
   0x6   : > { %s814_s17 = smov (%p30_p0, %s28_s17), 0  ;;  %p78_p3 = por %p77_p2, %p76_p1 }
   0x7   : > { %s65_s18 = ssub.s32 %s689_s15, %s814_s17  ;;  %166 = sbr.rel (%p566_p5) target bundleno = 32 (0x20), region = 20 }
   0x8   : > { %p67_p4 = scmp.eq.s32.totalorder %s65_s18, 0 }
   0xa   : > { %s750_s20 = scalar_select %p67_p4, %s681_s13, %s69_s19  }
   0xc   : > { %169 = sbr.rel (!%p78_p3) target bundleno = 32 (0x20), region = 24  ;;  %s171_s21 = sand.u32 (%p78_p3), 1, %s681_s13  }
   0xd   : > { %s568_s22 = sshll.u32 (%p78_p3), %s689_s15, 2  ;;  %s567_s23 = sshll.u32 (%p78_p3), %s171_s21, 6 }
   0xe   : > { %s758_s26 = scalar_lea.vmem (%p78_p3), %s806_s1, %s568_s22  ;;  %s173_s27 = scalar_lea.vmem (%p78_p3), [#allocation3], %s567_s23 }
   0xf   : > { %v195_v0 = vld [vmem:[%s758_s26] sm:$0xf] (%p78_p3)  ;;  %v197_v1 = vld [vmem:[%s758_s26 + $0x8] sm:$0xf] (%p78_p3)  ;;  %v199_v2 = vld [vmem:[%s758_s26 + $0x10] sm:$0xf] (%p78_p3) }
  0x10   : > { %196 = vst [vmem:[%s173_s27] sm:$0xf] (%p78_p3), %v195_v0  ;;  %v201_v3 = vld [vmem:[%s758_s26 + $0x18] sm:$0xf] (%p78_p3)  ;;  %v203_v4 = vld [vmem:[%s758_s26 + $0x20] sm:$0xf] (%p78_p3) }
  0x11   : > { %198 = vst [vmem:[%s173_s27 + $0x4] sm:$0xf] %v197_v1  ;;  %v205_v5 = vld [vmem:[%s758_s26 + $0x28] sm:$0xf]  ;;  %v207_v6 = vld [vmem:[%s758_s26 + $0x30] sm:$0xf] }
  0x12   : > { %200 = vst [vmem:[%s173_s27 + $0x8] sm:$0xf] %v199_v2  ;;  %v209_v7 = vld [vmem:[%s758_s26 + $0x38] sm:$0xf]  ;;  %v211_v8 = vld [vmem:[%s758_s26 + $0x40] sm:$0xf] }
  0x13   : > { %202 = vst [vmem:[%s173_s27 + $0xc] sm:$0xf] %v201_v3  ;;  %v213_v9 = vld [vmem:[%s758_s26 + $0x48] sm:$0xf]  ;;  %v215_v10 = vld [vmem:[%s758_s26 + $0x50] sm:$0xf] }
  0x14   : > { %204 = vst [vmem:[%s173_s27 + $0x10] sm:$0xf] %v203_v4  ;;  %v217_v11 = vld [vmem:[%s758_s26 + $0x58] sm:$0xf]  ;;  %v219_v12 = vld [vmem:[%s758_s26 + $0x60] sm:$0xf] }
  0x15   : > { %206 = vst [vmem:[%s173_s27 + $0x14] sm:$0xf] %v205_v5  ;;  %v221_v13 = vld [vmem:[%s758_s26 + $0x68] sm:$0xf]  ;;  %v223_v14 = vld [vmem:[%s758_s26 + $0x70] sm:$0xf] }
  0x16   : > { %208 = vst [vmem:[%s173_s27 + $0x18] sm:$0xf] %v207_v6  ;;  %v225_v15 = vld [vmem:[%s758_s26 + $0x78] sm:$0xf] }
  0x17   : > { %210 = vst [vmem:[%s173_s27 + $0x1c] sm:$0xf] %v209_v7 }
  0x18   : > { %212 = vst [vmem:[%s173_s27 + $0x20] sm:$0xf] %v211_v8 }
  0x19   : > { %214 = vst [vmem:[%s173_s27 + $0x24] sm:$0xf] %v213_v9 }
  0x1a   : > { %216 = vst [vmem:[%s173_s27 + $0x28] sm:$0xf] %v215_v10 }
  0x1b   : > { %218 = vst [vmem:[%s173_s27 + $0x2c] sm:$0xf] %v217_v11 }
  0x1c   : > { %220 = vst [vmem:[%s173_s27 + $0x30] sm:$0xf] %v219_v12 }
  0x1d   : > { %222 = vst [vmem:[%s173_s27 + $0x34] sm:$0xf] %v221_v13 }
  0x1e   : > { %224 = vst [vmem:[%s173_s27 + $0x38] sm:$0xf] %v223_v14 }
  0x1f   : > { %226 = vst [vmem:[%s173_s27 + $0x3c] sm:$0xf] %v225_v15 }
  0x20 PF: > { %p569_p6 = scmp.ge.s32.totalorder %s693_s16, 1  ;;  %p287_p7 = scmp.lt.s32.totalorder %s693_s16, 3 }
  0x22   : > { %p288_p8 = pnand %p569_p6, %p287_p7 }
  0x23   : > { %s294_s28 = sand.u32 (!%p288_p8), 1, %s677_s12   ;;  %p338_p9 = scmp.lt.s32.totalorder (!%p288_p8), %s685_s14, 1 }
  0x24   : > { %291 = sbr.rel (%p288_p8) target bundleno = 207 (0xcf), region = 69  ;;  %s570_s29 = sshll.u32 (!%p288_p8), %s294_s28, 6 }
  0x25   : > { %s296_s30 = scalar_lea.vmem (!%p288_p8), [#allocation3], %s570_s29 }
  0x29   : > { %v613_v16 = vld [vmem:[%s296_s30 + $0x38] sm:$0xff]  ;;  %s816_s14 = smov (!%p338_p9, %s685_s14), 1  ;;  %v612_v17 = vld [vmem:[%s296_s30 + $0x30] sm:$0xff]  ;;  %v611_v18 = vld [vmem:[%s296_s30 + $0x28] sm:$0xff] }
  0x2a   : > { %420 = vmatpush.bf16.msra.mxu0 %v613_v16  ;;  %s340_s6 = scalar_lea.vmem %s807_s2, %s816_s14  ;;  %v610_v19 = vld [vmem:[%s296_s30 + $0x20] sm:$0xff]  ;;  %v609_v20 = vld [vmem:[%s296_s30 + $0x18] sm:$0xff]  ;;  %v608_v21 = vld [vmem:[%s296_s30 + $0x10] sm:$0xff]  ;;  %s571_s9 = sshll.u32 %s816_s14, 2 }
  0x2b   : > { %v607_v22 = vld [vmem:[%s296_s30 + $0x8] sm:$0xff]  ;;  %v606_v23 = vld [vmem:[%s296_s30] sm:$0xff]  ;;  %s348_s12 = scalar_lea.vmem %s808_s3, %s571_s9 }
  0x2c   : > { %v355_v24 = vld [vmem:[%s805_s0] sm:$0xf] }
  0x2d   : > { %v654_v25 = vld [vmem:[%s340_s6] ss:$0 sm:$0xff] }
  0x2e   : > { %421 = vmatpush.bf16.msra.mxu0 %v612_v17 }
  0x32   : > { %422 = vmatpush.bf16.msra.mxu0 %v611_v18 }
  0x36   : > { %423 = vmatpush.bf16.msra.mxu0 %v610_v19 }
  0x3a   : > { %424 = vmatpush.bf16.msra.mxu0 %v609_v20 }
  0x3e   : > { %425 = vmatpush.bf16.msra.mxu0 %v608_v21 }
  0x42   : > { %426 = vmatpush.bf16.msra.mxu0 %v607_v22 }
  0x46   : > { %427 = vmatpush.bf16.msra.mxu0 %v606_v23 }
  0x49   : > { %428 = vmatmul.bf16.vlgmr.msra.gmra.mxu0 %v355_v24 }
  0xc6   : > { %v429_v26 = vpop.f32.mrf.mxu0 }
  0xc7   : > { %v443_v27 = vadd.f32 %v654_v25, %v429_v26 }
  0xc9   : > { %v444_v28 = vpack.c.bf16 %v443_v27, %v443_v27 }
  0xcb   : > { %445 = vst [vmem:[%s348_s12] sm:$0xf] %v444_v28 }
  0xce   : > { %v431_v29 = vpop.f32.mrf.mxu0 }
  0xcf PF: > { %s13_s16 = sadd.s32 1, %s693_s16   ;;  %s809_s12 = smov %s681_s13 }
  0xd0   : > { %p10_p10 = scmp.ge.s32.totalorder %s13_s16, 4   ;;  %s810_s13 = smov %s750_s20 }
  0xd1   : > { %s811_s14 = smov %s689_s15  ;;  %s812_s15 = smov %s814_s17 }
  0xd2   :  { %12 = sbr.rel (!%p10_p10) target bundleno = 3 (0x3), region = 122 }

// kernel: forward.33
= control target key start
LH: loop header
LB: loop body
LE: loop exit
PB: predicated region body
PF: predicated region fallthrough
CT: control target
= control target key end

     0   :  { %s1778_s15 = smov 0   ;;  %s1780_s16 = smov 0   ;;  %s2145_s0 = inlined_call_operand.vmem [shape: bf16[8,2304], index: 0, kind: input, shape index: {}]   ;;  %s2146_s1 = inlined_call_operand.vmem [shape: bf16[2304,256], index: 1, kind: input, shape index: {}]   ;;  %s2147_s2 = inlined_call_operand.vmem [shape: f32[1,256], index: 2, kind: input, shape index: {}]   ;;  %s2148_s3 = inlined_call_operand.vmem [shape: bf16[8,256], index: 3, kind: input, shape index: {}]   ;;  %s2149_s4 = inlined_call_operand.vmem [shape: bf16[8,256], index: 4, kind: output, shape index: {}]  }
   0x1   :  { %s1782_s17 = smov 0   ;;  %s1784_s18 = smov 0  }
   0x2   :  { %s1786_s19 = smov 0   ;;  %s1788_s20 = smov 0  }
   0x3   :  { %s1790_s21 = smov 0  }
   0x4 LB: > { %s26_s22 = sadd.s32 1, %s1742_s19  ;;  %s29_s23 = sadd.s32 1, %s1746_s20  ;;  %s1750_s21 = sphi %s1790_s21, %s14_s21   ;;  %s1746_s20 = sphi %s1788_s20, %s2155_s20   ;;  %s1742_s19 = sphi %s1786_s19, %s2154_s19   ;;  %s1738_s18 = sphi %s1784_s18, %s2153_s18   ;;  %s1734_s17 = sphi %s1782_s17, %s2152_s17   ;;  %s1730_s16 = sphi %s1780_s16, %s2151_s16   ;;  %s1726_s15 = sphi %s1778_s15, %s2150_s15  }
   0x5   : > { %p27_p0 = scmp.ge.s32.totalorder %s26_s22, 3  ;;  %p77_p1 = scmp.ne.s32.totalorder %s1730_s16, %s1726_s15 }
   0x6   : > { %p78_p2 = scmp.eq.s32.totalorder %s1750_s21, 0  ;;  %s70_s27 = sadd.s32 1, %s1730_s16 }
   0x7   : > { %s2157_s22 = smov (%p27_p0, %s26_s22), 0  ;;  %s2159_s23 = smov (!%p27_p0, %s29_s23), %s1746_s20 }
   0x8   : > { %p79_p3 = por %p78_p2, %p77_p1  ;;  %p31_p4 = scmp.ge.s32.totalorder %s2159_s23, 2 }
   0x9   : > { %s65_s24 = ssub.s32 %s1742_s19, %s2157_s22  ;;  %p1384_p6 = scmp.ge.s32.totalorder %s1750_s21, 6 }
   0xa   : > { %s2161_s23 = smov (%p31_p4, %s2159_s23), 0 }
   0xb   : > { %s66_s25 = ssub.s32 %s1746_s20, %s2161_s23  ;;  %185 = sbr.rel (%p1384_p6) target bundleno = 119 (0x77), region = 16 }
   0xc   : > { %s67_s26 = sor.u32 %s66_s25, %s65_s24 }
   0xd   : > { %p68_p5 = scmp.eq.s32.totalorder %s67_s26, 0 }
   0xf   : > { %s1829_s28 = scalar_select %p68_p5, %s1730_s16, %s70_s27  }
  0x10   : > { %201 = sbr.rel (!%p79_p3) target bundleno = 119 (0x77), region = 24  ;;  %s203_s29 = sand.u32 (%p79_p3), 1, %s1730_s16  }
  0x11   : > { %s1587_s30 = smul.u32 (%p79_p3), 192, %s1742_s19 }
  0x12   : > { %s1636_s5 = smul.u32 (%p79_p3), 384, %s203_s29 }
  0x13   : > { %s208_s6 = sadd.s32 (%p79_p3), %s1746_s20, %s1587_s30 }
  0x14   : > { %s1386_s7 = sshll.u32 (%p79_p3), %s208_s6, 2  ;;  %s1843_s11 = scalar_lea.vmem (%p79_p3), [#allocation3], %s1636_s5 }
  0x15   : > { %s1838_s10 = scalar_lea.vmem %s2146_s1, %s1386_s7 }
  0x16   : > { %v227_v0 = vld [vmem:[%s1838_s10] sm:$0xf]  ;;  %v229_v1 = vld [vmem:[%s1838_s10 + $0x8] sm:$0xf]  ;;  %v231_v2 = vld [vmem:[%s1838_s10 + $0x10] sm:$0xf] }
  0x17   : > { %228 = vst [vmem:[%s1843_s11] sm:$0xf] %v227_v0  ;;  %v233_v3 = vld [vmem:[%s1838_s10 + $0x18] sm:$0xf]  ;;  %v235_v4 = vld [vmem:[%s1838_s10 + $0x20] sm:$0xf] }
  0x18   : > { %230 = vst [vmem:[%s1843_s11 + $0x4] sm:$0xf] %v229_v1  ;;  %v237_v5 = vld [vmem:[%s1838_s10 + $0x28] sm:$0xf]  ;;  %v239_v6 = vld [vmem:[%s1838_s10 + $0x30] sm:$0xf] }
  0x19   : > { %232 = vst [vmem:[%s1843_s11 + $0x8] sm:$0xf] %v231_v2  ;;  %v241_v7 = vld [vmem:[%s1838_s10 + $0x38] sm:$0xf]  ;;  %v243_v8 = vld [vmem:[%s1838_s10 + $0x40] sm:$0xf] }
  0x1a   : > { %234 = vst [vmem:[%s1843_s11 + $0xc] sm:$0xf] %v233_v3  ;;  %v245_v9 = vld [vmem:[%s1838_s10 + $0x48] sm:$0xf]  ;;  %v247_v10 = vld [vmem:[%s1838_s10 + $0x50] sm:$0xf] }
  0x1b   : > { %236 = vst [vmem:[%s1843_s11 + $0x10] sm:$0xf] %v235_v4  ;;  %v249_v11 = vld [vmem:[%s1838_s10 + $0x58] sm:$0xf]  ;;  %v251_v12 = vld [vmem:[%s1838_s10 + $0x60] sm:$0xf] }
  0x1c   : > { %238 = vst [vmem:[%s1843_s11 + $0x14] sm:$0xf] %v237_v5  ;;  %v253_v13 = vld [vmem:[%s1838_s10 + $0x68] sm:$0xf]  ;;  %v255_v14 = vld [vmem:[%s1838_s10 + $0x70] sm:$0xf] }
  0x1d   : > { %240 = vst [vmem:[%s1843_s11 + $0x18] sm:$0xf] %v239_v6  ;;  %v257_v15 = vld [vmem:[%s1838_s10 + $0x78] sm:$0xf]  ;;  %v259_v16 = vld [vmem:[%s1838_s10 + $0x80] sm:$0xf] }
  0x1e   : > { %242 = vst [vmem:[%s1843_s11 + $0x1c] sm:$0xf] %v241_v7  ;;  %v261_v17 = vld [vmem:[%s1838_s10 + $0x88] sm:$0xf]  ;;  %v263_v18 = vld [vmem:[%s1838_s10 + $0x90] sm:$0xf] }
  0x1f   : > { %244 = vst [vmem:[%s1843_s11 + $0x20] sm:$0xf] %v243_v8  ;;  %v265_v19 = vld [vmem:[%s1838_s10 + $0x98] sm:$0xf]  ;;  %v267_v20 = vld [vmem:[%s1838_s10 + $0xa0] sm:$0xf] }
  0x20   : > { %246 = vst [vmem:[%s1843_s11 + $0x24] sm:$0xf] %v245_v9  ;;  %v269_v21 = vld [vmem:[%s1838_s10 + $0xa8] sm:$0xf]  ;;  %v271_v22 = vld [vmem:[%s1838_s10 + $0xb0] sm:$0xf] }
  0x21   : > { %248 = vst [vmem:[%s1843_s11 + $0x28] sm:$0xf] %v247_v10  ;;  %v273_v23 = vld [vmem:[%s1838_s10 + $0xb8] sm:$0xf]  ;;  %v275_v24 = vld [vmem:[%s1838_s10 + $0xc0] sm:$0xf] }
  0x22   : > { %250 = vst [vmem:[%s1843_s11 + $0x2c] sm:$0xf] %v249_v11  ;;  %v277_v25 = vld [vmem:[%s1838_s10 + $0xc8] sm:$0xf]  ;;  %v279_v26 = vld [vmem:[%s1838_s10 + $0xd0] sm:$0xf] }
  0x23   : > { %252 = vst [vmem:[%s1843_s11 + $0x30] sm:$0xf] %v251_v12  ;;  %v281_v27 = vld [vmem:[%s1838_s10 + $0xd8] sm:$0xf]  ;;  %v283_v28 = vld [vmem:[%s1838_s10 + $0xe0] sm:$0xf] }
  0x24   : > { %254 = vst [vmem:[%s1843_s11 + $0x34] sm:$0xf] %v253_v13  ;;  %v285_v29 = vld [vmem:[%s1838_s10 + $0xe8] sm:$0xf]  ;;  %v287_v30 = vld [vmem:[%s1838_s10 + $0xf0] sm:$0xf] }
  0x25   : > { %256 = vst [vmem:[%s1843_s11 + $0x38] sm:$0xf] %v255_v14  ;;  %v289_v31 = vld [vmem:[%s1838_s10 + $0xf8] sm:$0xf]  ;;  %v291_v32 = vld [vmem:[%s1838_s10 + $0x100] sm:$0xf] }
  0x26   : > { %258 = vst [vmem:[%s1843_s11 + $0x3c] sm:$0xf] %v257_v15  ;;  %v293_v33 = vld [vmem:[%s1838_s10 + $0x108] sm:$0xf]  ;;  %v295_v34 = vld [vmem:[%s1838_s10 + $0x110] sm:$0xf] }
  0x27   : > { %260 = vst [vmem:[%s1843_s11 + $0x40] sm:$0xf] %v259_v16  ;;  %v297_v35 = vld [vmem:[%s1838_s10 + $0x118] sm:$0xf]  ;;  %v299_v36 = vld [vmem:[%s1838_s10 + $0x120] sm:$0xf] }
  0x28   : > { %262 = vst [vmem:[%s1843_s11 + $0x44] sm:$0xf] %v261_v17  ;;  %v301_v37 = vld [vmem:[%s1838_s10 + $0x128] sm:$0xf]  ;;  %v303_v38 = vld [vmem:[%s1838_s10 + $0x130] sm:$0xf] }
  0x29   : > { %264 = vst [vmem:[%s1843_s11 + $0x48] sm:$0xf] %v263_v18  ;;  %v305_v39 = vld [vmem:[%s1838_s10 + $0x138] sm:$0xf]  ;;  %v307_v40 = vld [vmem:[%s1838_s10 + $0x140] sm:$0xf] }
  0x2a   : > { %266 = vst [vmem:[%s1843_s11 + $0x4c] sm:$0xf] %v265_v19  ;;  %v309_v41 = vld [vmem:[%s1838_s10 + $0x148] sm:$0xf]  ;;  %v311_v42 = vld [vmem:[%s1838_s10 + $0x150] sm:$0xf] }
  0x2b   : > { %268 = vst [vmem:[%s1843_s11 + $0x50] sm:$0xf] %v267_v20  ;;  %v313_v43 = vld [vmem:[%s1838_s10 + $0x158] sm:$0xf]  ;;  %v315_v44 = vld [vmem:[%s1838_s10 + $0x160] sm:$0xf] }
  0x2c   : > { %270 = vst [vmem:[%s1843_s11 + $0x54] sm:$0xf] %v269_v21  ;;  %v317_v45 = vld [vmem:[%s1838_s10 + $0x168] sm:$0xf]  ;;  %v319_v46 = vld [vmem:[%s1838_s10 + $0x170] sm:$0xf] }
  0x2d   : > { %272 = vst [vmem:[%s1843_s11 + $0x58] sm:$0xf] %v271_v22  ;;  %v321_v47 = vld [vmem:[%s1838_s10 + $0x178] sm:$0xf]  ;;  %v323_v48 = vld [vmem:[%s1838_s10 + $0x180] sm:$0xf] }
  0x2e   : > { %274 = vst [vmem:[%s1843_s11 + $0x5c] sm:$0xf] %v273_v23  ;;  %v325_v49 = vld [vmem:[%s1838_s10 + $0x188] sm:$0xf]  ;;  %v327_v50 = vld [vmem:[%s1838_s10 + $0x190] sm:$0xf] }
  0x2f   : > { %276 = vst [vmem:[%s1843_s11 + $0x60] sm:$0xf] %v275_v24  ;;  %v329_v51 = vld [vmem:[%s1838_s10 + $0x198] sm:$0xf]  ;;  %v331_v52 = vld [vmem:[%s1838_s10 + $0x1a0] sm:$0xf] }
  0x30   : > { %278 = vst [vmem:[%s1843_s11 + $0x64] sm:$0xf] %v277_v25  ;;  %v333_v53 = vld [vmem:[%s1838_s10 + $0x1a8] sm:$0xf]  ;;  %v335_v54 = vld [vmem:[%s1838_s10 + $0x1b0] sm:$0xf] }
  0x31   : > { %280 = vst [vmem:[%s1843_s11 + $0x68] sm:$0xf] %v279_v26  ;;  %v337_v55 = vld [vmem:[%s1838_s10 + $0x1b8] sm:$0xf]  ;;  %v339_v56 = vld [vmem:[%s1838_s10 + $0x1c0] sm:$0xf] }
  0x32   : > { %282 = vst [vmem:[%s1843_s11 + $0x6c] sm:$0xf] %v281_v27  ;;  %v341_v57 = vld [vmem:[%s1838_s10 + $0x1c8] sm:$0xf]  ;;  %v343_v58 = vld [vmem:[%s1838_s10 + $0x1d0] sm:$0xf] }
  0x33   : > { %284 = vst [vmem:[%s1843_s11 + $0x70] sm:$0xf] %v283_v28  ;;  %v345_v59 = vld [vmem:[%s1838_s10 + $0x1d8] sm:$0xf]  ;;  %v347_v60 = vld [vmem:[%s1838_s10 + $0x1e0] sm:$0xf] }
  0x34   : > { %286 = vst [vmem:[%s1843_s11 + $0x74] sm:$0xf] %v285_v29  ;;  %v349_v61 = vld [vmem:[%s1838_s10 + $0x1e8] sm:$0xf]  ;;  %v351_v62 = vld [vmem:[%s1838_s10 + $0x1f0] sm:$0xf] }
  0x35   : > { %288 = vst [vmem:[%s1843_s11 + $0x78] sm:$0xf] %v287_v30  ;;  %v353_v63 = vld [vmem:[%s1838_s10 + $0x1f8] sm:$0xf]  ;;  %v355_v0 = vld [vmem:[%s1838_s10 + $0x200] sm:$0xf] }
  0x36   : > { %290 = vst [vmem:[%s1843_s11 + $0x7c] sm:$0xf] %v289_v31  ;;  %v357_v1 = vld [vmem:[%s1838_s10 + $0x208] sm:$0xf]  ;;  %v359_v2 = vld [vmem:[%s1838_s10 + $0x210] sm:$0xf] }
  0x37   : > { %292 = vst [vmem:[%s1843_s11 + $0x80] sm:$0xf] %v291_v32  ;;  %v361_v3 = vld [vmem:[%s1838_s10 + $0x218] sm:$0xf]  ;;  %v363_v4 = vld [vmem:[%s1838_s10 + $0x220] sm:$0xf] }
  0x38   : > { %294 = vst [vmem:[%s1843_s11 + $0x84] sm:$0xf] %v293_v33  ;;  %v365_v5 = vld [vmem:[%s1838_s10 + $0x228] sm:$0xf]  ;;  %v367_v6 = vld [vmem:[%s1838_s10 + $0x230] sm:$0xf] }
  0x39   : > { %296 = vst [vmem:[%s1843_s11 + $0x88] sm:$0xf] %v295_v34  ;;  %v369_v7 = vld [vmem:[%s1838_s10 + $0x238] sm:$0xf]  ;;  %v371_v8 = vld [vmem:[%s1838_s10 + $0x240] sm:$0xf] }
  0x3a   : > { %298 = vst [vmem:[%s1843_s11 + $0x8c] sm:$0xf] %v297_v35  ;;  %v373_v9 = vld [vmem:[%s1838_s10 + $0x248] sm:$0xf]  ;;  %v375_v10 = vld [vmem:[%s1838_s10 + $0x250] sm:$0xf] }
  0x3b   : > { %300 = vst [vmem:[%s1843_s11 + $0x90] sm:$0xf] %v299_v36  ;;  %v377_v11 = vld [vmem:[%s1838_s10 + $0x258] sm:$0xf]  ;;  %v379_v12 = vld [vmem:[%s1838_s10 + $0x260] sm:$0xf] }
  0x3c   : > { %302 = vst [vmem:[%s1843_s11 + $0x94] sm:$0xf] %v301_v37  ;;  %v381_v13 = vld [vmem:[%s1838_s10 + $0x268] sm:$0xf]  ;;  %v383_v14 = vld [vmem:[%s1838_s10 + $0x270] sm:$0xf] }
  0x3d   : > { %304 = vst [vmem:[%s1843_s11 + $0x98] sm:$0xf] %v303_v38  ;;  %v385_v15 = vld [vmem:[%s1838_s10 + $0x278] sm:$0xf]  ;;  %v387_v16 = vld [vmem:[%s1838_s10 + $0x280] sm:$0xf] }
  0x3e   : > { %306 = vst [vmem:[%s1843_s11 + $0x9c] sm:$0xf] %v305_v39  ;;  %v389_v17 = vld [vmem:[%s1838_s10 + $0x288] sm:$0xf]  ;;  %v391_v18 = vld [vmem:[%s1838_s10 + $0x290] sm:$0xf] }
  0x3f   : > { %308 = vst [vmem:[%s1843_s11 + $0xa0] sm:$0xf] %v307_v40  ;;  %v393_v19 = vld [vmem:[%s1838_s10 + $0x298] sm:$0xf]  ;;  %v395_v20 = vld [vmem:[%s1838_s10 + $0x2a0] sm:$0xf] }
  0x40   : > { %310 = vst [vmem:[%s1843_s11 + $0xa4] sm:$0xf] %v309_v41  ;;  %v397_v21 = vld [vmem:[%s1838_s10 + $0x2a8] sm:$0xf]  ;;  %v399_v22 = vld [vmem:[%s1838_s10 + $0x2b0] sm:$0xf] }
  0x41   : > { %312 = vst [vmem:[%s1843_s11 + $0xa8] sm:$0xf] %v311_v42  ;;  %v401_v23 = vld [vmem:[%s1838_s10 + $0x2b8] sm:$0xf]  ;;  %v403_v24 = vld [vmem:[%s1838_s10 + $0x2c0] sm:$0xf] }
  0x42   : > { %314 = vst [vmem:[%s1843_s11 + $0xac] sm:$0xf] %v313_v43  ;;  %v405_v25 = vld [vmem:[%s1838_s10 + $0x2c8] sm:$0xf]  ;;  %v407_v26 = vld [vmem:[%s1838_s10 + $0x2d0] sm:$0xf] }
  0x43   : > { %316 = vst [vmem:[%s1843_s11 + $0xb0] sm:$0xf] %v315_v44  ;;  %v409_v27 = vld [vmem:[%s1838_s10 + $0x2d8] sm:$0xf]  ;;  %v411_v28 = vld [vmem:[%s1838_s10 + $0x2e0] sm:$0xf] }
  0x44   : > { %318 = vst [vmem:[%s1843_s11 + $0xb4] sm:$0xf] %v317_v45  ;;  %v413_v29 = vld [vmem:[%s1838_s10 + $0x2e8] sm:$0xf]  ;;  %v415_v30 = vld [vmem:[%s1838_s10 + $0x2f0] sm:$0xf] }
  0x45   : > { %320 = vst [vmem:[%s1843_s11 + $0xb8] sm:$0xf] %v319_v46  ;;  %v417_v31 = vld [vmem:[%s1838_s10 + $0x2f8] sm:$0xf] }
  0x46   : > { %322 = vst [vmem:[%s1843_s11 + $0xbc] sm:$0xf] %v321_v47 }
  0x47   : > { %324 = vst [vmem:[%s1843_s11 + $0xc0] sm:$0xf] %v323_v48 }
  0x48   : > { %326 = vst [vmem:[%s1843_s11 + $0xc4] sm:$0xf] %v325_v49 }
  0x49   : > { %328 = vst [vmem:[%s1843_s11 + $0xc8] sm:$0xf] %v327_v50 }
  0x4a   : > { %330 = vst [vmem:[%s1843_s11 + $0xcc] sm:$0xf] %v329_v51 }
  0x4b   : > { %332 = vst [vmem:[%s1843_s11 + $0xd0] sm:$0xf] %v331_v52 }
  0x4c   : > { %334 = vst [vmem:[%s1843_s11 + $0xd4] sm:$0xf] %v333_v53 }
  0x4d   : > { %336 = vst [vmem:[%s1843_s11 + $0xd8] sm:$0xf] %v335_v54 }
  0x4e   : > { %338 = vst [vmem:[%s1843_s11 + $0xdc] sm:$0xf] %v337_v55 }
  0x4f   : > { %340 = vst [vmem:[%s1843_s11 + $0xe0] sm:$0xf] %v339_v56 }
  0x50   : > { %342 = vst [vmem:[%s1843_s11 + $0xe4] sm:$0xf] %v341_v57 }
  0x51   : > { %344 = vst [vmem:[%s1843_s11 + $0xe8] sm:$0xf] %v343_v58 }
  0x52   : > { %346 = vst [vmem:[%s1843_s11 + $0xec] sm:$0xf] %v345_v59 }
  0x53   : > { %348 = vst [vmem:[%s1843_s11 + $0xf0] sm:$0xf] %v347_v60 }
  0x54   : > { %350 = vst [vmem:[%s1843_s11 + $0xf4] sm:$0xf] %v349_v61 }
  0x55   : > { %352 = vst [vmem:[%s1843_s11 + $0xf8] sm:$0xf] %v351_v62 }
  0x56   : > { %354 = vst [vmem:[%s1843_s11 + $0xfc] sm:$0xf] %v353_v63 }
  0x57   : > { %356 = vst [vmem:[%s1843_s11 + $0x100] sm:$0xf] %v355_v0 }
  0x58   : > { %358 = vst [vmem:[%s1843_s11 + $0x104] sm:$0xf] %v357_v1 }
  0x59   : > { %360 = vst [vmem:[%s1843_s11 + $0x108] sm:$0xf] %v359_v2 }
  0x5a   : > { %362 = vst [vmem:[%s1843_s11 + $0x10c] sm:$0xf] %v361_v3 }
  0x5b   : > { %364 = vst [vmem:[%s1843_s11 + $0x110] sm:$0xf] %v363_v4 }
  0x5c   : > { %366 = vst [vmem:[%s1843_s11 + $0x114] sm:$0xf] %v365_v5 }
  0x5d   : > { %368 = vst [vmem:[%s1843_s11 + $0x118] sm:$0xf] %v367_v6 }
  0x5e   : > { %370 = vst [vmem:[%s1843_s11 + $0x11c] sm:$0xf] %v369_v7 }
  0x5f   : > { %372 = vst [vmem:[%s1843_s11 + $0x120] sm:$0xf] %v371_v8 }
  0x60   : > { %374 = vst [vmem:[%s1843_s11 + $0x124] sm:$0xf] %v373_v9 }
  0x61   : > { %376 = vst [vmem:[%s1843_s11 + $0x128] sm:$0xf] %v375_v10 }
  0x62   : > { %378 = vst [vmem:[%s1843_s11 + $0x12c] sm:$0xf] %v377_v11 }
  0x63   : > { %380 = vst [vmem:[%s1843_s11 + $0x130] sm:$0xf] %v379_v12 }
  0x64   : > { %382 = vst [vmem:[%s1843_s11 + $0x134] sm:$0xf] %v381_v13 }
  0x65   : > { %384 = vst [vmem:[%s1843_s11 + $0x138] sm:$0xf] %v383_v14 }
  0x66   : > { %386 = vst [vmem:[%s1843_s11 + $0x13c] sm:$0xf] %v385_v15 }
  0x67   : > { %388 = vst [vmem:[%s1843_s11 + $0x140] sm:$0xf] %v387_v16 }
  0x68   : > { %390 = vst [vmem:[%s1843_s11 + $0x144] sm:$0xf] %v389_v17 }
  0x69   : > { %392 = vst [vmem:[%s1843_s11 + $0x148] sm:$0xf] %v391_v18 }
  0x6a   : > { %394 = vst [vmem:[%s1843_s11 + $0x14c] sm:$0xf] %v393_v19 }
  0x6b   : > { %396 = vst [vmem:[%s1843_s11 + $0x150] sm:$0xf] %v395_v20 }
  0x6c   : > { %398 = vst [vmem:[%s1843_s11 + $0x154] sm:$0xf] %v397_v21 }
  0x6d   : > { %400 = vst [vmem:[%s1843_s11 + $0x158] sm:$0xf] %v399_v22 }
  0x6e   : > { %402 = vst [vmem:[%s1843_s11 + $0x15c] sm:$0xf] %v401_v23 }
  0x6f   : > { %404 = vst [vmem:[%s1843_s11 + $0x160] sm:$0xf] %v403_v24 }
  0x70   : > { %406 = vst [vmem:[%s1843_s11 + $0x164] sm:$0xf] %v405_v25 }
  0x71   : > { %408 = vst [vmem:[%s1843_s11 + $0x168] sm:$0xf] %v407_v26 }
  0x72   : > { %410 = vst [vmem:[%s1843_s11 + $0x16c] sm:$0xf] %v409_v27 }
  0x73   : > { %412 = vst [vmem:[%s1843_s11 + $0x170] sm:$0xf] %v411_v28 }
  0x74   : > { %414 = vst [vmem:[%s1843_s11 + $0x174] sm:$0xf] %v413_v29 }
  0x75   : > { %416 = vst [vmem:[%s1843_s11 + $0x178] sm:$0xf] %v415_v30 }
  0x76   : > { %418 = vst [vmem:[%s1843_s11 + $0x17c] sm:$0xf] %v417_v31 }
  0x77 PF: > { %p1387_p7 = scmp.ge.s32.totalorder %s1750_s21, 1  ;;  %p650_p8 = scmp.lt.s32.totalorder %s1750_s21, 7 }
  0x79   : > { %p651_p9 = pnand %p1387_p7, %p650_p8 }
  0x7a   : > { %s657_s12 = sand.u32 (!%p651_p9), 1, %s1726_s15   ;;  %s705_s13 = smul.u32 (!%p651_p9), 6, %s1734_s17 }
  0x7b   : > { %654 = sbr.rel (%p651_p9) target bundleno = 352 (0x160), region = 73  ;;  %p716_p10 = scmp.lt.s32.totalorder (!%p651_p9), %s1738_s18, 1 }
  0x7c   : > { %s1637_s14 = smul.u32 (!%p651_p9), 384, %s657_s12  ;;  %p708_p11 = scmp.lt.s32.totalorder (!%p651_p9), %s705_s13, 17 }
  0x7d   : > { %p1391_p12 = scmp.ne.s32.totalorder (!%p651_p9), %s1734_s17, 0 }
  0x7e   : > { %s2062_s12 = scalar_lea.vmem (!%p651_p9), [#allocation3], %s1637_s14 }
  0x80   : > { %s2163_s13 = smov (!%p708_p11, %s705_s13), 17  ;;  %s2165_s18 = smov (!%p716_p10, %s1738_s18), 1 }
  0x81   : > { %s1388_s24 = sshll.u32 %s2163_s13, 2  ;;  %s718_s5 = scalar_lea.vmem %s2147_s2, %s2165_s18 }
  0x82   : > { %s2045_s27 = scalar_lea.vmem %s2145_s0, %s1388_s24  ;;  %s1389_s15 = sshll.u32 %s2165_s18, 2 }
  0x83   : > { %s2055_s8 = scalar_lea.vmem %s2148_s3, %s1389_s15  ;;  %s2060_s11 = scalar_lea.vmem %s2149_s4, %s1389_s15 }
  0x84   : > { %738 = sbr.rel (%p1391_p12) target bundleno = 139 (0x8b), region = 81 }
  0x89   : > { %v1752_v32 = vmov 0.0  }
  0x8a   : > { %739 = vst [vmem:[#allocation2] sm:$0xff] %v1752_v32 }
  0x8b PF: > { %v1595_v33 = vld [vmem:[%s2062_s12 + $0x38] sm:$0xff]  ;;  %v1594_v35 = vld [vmem:[%s2062_s12 + $0x30] sm:$0xff]  ;;  %v1593_v41 = vld [vmem:[%s2062_s12 + $0x28] sm:$0xff]  ;;  %p1584_p13 = scmp.ne.s32.totalorder %s1734_s17, 2 }
  0x8c   : > { %v1603_v34 = vld [vmem:[%s2062_s12 + $0x78] sm:$0xff]  ;;  %1149 = vmatpush.bf16.msra.mxu0 %v1595_v33  ;;  %v1602_v36 = vld [vmem:[%s2062_s12 + $0x70] sm:$0xff]  ;;  %v1601_v42 = vld [vmem:[%s2062_s12 + $0x68] sm:$0xff] }
  0x8d   : > { %1162 = vmatpush.bf16.msra.mxu1 %v1603_v34  ;;  %v1611_v37 = vld [vmem:[%s2062_s12 + $0xb8] sm:$0xff]  ;;  %v1610_v39 = vld [vmem:[%s2062_s12 + $0xb0] sm:$0xff]  ;;  %v1609_v43 = vld [vmem:[%s2062_s12 + $0xa8] sm:$0xff] }
  0x8e   : > { %v1619_v38 = vld [vmem:[%s2062_s12 + $0xf8] sm:$0xff]  ;;  %1175 = vmatpush.bf16.msra.mxu2 %v1611_v37  ;;  %v1618_v40 = vld [vmem:[%s2062_s12 + $0xf0] sm:$0xff]  ;;  %v1617_v44 = vld [vmem:[%s2062_s12 + $0xe8] sm:$0xff] }
  0x8f   : > { %1188 = vmatpush.bf16.msra.mxu3 %v1619_v38  ;;  %v1592_v45 = vld [vmem:[%s2062_s12 + $0x20] sm:$0xff]  ;;  %v1591_v49 = vld [vmem:[%s2062_s12 + $0x18] sm:$0xff]  ;;  %v1590_v53 = vld [vmem:[%s2062_s12 + $0x10] sm:$0xff] }
  0x90   : > { %1150 = vmatpush.bf16.msra.mxu0 %v1594_v35  ;;  %v1600_v46 = vld [vmem:[%s2062_s12 + $0x60] sm:$0xff]  ;;  %v1599_v50 = vld [vmem:[%s2062_s12 + $0x58] sm:$0xff]  ;;  %v1598_v54 = vld [vmem:[%s2062_s12 + $0x50] sm:$0xff] }
  0x91   : > { %1163 = vmatpush.bf16.msra.mxu1 %v1602_v36  ;;  %v1608_v47 = vld [vmem:[%s2062_s12 + $0xa0] sm:$0xff]  ;;  %v1607_v51 = vld [vmem:[%s2062_s12 + $0x98] sm:$0xff]  ;;  %v1606_v55 = vld [vmem:[%s2062_s12 + $0x90] sm:$0xff] }
  0x92   : > { %1176 = vmatpush.bf16.msra.mxu2 %v1610_v39  ;;  %v1616_v48 = vld [vmem:[%s2062_s12 + $0xe0] sm:$0xff]  ;;  %v1615_v52 = vld [vmem:[%s2062_s12 + $0xd8] sm:$0xff]  ;;  %v1614_v56 = vld [vmem:[%s2062_s12 + $0xd0] sm:$0xff] }
  0x93   : > { %1189 = vmatpush.bf16.msra.mxu3 %v1618_v40  ;;  %v1589_v57 = vld [vmem:[%s2062_s12 + $0x8] sm:$0xff]  ;;  %v741_v59 = vld [vmem:[%s2045_s27] sm:$0xff]  ;;  %v742_v0 = vld [vmem:[%s2045_s27 + $0x8] sm:$0xff] }
  0x94   : > { %1151 = vmatpush.bf16.msra.mxu0 %v1593_v41  ;;  %v1597_v58 = vld [vmem:[%s2062_s12 + $0x48] sm:$0xff]  ;;  %v843_v62 = vunpack.c.l.b16 %v741_v59  ;;  %v844_v63 = vunpack.c.h.b16 %v741_v59  ;;  %v1588_v1 = vld [vmem:[%s2062_s12] sm:$0xff]  ;;  %v1627_v3 = vld [vmem:[%s2062_s12 + $0x138] sm:$0xff]  ;;  %v845_v7 = vunpack.c.l.b16 %v742_v0  ;;  %v846_v8 = vunpack.c.h.b16 %v742_v0 }
  0x95   : > { %1164 = vmatpush.bf16.msra.mxu1 %v1601_v42  ;;  %v1605_v60 = vld [vmem:[%s2062_s12 + $0x88] sm:$0xff]  ;;  %v1596_v2 = vld [vmem:[%s2062_s12 + $0x40] sm:$0xff]  ;;  %v1635_v4 = vld [vmem:[%s2062_s12 + $0x178] sm:$0xff] }
  0x96   : > { %1177 = vmatpush.bf16.msra.mxu2 %v1609_v43  ;;  %v1613_v61 = vld [vmem:[%s2062_s12 + $0xc8] sm:$0xff]  ;;  %v1604_v5 = vld [vmem:[%s2062_s12 + $0x80] sm:$0xff]  ;;  %v849_v9 = vpack.c.b16 %v843_v62, %v843_v62  ;;  %v850_v10 = vpack.c.b16 %v844_v63, %v844_v63  ;;  %v1626_v11 = vld [vmem:[%s2062_s12 + $0x130] sm:$0xff]  ;;  %v851_v13 = vpack.c.b16 %v845_v7, %v845_v7  ;;  %v852_v14 = vpack.c.b16 %v846_v8, %v846_v8 }
  0x97   : > { %1190 = vmatpush.bf16.msra.mxu3 %v1617_v44  ;;  %v1612_v6 = vld [vmem:[%s2062_s12 + $0xc0] sm:$0xff]  ;;  %v1634_v12 = vld [vmem:[%s2062_s12 + $0x170] sm:$0xff]  ;;  %v1625_v15 = vld [vmem:[%s2062_s12 + $0x128] sm:$0xff] }
  0x98   : > { %1152 = vmatpush.bf16.msra.mxu0 %v1592_v45  ;;  %v1633_v16 = vld [vmem:[%s2062_s12 + $0x168] sm:$0xff]  ;;  %v1624_v17 = vld [vmem:[%s2062_s12 + $0x120] sm:$0xff]  ;;  %v1623_v19 = vld [vmem:[%s2062_s12 + $0x118] sm:$0xff] }
  0x99   : > { %1165 = vmatpush.bf16.msra.mxu1 %v1600_v46  ;;  %v1632_v18 = vld [vmem:[%s2062_s12 + $0x160] sm:$0xff]  ;;  %v1631_v20 = vld [vmem:[%s2062_s12 + $0x158] sm:$0xff]  ;;  %v1622_v21 = vld [vmem:[%s2062_s12 + $0x110] sm:$0xff] }
  0x9a   : > { %1178 = vmatpush.bf16.msra.mxu2 %v1608_v47  ;;  %v1630_v22 = vld [vmem:[%s2062_s12 + $0x150] sm:$0xff]  ;;  %v1621_v23 = vld [vmem:[%s2062_s12 + $0x108] sm:$0xff]  ;;  %v1620_v28 = vld [vmem:[%s2062_s12 + $0x100] sm:$0xff] }
  0x9b   : > { %1191 = vmatpush.bf16.msra.mxu3 %v1616_v48  ;;  %v1629_v24 = vld [vmem:[%s2062_s12 + $0x148] sm:$0xff]  ;;  %v1628_v29 = vld [vmem:[%s2062_s12 + $0x140] sm:$0xff]  ;;  %v740_v46 = vld [vmem:[#allocation2] sm:$0xff] }
  0x9c   : > { %1153 = vmatpush.bf16.msra.mxu0 %v1591_v49  ;;  %v743_v25 = vld [vmem:[%s2045_s27 + $0x10] sm:$0xff] }
  0x9d   : > { %1166 = vmatpush.bf16.msra.mxu1 %v1599_v50  ;;  %v847_v26 = vunpack.c.l.b16 %v743_v25  ;;  %v848_v27 = vunpack.c.h.b16 %v743_v25 }
  0x9e   : > { %1179 = vmatpush.bf16.msra.mxu2 %v1607_v51 }
  0x9f   : > { %1192 = vmatpush.bf16.msra.mxu3 %v1615_v52  ;;  %v853_v30 = vpack.c.b16 %v847_v26, %v847_v26  ;;  %v854_v31 = vpack.c.b16 %v848_v27, %v848_v27 }
  0xa0   : > { %1154 = vmatpush.bf16.msra.mxu0 %v1590_v53 }
  0xa1   : > { %1167 = vmatpush.bf16.msra.mxu1 %v1598_v54 }
  0xa2   : > { %1180 = vmatpush.bf16.msra.mxu2 %v1606_v55 }
  0xa3   : > { %1193 = vmatpush.bf16.msra.mxu3 %v1614_v56 }
  0xa4   : > { %1155 = vmatpush.bf16.msra.mxu0 %v1589_v57 }
  0xa5   : > { %1168 = vmatpush.bf16.msra.mxu1 %v1597_v58 }
  0xa6   : > { %1181 = vmatpush.bf16.msra.mxu2 %v1605_v60 }
  0xa7   : > { %1194 = vmatpush.bf16.msra.mxu3 %v1613_v61 }
  0xa8   : > { %1156 = vmatpush.bf16.msra.mxu0 %v1588_v1 }
  0xa9   : > { %1169 = vmatpush.bf16.msra.mxu1 %v1596_v2 }
  0xaa   : > { %1182 = vmatpush.bf16.msra.mxu2 %v1604_v5 }
  0xab   : > { %1195 = vmatpush.bf16.msra.mxu3 %v1612_v6  ;;  %1157 = vmatmul.bf16.vlgmr.msra.gmra.mxu0 %v849_v9 }
  0xac   : > { %1201 = vmatpush.bf16.msrb.mxu0 %v1627_v3  ;;  %1170 = vmatmul.bf16.vlgmr.msra.gmra.mxu1 %v850_v10 }
  0xad   : > { %1214 = vmatpush.bf16.msrb.mxu1 %v1635_v4  ;;  %1183 = vmatmul.bf16.vlgmr.msra.gmra.mxu2 %v851_v13 }
  0xae   : > { %1196 = vmatmul.bf16.vlgmr.msra.gmra.mxu3 %v852_v14 }
  0xb0   : > { %1202 = vmatpush.bf16.msrb.mxu0 %v1626_v11 }
  0xb1   : > { %1215 = vmatpush.bf16.msrb.mxu1 %v1634_v12 }
  0xb4   : > { %1203 = vmatpush.bf16.msrb.mxu0 %v1625_v15 }
  0xb5   : > { %1216 = vmatpush.bf16.msrb.mxu1 %v1633_v16 }
  0xb8   : > { %1204 = vmatpush.bf16.msrb.mxu0 %v1624_v17 }
  0xb9   : > { %1217 = vmatpush.bf16.msrb.mxu1 %v1632_v18 }
  0xbc   : > { %1205 = vmatpush.bf16.msrb.mxu0 %v1623_v19 }
  0xbd   : > { %1218 = vmatpush.bf16.msrb.mxu1 %v1631_v20 }
  0xc0   : > { %1206 = vmatpush.bf16.msrb.mxu0 %v1622_v21 }
  0xc1   : > { %1219 = vmatpush.bf16.msrb.mxu1 %v1630_v22 }
  0xc4   : > { %1207 = vmatpush.bf16.msrb.mxu0 %v1621_v23 }
  0xc5   : > { %1220 = vmatpush.bf16.msrb.mxu1 %v1629_v24 }
  0xc8   : > { %1208 = vmatpush.bf16.msrb.mxu0 %v1620_v28 }
  0xc9   : > { %1221 = vmatpush.bf16.msrb.mxu1 %v1628_v29 }
  0xcb   : > { %1209 = vmatmul.bf16.vlgmr.msrb.gmra.mxu0 %v853_v30 }
  0xcc   : > { %1222 = vmatmul.bf16.vlgmr.msrb.gmra.mxu1 %v854_v31 }
 0x128   : > { %v1158_v32 = vpop.f32.mrf.mxu0 }
 0x129   : > { %v1171_v33 = vpop.f32.mrf.mxu1 }
 0x12a   : > { %v1172_v40 = vadd.f32 %v1171_v33, %v1158_v32 }
 0x130   : > { %v1160_v34 = vpop.f32.mrf.mxu0  ;;  %v1184_v36 = vpop.f32.mrf.mxu2 }
 0x131   : > { %v1173_v35 = vpop.f32.mrf.mxu1  ;;  %v1197_v37 = vpop.f32.mrf.mxu3  ;;  %v1185_v41 = vadd.f32 %v1184_v36, %v1172_v40 }
 0x133   : > { %v1198_v42 = vadd.f32 %v1197_v37, %v1185_v41 }
 0x138   : > { %v1186_v38 = vpop.f32.mrf.mxu2 }
 0x139   : > { %v1199_v39 = vpop.f32.mrf.mxu3 }
 0x148   : > { %v1210_v43 = vpop.f32.mrf.mxu0 }
 0x149   : > { %v1223_v44 = vpop.f32.mrf.mxu1  ;;  %v1211_v45 = vadd.f32 %v1210_v43, %v1198_v42 }
 0x14b   : > { %v1224_v47 = vadd.f32 %v1223_v44, %v1211_v45 }
 0x14d   : > { %v1227_v48 = vadd.f32 %v1224_v47, %v740_v46  ;;  %1232 = sbr.rel (%p1584_p13) target bundleno = 352 (0x160), region = 85 }
 0x14f   : > { %1228 = vst [vmem:[#allocation2] sm:$0xff] %v1227_v48 }
 0x150   : > { %v1212_v49 = vpop.f32.mrf.mxu0 }
 0x151   : > { %v1225_v50 = vpop.f32.mrf.mxu1 }
 0x152   : > { %v1695_v52 = vld [vmem:[%s718_s5] ss:$0 sm:$0xff] }
 0x153   : > { %v1239_v53 = vld [vmem:[%s2055_s8] sm:$0xf] }
 0x154   : > { %v1240_v55 = vunpack.c.l.bf16 %v1239_v53 }
 0x156   : > { %v1233_v51 = vld [vmem:[#allocation2] sm:$0xff] }
 0x157   : > { %v1238_v54 = vadd.f32 %v1695_v52, %v1233_v51 }
 0x159   : > { %v1241_v56 = vadd.f32 %v1240_v55, %v1238_v54 }
 0x15b   : > { %v1242_v57 = vmax.f32 %v1241_v56, 0.0 }
 0x15d   : > { %v1243_v58 = vpack.c.bf16 %v1242_v57, %v1242_v57 }
 0x15f   : > { %1244 = vst [vmem:[%s2060_s11] sm:$0xf] %v1243_v58 }
 0x160 PF: > { %s14_s21 = sadd.s32 1, %s1750_s21   ;;  %s2150_s15 = smov %s1730_s16 }
 0x161   : > { %p11_p0 = scmp.ge.s32.totalorder %s14_s21, 8   ;;  %s2151_s16 = smov %s1829_s28 }
 0x162   : > { %s2152_s17 = smov %s1742_s19  ;;  %s2153_s18 = smov %s1746_s20 }
 0x163   : > { %s2154_s19 = smov %s2157_s22  ;;  %s2155_s20 = smov %s2161_s23 }
 0x164   :  { %13 = sbr.rel (!%p11_p0) target bundleno = 4 (0x4), region = 129 }

// kernel: forward.34
= control target key start
LH: loop header
LB: loop body
LE: loop exit
PB: predicated region body
PF: predicated region fallthrough
CT: control target
= control target key end

     0   :  { %s1693_s12 = smov 0   ;;  %s1695_s13 = smov 0   ;;  %s2054_s0 = inlined_call_operand.vmem [shape: bf16[8,2304], index: 0, kind: input, shape index: {}]   ;;  %s2055_s1 = inlined_call_operand.vmem [shape: bf16[2304,256], index: 1, kind: input, shape index: {}]   ;;  %s2056_s2 = inlined_call_operand.vmem [shape: f32[1,256], index: 2, kind: input, shape index: {}]   ;;  %s2057_s3 = inlined_call_operand.vmem [shape: bf16[8,256], index: 3, kind: output, shape index: {}]  }
   0x1   :  { %s1697_s14 = smov 0   ;;  %s1699_s15 = smov 0  }
   0x2   :  { %s1701_s16 = smov 0   ;;  %s1703_s17 = smov 0  }
   0x3   :  { %s1705_s18 = smov 0  }
   0x4 LB: > { %s25_s19 = sadd.s32 1, %s1662_s16  ;;  %s28_s20 = sadd.s32 1, %s1666_s17  ;;  %s1670_s18 = sphi %s1705_s18, %s13_s18   ;;  %s1666_s17 = sphi %s1703_s17, %s2063_s17   ;;  %s1662_s16 = sphi %s1701_s16, %s2062_s16   ;;  %s1658_s15 = sphi %s1699_s15, %s2061_s15   ;;  %s1654_s14 = sphi %s1697_s14, %s2060_s14   ;;  %s1650_s13 = sphi %s1695_s13, %s2059_s13   ;;  %s1646_s12 = sphi %s1693_s12, %s2058_s12  }
   0x5   : > { %p26_p0 = scmp.ge.s32.totalorder %s25_s19, 3  ;;  %p76_p1 = scmp.ne.s32.totalorder %s1650_s13, %s1646_s12 }
   0x6   : > { %p77_p2 = scmp.eq.s32.totalorder %s1670_s18, 0  ;;  %s69_s24 = sadd.s32 1, %s1650_s13 }
   0x7   : > { %s2065_s19 = smov (%p26_p0, %s25_s19), 0  ;;  %s2067_s20 = smov (!%p26_p0, %s28_s20), %s1666_s17 }
   0x8   : > { %p78_p3 = por %p77_p2, %p76_p1  ;;  %p30_p4 = scmp.ge.s32.totalorder %s2067_s20, 2 }
   0x9   : > { %s64_s21 = ssub.s32 %s1662_s16, %s2065_s19  ;;  %p1305_p6 = scmp.ge.s32.totalorder %s1670_s18, 6 }
   0xa   : > { %s2069_s20 = smov (%p30_p4, %s2067_s20), 0 }
   0xb   : > { %s65_s22 = ssub.s32 %s1666_s17, %s2069_s20  ;;  %156 = sbr.rel (%p1305_p6) target bundleno = 119 (0x77), region = 16 }
   0xc   : > { %s66_s23 = sor.u32 %s65_s22, %s64_s21 }
   0xd   : > { %p67_p5 = scmp.eq.s32.totalorder %s66_s23, 0 }
   0xf   : > { %s1744_s25 = scalar_select %p67_p5, %s1650_s13, %s69_s24  }
  0x10   : > { %172 = sbr.rel (!%p78_p3) target bundleno = 119 (0x77), region = 24  ;;  %s174_s26 = sand.u32 (%p78_p3), 1, %s1650_s13  }
  0x11   : > { %s1507_s27 = smul.u32 (%p78_p3), 192, %s1662_s16 }
  0x12   : > { %s1556_s28 = smul.u32 (%p78_p3), 384, %s174_s26 }
  0x13   : > { %s179_s29 = sadd.s32 (%p78_p3), %s1666_s17, %s1507_s27 }
  0x14   : > { %s1307_s30 = sshll.u32 (%p78_p3), %s179_s29, 2  ;;  %s1758_s7 = scalar_lea.vmem (%p78_p3), [#allocation3], %s1556_s28 }
  0x15   : > { %s1753_s6 = scalar_lea.vmem %s2055_s1, %s1307_s30 }
  0x16   : > { %v198_v0 = vld [vmem:[%s1753_s6] sm:$0xf]  ;;  %v200_v1 = vld [vmem:[%s1753_s6 + $0x8] sm:$0xf]  ;;  %v202_v2 = vld [vmem:[%s1753_s6 + $0x10] sm:$0xf] }
  0x17   : > { %199 = vst [vmem:[%s1758_s7] sm:$0xf] %v198_v0  ;;  %v204_v3 = vld [vmem:[%s1753_s6 + $0x18] sm:$0xf]  ;;  %v206_v4 = vld [vmem:[%s1753_s6 + $0x20] sm:$0xf] }
  0x18   : > { %201 = vst [vmem:[%s1758_s7 + $0x4] sm:$0xf] %v200_v1  ;;  %v208_v5 = vld [vmem:[%s1753_s6 + $0x28] sm:$0xf]  ;;  %v210_v6 = vld [vmem:[%s1753_s6 + $0x30] sm:$0xf] }
  0x19   : > { %203 = vst [vmem:[%s1758_s7 + $0x8] sm:$0xf] %v202_v2  ;;  %v212_v7 = vld [vmem:[%s1753_s6 + $0x38] sm:$0xf]  ;;  %v214_v8 = vld [vmem:[%s1753_s6 + $0x40] sm:$0xf] }
  0x1a   : > { %205 = vst [vmem:[%s1758_s7 + $0xc] sm:$0xf] %v204_v3  ;;  %v216_v9 = vld [vmem:[%s1753_s6 + $0x48] sm:$0xf]  ;;  %v218_v10 = vld [vmem:[%s1753_s6 + $0x50] sm:$0xf] }
  0x1b   : > { %207 = vst [vmem:[%s1758_s7 + $0x10] sm:$0xf] %v206_v4  ;;  %v220_v11 = vld [vmem:[%s1753_s6 + $0x58] sm:$0xf]  ;;  %v222_v12 = vld [vmem:[%s1753_s6 + $0x60] sm:$0xf] }
  0x1c   : > { %209 = vst [vmem:[%s1758_s7 + $0x14] sm:$0xf] %v208_v5  ;;  %v224_v13 = vld [vmem:[%s1753_s6 + $0x68] sm:$0xf]  ;;  %v226_v14 = vld [vmem:[%s1753_s6 + $0x70] sm:$0xf] }
  0x1d   : > { %211 = vst [vmem:[%s1758_s7 + $0x18] sm:$0xf] %v210_v6  ;;  %v228_v15 = vld [vmem:[%s1753_s6 + $0x78] sm:$0xf]  ;;  %v230_v16 = vld [vmem:[%s1753_s6 + $0x80] sm:$0xf] }
  0x1e   : > { %213 = vst [vmem:[%s1758_s7 + $0x1c] sm:$0xf] %v212_v7  ;;  %v232_v17 = vld [vmem:[%s1753_s6 + $0x88] sm:$0xf]  ;;  %v234_v18 = vld [vmem:[%s1753_s6 + $0x90] sm:$0xf] }
  0x1f   : > { %215 = vst [vmem:[%s1758_s7 + $0x20] sm:$0xf] %v214_v8  ;;  %v236_v19 = vld [vmem:[%s1753_s6 + $0x98] sm:$0xf]  ;;  %v238_v20 = vld [vmem:[%s1753_s6 + $0xa0] sm:$0xf] }
  0x20   : > { %217 = vst [vmem:[%s1758_s7 + $0x24] sm:$0xf] %v216_v9  ;;  %v240_v21 = vld [vmem:[%s1753_s6 + $0xa8] sm:$0xf]  ;;  %v242_v22 = vld [vmem:[%s1753_s6 + $0xb0] sm:$0xf] }
  0x21   : > { %219 = vst [vmem:[%s1758_s7 + $0x28] sm:$0xf] %v218_v10  ;;  %v244_v23 = vld [vmem:[%s1753_s6 + $0xb8] sm:$0xf]  ;;  %v246_v24 = vld [vmem:[%s1753_s6 + $0xc0] sm:$0xf] }
  0x22   : > { %221 = vst [vmem:[%s1758_s7 + $0x2c] sm:$0xf] %v220_v11  ;;  %v248_v25 = vld [vmem:[%s1753_s6 + $0xc8] sm:$0xf]  ;;  %v250_v26 = vld [vmem:[%s1753_s6 + $0xd0] sm:$0xf] }
  0x23   : > { %223 = vst [vmem:[%s1758_s7 + $0x30] sm:$0xf] %v222_v12  ;;  %v252_v27 = vld [vmem:[%s1753_s6 + $0xd8] sm:$0xf]  ;;  %v254_v28 = vld [vmem:[%s1753_s6 + $0xe0] sm:$0xf] }
  0x24   : > { %225 = vst [vmem:[%s1758_s7 + $0x34] sm:$0xf] %v224_v13  ;;  %v256_v29 = vld [vmem:[%s1753_s6 + $0xe8] sm:$0xf]  ;;  %v258_v30 = vld [vmem:[%s1753_s6 + $0xf0] sm:$0xf] }
  0x25   : > { %227 = vst [vmem:[%s1758_s7 + $0x38] sm:$0xf] %v226_v14  ;;  %v260_v31 = vld [vmem:[%s1753_s6 + $0xf8] sm:$0xf]  ;;  %v262_v32 = vld [vmem:[%s1753_s6 + $0x100] sm:$0xf] }
  0x26   : > { %229 = vst [vmem:[%s1758_s7 + $0x3c] sm:$0xf] %v228_v15  ;;  %v264_v33 = vld [vmem:[%s1753_s6 + $0x108] sm:$0xf]  ;;  %v266_v34 = vld [vmem:[%s1753_s6 + $0x110] sm:$0xf] }
  0x27   : > { %231 = vst [vmem:[%s1758_s7 + $0x40] sm:$0xf] %v230_v16  ;;  %v268_v35 = vld [vmem:[%s1753_s6 + $0x118] sm:$0xf]  ;;  %v270_v36 = vld [vmem:[%s1753_s6 + $0x120] sm:$0xf] }
  0x28   : > { %233 = vst [vmem:[%s1758_s7 + $0x44] sm:$0xf] %v232_v17  ;;  %v272_v37 = vld [vmem:[%s1753_s6 + $0x128] sm:$0xf]  ;;  %v274_v38 = vld [vmem:[%s1753_s6 + $0x130] sm:$0xf] }
  0x29   : > { %235 = vst [vmem:[%s1758_s7 + $0x48] sm:$0xf] %v234_v18  ;;  %v276_v39 = vld [vmem:[%s1753_s6 + $0x138] sm:$0xf]  ;;  %v278_v40 = vld [vmem:[%s1753_s6 + $0x140] sm:$0xf] }
  0x2a   : > { %237 = vst [vmem:[%s1758_s7 + $0x4c] sm:$0xf] %v236_v19  ;;  %v280_v41 = vld [vmem:[%s1753_s6 + $0x148] sm:$0xf]  ;;  %v282_v42 = vld [vmem:[%s1753_s6 + $0x150] sm:$0xf] }
  0x2b   : > { %239 = vst [vmem:[%s1758_s7 + $0x50] sm:$0xf] %v238_v20  ;;  %v284_v43 = vld [vmem:[%s1753_s6 + $0x158] sm:$0xf]  ;;  %v286_v44 = vld [vmem:[%s1753_s6 + $0x160] sm:$0xf] }
  0x2c   : > { %241 = vst [vmem:[%s1758_s7 + $0x54] sm:$0xf] %v240_v21  ;;  %v288_v45 = vld [vmem:[%s1753_s6 + $0x168] sm:$0xf]  ;;  %v290_v46 = vld [vmem:[%s1753_s6 + $0x170] sm:$0xf] }
  0x2d   : > { %243 = vst [vmem:[%s1758_s7 + $0x58] sm:$0xf] %v242_v22  ;;  %v292_v47 = vld [vmem:[%s1753_s6 + $0x178] sm:$0xf]  ;;  %v294_v48 = vld [vmem:[%s1753_s6 + $0x180] sm:$0xf] }
  0x2e   : > { %245 = vst [vmem:[%s1758_s7 + $0x5c] sm:$0xf] %v244_v23  ;;  %v296_v49 = vld [vmem:[%s1753_s6 + $0x188] sm:$0xf]  ;;  %v298_v50 = vld [vmem:[%s1753_s6 + $0x190] sm:$0xf] }
  0x2f   : > { %247 = vst [vmem:[%s1758_s7 + $0x60] sm:$0xf] %v246_v24  ;;  %v300_v51 = vld [vmem:[%s1753_s6 + $0x198] sm:$0xf]  ;;  %v302_v52 = vld [vmem:[%s1753_s6 + $0x1a0] sm:$0xf] }
  0x30   : > { %249 = vst [vmem:[%s1758_s7 + $0x64] sm:$0xf] %v248_v25  ;;  %v304_v53 = vld [vmem:[%s1753_s6 + $0x1a8] sm:$0xf]  ;;  %v306_v54 = vld [vmem:[%s1753_s6 + $0x1b0] sm:$0xf] }
  0x31   : > { %251 = vst [vmem:[%s1758_s7 + $0x68] sm:$0xf] %v250_v26  ;;  %v308_v55 = vld [vmem:[%s1753_s6 + $0x1b8] sm:$0xf]  ;;  %v310_v56 = vld [vmem:[%s1753_s6 + $0x1c0] sm:$0xf] }
  0x32   : > { %253 = vst [vmem:[%s1758_s7 + $0x6c] sm:$0xf] %v252_v27  ;;  %v312_v57 = vld [vmem:[%s1753_s6 + $0x1c8] sm:$0xf]  ;;  %v314_v58 = vld [vmem:[%s1753_s6 + $0x1d0] sm:$0xf] }
  0x33   : > { %255 = vst [vmem:[%s1758_s7 + $0x70] sm:$0xf] %v254_v28  ;;  %v316_v59 = vld [vmem:[%s1753_s6 + $0x1d8] sm:$0xf]  ;;  %v318_v60 = vld [vmem:[%s1753_s6 + $0x1e0] sm:$0xf] }
  0x34   : > { %257 = vst [vmem:[%s1758_s7 + $0x74] sm:$0xf] %v256_v29  ;;  %v320_v61 = vld [vmem:[%s1753_s6 + $0x1e8] sm:$0xf]  ;;  %v322_v62 = vld [vmem:[%s1753_s6 + $0x1f0] sm:$0xf] }
  0x35   : > { %259 = vst [vmem:[%s1758_s7 + $0x78] sm:$0xf] %v258_v30  ;;  %v324_v63 = vld [vmem:[%s1753_s6 + $0x1f8] sm:$0xf]  ;;  %v326_v0 = vld [vmem:[%s1753_s6 + $0x200] sm:$0xf] }
  0x36   : > { %261 = vst [vmem:[%s1758_s7 + $0x7c] sm:$0xf] %v260_v31  ;;  %v328_v1 = vld [vmem:[%s1753_s6 + $0x208] sm:$0xf]  ;;  %v330_v2 = vld [vmem:[%s1753_s6 + $0x210] sm:$0xf] }
  0x37   : > { %263 = vst [vmem:[%s1758_s7 + $0x80] sm:$0xf] %v262_v32  ;;  %v332_v3 = vld [vmem:[%s1753_s6 + $0x218] sm:$0xf]  ;;  %v334_v4 = vld [vmem:[%s1753_s6 + $0x220] sm:$0xf] }
  0x38   : > { %265 = vst [vmem:[%s1758_s7 + $0x84] sm:$0xf] %v264_v33  ;;  %v336_v5 = vld [vmem:[%s1753_s6 + $0x228] sm:$0xf]  ;;  %v338_v6 = vld [vmem:[%s1753_s6 + $0x230] sm:$0xf] }
  0x39   : > { %267 = vst [vmem:[%s1758_s7 + $0x88] sm:$0xf] %v266_v34  ;;  %v340_v7 = vld [vmem:[%s1753_s6 + $0x238] sm:$0xf]  ;;  %v342_v8 = vld [vmem:[%s1753_s6 + $0x240] sm:$0xf] }
  0x3a   : > { %269 = vst [vmem:[%s1758_s7 + $0x8c] sm:$0xf] %v268_v35  ;;  %v344_v9 = vld [vmem:[%s1753_s6 + $0x248] sm:$0xf]  ;;  %v346_v10 = vld [vmem:[%s1753_s6 + $0x250] sm:$0xf] }
  0x3b   : > { %271 = vst [vmem:[%s1758_s7 + $0x90] sm:$0xf] %v270_v36  ;;  %v348_v11 = vld [vmem:[%s1753_s6 + $0x258] sm:$0xf]  ;;  %v350_v12 = vld [vmem:[%s1753_s6 + $0x260] sm:$0xf] }
  0x3c   : > { %273 = vst [vmem:[%s1758_s7 + $0x94] sm:$0xf] %v272_v37  ;;  %v352_v13 = vld [vmem:[%s1753_s6 + $0x268] sm:$0xf]  ;;  %v354_v14 = vld [vmem:[%s1753_s6 + $0x270] sm:$0xf] }
  0x3d   : > { %275 = vst [vmem:[%s1758_s7 + $0x98] sm:$0xf] %v274_v38  ;;  %v356_v15 = vld [vmem:[%s1753_s6 + $0x278] sm:$0xf]  ;;  %v358_v16 = vld [vmem:[%s1753_s6 + $0x280] sm:$0xf] }
  0x3e   : > { %277 = vst [vmem:[%s1758_s7 + $0x9c] sm:$0xf] %v276_v39  ;;  %v360_v17 = vld [vmem:[%s1753_s6 + $0x288] sm:$0xf]  ;;  %v362_v18 = vld [vmem:[%s1753_s6 + $0x290] sm:$0xf] }
  0x3f   : > { %279 = vst [vmem:[%s1758_s7 + $0xa0] sm:$0xf] %v278_v40  ;;  %v364_v19 = vld [vmem:[%s1753_s6 + $0x298] sm:$0xf]  ;;  %v366_v20 = vld [vmem:[%s1753_s6 + $0x2a0] sm:$0xf] }
  0x40   : > { %281 = vst [vmem:[%s1758_s7 + $0xa4] sm:$0xf] %v280_v41  ;;  %v368_v21 = vld [vmem:[%s1753_s6 + $0x2a8] sm:$0xf]  ;;  %v370_v22 = vld [vmem:[%s1753_s6 + $0x2b0] sm:$0xf] }
  0x41   : > { %283 = vst [vmem:[%s1758_s7 + $0xa8] sm:$0xf] %v282_v42  ;;  %v372_v23 = vld [vmem:[%s1753_s6 + $0x2b8] sm:$0xf]  ;;  %v374_v24 = vld [vmem:[%s1753_s6 + $0x2c0] sm:$0xf] }
  0x42   : > { %285 = vst [vmem:[%s1758_s7 + $0xac] sm:$0xf] %v284_v43  ;;  %v376_v25 = vld [vmem:[%s1753_s6 + $0x2c8] sm:$0xf]  ;;  %v378_v26 = vld [vmem:[%s1753_s6 + $0x2d0] sm:$0xf] }
  0x43   : > { %287 = vst [vmem:[%s1758_s7 + $0xb0] sm:$0xf] %v286_v44  ;;  %v380_v27 = vld [vmem:[%s1753_s6 + $0x2d8] sm:$0xf]  ;;  %v382_v28 = vld [vmem:[%s1753_s6 + $0x2e0] sm:$0xf] }
  0x44   : > { %289 = vst [vmem:[%s1758_s7 + $0xb4] sm:$0xf] %v288_v45  ;;  %v384_v29 = vld [vmem:[%s1753_s6 + $0x2e8] sm:$0xf]  ;;  %v386_v30 = vld [vmem:[%s1753_s6 + $0x2f0] sm:$0xf] }
  0x45   : > { %291 = vst [vmem:[%s1758_s7 + $0xb8] sm:$0xf] %v290_v46  ;;  %v388_v31 = vld [vmem:[%s1753_s6 + $0x2f8] sm:$0xf] }
  0x46   : > { %293 = vst [vmem:[%s1758_s7 + $0xbc] sm:$0xf] %v292_v47 }
  0x47   : > { %295 = vst [vmem:[%s1758_s7 + $0xc0] sm:$0xf] %v294_v48 }
  0x48   : > { %297 = vst [vmem:[%s1758_s7 + $0xc4] sm:$0xf] %v296_v49 }
  0x49   : > { %299 = vst [vmem:[%s1758_s7 + $0xc8] sm:$0xf] %v298_v50 }
  0x4a   : > { %301 = vst [vmem:[%s1758_s7 + $0xcc] sm:$0xf] %v300_v51 }
  0x4b   : > { %303 = vst [vmem:[%s1758_s7 + $0xd0] sm:$0xf] %v302_v52 }
  0x4c   : > { %305 = vst [vmem:[%s1758_s7 + $0xd4] sm:$0xf] %v304_v53 }
  0x4d   : > { %307 = vst [vmem:[%s1758_s7 + $0xd8] sm:$0xf] %v306_v54 }
  0x4e   : > { %309 = vst [vmem:[%s1758_s7 + $0xdc] sm:$0xf] %v308_v55 }
  0x4f   : > { %311 = vst [vmem:[%s1758_s7 + $0xe0] sm:$0xf] %v310_v56 }
  0x50   : > { %313 = vst [vmem:[%s1758_s7 + $0xe4] sm:$0xf] %v312_v57 }
  0x51   : > { %315 = vst [vmem:[%s1758_s7 + $0xe8] sm:$0xf] %v314_v58 }
  0x52   : > { %317 = vst [vmem:[%s1758_s7 + $0xec] sm:$0xf] %v316_v59 }
  0x53   : > { %319 = vst [vmem:[%s1758_s7 + $0xf0] sm:$0xf] %v318_v60 }
  0x54   : > { %321 = vst [vmem:[%s1758_s7 + $0xf4] sm:$0xf] %v320_v61 }
  0x55   : > { %323 = vst [vmem:[%s1758_s7 + $0xf8] sm:$0xf] %v322_v62 }
  0x56   : > { %325 = vst [vmem:[%s1758_s7 + $0xfc] sm:$0xf] %v324_v63 }
  0x57   : > { %327 = vst [vmem:[%s1758_s7 + $0x100] sm:$0xf] %v326_v0 }
  0x58   : > { %329 = vst [vmem:[%s1758_s7 + $0x104] sm:$0xf] %v328_v1 }
  0x59   : > { %331 = vst [vmem:[%s1758_s7 + $0x108] sm:$0xf] %v330_v2 }
  0x5a   : > { %333 = vst [vmem:[%s1758_s7 + $0x10c] sm:$0xf] %v332_v3 }
  0x5b   : > { %335 = vst [vmem:[%s1758_s7 + $0x110] sm:$0xf] %v334_v4 }
  0x5c   : > { %337 = vst [vmem:[%s1758_s7 + $0x114] sm:$0xf] %v336_v5 }
  0x5d   : > { %339 = vst [vmem:[%s1758_s7 + $0x118] sm:$0xf] %v338_v6 }
  0x5e   : > { %341 = vst [vmem:[%s1758_s7 + $0x11c] sm:$0xf] %v340_v7 }
  0x5f   : > { %343 = vst [vmem:[%s1758_s7 + $0x120] sm:$0xf] %v342_v8 }
  0x60   : > { %345 = vst [vmem:[%s1758_s7 + $0x124] sm:$0xf] %v344_v9 }
  0x61   : > { %347 = vst [vmem:[%s1758_s7 + $0x128] sm:$0xf] %v346_v10 }
  0x62   : > { %349 = vst [vmem:[%s1758_s7 + $0x12c] sm:$0xf] %v348_v11 }
  0x63   : > { %351 = vst [vmem:[%s1758_s7 + $0x130] sm:$0xf] %v350_v12 }
  0x64   : > { %353 = vst [vmem:[%s1758_s7 + $0x134] sm:$0xf] %v352_v13 }
  0x65   : > { %355 = vst [vmem:[%s1758_s7 + $0x138] sm:$0xf] %v354_v14 }
  0x66   : > { %357 = vst [vmem:[%s1758_s7 + $0x13c] sm:$0xf] %v356_v15 }
  0x67   : > { %359 = vst [vmem:[%s1758_s7 + $0x140] sm:$0xf] %v358_v16 }
  0x68   : > { %361 = vst [vmem:[%s1758_s7 + $0x144] sm:$0xf] %v360_v17 }
  0x69   : > { %363 = vst [vmem:[%s1758_s7 + $0x148] sm:$0xf] %v362_v18 }
  0x6a   : > { %365 = vst [vmem:[%s1758_s7 + $0x14c] sm:$0xf] %v364_v19 }
  0x6b   : > { %367 = vst [vmem:[%s1758_s7 + $0x150] sm:$0xf] %v366_v20 }
  0x6c   : > { %369 = vst [vmem:[%s1758_s7 + $0x154] sm:$0xf] %v368_v21 }
  0x6d   : > { %371 = vst [vmem:[%s1758_s7 + $0x158] sm:$0xf] %v370_v22 }
  0x6e   : > { %373 = vst [vmem:[%s1758_s7 + $0x15c] sm:$0xf] %v372_v23 }
  0x6f   : > { %375 = vst [vmem:[%s1758_s7 + $0x160] sm:$0xf] %v374_v24 }
  0x70   : > { %377 = vst [vmem:[%s1758_s7 + $0x164] sm:$0xf] %v376_v25 }
  0x71   : > { %379 = vst [vmem:[%s1758_s7 + $0x168] sm:$0xf] %v378_v26 }
  0x72   : > { %381 = vst [vmem:[%s1758_s7 + $0x16c] sm:$0xf] %v380_v27 }
  0x73   : > { %383 = vst [vmem:[%s1758_s7 + $0x170] sm:$0xf] %v382_v28 }
  0x74   : > { %385 = vst [vmem:[%s1758_s7 + $0x174] sm:$0xf] %v384_v29 }
  0x75   : > { %387 = vst [vmem:[%s1758_s7 + $0x178] sm:$0xf] %v386_v30 }
  0x76   : > { %389 = vst [vmem:[%s1758_s7 + $0x17c] sm:$0xf] %v388_v31 }
  0x77 PF: > { %p1308_p7 = scmp.ge.s32.totalorder %s1670_s18, 1  ;;  %p610_p8 = scmp.lt.s32.totalorder %s1670_s18, 7 }
  0x79   : > { %p611_p9 = pnand %p1308_p7, %p610_p8 }
  0x7a   : > { %s617_s8 = sand.u32 (!%p611_p9), 1, %s1646_s12   ;;  %s655_s9 = smul.u32 (!%p611_p9), 6, %s1654_s14 }
  0x7b   : > { %614 = sbr.rel (%p611_p9) target bundleno = 349 (0x15d), region = 69  ;;  %p666_p10 = scmp.lt.s32.totalorder (!%p611_p9), %s1658_s15, 1 }
  0x7c   : > { %s1557_s10 = smul.u32 (!%p611_p9), 384, %s617_s8  ;;  %p658_p11 = scmp.lt.s32.totalorder (!%p611_p9), %s655_s9, 17 }
  0x7d   : > { %p1311_p12 = scmp.ne.s32.totalorder (!%p611_p9), %s1654_s14, 0 }
  0x7e   : > { %s1972_s4 = scalar_lea.vmem (!%p611_p9), [#allocation3], %s1557_s10 }
  0x80   : > { %s2071_s9 = smov (!%p658_p11, %s655_s9), 17  ;;  %s2073_s15 = smov (!%p666_p10, %s1658_s15), 1 }
  0x81   : > { %s1309_s11 = sshll.u32 %s2071_s9, 2  ;;  %s668_s27 = scalar_lea.vmem %s2056_s2, %s2073_s15 }
  0x82   : > { %s1960_s23 = scalar_lea.vmem %s2054_s0, %s1309_s11  ;;  %s1310_s12 = sshll.u32 %s2073_s15, 2 }
  0x83   : > { %s1970_s30 = scalar_lea.vmem %s2057_s3, %s1310_s12  ;;  %680 = sbr.rel (%p1311_p12) target bundleno = 138 (0x8a), region = 77 }
  0x88   : > { %v1672_v32 = vmov 0.0  }
  0x89   : > { %681 = vst [vmem:[#allocation2] sm:$0xff] %v1672_v32 }
  0x8a PF: > { %v1515_v33 = vld [vmem:[%s1972_s4 + $0x38] sm:$0xff]  ;;  %v1514_v35 = vld [vmem:[%s1972_s4 + $0x30] sm:$0xff]  ;;  %v1513_v41 = vld [vmem:[%s1972_s4 + $0x28] sm:$0xff]  ;;  %p1504_p13 = scmp.ne.s32.totalorder %s1654_s14, 2 }
  0x8b   : > { %v1523_v34 = vld [vmem:[%s1972_s4 + $0x78] sm:$0xff]  ;;  %1091 = vmatpush.bf16.msra.mxu0 %v1515_v33  ;;  %v1522_v36 = vld [vmem:[%s1972_s4 + $0x70] sm:$0xff]  ;;  %v1521_v42 = vld [vmem:[%s1972_s4 + $0x68] sm:$0xff] }
  0x8c   : > { %1104 = vmatpush.bf16.msra.mxu1 %v1523_v34  ;;  %v1531_v37 = vld [vmem:[%s1972_s4 + $0xb8] sm:$0xff]  ;;  %v1530_v39 = vld [vmem:[%s1972_s4 + $0xb0] sm:$0xff]  ;;  %v1529_v43 = vld [vmem:[%s1972_s4 + $0xa8] sm:$0xff] }
  0x8d   : > { %v1539_v38 = vld [vmem:[%s1972_s4 + $0xf8] sm:$0xff]  ;;  %1117 = vmatpush.bf16.msra.mxu2 %v1531_v37  ;;  %v1538_v40 = vld [vmem:[%s1972_s4 + $0xf0] sm:$0xff]  ;;  %v1537_v44 = vld [vmem:[%s1972_s4 + $0xe8] sm:$0xff] }
  0x8e   : > { %1130 = vmatpush.bf16.msra.mxu3 %v1539_v38  ;;  %v1512_v45 = vld [vmem:[%s1972_s4 + $0x20] sm:$0xff]  ;;  %v1511_v49 = vld [vmem:[%s1972_s4 + $0x18] sm:$0xff]  ;;  %v1510_v53 = vld [vmem:[%s1972_s4 + $0x10] sm:$0xff] }
  0x8f   : > { %1092 = vmatpush.bf16.msra.mxu0 %v1514_v35  ;;  %v1520_v46 = vld [vmem:[%s1972_s4 + $0x60] sm:$0xff]  ;;  %v1519_v50 = vld [vmem:[%s1972_s4 + $0x58] sm:$0xff]  ;;  %v1518_v54 = vld [vmem:[%s1972_s4 + $0x50] sm:$0xff] }
  0x90   : > { %1105 = vmatpush.bf16.msra.mxu1 %v1522_v36  ;;  %v1528_v47 = vld [vmem:[%s1972_s4 + $0xa0] sm:$0xff]  ;;  %v1527_v51 = vld [vmem:[%s1972_s4 + $0x98] sm:$0xff]  ;;  %v1526_v55 = vld [vmem:[%s1972_s4 + $0x90] sm:$0xff] }
  0x91   : > { %1118 = vmatpush.bf16.msra.mxu2 %v1530_v39  ;;  %v1536_v48 = vld [vmem:[%s1972_s4 + $0xe0] sm:$0xff]  ;;  %v1535_v52 = vld [vmem:[%s1972_s4 + $0xd8] sm:$0xff]  ;;  %v1534_v56 = vld [vmem:[%s1972_s4 + $0xd0] sm:$0xff] }
  0x92   : > { %1131 = vmatpush.bf16.msra.mxu3 %v1538_v40  ;;  %v1509_v57 = vld [vmem:[%s1972_s4 + $0x8] sm:$0xff]  ;;  %v683_v59 = vld [vmem:[%s1960_s23] sm:$0xff]  ;;  %v684_v0 = vld [vmem:[%s1960_s23 + $0x8] sm:$0xff] }
  0x93   : > { %1093 = vmatpush.bf16.msra.mxu0 %v1513_v41  ;;  %v1517_v58 = vld [vmem:[%s1972_s4 + $0x48] sm:$0xff]  ;;  %v785_v62 = vunpack.c.l.b16 %v683_v59  ;;  %v786_v63 = vunpack.c.h.b16 %v683_v59  ;;  %v1508_v1 = vld [vmem:[%s1972_s4] sm:$0xff]  ;;  %v1547_v3 = vld [vmem:[%s1972_s4 + $0x138] sm:$0xff]  ;;  %v787_v7 = vunpack.c.l.b16 %v684_v0  ;;  %v788_v8 = vunpack.c.h.b16 %v684_v0 }
  0x94   : > { %1106 = vmatpush.bf16.msra.mxu1 %v1521_v42  ;;  %v1525_v60 = vld [vmem:[%s1972_s4 + $0x88] sm:$0xff]  ;;  %v1516_v2 = vld [vmem:[%s1972_s4 + $0x40] sm:$0xff]  ;;  %v1555_v4 = vld [vmem:[%s1972_s4 + $0x178] sm:$0xff] }
  0x95   : > { %1119 = vmatpush.bf16.msra.mxu2 %v1529_v43  ;;  %v1533_v61 = vld [vmem:[%s1972_s4 + $0xc8] sm:$0xff]  ;;  %v1524_v5 = vld [vmem:[%s1972_s4 + $0x80] sm:$0xff]  ;;  %v791_v9 = vpack.c.b16 %v785_v62, %v785_v62  ;;  %v792_v10 = vpack.c.b16 %v786_v63, %v786_v63  ;;  %v1546_v11 = vld [vmem:[%s1972_s4 + $0x130] sm:$0xff]  ;;  %v793_v13 = vpack.c.b16 %v787_v7, %v787_v7  ;;  %v794_v14 = vpack.c.b16 %v788_v8, %v788_v8 }
  0x96   : > { %1132 = vmatpush.bf16.msra.mxu3 %v1537_v44  ;;  %v1532_v6 = vld [vmem:[%s1972_s4 + $0xc0] sm:$0xff]  ;;  %v1554_v12 = vld [vmem:[%s1972_s4 + $0x170] sm:$0xff]  ;;  %v1545_v15 = vld [vmem:[%s1972_s4 + $0x128] sm:$0xff] }
  0x97   : > { %1094 = vmatpush.bf16.msra.mxu0 %v1512_v45  ;;  %v1553_v16 = vld [vmem:[%s1972_s4 + $0x168] sm:$0xff]  ;;  %v1544_v17 = vld [vmem:[%s1972_s4 + $0x120] sm:$0xff]  ;;  %v1543_v19 = vld [vmem:[%s1972_s4 + $0x118] sm:$0xff] }
  0x98   : > { %1107 = vmatpush.bf16.msra.mxu1 %v1520_v46  ;;  %v1552_v18 = vld [vmem:[%s1972_s4 + $0x160] sm:$0xff]  ;;  %v1551_v20 = vld [vmem:[%s1972_s4 + $0x158] sm:$0xff]  ;;  %v1542_v21 = vld [vmem:[%s1972_s4 + $0x110] sm:$0xff] }
  0x99   : > { %1120 = vmatpush.bf16.msra.mxu2 %v1528_v47  ;;  %v1550_v22 = vld [vmem:[%s1972_s4 + $0x150] sm:$0xff]  ;;  %v1541_v23 = vld [vmem:[%s1972_s4 + $0x108] sm:$0xff]  ;;  %v1540_v28 = vld [vmem:[%s1972_s4 + $0x100] sm:$0xff] }
  0x9a   : > { %1133 = vmatpush.bf16.msra.mxu3 %v1536_v48  ;;  %v1549_v24 = vld [vmem:[%s1972_s4 + $0x148] sm:$0xff]  ;;  %v1548_v29 = vld [vmem:[%s1972_s4 + $0x140] sm:$0xff]  ;;  %v682_v46 = vld [vmem:[#allocation2] sm:$0xff] }
  0x9b   : > { %1095 = vmatpush.bf16.msra.mxu0 %v1511_v49  ;;  %v685_v25 = vld [vmem:[%s1960_s23 + $0x10] sm:$0xff] }
  0x9c   : > { %1108 = vmatpush.bf16.msra.mxu1 %v1519_v50  ;;  %v789_v26 = vunpack.c.l.b16 %v685_v25  ;;  %v790_v27 = vunpack.c.h.b16 %v685_v25 }
  0x9d   : > { %1121 = vmatpush.bf16.msra.mxu2 %v1527_v51 }
  0x9e   : > { %1134 = vmatpush.bf16.msra.mxu3 %v1535_v52  ;;  %v795_v30 = vpack.c.b16 %v789_v26, %v789_v26  ;;  %v796_v31 = vpack.c.b16 %v790_v27, %v790_v27 }
  0x9f   : > { %1096 = vmatpush.bf16.msra.mxu0 %v1510_v53 }
  0xa0   : > { %1109 = vmatpush.bf16.msra.mxu1 %v1518_v54 }
  0xa1   : > { %1122 = vmatpush.bf16.msra.mxu2 %v1526_v55 }
  0xa2   : > { %1135 = vmatpush.bf16.msra.mxu3 %v1534_v56 }
  0xa3   : > { %1097 = vmatpush.bf16.msra.mxu0 %v1509_v57 }
  0xa4   : > { %1110 = vmatpush.bf16.msra.mxu1 %v1517_v58 }
  0xa5   : > { %1123 = vmatpush.bf16.msra.mxu2 %v1525_v60 }
  0xa6   : > { %1136 = vmatpush.bf16.msra.mxu3 %v1533_v61 }
  0xa7   : > { %1098 = vmatpush.bf16.msra.mxu0 %v1508_v1 }
  0xa8   : > { %1111 = vmatpush.bf16.msra.mxu1 %v1516_v2 }
  0xa9   : > { %1124 = vmatpush.bf16.msra.mxu2 %v1524_v5 }
  0xaa   : > { %1137 = vmatpush.bf16.msra.mxu3 %v1532_v6  ;;  %1099 = vmatmul.bf16.vlgmr.msra.gmra.mxu0 %v791_v9 }
  0xab   : > { %1143 = vmatpush.bf16.msrb.mxu0 %v1547_v3  ;;  %1112 = vmatmul.bf16.vlgmr.msra.gmra.mxu1 %v792_v10 }
  0xac   : > { %1156 = vmatpush.bf16.msrb.mxu1 %v1555_v4  ;;  %1125 = vmatmul.bf16.vlgmr.msra.gmra.mxu2 %v793_v13 }
  0xad   : > { %1138 = vmatmul.bf16.vlgmr.msra.gmra.mxu3 %v794_v14 }
  0xaf   : > { %1144 = vmatpush.bf16.msrb.mxu0 %v1546_v11 }
  0xb0   : > { %1157 = vmatpush.bf16.msrb.mxu1 %v1554_v12 }
  0xb3   : > { %1145 = vmatpush.bf16.msrb.mxu0 %v1545_v15 }
  0xb4   : > { %1158 = vmatpush.bf16.msrb.mxu1 %v1553_v16 }
  0xb7   : > { %1146 = vmatpush.bf16.msrb.mxu0 %v1544_v17 }
  0xb8   : > { %1159 = vmatpush.bf16.msrb.mxu1 %v1552_v18 }
  0xbb   : > { %1147 = vmatpush.bf16.msrb.mxu0 %v1543_v19 }
  0xbc   : > { %1160 = vmatpush.bf16.msrb.mxu1 %v1551_v20 }
  0xbf   : > { %1148 = vmatpush.bf16.msrb.mxu0 %v1542_v21 }
  0xc0   : > { %1161 = vmatpush.bf16.msrb.mxu1 %v1550_v22 }
  0xc3   : > { %1149 = vmatpush.bf16.msrb.mxu0 %v1541_v23 }
  0xc4   : > { %1162 = vmatpush.bf16.msrb.mxu1 %v1549_v24 }
  0xc7   : > { %1150 = vmatpush.bf16.msrb.mxu0 %v1540_v28 }
  0xc8   : > { %1163 = vmatpush.bf16.msrb.mxu1 %v1548_v29 }
  0xca   : > { %1151 = vmatmul.bf16.vlgmr.msrb.gmra.mxu0 %v795_v30 }
  0xcb   : > { %1164 = vmatmul.bf16.vlgmr.msrb.gmra.mxu1 %v796_v31 }
 0x127   : > { %v1100_v32 = vpop.f32.mrf.mxu0 }
 0x128   : > { %v1113_v33 = vpop.f32.mrf.mxu1 }
 0x129   : > { %v1114_v40 = vadd.f32 %v1113_v33, %v1100_v32 }
 0x12f   : > { %v1102_v34 = vpop.f32.mrf.mxu0  ;;  %v1126_v36 = vpop.f32.mrf.mxu2 }
 0x130   : > { %v1115_v35 = vpop.f32.mrf.mxu1  ;;  %v1139_v37 = vpop.f32.mrf.mxu3  ;;  %v1127_v41 = vadd.f32 %v1126_v36, %v1114_v40 }
 0x132   : > { %v1140_v42 = vadd.f32 %v1139_v37, %v1127_v41 }
 0x137   : > { %v1128_v38 = vpop.f32.mrf.mxu2 }
 0x138   : > { %v1141_v39 = vpop.f32.mrf.mxu3 }
 0x147   : > { %v1152_v43 = vpop.f32.mrf.mxu0 }
 0x148   : > { %v1165_v44 = vpop.f32.mrf.mxu1  ;;  %v1153_v45 = vadd.f32 %v1152_v43, %v1140_v42 }
 0x14a   : > { %v1166_v47 = vadd.f32 %v1165_v44, %v1153_v45 }
 0x14c   : > { %v1169_v48 = vadd.f32 %v1166_v47, %v682_v46  ;;  %1174 = sbr.rel (%p1504_p13) target bundleno = 349 (0x15d), region = 81 }
 0x14e   : > { %1170 = vst [vmem:[#allocation2] sm:$0xff] %v1169_v48 }
 0x14f   : > { %v1154_v49 = vpop.f32.mrf.mxu0 }
 0x150   : > { %v1167_v50 = vpop.f32.mrf.mxu1 }
 0x151   : > { %v1615_v52 = vld [vmem:[%s668_s27] ss:$0 sm:$0xff] }
 0x155   : > { %v1175_v51 = vld [vmem:[#allocation2] sm:$0xff] }
 0x156   : > { %v1180_v53 = vadd.f32 %v1615_v52, %v1175_v51 }
 0x158   : > { %v1181_v54 = vmax.f32 %v1180_v53, 0.0 }
 0x15a   : > { %v1182_v55 = vpack.c.bf16 %v1181_v54, %v1181_v54 }
 0x15c   : > { %1183 = vst [vmem:[%s1970_s30] sm:$0xf] %v1182_v55 }
 0x15d PF: > { %s13_s18 = sadd.s32 1, %s1670_s18   ;;  %s2058_s12 = smov %s1650_s13 }
 0x15e   : > { %p10_p0 = scmp.ge.s32.totalorder %s13_s18, 8   ;;  %s2059_s13 = smov %s1744_s25 }
 0x15f   : > { %s2060_s14 = smov %s1662_s16  ;;  %s2061_s15 = smov %s1666_s17 }
 0x160   : > { %s2062_s16 = smov %s2065_s19  ;;  %s2063_s17 = smov %s2069_s20 }
 0x161   :  { %12 = sbr.rel (!%p10_p0) target bundleno = 4 (0x4), region = 122 }

// kernel: forward.36
= control target key start
LH: loop header
LB: loop body
LE: loop exit
PB: predicated region body
PF: predicated region fallthrough
CT: control target
= control target key end

     0   :  { %s2221_s12 = smov 0   ;;  %s2223_s13 = smov 0   ;;  %s2749_s0 = inlined_call_operand.vmem [shape: bf16[8,2304], index: 0, kind: input, shape index: {}]   ;;  %s2750_s1 = inlined_call_operand.vmem [shape: bf16[2304,512], index: 1, kind: input, shape index: {}]   ;;  %s2751_s2 = inlined_call_operand.vmem [shape: f32[1,512], index: 2, kind: input, shape index: {}]   ;;  %s2752_s3 = inlined_call_operand.vmem [shape: bf16[8,512], index: 3, kind: output, shape index: {}]  }
   0x1   :  { %s2225_s14 = smov 0   ;;  %s2227_s15 = smov 0  }
   0x2   :  { %s2229_s16 = smov 0   ;;  %s2231_s17 = smov 0  }
   0x3   :  { %s2233_s18 = smov 0  }
   0x4 LB: > { %s25_s19 = sadd.s32 1, %s2190_s16  ;;  %s28_s20 = sadd.s32 1, %s2194_s17  ;;  %s2198_s18 = sphi %s2233_s18, %s13_s18   ;;  %s2194_s17 = sphi %s2231_s17, %s2758_s17   ;;  %s2190_s16 = sphi %s2229_s16, %s2757_s16   ;;  %s2186_s15 = sphi %s2227_s15, %s2756_s15   ;;  %s2182_s14 = sphi %s2225_s14, %s2755_s14   ;;  %s2178_s13 = sphi %s2223_s13, %s2754_s13   ;;  %s2174_s12 = sphi %s2221_s12, %s2753_s12  }
   0x5   : > { %p26_p0 = scmp.ge.s32.totalorder %s25_s19, 3  ;;  %p76_p1 = scmp.ne.s32.totalorder %s2178_s13, %s2174_s12 }
   0x6   : > { %p77_p2 = scmp.eq.s32.totalorder %s2198_s18, 0  ;;  %s69_s24 = sadd.s32 1, %s2178_s13 }
   0x7   : > { %s2760_s19 = smov (%p26_p0, %s25_s19), 0  ;;  %s2762_s20 = smov (!%p26_p0, %s28_s20), %s2194_s17 }
   0x8   : > { %p78_p3 = por %p77_p2, %p76_p1  ;;  %p30_p4 = scmp.ge.s32.totalorder %s2762_s20, 2 }
   0x9   : > { %s64_s21 = ssub.s32 %s2190_s16, %s2760_s19  ;;  %p1591_p6 = scmp.ge.s32.totalorder %s2198_s18, 6 }
   0xa   : > { %s2764_s20 = smov (%p30_p4, %s2762_s20), 0 }
   0xb   : > { %s65_s22 = ssub.s32 %s2194_s17, %s2764_s20  ;;  %156 = sbr.rel (%p1591_p6) target bundleno = 120 (0x78), region = 16 }
   0xc   : > { %s66_s23 = sor.u32 %s65_s22, %s64_s21 }
   0xd   : > { %p67_p5 = scmp.eq.s32.totalorder %s66_s23, 0 }
   0xf   : > { %s2272_s25 = scalar_select %p67_p5, %s2178_s13, %s69_s24  }
  0x10   : > { %172 = sbr.rel (!%p78_p3) target bundleno = 120 (0x78), region = 24  ;;  %s174_s26 = sand.u32 (%p78_p3), 1, %s2178_s13  }
  0x11   : > { %s2085_s27 = smul.u32 (%p78_p3), 768, %s174_s26  ;;  %s1592_s28 = sshll.u32 (%p78_p3), %s2194_s17, 1 }
  0x12   : > { %s1988_s29 = smul.u32 (%p78_p3), 384, %s2190_s16 }
  0x13   : > { %s2286_s8 = scalar_lea.vmem (%p78_p3), [#allocation3], %s2085_s27 }
  0x14   : > { %s180_s30 = sadd.s32 (%p78_p3), %s1988_s29, %s1592_s28 }
  0x15   : > { %s1594_s4 = sshll.u32 %s180_s30, 2 }
  0x16   : > { %s2281_s7 = scalar_lea.vmem %s2750_s1, %s1594_s4 }
  0x17   : > { %v401_v0 = vld [vmem:[%s2281_s7] sm:$0xff]  ;;  %v403_v1 = vld [vmem:[%s2281_s7 + $0x10] sm:$0xff] }
  0x18   : > { %v405_v2 = vld [vmem:[%s2281_s7 + $0x20] sm:$0xff]  ;;  %402 = vst [vmem:[%s2286_s8] sm:$0xff] %v401_v0  ;;  %v407_v3 = vld [vmem:[%s2281_s7 + $0x30] sm:$0xff] }
  0x19   : > { %404 = vst [vmem:[%s2286_s8 + $0x8] sm:$0xff] %v403_v1  ;;  %v409_v4 = vld [vmem:[%s2281_s7 + $0x40] sm:$0xff]  ;;  %v411_v5 = vld [vmem:[%s2281_s7 + $0x50] sm:$0xff] }
  0x1a   : > { %406 = vst [vmem:[%s2286_s8 + $0x10] sm:$0xff] %v405_v2  ;;  %v413_v6 = vld [vmem:[%s2281_s7 + $0x60] sm:$0xff]  ;;  %v415_v7 = vld [vmem:[%s2281_s7 + $0x70] sm:$0xff] }
  0x1b   : > { %408 = vst [vmem:[%s2286_s8 + $0x18] sm:$0xff] %v407_v3  ;;  %v417_v8 = vld [vmem:[%s2281_s7 + $0x80] sm:$0xff]  ;;  %v419_v9 = vld [vmem:[%s2281_s7 + $0x90] sm:$0xff] }
  0x1c   : > { %410 = vst [vmem:[%s2286_s8 + $0x20] sm:$0xff] %v409_v4  ;;  %v421_v10 = vld [vmem:[%s2281_s7 + $0xa0] sm:$0xff]  ;;  %v423_v11 = vld [vmem:[%s2281_s7 + $0xb0] sm:$0xff] }
  0x1d   : > { %412 = vst [vmem:[%s2286_s8 + $0x28] sm:$0xff] %v411_v5  ;;  %v425_v12 = vld [vmem:[%s2281_s7 + $0xc0] sm:$0xff]  ;;  %v427_v13 = vld [vmem:[%s2281_s7 + $0xd0] sm:$0xff] }
  0x1e   : > { %414 = vst [vmem:[%s2286_s8 + $0x30] sm:$0xff] %v413_v6  ;;  %v429_v14 = vld [vmem:[%s2281_s7 + $0xe0] sm:$0xff]  ;;  %v431_v15 = vld [vmem:[%s2281_s7 + $0xf0] sm:$0xff] }
  0x1f   : > { %416 = vst [vmem:[%s2286_s8 + $0x38] sm:$0xff] %v415_v7  ;;  %v433_v16 = vld [vmem:[%s2281_s7 + $0x100] sm:$0xff]  ;;  %v435_v17 = vld [vmem:[%s2281_s7 + $0x110] sm:$0xff] }
  0x20   : > { %418 = vst [vmem:[%s2286_s8 + $0x40] sm:$0xff] %v417_v8  ;;  %v437_v18 = vld [vmem:[%s2281_s7 + $0x120] sm:$0xff]  ;;  %v439_v19 = vld [vmem:[%s2281_s7 + $0x130] sm:$0xff] }
  0x21   : > { %420 = vst [vmem:[%s2286_s8 + $0x48] sm:$0xff] %v419_v9  ;;  %v441_v20 = vld [vmem:[%s2281_s7 + $0x140] sm:$0xff]  ;;  %v443_v21 = vld [vmem:[%s2281_s7 + $0x150] sm:$0xff] }
  0x22   : > { %422 = vst [vmem:[%s2286_s8 + $0x50] sm:$0xff] %v421_v10  ;;  %v445_v22 = vld [vmem:[%s2281_s7 + $0x160] sm:$0xff]  ;;  %v447_v23 = vld [vmem:[%s2281_s7 + $0x170] sm:$0xff] }
  0x23   : > { %424 = vst [vmem:[%s2286_s8 + $0x58] sm:$0xff] %v423_v11  ;;  %v449_v24 = vld [vmem:[%s2281_s7 + $0x180] sm:$0xff]  ;;  %v451_v25 = vld [vmem:[%s2281_s7 + $0x190] sm:$0xff] }
  0x24   : > { %426 = vst [vmem:[%s2286_s8 + $0x60] sm:$0xff] %v425_v12  ;;  %v453_v26 = vld [vmem:[%s2281_s7 + $0x1a0] sm:$0xff]  ;;  %v455_v27 = vld [vmem:[%s2281_s7 + $0x1b0] sm:$0xff] }
  0x25   : > { %428 = vst [vmem:[%s2286_s8 + $0x68] sm:$0xff] %v427_v13  ;;  %v457_v28 = vld [vmem:[%s2281_s7 + $0x1c0] sm:$0xff]  ;;  %v459_v29 = vld [vmem:[%s2281_s7 + $0x1d0] sm:$0xff] }
  0x26   : > { %430 = vst [vmem:[%s2286_s8 + $0x70] sm:$0xff] %v429_v14  ;;  %v461_v30 = vld [vmem:[%s2281_s7 + $0x1e0] sm:$0xff]  ;;  %v463_v31 = vld [vmem:[%s2281_s7 + $0x1f0] sm:$0xff] }
  0x27   : > { %432 = vst [vmem:[%s2286_s8 + $0x78] sm:$0xff] %v431_v15  ;;  %v465_v32 = vld [vmem:[%s2281_s7 + $0x200] sm:$0xff]  ;;  %v467_v33 = vld [vmem:[%s2281_s7 + $0x210] sm:$0xff] }
  0x28   : > { %434 = vst [vmem:[%s2286_s8 + $0x80] sm:$0xff] %v433_v16  ;;  %v469_v34 = vld [vmem:[%s2281_s7 + $0x220] sm:$0xff]  ;;  %v471_v35 = vld [vmem:[%s2281_s7 + $0x230] sm:$0xff] }
  0x29   : > { %436 = vst [vmem:[%s2286_s8 + $0x88] sm:$0xff] %v435_v17  ;;  %v473_v36 = vld [vmem:[%s2281_s7 + $0x240] sm:$0xff]  ;;  %v475_v37 = vld [vmem:[%s2281_s7 + $0x250] sm:$0xff] }
  0x2a   : > { %438 = vst [vmem:[%s2286_s8 + $0x90] sm:$0xff] %v437_v18  ;;  %v477_v38 = vld [vmem:[%s2281_s7 + $0x260] sm:$0xff]  ;;  %v479_v39 = vld [vmem:[%s2281_s7 + $0x270] sm:$0xff] }
  0x2b   : > { %440 = vst [vmem:[%s2286_s8 + $0x98] sm:$0xff] %v439_v19  ;;  %v481_v40 = vld [vmem:[%s2281_s7 + $0x280] sm:$0xff]  ;;  %v483_v41 = vld [vmem:[%s2281_s7 + $0x290] sm:$0xff] }
  0x2c   : > { %442 = vst [vmem:[%s2286_s8 + $0xa0] sm:$0xff] %v441_v20  ;;  %v485_v42 = vld [vmem:[%s2281_s7 + $0x2a0] sm:$0xff]  ;;  %v487_v43 = vld [vmem:[%s2281_s7 + $0x2b0] sm:$0xff] }
  0x2d   : > { %444 = vst [vmem:[%s2286_s8 + $0xa8] sm:$0xff] %v443_v21  ;;  %v489_v44 = vld [vmem:[%s2281_s7 + $0x2c0] sm:$0xff]  ;;  %v491_v45 = vld [vmem:[%s2281_s7 + $0x2d0] sm:$0xff] }
  0x2e   : > { %446 = vst [vmem:[%s2286_s8 + $0xb0] sm:$0xff] %v445_v22  ;;  %v493_v46 = vld [vmem:[%s2281_s7 + $0x2e0] sm:$0xff]  ;;  %v495_v47 = vld [vmem:[%s2281_s7 + $0x2f0] sm:$0xff] }
  0x2f   : > { %448 = vst [vmem:[%s2286_s8 + $0xb8] sm:$0xff] %v447_v23  ;;  %v497_v48 = vld [vmem:[%s2281_s7 + $0x300] sm:$0xff]  ;;  %v499_v49 = vld [vmem:[%s2281_s7 + $0x310] sm:$0xff] }
  0x30   : > { %450 = vst [vmem:[%s2286_s8 + $0xc0] sm:$0xff] %v449_v24  ;;  %v501_v50 = vld [vmem:[%s2281_s7 + $0x320] sm:$0xff]  ;;  %v503_v51 = vld [vmem:[%s2281_s7 + $0x330] sm:$0xff] }
  0x31   : > { %452 = vst [vmem:[%s2286_s8 + $0xc8] sm:$0xff] %v451_v25  ;;  %v505_v52 = vld [vmem:[%s2281_s7 + $0x340] sm:$0xff]  ;;  %v507_v53 = vld [vmem:[%s2281_s7 + $0x350] sm:$0xff] }
  0x32   : > { %454 = vst [vmem:[%s2286_s8 + $0xd0] sm:$0xff] %v453_v26  ;;  %v509_v54 = vld [vmem:[%s2281_s7 + $0x360] sm:$0xff]  ;;  %v511_v55 = vld [vmem:[%s2281_s7 + $0x370] sm:$0xff] }
  0x33   : > { %456 = vst [vmem:[%s2286_s8 + $0xd8] sm:$0xff] %v455_v27  ;;  %v513_v56 = vld [vmem:[%s2281_s7 + $0x380] sm:$0xff]  ;;  %v515_v57 = vld [vmem:[%s2281_s7 + $0x390] sm:$0xff] }
  0x34   : > { %458 = vst [vmem:[%s2286_s8 + $0xe0] sm:$0xff] %v457_v28  ;;  %v517_v58 = vld [vmem:[%s2281_s7 + $0x3a0] sm:$0xff]  ;;  %v519_v59 = vld [vmem:[%s2281_s7 + $0x3b0] sm:$0xff] }
  0x35   : > { %460 = vst [vmem:[%s2286_s8 + $0xe8] sm:$0xff] %v459_v29  ;;  %v521_v60 = vld [vmem:[%s2281_s7 + $0x3c0] sm:$0xff]  ;;  %v523_v61 = vld [vmem:[%s2281_s7 + $0x3d0] sm:$0xff] }
  0x36   : > { %462 = vst [vmem:[%s2286_s8 + $0xf0] sm:$0xff] %v461_v30  ;;  %v525_v62 = vld [vmem:[%s2281_s7 + $0x3e0] sm:$0xff]  ;;  %v527_v63 = vld [vmem:[%s2281_s7 + $0x3f0] sm:$0xff] }
  0x37   : > { %464 = vst [vmem:[%s2286_s8 + $0xf8] sm:$0xff] %v463_v31  ;;  %v529_v0 = vld [vmem:[%s2281_s7 + $0x400] sm:$0xff]  ;;  %v531_v1 = vld [vmem:[%s2281_s7 + $0x410] sm:$0xff] }
  0x38   : > { %466 = vst [vmem:[%s2286_s8 + $0x100] sm:$0xff] %v465_v32  ;;  %v533_v2 = vld [vmem:[%s2281_s7 + $0x420] sm:$0xff]  ;;  %v535_v3 = vld [vmem:[%s2281_s7 + $0x430] sm:$0xff] }
  0x39   : > { %468 = vst [vmem:[%s2286_s8 + $0x108] sm:$0xff] %v467_v33  ;;  %v537_v4 = vld [vmem:[%s2281_s7 + $0x440] sm:$0xff]  ;;  %v539_v5 = vld [vmem:[%s2281_s7 + $0x450] sm:$0xff] }
  0x3a   : > { %470 = vst [vmem:[%s2286_s8 + $0x110] sm:$0xff] %v469_v34  ;;  %v541_v6 = vld [vmem:[%s2281_s7 + $0x460] sm:$0xff]  ;;  %v543_v7 = vld [vmem:[%s2281_s7 + $0x470] sm:$0xff] }
  0x3b   : > { %472 = vst [vmem:[%s2286_s8 + $0x118] sm:$0xff] %v471_v35  ;;  %v545_v8 = vld [vmem:[%s2281_s7 + $0x480] sm:$0xff]  ;;  %v547_v9 = vld [vmem:[%s2281_s7 + $0x490] sm:$0xff] }
  0x3c   : > { %474 = vst [vmem:[%s2286_s8 + $0x120] sm:$0xff] %v473_v36  ;;  %v549_v10 = vld [vmem:[%s2281_s7 + $0x4a0] sm:$0xff]  ;;  %v551_v11 = vld [vmem:[%s2281_s7 + $0x4b0] sm:$0xff] }
  0x3d   : > { %476 = vst [vmem:[%s2286_s8 + $0x128] sm:$0xff] %v475_v37  ;;  %v553_v12 = vld [vmem:[%s2281_s7 + $0x4c0] sm:$0xff]  ;;  %v555_v13 = vld [vmem:[%s2281_s7 + $0x4d0] sm:$0xff] }
  0x3e   : > { %478 = vst [vmem:[%s2286_s8 + $0x130] sm:$0xff] %v477_v38  ;;  %v557_v14 = vld [vmem:[%s2281_s7 + $0x4e0] sm:$0xff]  ;;  %v559_v15 = vld [vmem:[%s2281_s7 + $0x4f0] sm:$0xff] }
  0x3f   : > { %480 = vst [vmem:[%s2286_s8 + $0x138] sm:$0xff] %v479_v39  ;;  %v561_v16 = vld [vmem:[%s2281_s7 + $0x500] sm:$0xff]  ;;  %v563_v17 = vld [vmem:[%s2281_s7 + $0x510] sm:$0xff] }
  0x40   : > { %482 = vst [vmem:[%s2286_s8 + $0x140] sm:$0xff] %v481_v40  ;;  %v565_v18 = vld [vmem:[%s2281_s7 + $0x520] sm:$0xff]  ;;  %v567_v19 = vld [vmem:[%s2281_s7 + $0x530] sm:$0xff] }
  0x41   : > { %484 = vst [vmem:[%s2286_s8 + $0x148] sm:$0xff] %v483_v41  ;;  %v569_v20 = vld [vmem:[%s2281_s7 + $0x540] sm:$0xff]  ;;  %v571_v21 = vld [vmem:[%s2281_s7 + $0x550] sm:$0xff] }
  0x42   : > { %486 = vst [vmem:[%s2286_s8 + $0x150] sm:$0xff] %v485_v42  ;;  %v573_v22 = vld [vmem:[%s2281_s7 + $0x560] sm:$0xff]  ;;  %v575_v23 = vld [vmem:[%s2281_s7 + $0x570] sm:$0xff] }
  0x43   : > { %488 = vst [vmem:[%s2286_s8 + $0x158] sm:$0xff] %v487_v43  ;;  %v577_v24 = vld [vmem:[%s2281_s7 + $0x580] sm:$0xff]  ;;  %v579_v25 = vld [vmem:[%s2281_s7 + $0x590] sm:$0xff] }
  0x44   : > { %490 = vst [vmem:[%s2286_s8 + $0x160] sm:$0xff] %v489_v44  ;;  %v581_v26 = vld [vmem:[%s2281_s7 + $0x5a0] sm:$0xff]  ;;  %v583_v27 = vld [vmem:[%s2281_s7 + $0x5b0] sm:$0xff] }
  0x45   : > { %492 = vst [vmem:[%s2286_s8 + $0x168] sm:$0xff] %v491_v45  ;;  %v585_v28 = vld [vmem:[%s2281_s7 + $0x5c0] sm:$0xff]  ;;  %v587_v29 = vld [vmem:[%s2281_s7 + $0x5d0] sm:$0xff] }
  0x46   : > { %494 = vst [vmem:[%s2286_s8 + $0x170] sm:$0xff] %v493_v46  ;;  %v589_v30 = vld [vmem:[%s2281_s7 + $0x5e0] sm:$0xff]  ;;  %v591_v31 = vld [vmem:[%s2281_s7 + $0x5f0] sm:$0xff] }
  0x47   : > { %496 = vst [vmem:[%s2286_s8 + $0x178] sm:$0xff] %v495_v47 }
  0x48   : > { %498 = vst [vmem:[%s2286_s8 + $0x180] sm:$0xff] %v497_v48 }
  0x49   : > { %500 = vst [vmem:[%s2286_s8 + $0x188] sm:$0xff] %v499_v49 }
  0x4a   : > { %502 = vst [vmem:[%s2286_s8 + $0x190] sm:$0xff] %v501_v50 }
  0x4b   : > { %504 = vst [vmem:[%s2286_s8 + $0x198] sm:$0xff] %v503_v51 }
  0x4c   : > { %506 = vst [vmem:[%s2286_s8 + $0x1a0] sm:$0xff] %v505_v52 }
  0x4d   : > { %508 = vst [vmem:[%s2286_s8 + $0x1a8] sm:$0xff] %v507_v53 }
  0x4e   : > { %510 = vst [vmem:[%s2286_s8 + $0x1b0] sm:$0xff] %v509_v54 }
  0x4f   : > { %512 = vst [vmem:[%s2286_s8 + $0x1b8] sm:$0xff] %v511_v55 }
  0x50   : > { %514 = vst [vmem:[%s2286_s8 + $0x1c0] sm:$0xff] %v513_v56 }
  0x51   : > { %516 = vst [vmem:[%s2286_s8 + $0x1c8] sm:$0xff] %v515_v57 }
  0x52   : > { %518 = vst [vmem:[%s2286_s8 + $0x1d0] sm:$0xff] %v517_v58 }
  0x53   : > { %520 = vst [vmem:[%s2286_s8 + $0x1d8] sm:$0xff] %v519_v59 }
  0x54   : > { %522 = vst [vmem:[%s2286_s8 + $0x1e0] sm:$0xff] %v521_v60 }
  0x55   : > { %524 = vst [vmem:[%s2286_s8 + $0x1e8] sm:$0xff] %v523_v61 }
  0x56   : > { %526 = vst [vmem:[%s2286_s8 + $0x1f0] sm:$0xff] %v525_v62 }
  0x57   : > { %528 = vst [vmem:[%s2286_s8 + $0x1f8] sm:$0xff] %v527_v63 }
  0x58   : > { %530 = vst [vmem:[%s2286_s8 + $0x200] sm:$0xff] %v529_v0 }
  0x59   : > { %532 = vst [vmem:[%s2286_s8 + $0x208] sm:$0xff] %v531_v1 }
  0x5a   : > { %534 = vst [vmem:[%s2286_s8 + $0x210] sm:$0xff] %v533_v2 }
  0x5b   : > { %536 = vst [vmem:[%s2286_s8 + $0x218] sm:$0xff] %v535_v3 }
  0x5c   : > { %538 = vst [vmem:[%s2286_s8 + $0x220] sm:$0xff] %v537_v4 }
  0x5d   : > { %540 = vst [vmem:[%s2286_s8 + $0x228] sm:$0xff] %v539_v5 }
  0x5e   : > { %542 = vst [vmem:[%s2286_s8 + $0x230] sm:$0xff] %v541_v6 }
  0x5f   : > { %544 = vst [vmem:[%s2286_s8 + $0x238] sm:$0xff] %v543_v7 }
  0x60   : > { %546 = vst [vmem:[%s2286_s8 + $0x240] sm:$0xff] %v545_v8 }
  0x61   : > { %548 = vst [vmem:[%s2286_s8 + $0x248] sm:$0xff] %v547_v9 }
  0x62   : > { %550 = vst [vmem:[%s2286_s8 + $0x250] sm:$0xff] %v549_v10 }
  0x63   : > { %552 = vst [vmem:[%s2286_s8 + $0x258] sm:$0xff] %v551_v11 }
  0x64   : > { %554 = vst [vmem:[%s2286_s8 + $0x260] sm:$0xff] %v553_v12 }
  0x65   : > { %556 = vst [vmem:[%s2286_s8 + $0x268] sm:$0xff] %v555_v13 }
  0x66   : > { %558 = vst [vmem:[%s2286_s8 + $0x270] sm:$0xff] %v557_v14 }
  0x67   : > { %560 = vst [vmem:[%s2286_s8 + $0x278] sm:$0xff] %v559_v15 }
  0x68   : > { %562 = vst [vmem:[%s2286_s8 + $0x280] sm:$0xff] %v561_v16 }
  0x69   : > { %564 = vst [vmem:[%s2286_s8 + $0x288] sm:$0xff] %v563_v17 }
  0x6a   : > { %566 = vst [vmem:[%s2286_s8 + $0x290] sm:$0xff] %v565_v18 }
  0x6b   : > { %568 = vst [vmem:[%s2286_s8 + $0x298] sm:$0xff] %v567_v19 }
  0x6c   : > { %570 = vst [vmem:[%s2286_s8 + $0x2a0] sm:$0xff] %v569_v20 }
  0x6d   : > { %572 = vst [vmem:[%s2286_s8 + $0x2a8] sm:$0xff] %v571_v21 }
  0x6e   : > { %574 = vst [vmem:[%s2286_s8 + $0x2b0] sm:$0xff] %v573_v22 }
  0x6f   : > { %576 = vst [vmem:[%s2286_s8 + $0x2b8] sm:$0xff] %v575_v23 }
  0x70   : > { %578 = vst [vmem:[%s2286_s8 + $0x2c0] sm:$0xff] %v577_v24 }
  0x71   : > { %580 = vst [vmem:[%s2286_s8 + $0x2c8] sm:$0xff] %v579_v25 }
  0x72   : > { %582 = vst [vmem:[%s2286_s8 + $0x2d0] sm:$0xff] %v581_v26 }
  0x73   : > { %584 = vst [vmem:[%s2286_s8 + $0x2d8] sm:$0xff] %v583_v27 }
  0x74   : > { %586 = vst [vmem:[%s2286_s8 + $0x2e0] sm:$0xff] %v585_v28 }
  0x75   : > { %588 = vst [vmem:[%s2286_s8 + $0x2e8] sm:$0xff] %v587_v29 }
  0x76   : > { %590 = vst [vmem:[%s2286_s8 + $0x2f0] sm:$0xff] %v589_v30 }
  0x77   : > { %592 = vst [vmem:[%s2286_s8 + $0x2f8] sm:$0xff] %v591_v31 }
  0x78 PF: > { %p1595_p7 = scmp.ge.s32.totalorder %s2198_s18, 1  ;;  %p605_p8 = scmp.lt.s32.totalorder %s2198_s18, 7 }
  0x7a   : > { %p606_p9 = pnand %p1595_p7, %p605_p8 }
  0x7b   : > { %s612_s9 = sand.u32 (!%p606_p9), 1, %s2174_s12   ;;  %s652_s10 = smul.u32 (!%p606_p9), 6, %s2182_s14 }
  0x7c   : > { %609 = sbr.rel (%p606_p9) target bundleno = 393 (0x189), region = 66  ;;  %s1597_s21 = sshll.u32 (!%p606_p9), %s2186_s15, 1 }
  0x7d   : > { %s2086_s11 = smul.u32 (!%p606_p9), 768, %s612_s9  ;;  %p655_p10 = scmp.lt.s32.totalorder (!%p606_p9), %s652_s10, 17 }
  0x7e   : > { %p665_p11 = scmp.lt.s32.totalorder (!%p606_p9), %s1597_s21, 3  ;;  %p1600_p12 = scmp.ne.s32.totalorder (!%p606_p9), %s2182_s14, 0 }
  0x7f   : > { %s2499_s5 = scalar_lea.vmem (!%p606_p9), [#allocation3], %s2086_s11 }
  0x81   : > { %s2766_s10 = smov (!%p655_p10, %s652_s10), 17  ;;  %s2768_s21 = smov (!%p665_p11, %s1597_s21), 3 }
  0x82   : > { %s1596_s22 = sshll.u32 %s2766_s10, 2  ;;  %s667_s12 = scalar_lea.vmem %s2751_s2, %s2768_s21 }
  0x83   : > { %s2487_s26 = scalar_lea.vmem %s2749_s0, %s1596_s22  ;;  %s1599_s29 = sshll.u32 %s2768_s21, 2 }
  0x84   : > { %s2497_s4 = scalar_lea.vmem %s2752_s3, %s1599_s29  ;;  %682 = sbr.rel (%p1600_p12) target bundleno = 140 (0x8c), region = 74 }
  0x89   : > { %v2200_v32 = vmov 0.0  }
  0x8a   : > { %683 = vst [vmem:[#allocation2] sm:$0xff] %v2200_v32 }
  0x8b   : > { %684 = vst [vmem:[#allocation2 + $0x8] sm:$0xff] %v2200_v32 }
  0x8c PF: > { %v1659_v33 = vld [vmem:[%s2499_s5 + $0x70] sm:$0xf]  ;;  %v2004_v34 = vld [vmem:[%s2499_s5 + $0x74] sm:$0xf0]  ;;  %v1651_v44 = vld [vmem:[%s2499_s5 + $0x60] sm:$0xf] }
  0x8d   : > { %v1723_v35 = vld [vmem:[%s2499_s5 + $0xf0] sm:$0xf]  ;;  %v1660_v36 = vor.u32 %v2004_v34, %v1659_v33  ;;  %v2020_v37 = vld [vmem:[%s2499_s5 + $0xf4] sm:$0xf0]  ;;  %v2002_v46 = vld [vmem:[%s2499_s5 + $0x64] sm:$0xf0] }
  0x8e   : > { %v1787_v38 = vld [vmem:[%s2499_s5 + $0x170] sm:$0xf]  ;;  %v2036_v39 = vld [vmem:[%s2499_s5 + $0x174] sm:$0xf0]  ;;  %v1724_v40 = vor.u32 %v2020_v37, %v1723_v35  ;;  %v1715_v47 = vld [vmem:[%s2499_s5 + $0xe0] sm:$0xf]  ;;  %v1652_v49 = vor.u32 %v2002_v46, %v1651_v44 }
  0x8f   : > { %v1788_v41 = vor.u32 %v2036_v39, %v1787_v38  ;;  %v1851_v42 = vld [vmem:[%s2499_s5 + $0x1f0] sm:$0xf]  ;;  %v2052_v43 = vld [vmem:[%s2499_s5 + $0x1f4] sm:$0xf0]  ;;  %1287 = vmatpush.bf16.msra.mxu0 %v1660_v36  ;;  %v2018_v48 = vld [vmem:[%s2499_s5 + $0xe4] sm:$0xf0] }
  0x90   : > { %v1852_v45 = vor.u32 %v2052_v43, %v1851_v42  ;;  %1300 = vmatpush.bf16.msra.mxu1 %v1724_v40  ;;  %v1716_v50 = vor.u32 %v2018_v48, %v1715_v47  ;;  %v1779_v51 = vld [vmem:[%s2499_s5 + $0x160] sm:$0xf]  ;;  %v2034_v52 = vld [vmem:[%s2499_s5 + $0x164] sm:$0xf0]  ;;  %v1643_v56 = vld [vmem:[%s2499_s5 + $0x50] sm:$0xf] }
  0x91   : > { %1313 = vmatpush.bf16.msra.mxu2 %v1788_v41  ;;  %v1843_v53 = vld [vmem:[%s2499_s5 + $0x1e0] sm:$0xf]  ;;  %v1780_v54 = vor.u32 %v2034_v52, %v1779_v51  ;;  %v2050_v55 = vld [vmem:[%s2499_s5 + $0x1e4] sm:$0xf0]  ;;  %v2000_v57 = vld [vmem:[%s2499_s5 + $0x54] sm:$0xf0] }
  0x92   : > { %1326 = vmatpush.bf16.msra.mxu3 %v1852_v45  ;;  %v1844_v58 = vor.u32 %v2050_v55, %v1843_v53  ;;  %v1707_v59 = vld [vmem:[%s2499_s5 + $0xd0] sm:$0xf]  ;;  %v2016_v60 = vld [vmem:[%s2499_s5 + $0xd4] sm:$0xf0]  ;;  %v1644_v62 = vor.u32 %v2000_v57, %v1643_v56  ;;  %v1635_v4 = vld [vmem:[%s2499_s5 + $0x40] sm:$0xf] }
  0x93   : > { %v1771_v61 = vld [vmem:[%s2499_s5 + $0x150] sm:$0xf]  ;;  %1288 = vmatpush.bf16.msra.mxu0 %v1652_v49  ;;  %v2032_v63 = vld [vmem:[%s2499_s5 + $0x154] sm:$0xf0]  ;;  %v1708_v2 = vor.u32 %v2016_v60, %v1707_v59  ;;  %v1998_v5 = vld [vmem:[%s2499_s5 + $0x44] sm:$0xf0] }
  0x94   : > { %v1835_v0 = vld [vmem:[%s2499_s5 + $0x1d0] sm:$0xf]  ;;  %v2048_v1 = vld [vmem:[%s2499_s5 + $0x1d4] sm:$0xf0]  ;;  %1301 = vmatpush.bf16.msra.mxu1 %v1716_v50  ;;  %v1772_v3 = vor.u32 %v2032_v63, %v1771_v61  ;;  %v1699_v6 = vld [vmem:[%s2499_s5 + $0xc0] sm:$0xf]  ;;  %v1636_v13 = vor.u32 %v1998_v5, %v1635_v4 }
  0x95   : > { %1314 = vmatpush.bf16.msra.mxu2 %v1780_v54  ;;  %v1836_v7 = vor.u32 %v2048_v1, %v1835_v0  ;;  %v2014_v8 = vld [vmem:[%s2499_s5 + $0xc4] sm:$0xf0]  ;;  %v1763_v9 = vld [vmem:[%s2499_s5 + $0x140] sm:$0xf]  ;;  %v1627_v16 = vld [vmem:[%s2499_s5 + $0x30] sm:$0xf] }
  0x96   : > { %1327 = vmatpush.bf16.msra.mxu3 %v1844_v58  ;;  %v2030_v10 = vld [vmem:[%s2499_s5 + $0x144] sm:$0xf0]  ;;  %v1827_v11 = vld [vmem:[%s2499_s5 + $0x1c0] sm:$0xf]  ;;  %v1700_v14 = vor.u32 %v2014_v8, %v1699_v6  ;;  %v1996_v17 = vld [vmem:[%s2499_s5 + $0x34] sm:$0xf0] }
  0x97   : > { %v2046_v12 = vld [vmem:[%s2499_s5 + $0x1c4] sm:$0xf0]  ;;  %1289 = vmatpush.bf16.msra.mxu0 %v1644_v62  ;;  %v1764_v15 = vor.u32 %v2030_v10, %v1763_v9  ;;  %v1691_v18 = vld [vmem:[%s2499_s5 + $0xb0] sm:$0xf]  ;;  %v2012_v20 = vld [vmem:[%s2499_s5 + $0xb4] sm:$0xf0]  ;;  %v1628_v25 = vor.u32 %v1996_v17, %v1627_v16 }
  0x98   : > { %1302 = vmatpush.bf16.msra.mxu1 %v1708_v2  ;;  %v1828_v19 = vor.u32 %v2046_v12, %v1827_v11  ;;  %v1755_v21 = vld [vmem:[%s2499_s5 + $0x130] sm:$0xf]  ;;  %v2028_v22 = vld [vmem:[%s2499_s5 + $0x134] sm:$0xf0]  ;;  %v1692_v26 = vor.u32 %v2012_v20, %v1691_v18  ;;  %v1619_v28 = vld [vmem:[%s2499_s5 + $0x20] sm:$0xf] }
  0x99   : > { %1315 = vmatpush.bf16.msra.mxu2 %v1772_v3  ;;  %v1819_v23 = vld [vmem:[%s2499_s5 + $0x1b0] sm:$0xf]  ;;  %v2044_v24 = vld [vmem:[%s2499_s5 + $0x1b4] sm:$0xf0]  ;;  %v1756_v27 = vor.u32 %v2028_v22, %v1755_v21  ;;  %v1994_v29 = vld [vmem:[%s2499_s5 + $0x24] sm:$0xf0] }
  0x9a   : > { %1328 = vmatpush.bf16.msra.mxu3 %v1836_v7  ;;  %v1683_v30 = vld [vmem:[%s2499_s5 + $0xa0] sm:$0xf]  ;;  %v1820_v31 = vor.u32 %v2044_v24, %v1819_v23  ;;  %v2010_v32 = vld [vmem:[%s2499_s5 + $0xa4] sm:$0xf0]  ;;  %v1620_v37 = vor.u32 %v1994_v29, %v1619_v28  ;;  %v1611_v40 = vld [vmem:[%s2499_s5 + $0x10] sm:$0xf] }
  0x9b   : > { %1290 = vmatpush.bf16.msra.mxu0 %v1636_v13  ;;  %v1747_v33 = vld [vmem:[%s2499_s5 + $0x120] sm:$0xf]  ;;  %v2026_v34 = vld [vmem:[%s2499_s5 + $0x124] sm:$0xf0]  ;;  %v1684_v38 = vor.u32 %v2010_v32, %v1683_v30  ;;  %v1992_v41 = vld [vmem:[%s2499_s5 + $0x14] sm:$0xf0] }
  0x9c   : > { %1303 = vmatpush.bf16.msra.mxu1 %v1700_v14  ;;  %v1811_v35 = vld [vmem:[%s2499_s5 + $0x1a0] sm:$0xf]  ;;  %v2042_v36 = vld [vmem:[%s2499_s5 + $0x1a4] sm:$0xf0]  ;;  %v1748_v39 = vor.u32 %v2026_v34, %v1747_v33  ;;  %v1675_v42 = vld [vmem:[%s2499_s5 + $0x90] sm:$0xf]  ;;  %v1612_v49 = vor.u32 %v1992_v41, %v1611_v40 }
  0x9d   : > { %1316 = vmatpush.bf16.msra.mxu2 %v1764_v15  ;;  %v1812_v43 = vor.u32 %v2042_v36, %v1811_v35  ;;  %v2008_v44 = vld [vmem:[%s2499_s5 + $0x94] sm:$0xf0]  ;;  %v1739_v45 = vld [vmem:[%s2499_s5 + $0x110] sm:$0xf]  ;;  %v1603_v50 = vld [vmem:[%s2499_s5] sm:$0xf] }
  0x9e   : > { %1329 = vmatpush.bf16.msra.mxu3 %v1828_v19  ;;  %v2024_v46 = vld [vmem:[%s2499_s5 + $0x114] sm:$0xf0]  ;;  %v1803_v47 = vld [vmem:[%s2499_s5 + $0x190] sm:$0xf]  ;;  %v1990_v51 = vld [vmem:[%s2499_s5 + $0x4] sm:$0xf0]  ;;  %v1676_v52 = vor.u32 %v2008_v44, %v1675_v42 }
  0x9f   : > { %1291 = vmatpush.bf16.msra.mxu0 %v1628_v25  ;;  %v2040_v48 = vld [vmem:[%s2499_s5 + $0x194] sm:$0xf0]  ;;  %v1740_v53 = vor.u32 %v2024_v46, %v1739_v45  ;;  %v1667_v54 = vld [vmem:[%s2499_s5 + $0x80] sm:$0xf]  ;;  %v2006_v55 = vld [vmem:[%s2499_s5 + $0x84] sm:$0xf0]  ;;  %v1604_v0 = vor.u32 %v1990_v51, %v1603_v50 }
  0xa0   : > { %1304 = vmatpush.bf16.msra.mxu1 %v1692_v26  ;;  %v1731_v56 = vld [vmem:[%s2499_s5 + $0x100] sm:$0xf]  ;;  %v1804_v57 = vor.u32 %v2040_v48, %v1803_v47  ;;  %v2022_v58 = vld [vmem:[%s2499_s5 + $0x104] sm:$0xf0]  ;;  %v1915_v61 = vld [vmem:[%s2499_s5 + $0x270] sm:$0xf]  ;;  %v1668_v4 = vor.u32 %v2006_v55, %v1667_v54 }
  0xa1   : > { %1317 = vmatpush.bf16.msra.mxu2 %v1756_v27  ;;  %v1795_v59 = vld [vmem:[%s2499_s5 + $0x180] sm:$0xf]  ;;  %v2038_v60 = vld [vmem:[%s2499_s5 + $0x184] sm:$0xf0]  ;;  %v2068_v62 = vld [vmem:[%s2499_s5 + $0x274] sm:$0xf0]  ;;  %v1732_v5 = vor.u32 %v2022_v58, %v1731_v56 }
  0xa2   : > { %1330 = vmatpush.bf16.msra.mxu3 %v1820_v31  ;;  %v1979_v63 = vld [vmem:[%s2499_s5 + $0x2f0] sm:$0xf]  ;;  %v2084_v1 = vld [vmem:[%s2499_s5 + $0x2f4] sm:$0xf0]  ;;  %v2003_v2 = vld [vmem:[%s2499_s5 + $0x74] sm:$0xf]  ;;  %v1796_v8 = vor.u32 %v2038_v60, %v1795_v59  ;;  %v1916_v9 = vor.u32 %v2068_v62, %v1915_v61 }
  0xa3   : > { %1292 = vmatpush.bf16.msra.mxu0 %v1620_v37  ;;  %v1661_v3 = vld [vmem:[%s2499_s5 + $0x78] sm:$0xf0]  ;;  %v2019_v6 = vld [vmem:[%s2499_s5 + $0xf4] sm:$0xf]  ;;  %v1980_v10 = vor.u32 %v2084_v1, %v1979_v63  ;;  %v1907_v12 = vld [vmem:[%s2499_s5 + $0x260] sm:$0xf] }
  0xa4   : > { %1305 = vmatpush.bf16.msra.mxu1 %v1684_v38  ;;  %v1725_v7 = vld [vmem:[%s2499_s5 + $0xf8] sm:$0xf0]  ;;  %v1664_v11 = vor.u32 %v2003_v2, %v1661_v3  ;;  %v2066_v13 = vld [vmem:[%s2499_s5 + $0x264] sm:$0xf0]  ;;  %v1971_v14 = vld [vmem:[%s2499_s5 + $0x2e0] sm:$0xf] }
  0xa5   : > { %1318 = vmatpush.bf16.msra.mxu2 %v1748_v39  ;;  %v1728_v15 = vor.u32 %v2019_v6, %v1725_v7  ;;  %v2082_v16 = vld [vmem:[%s2499_s5 + $0x2e4] sm:$0xf0]  ;;  %v2001_v17 = vld [vmem:[%s2499_s5 + $0x64] sm:$0xf]  ;;  %v1653_v18 = vld [vmem:[%s2499_s5 + $0x68] sm:$0xf0]  ;;  %v1908_v21 = vor.u32 %v2066_v13, %v1907_v12 }
  0xa6   : > { %1331 = vmatpush.bf16.msra.mxu3 %v1812_v43  ;;  %v2017_v19 = vld [vmem:[%s2499_s5 + $0xe4] sm:$0xf]  ;;  %v1717_v20 = vld [vmem:[%s2499_s5 + $0xe8] sm:$0xf0]  ;;  %v1899_v22 = vld [vmem:[%s2499_s5 + $0x250] sm:$0xf]  ;;  %v1972_v24 = vor.u32 %v2082_v16, %v1971_v14  ;;  %v1656_v25 = vor.u32 %v2001_v17, %v1653_v18 }
  0xa7   : > { %1293 = vmatpush.bf16.msra.mxu0 %v1612_v49  ;;  %v2064_v23 = vld [vmem:[%s2499_s5 + $0x254] sm:$0xf0]  ;;  %v1963_v26 = vld [vmem:[%s2499_s5 + $0x2d0] sm:$0xf]  ;;  %v1720_v29 = vor.u32 %v2017_v19, %v1717_v20  ;;  %v1999_v30 = vld [vmem:[%s2499_s5 + $0x54] sm:$0xf] }
  0xa8   : > { %1306 = vmatpush.bf16.msra.mxu1 %v1676_v52  ;;  %v2080_v27 = vld [vmem:[%s2499_s5 + $0x2d4] sm:$0xf0]  ;;  %v687_v28 = vld [vmem:[%s2487_s26] sm:$0xff]  ;;  %v1645_v31 = vld [vmem:[%s2499_s5 + $0x58] sm:$0xf0]  ;;  %v1900_v39 = vor.u32 %v2064_v23, %v1899_v22  ;;  %p1985_p13 = scmp.ne.s32.totalorder %s2182_s14, 2 }
  0xa9   : > { %1319 = vmatpush.bf16.msra.mxu2 %v1740_v53  ;;  %v789_v32 = vunpack.c.l.b16 %v687_v28  ;;  %v688_v33 = vld [vmem:[%s2487_s26 + $0x8] sm:$0xff]  ;;  %v790_v34 = vunpack.c.h.b16 %v687_v28  ;;  %v2015_v35 = vld [vmem:[%s2499_s5 + $0xd4] sm:$0xf]  ;;  %v1964_v40 = vor.u32 %v2080_v27, %v1963_v26  ;;  %v1648_v43 = vor.u32 %v1999_v30, %v1645_v31  ;;  %v1891_v44 = vld [vmem:[%s2499_s5 + $0x240] sm:$0xf] }
  0xaa   : > { %1332 = vmatpush.bf16.msra.mxu3 %v1804_v57  ;;  %v1709_v36 = vld [vmem:[%s2499_s5 + $0xd8] sm:$0xf0]  ;;  %v791_v37 = vunpack.c.l.b16 %v688_v33  ;;  %v792_v38 = vunpack.c.h.b16 %v688_v33  ;;  %v2062_v45 = vld [vmem:[%s2499_s5 + $0x244] sm:$0xf0]  ;;  %v1955_v46 = vld [vmem:[%s2499_s5 + $0x2c0] sm:$0xf] }
  0xab   : > { %1294 = vmatpush.bf16.msra.mxu0 %v1604_v0  ;;  %v2592_v41 = vpack.c.b16 %v789_v32, %v789_v32  ;;  %v2594_v42 = vpack.c.b16 %v790_v34, %v790_v34  ;;  %v1712_v49 = vor.u32 %v2015_v35, %v1709_v36  ;;  %v2078_v50 = vld [vmem:[%s2499_s5 + $0x2c4] sm:$0xf0]  ;;  %v1997_v51 = vld [vmem:[%s2499_s5 + $0x44] sm:$0xf]  ;;  %v1637_v52 = vld [vmem:[%s2499_s5 + $0x48] sm:$0xf0]  ;;  %v1892_v55 = vor.u32 %v2062_v45, %v1891_v44 }
  0xac   : > { %1307 = vmatpush.bf16.msra.mxu1 %v1668_v4  ;;  %v2599_v47 = vpack.c.b16 %v791_v37, %v791_v37  ;;  %v2601_v48 = vpack.c.b16 %v792_v38, %v792_v38  ;;  %v2013_v53 = vld [vmem:[%s2499_s5 + $0xc4] sm:$0xf]  ;;  %v1701_v54 = vld [vmem:[%s2499_s5 + $0xc8] sm:$0xf0]  ;;  %v1956_v56 = vor.u32 %v2078_v50, %v1955_v46  ;;  %v1640_v57 = vor.u32 %v1997_v51, %v1637_v52  ;;  %v1883_v58 = vld [vmem:[%s2499_s5 + $0x230] sm:$0xf] }
  0xad   : > { %1320 = vmatpush.bf16.msra.mxu2 %v1732_v5  ;;  %v2060_v59 = vld [vmem:[%s2499_s5 + $0x234] sm:$0xf0]  ;;  %v1947_v60 = vld [vmem:[%s2499_s5 + $0x2b0] sm:$0xf]  ;;  %v1704_v61 = vor.u32 %v2013_v53, %v1701_v54  ;;  %v1995_v63 = vld [vmem:[%s2499_s5 + $0x34] sm:$0xf] }
  0xae   : > { %1333 = vmatpush.bf16.msra.mxu3 %v1796_v8  ;;  %1295 = vmatmul.bf16.vlgmr.msra.gmra.mxu0 %v2592_v41  ;;  %v2076_v62 = vld [vmem:[%s2499_s5 + $0x2b4] sm:$0xf0]  ;;  %v1629_v0 = vld [vmem:[%s2499_s5 + $0x38] sm:$0xf0]  ;;  %v2011_v1 = vld [vmem:[%s2499_s5 + $0xb4] sm:$0xf]  ;;  %v1884_v3 = vor.u32 %v2060_v59, %v1883_v58 }
  0xaf   : > { %1339 = vmatpush.bf16.msrb.mxu0 %v1916_v9  ;;  %1308 = vmatmul.bf16.vlgmr.msra.gmra.mxu1 %v2594_v42  ;;  %v1693_v2 = vld [vmem:[%s2499_s5 + $0xb8] sm:$0xf0]  ;;  %v1948_v4 = vor.u32 %v2076_v62, %v1947_v60  ;;  %v1632_v5 = vor.u32 %v1995_v63, %v1629_v0  ;;  %v1875_v6 = vld [vmem:[%s2499_s5 + $0x220] sm:$0xf]  ;;  %v2058_v7 = vld [vmem:[%s2499_s5 + $0x224] sm:$0xf0] }
  0xb0   : > { %1352 = vmatpush.bf16.msrb.mxu1 %v1980_v10  ;;  %1321 = vmatmul.bf16.vlgmr.msra.gmra.mxu2 %v2599_v47  ;;  %v1939_v8 = vld [vmem:[%s2499_s5 + $0x2a0] sm:$0xf]  ;;  %v1696_v9 = vor.u32 %v2011_v1, %v1693_v2  ;;  %v2074_v10 = vld [vmem:[%s2499_s5 + $0x2a4] sm:$0xf0]  ;;  %v1621_v12 = vld [vmem:[%s2499_s5 + $0x28] sm:$0xf0] }
  0xb1   : > { %1365 = vmatpush.bf16.msrb.mxu2 %v1664_v11  ;;  %1334 = vmatmul.bf16.vlgmr.msra.gmra.mxu3 %v2601_v48  ;;  %v1993_v11 = vld [vmem:[%s2499_s5 + $0x24] sm:$0xf]  ;;  %v1685_v14 = vld [vmem:[%s2499_s5 + $0xa8] sm:$0xf0]  ;;  %v1940_v16 = vor.u32 %v2074_v10, %v1939_v8  ;;  %v1867_v18 = vld [vmem:[%s2499_s5 + $0x210] sm:$0xf] }
  0xb2   : > { %1378 = vmatpush.bf16.msrb.mxu3 %v1728_v15  ;;  %v2009_v13 = vld [vmem:[%s2499_s5 + $0xa4] sm:$0xf]  ;;  %v1876_v15 = vor.u32 %v2058_v7, %v1875_v6  ;;  %v1624_v17 = vor.u32 %v1993_v11, %v1621_v12  ;;  %v2056_v19 = vld [vmem:[%s2499_s5 + $0x214] sm:$0xf0]  ;;  %v1931_v20 = vld [vmem:[%s2499_s5 + $0x290] sm:$0xf] }
  0xb3   : > { %1340 = vmatpush.bf16.msrb.mxu0 %v1908_v21  ;;  %v1688_v21 = vor.u32 %v2009_v13, %v1685_v14  ;;  %v2072_v22 = vld [vmem:[%s2499_s5 + $0x294] sm:$0xf0]  ;;  %v1991_v23 = vld [vmem:[%s2499_s5 + $0x14] sm:$0xf]  ;;  %v1677_v26 = vld [vmem:[%s2499_s5 + $0x98] sm:$0xf0]  ;;  %v1868_v27 = vor.u32 %v2056_v19, %v1867_v18 }
  0xb4   : > { %1353 = vmatpush.bf16.msrb.mxu1 %v1972_v24  ;;  %v1613_v24 = vld [vmem:[%s2499_s5 + $0x18] sm:$0xf0]  ;;  %v1859_v28 = vld [vmem:[%s2499_s5 + $0x200] sm:$0xf]  ;;  %v1932_v31 = vor.u32 %v2072_v22, %v1931_v20  ;;  %v2070_v33 = vld [vmem:[%s2499_s5 + $0x284] sm:$0xf0] }
  0xb5   : > { %1366 = vmatpush.bf16.msrb.mxu2 %v1656_v25  ;;  %v2007_v25 = vld [vmem:[%s2499_s5 + $0x94] sm:$0xf]  ;;  %v1923_v30 = vld [vmem:[%s2499_s5 + $0x280] sm:$0xf]  ;;  %v1616_v32 = vor.u32 %v1991_v23, %v1613_v24  ;;  %v1989_v34 = vld [vmem:[%s2499_s5 + $0x4] sm:$0xf] }
  0xb6   : > { %1379 = vmatpush.bf16.msrb.mxu3 %v1720_v29  ;;  %v2054_v29 = vld [vmem:[%s2499_s5 + $0x204] sm:$0xf0]  ;;  %v689_v35 = vld [vmem:[%s2487_s26 + $0x10] sm:$0xff]  ;;  %v1680_v36 = vor.u32 %v2007_v25, %v1677_v26  ;;  %v1605_v37 = vld [vmem:[%s2499_s5 + $0x8] sm:$0xf0]  ;;  %v1924_v52 = vor.u32 %v2070_v33, %v1923_v30 }
  0xb7   : > { %1341 = vmatpush.bf16.msrb.mxu0 %v1900_v39  ;;  %v2005_v38 = vld [vmem:[%s2499_s5 + $0x84] sm:$0xf]  ;;  %v1669_v39 = vld [vmem:[%s2499_s5 + $0x88] sm:$0xf0]  ;;  %v2051_v44 = vld [vmem:[%s2499_s5 + $0x1f4] sm:$0xf]  ;;  %v1860_v45 = vor.u32 %v2054_v29, %v1859_v28  ;;  %v793_v51 = vunpack.c.l.b16 %v689_v35  ;;  %v1608_v53 = vor.u32 %v1989_v34, %v1605_v37  ;;  %v794_v58 = vunpack.c.h.b16 %v689_v35 }
  0xb8   : > { %1354 = vmatpush.bf16.msrb.mxu1 %v1964_v40  ;;  %v2035_v40 = vld [vmem:[%s2499_s5 + $0x174] sm:$0xf]  ;;  %v1853_v46 = vld [vmem:[%s2499_s5 + $0x1f8] sm:$0xf0]  ;;  %v1781_v62 = vld [vmem:[%s2499_s5 + $0x168] sm:$0xf0] }
  0xb9   : > { %1367 = vmatpush.bf16.msrb.mxu2 %v1648_v43  ;;  %v1789_v43 = vld [vmem:[%s2499_s5 + $0x178] sm:$0xf0]  ;;  %v2083_v54 = vld [vmem:[%s2499_s5 + $0x2f4] sm:$0xf]  ;;  %v1856_v59 = vor.u32 %v2051_v44, %v1853_v46  ;;  %v2049_v63 = vld [vmem:[%s2499_s5 + $0x1e4] sm:$0xf]  ;;  %v2663_v8 = vpack.c.b16 %v794_v58, %v794_v58 }
  0xba   : > { %1380 = vmatpush.bf16.msrb.mxu3 %v1712_v49  ;;  %v2067_v49 = vld [vmem:[%s2499_s5 + $0x274] sm:$0xf]  ;;  %v1917_v50 = vld [vmem:[%s2499_s5 + $0x278] sm:$0xf0]  ;;  %v1845_v1 = vld [vmem:[%s2499_s5 + $0x1e8] sm:$0xf0] }
  0xbb   : > { %1342 = vmatpush.bf16.msrb.mxu0 %v1892_v55  ;;  %v1981_v55 = vld [vmem:[%s2499_s5 + $0x2f8] sm:$0xf0]  ;;  %v1920_v60 = vor.u32 %v2067_v49, %v1917_v50  ;;  %v2065_v2 = vld [vmem:[%s2499_s5 + $0x264] sm:$0xf]  ;;  %v1973_v6 = vld [vmem:[%s2499_s5 + $0x2e8] sm:$0xf0] }
  0xbc   : > { %1355 = vmatpush.bf16.msrb.mxu1 %v1956_v56  ;;  %v1672_v56 = vor.u32 %v2005_v38, %v1669_v39  ;;  %v1984_v0 = vor.u32 %v2083_v54, %v1981_v55  ;;  %v2031_v11 = vld [vmem:[%s2499_s5 + $0x154] sm:$0xf]  ;;  %v1773_v12 = vld [vmem:[%s2499_s5 + $0x158] sm:$0xf0]  ;;  %v2029_v23 = vld [vmem:[%s2499_s5 + $0x144] sm:$0xf] }
  0xbd   : > { %1368 = vmatpush.bf16.msrb.mxu2 %v1640_v57  ;;  %v1792_v57 = vor.u32 %v2035_v40, %v1789_v43  ;;  %v2047_v13 = vld [vmem:[%s2499_s5 + $0x1d4] sm:$0xf]  ;;  %v1965_v19 = vld [vmem:[%s2499_s5 + $0x2d8] sm:$0xf0]  ;;  %v1776_v20 = vor.u32 %v2031_v11, %v1773_v12  ;;  %v2045_v24 = vld [vmem:[%s2499_s5 + $0x1c4] sm:$0xf] }
  0xbe   : > { %1381 = vmatpush.bf16.msrb.mxu3 %v1704_v61  ;;  %v2033_v61 = vld [vmem:[%s2499_s5 + $0x164] sm:$0xf]  ;;  %v2079_v18 = vld [vmem:[%s2499_s5 + $0x2d4] sm:$0xf]  ;;  %v1829_v25 = vld [vmem:[%s2499_s5 + $0x1c8] sm:$0xf0] }
  0xbf   : > { %1343 = vmatpush.bf16.msrb.mxu0 %v1884_v3  ;;  %v1909_v3 = vld [vmem:[%s2499_s5 + $0x268] sm:$0xf0]  ;;  %v1784_v7 = vor.u32 %v2033_v61, %v1781_v62  ;;  %v2061_v26 = vld [vmem:[%s2499_s5 + $0x244] sm:$0xf]  ;;  %v2027_v33 = vld [vmem:[%s2499_s5 + $0x134] sm:$0xf] }
  0xc0   : > { %1356 = vmatpush.bf16.msrb.mxu1 %v1948_v4  ;;  %v2659_v4 = vpack.c.b16 %v793_v51, %v793_v51  ;;  %v1912_v10 = vor.u32 %v2065_v2, %v1909_v3  ;;  %v2077_v28 = vld [vmem:[%s2499_s5 + $0x2c4] sm:$0xf]  ;;  %v1957_v29 = vld [vmem:[%s2499_s5 + $0x2c8] sm:$0xf0]  ;;  %v1757_v34 = vld [vmem:[%s2499_s5 + $0x138] sm:$0xf0] }
  0xc1   : > { %1369 = vmatpush.bf16.msrb.mxu2 %v1632_v5  ;;  %v2081_v5 = vld [vmem:[%s2499_s5 + $0x2e4] sm:$0xf]  ;;  %v2043_v35 = vld [vmem:[%s2499_s5 + $0x1b4] sm:$0xf]  ;;  %v1821_v37 = vld [vmem:[%s2499_s5 + $0x1b8] sm:$0xf0]  ;;  %v1760_v44 = vor.u32 %v2027_v33, %v1757_v34 }
  0xc2   : > { %1382 = vmatpush.bf16.msrb.mxu3 %v1696_v9  ;;  %v1848_v9 = vor.u32 %v2049_v63, %v1845_v1  ;;  %v1976_v14 = vor.u32 %v2081_v5, %v1973_v6  ;;  %v2059_v38 = vld [vmem:[%s2499_s5 + $0x234] sm:$0xf]  ;;  %v1885_v39 = vld [vmem:[%s2499_s5 + $0x238] sm:$0xf0]  ;;  %v2025_v49 = vld [vmem:[%s2499_s5 + $0x124] sm:$0xf] }
  0xc3   : > { %1344 = vmatpush.bf16.msrb.mxu0 %v1876_v15  ;;  %v1837_v15 = vld [vmem:[%s2499_s5 + $0x1d8] sm:$0xf0]  ;;  %v2075_v40 = vld [vmem:[%s2499_s5 + $0x2b4] sm:$0xf]  ;;  %v1888_v46 = vor.u32 %v2059_v38, %v1885_v39  ;;  %v1749_v50 = vld [vmem:[%s2499_s5 + $0x128] sm:$0xf0] }
  0xc4   : > { %1357 = vmatpush.bf16.msrb.mxu1 %v1940_v16  ;;  %v2063_v16 = vld [vmem:[%s2499_s5 + $0x254] sm:$0xf]  ;;  %v1949_v43 = vld [vmem:[%s2499_s5 + $0x2b8] sm:$0xf0]  ;;  %v2041_v51 = vld [vmem:[%s2499_s5 + $0x1a4] sm:$0xf]  ;;  %v1752_v58 = vor.u32 %v2025_v49, %v1749_v50 }
  0xc5   : > { %1370 = vmatpush.bf16.msrb.mxu2 %v1624_v17  ;;  %v1901_v17 = vld [vmem:[%s2499_s5 + $0x258] sm:$0xf0]  ;;  %v2057_v54 = vld [vmem:[%s2499_s5 + $0x224] sm:$0xf]  ;;  %v1877_v55 = vld [vmem:[%s2499_s5 + $0x228] sm:$0xf0] }
  0xc6   : > { %1383 = vmatpush.bf16.msrb.mxu3 %v1688_v21  ;;  %v1840_v21 = vor.u32 %v2047_v13, %v1837_v15  ;;  %v1904_v22 = vor.u32 %v2063_v16, %v1901_v17  ;;  %v2023_v61 = vld [vmem:[%s2499_s5 + $0x114] sm:$0xf]  ;;  %v1741_v62 = vld [vmem:[%s2499_s5 + $0x118] sm:$0xf0]  ;;  %v2021_v11 = vld [vmem:[%s2499_s5 + $0x104] sm:$0xf] }
  0xc7   : > { %1345 = vmatpush.bf16.msrb.mxu0 %v1868_v27  ;;  %v1893_v27 = vld [vmem:[%s2499_s5 + $0x248] sm:$0xf0]  ;;  %v2039_v63 = vld [vmem:[%s2499_s5 + $0x194] sm:$0xf]  ;;  %v1805_v1 = vld [vmem:[%s2499_s5 + $0x198] sm:$0xf0] }
  0xc8   : > { %1358 = vmatpush.bf16.msrb.mxu1 %v1932_v31  ;;  %v1832_v31 = vor.u32 %v2045_v24, %v1829_v25  ;;  %v2055_v2 = vld [vmem:[%s2499_s5 + $0x214] sm:$0xf]  ;;  %v1869_v3 = vld [vmem:[%s2499_s5 + $0x218] sm:$0xf0]  ;;  %v1733_v12 = vld [vmem:[%s2499_s5 + $0x108] sm:$0xf0] }
  0xc9   : > { %1371 = vmatpush.bf16.msrb.mxu2 %v1616_v32  ;;  %v1896_v32 = vor.u32 %v2061_v26, %v1893_v27  ;;  %v2071_v5 = vld [vmem:[%s2499_s5 + $0x294] sm:$0xf]  ;;  %v1933_v6 = vld [vmem:[%s2499_s5 + $0x298] sm:$0xf0]  ;;  %v2037_v13 = vld [vmem:[%s2499_s5 + $0x184] sm:$0xf] }
  0xca   : > { %1384 = vmatpush.bf16.msrb.mxu3 %v1680_v36  ;;  %v1960_v36 = vor.u32 %v2077_v28, %v1957_v29  ;;  %v1797_v15 = vld [vmem:[%s2499_s5 + $0x188] sm:$0xf0]  ;;  %v2053_v16 = vld [vmem:[%s2499_s5 + $0x204] sm:$0xf] }
  0xcb   : > { %1346 = vmatpush.bf16.msrb.mxu0 %v1860_v45  ;;  %v1824_v45 = vor.u32 %v2043_v35, %v1821_v37  ;;  %v1861_v17 = vld [vmem:[%s2499_s5 + $0x208] sm:$0xf0] }
  0xcc   : > { %1359 = vmatpush.bf16.msrb.mxu1 %v1924_v52  ;;  %v1952_v52 = vor.u32 %v2075_v40, %v1949_v43 }
  0xcd   : > { %1372 = vmatpush.bf16.msrb.mxu2 %v1608_v53  ;;  %v1813_v53 = vld [vmem:[%s2499_s5 + $0x1a8] sm:$0xf0] }
  0xce   : > { %1385 = vmatpush.bf16.msrb.mxu3 %v1672_v56  ;;  %1347 = vmatmul.bf16.vlgmr.msrb.gmra.mxu0 %v2659_v4  ;;  %v2073_v56 = vld [vmem:[%s2499_s5 + $0x2a4] sm:$0xf] }
  0xcf   : > { %1391 = vmatpush.bf16.msra.mxu0 %v1792_v57  ;;  %1360 = vmatmul.bf16.vlgmr.msrb.gmra.mxu1 %v2663_v8  ;;  %v1941_v57 = vld [vmem:[%s2499_s5 + $0x2a8] sm:$0xf0] }
  0xd0   : > { %1404 = vmatpush.bf16.msra.mxu1 %v1856_v59  ;;  %1373 = vmatmul.bf16.vlgmr.msrb.gmra.mxu2 %v2592_v41  ;;  %v1765_v41 = vld [vmem:[%s2499_s5 + $0x148] sm:$0xf0]  ;;  %v1816_v59 = vor.u32 %v2041_v51, %v1813_v53 }
  0xd1   : > { %1417 = vmatpush.bf16.msra.mxu2 %v1920_v60  ;;  %1386 = vmatmul.bf16.vlgmr.msrb.gmra.mxu3 %v2594_v42  ;;  %v1968_v42 = vor.u32 %v2079_v18, %v1965_v19  ;;  %v1768_v30 = vor.u32 %v2029_v23, %v1765_v41  ;;  %v1880_v60 = vor.u32 %v2057_v54, %v1877_v55  ;;  %v2069_v18 = vld [vmem:[%s2499_s5 + $0x284] sm:$0xf]  ;;  %v1925_v19 = vld [vmem:[%s2499_s5 + $0x288] sm:$0xf0]  ;;  %v686_v54 = vld [vmem:[#allocation2 + $0x8] sm:$0xff] }
  0xd2   : > { %1430 = vmatpush.bf16.msra.mxu3 %v1984_v0  ;;  %v1944_v0 = vor.u32 %v2073_v56, %v1941_v57  ;;  %v1928_v23 = vor.u32 %v2069_v18, %v1925_v19 }
  0xd3   : > { %1392 = vmatpush.bf16.msra.mxu0 %v1784_v7  ;;  %v1744_v7 = vor.u32 %v2023_v61, %v1741_v62 }
  0xd4   : > { %1405 = vmatpush.bf16.msra.mxu1 %v1848_v9  ;;  %v1808_v9 = vor.u32 %v2039_v63, %v1805_v1 }
  0xd5   : > { %1418 = vmatpush.bf16.msra.mxu2 %v1912_v10  ;;  %v1872_v10 = vor.u32 %v2055_v2, %v1869_v3 }
  0xd6   : > { %1431 = vmatpush.bf16.msra.mxu3 %v1976_v14  ;;  %v1936_v14 = vor.u32 %v2071_v5, %v1933_v6 }
  0xd7   : > { %1393 = vmatpush.bf16.msra.mxu0 %v1776_v20  ;;  %v1736_v20 = vor.u32 %v2021_v11, %v1733_v12 }
  0xd8   : > { %1406 = vmatpush.bf16.msra.mxu1 %v1840_v21  ;;  %v1800_v21 = vor.u32 %v2037_v13, %v1797_v15 }
  0xd9   : > { %1419 = vmatpush.bf16.msra.mxu2 %v1904_v22  ;;  %v1864_v22 = vor.u32 %v2053_v16, %v1861_v17 }
  0xda   : > { %1432 = vmatpush.bf16.msra.mxu3 %v1968_v42 }
  0xdb   : > { %1394 = vmatpush.bf16.msra.mxu0 %v1768_v30 }
  0xdc   : > { %1407 = vmatpush.bf16.msra.mxu1 %v1832_v31 }
  0xdd   : > { %1420 = vmatpush.bf16.msra.mxu2 %v1896_v32 }
  0xde   : > { %1433 = vmatpush.bf16.msra.mxu3 %v1960_v36 }
  0xdf   : > { %1395 = vmatpush.bf16.msra.mxu0 %v1760_v44 }
  0xe0   : > { %1408 = vmatpush.bf16.msra.mxu1 %v1824_v45 }
  0xe1   : > { %1421 = vmatpush.bf16.msra.mxu2 %v1888_v46 }
  0xe2   : > { %1434 = vmatpush.bf16.msra.mxu3 %v1952_v52 }
  0xe3   : > { %1396 = vmatpush.bf16.msra.mxu0 %v1752_v58 }
  0xe4   : > { %1409 = vmatpush.bf16.msra.mxu1 %v1816_v59 }
  0xe5   : > { %1422 = vmatpush.bf16.msra.mxu2 %v1880_v60 }
  0xe6   : > { %1435 = vmatpush.bf16.msra.mxu3 %v1944_v0 }
  0xe7   : > { %1397 = vmatpush.bf16.msra.mxu0 %v1744_v7 }
  0xe8   : > { %1410 = vmatpush.bf16.msra.mxu1 %v1808_v9 }
  0xe9   : > { %1423 = vmatpush.bf16.msra.mxu2 %v1872_v10 }
  0xea   : > { %1436 = vmatpush.bf16.msra.mxu3 %v1936_v14 }
  0xeb   : > { %1398 = vmatpush.bf16.msra.mxu0 %v1736_v20 }
  0xec   : > { %1411 = vmatpush.bf16.msra.mxu1 %v1800_v21 }
  0xed   : > { %1424 = vmatpush.bf16.msra.mxu2 %v1864_v22 }
  0xee   : > { %1437 = vmatpush.bf16.msra.mxu3 %v1928_v23  ;;  %1399 = vmatmul.bf16.vlgmr.msra.gmra.mxu0 %v2599_v47  ;;  %v685_v47 = vld [vmem:[#allocation2] sm:$0xff] }
  0xef   : > { %1412 = vmatmul.bf16.vlgmr.msra.gmra.mxu1 %v2601_v48 }
  0xf0   : > { %1425 = vmatmul.bf16.vlgmr.msra.gmra.mxu2 %v2659_v4 }
  0xf1   : > { %1438 = vmatmul.bf16.vlgmr.msra.gmra.mxu3 %v2663_v8 }
 0x12b   : > { %v1296_v41 = vpop.f32.mrf.mxu0 }
 0x12c   : > { %v1309_v24 = vpop.f32.mrf.mxu1 }
 0x12d   : > { %v1310_v28 = vadd.f32 %v1309_v24, %v1296_v41 }
 0x133   : > { %v1322_v42 = vpop.f32.mrf.mxu2  ;;  %v1298_v26 = vpop.f32.mrf.mxu0 }
 0x134   : > { %v1335_v25 = vpop.f32.mrf.mxu3  ;;  %v1311_v27 = vpop.f32.mrf.mxu1  ;;  %v1323_v31 = vadd.f32 %v1322_v42, %v1310_v28 }
 0x136   : > { %v1336_v32 = vadd.f32 %v1335_v25, %v1323_v31 }
 0x13b   : > { %v1324_v29 = vpop.f32.mrf.mxu2 }
 0x13c   : > { %v1337_v30 = vpop.f32.mrf.mxu3 }
 0x14b   : > { %v1348_v33 = vpop.f32.mrf.mxu0 }
 0x14c   : > { %v1349_v34 = vadd.f32 %v1348_v33, %v1336_v32  ;;  %v1361_v35 = vpop.f32.mrf.mxu1 }
 0x14e   : > { %v1362_v48 = vadd.f32 %v1361_v35, %v1349_v34 }
 0x150   : > { %v1443_v36 = vadd.f32 %v1362_v48, %v685_v47 }
 0x152   : > { %1445 = vst [vmem:[#allocation2] sm:$0xff] %v1443_v36 }
 0x153   : > { %v1374_v4 = vpop.f32.mrf.mxu2  ;;  %v1350_v37 = vpop.f32.mrf.mxu0 }
 0x154   : > { %v1387_v8 = vpop.f32.mrf.mxu3  ;;  %v1363_v38 = vpop.f32.mrf.mxu1 }
 0x155   : > { %v1388_v43 = vadd.f32 %v1387_v8, %v1374_v4 }
 0x15b   : > { %v1376_v39 = vpop.f32.mrf.mxu2 }
 0x15c   : > { %v1389_v40 = vpop.f32.mrf.mxu3 }
 0x16b   : > { %v1400_v44 = vpop.f32.mrf.mxu0 }
 0x16c   : > { %v1413_v45 = vpop.f32.mrf.mxu1  ;;  %v1401_v46 = vadd.f32 %v1400_v44, %v1388_v43 }
 0x16e   : > { %v1414_v49 = vadd.f32 %v1413_v45, %v1401_v46 }
 0x173   : > { %v1426_v50 = vpop.f32.mrf.mxu2  ;;  %v1402_v53 = vpop.f32.mrf.mxu0 }
 0x174   : > { %v1427_v51 = vadd.f32 %v1426_v50, %v1414_v49  ;;  %v1439_v52 = vpop.f32.mrf.mxu3  ;;  %v1415_v55 = vpop.f32.mrf.mxu1 }
 0x176   : > { %v1440_v56 = vadd.f32 %v1439_v52, %v1427_v51 }
 0x178   : > { %v1444_v57 = vadd.f32 %v1440_v56, %v686_v54  ;;  %1450 = sbr.rel (%p1985_p13) target bundleno = 393 (0x189), region = 78 }
 0x17a   : > { %1446 = vst [vmem:[#allocation2 + $0x8] sm:$0xff] %v1444_v57 }
 0x17b   : > { %v1428_v58 = vpop.f32.mrf.mxu2 }
 0x17c   : > { %v1441_v59 = vpop.f32.mrf.mxu3 }
 0x17d   : > { %v1451_v60 = vld [vmem:[#allocation2] sm:$0xff] }
 0x17e   : > { %v1453_v62 = vld [vmem:[%s667_s12] sm:$0x3] }
 0x17f   : > { %v1455_v63 = vperm.slane %v1453_v62, 0  ;;  %v1456_v0 = vperm.slane %v1453_v62, 1 }
 0x181   : > { %v1452_v61 = vld [vmem:[#allocation2 + $0x8] sm:$0xff]  ;;  %v1459_v1 = vadd.f32 %v1455_v63, %v1451_v60 }
 0x182   : > { %v1460_v2 = vadd.f32 %v1456_v0, %v1452_v61 }
 0x183   : > { %v1461_v3 = vmax.f32 %v1459_v1, 0.0 }
 0x184   : > { %v1462_v5 = vmax.f32 %v1460_v2, 0.0 }
 0x186   : > { %v1463_v6 = vpack.c.bf16 %v1462_v5, %v1461_v3 }
 0x188   : > { %1464 = vst [vmem:[%s2497_s4] sm:$0xff] %v1463_v6 }
 0x189 PF: > { %s13_s18 = sadd.s32 1, %s2198_s18   ;;  %s2753_s12 = smov %s2178_s13 }
 0x18a   : > { %p10_p0 = scmp.ge.s32.totalorder %s13_s18, 8   ;;  %s2754_s13 = smov %s2272_s25 }
 0x18b   : > { %s2755_s14 = smov %s2190_s16  ;;  %s2756_s15 = smov %s2194_s17 }
 0x18c   : > { %s2757_s16 = smov %s2760_s19  ;;  %s2758_s17 = smov %s2764_s20 }
 0x18d   :  { %12 = sbr.rel (!%p10_p0) target bundleno = 4 (0x4), region = 119 }

// kernel: forward.37
= control target key start
LH: loop header
LB: loop body
LE: loop exit
PB: predicated region body
PF: predicated region fallthrough
CT: control target
= control target key end

     0   :  { %s1101_s12 = smov 0   ;;  %s1103_s13 = smov 0   ;;  %s1306_s0 = inlined_call_operand.vmem [shape: bf16[8,256], index: 0, kind: input, shape index: {}]   ;;  %s1307_s1 = inlined_call_operand.vmem [shape: bf16[256,512], index: 1, kind: input, shape index: {}]   ;;  %s1308_s2 = inlined_call_operand.vmem [shape: f32[1,512], index: 2, kind: input, shape index: {}]   ;;  %s1309_s3 = inlined_call_operand.vmem [shape: bf16[8,512], index: 3, kind: output, shape index: {}]  }
   0x1   :  { %s1105_s14 = smov 0   ;;  %s1107_s15 = smov 0  }
   0x2   :  { %s1109_s16 = smov 0  }
   0x3 LB: > { %s28_s17 = sadd.s32 1, %s1075_s15  ;;  %p76_p1 = scmp.ne.s32.totalorder %s1067_s13, %s1063_s12  ;;  %s1079_s16 = sphi %s1109_s16, %s13_s16   ;;  %s1075_s15 = sphi %s1107_s15, %s1313_s15   ;;  %s1071_s14 = sphi %s1105_s14, %s1312_s14   ;;  %s1067_s13 = sphi %s1103_s13, %s1311_s13   ;;  %s1063_s12 = sphi %s1101_s12, %s1310_s12  }
   0x4   : > { %p30_p0 = scmp.ge.s32.totalorder %s28_s17, 2  ;;  %p77_p2 = scmp.eq.s32.totalorder %s1079_s16, 0 }
   0x5   : > { %s69_s19 = sadd.s32 1, %s1067_s13  ;;  %p829_p5 = scmp.ge.s32.totalorder %s1079_s16, 2 }
   0x6   : > { %s1315_s17 = smov (%p30_p0, %s28_s17), 0  ;;  %p78_p3 = por %p77_p2, %p76_p1 }
   0x7   : > { %s65_s18 = ssub.s32 %s1075_s15, %s1315_s17  ;;  %169 = sbr.rel (%p829_p5) target bundleno = 48 (0x30), region = 20 }
   0x8   : > { %p67_p4 = scmp.eq.s32.totalorder %s65_s18, 0 }
   0xa   : > { %s1136_s20 = scalar_select %p67_p4, %s1067_s13, %s69_s19  }
   0xc   : > { %172 = sbr.rel (!%p78_p3) target bundleno = 48 (0x30), region = 24  ;;  %s174_s21 = sand.u32 (%p78_p3), 1, %s1067_s13  }
   0xd   : > { %s968_s22 = sshll.u32 (%p78_p3), %s1075_s15, 3  ;;  %s830_s23 = sshll.u32 (%p78_p3), %s174_s21, 8 }
   0xe   : > { %s1144_s26 = scalar_lea.vmem (%p78_p3), %s1307_s1, %s968_s22  ;;  %s1149_s27 = scalar_lea.vmem (%p78_p3), [#allocation3], %s830_s23 }
   0xf   : > { %v273_v0 = vld [vmem:[%s1144_s26] sm:$0xff] (%p78_p3)  ;;  %v275_v1 = vld [vmem:[%s1144_s26 + $0x10] sm:$0xff] (%p78_p3) }
  0x10   : > { %v277_v2 = vld [vmem:[%s1144_s26 + $0x20] sm:$0xff] (%p78_p3)  ;;  %274 = vst [vmem:[%s1149_s27] sm:$0xff] (%p78_p3), %v273_v0  ;;  %v279_v3 = vld [vmem:[%s1144_s26 + $0x30] sm:$0xff] (%p78_p3) }
  0x11   : > { %276 = vst [vmem:[%s1149_s27 + $0x8] sm:$0xff] %v275_v1  ;;  %v281_v4 = vld [vmem:[%s1144_s26 + $0x40] sm:$0xff]  ;;  %v283_v5 = vld [vmem:[%s1144_s26 + $0x50] sm:$0xff] }
  0x12   : > { %278 = vst [vmem:[%s1149_s27 + $0x10] sm:$0xff] %v277_v2  ;;  %v285_v6 = vld [vmem:[%s1144_s26 + $0x60] sm:$0xff]  ;;  %v287_v7 = vld [vmem:[%s1144_s26 + $0x70] sm:$0xff] }
  0x13   : > { %280 = vst [vmem:[%s1149_s27 + $0x18] sm:$0xff] %v279_v3  ;;  %v289_v8 = vld [vmem:[%s1144_s26 + $0x80] sm:$0xff]  ;;  %v291_v9 = vld [vmem:[%s1144_s26 + $0x90] sm:$0xff] }
  0x14   : > { %282 = vst [vmem:[%s1149_s27 + $0x20] sm:$0xff] %v281_v4  ;;  %v293_v10 = vld [vmem:[%s1144_s26 + $0xa0] sm:$0xff]  ;;  %v295_v11 = vld [vmem:[%s1144_s26 + $0xb0] sm:$0xff] }
  0x15   : > { %284 = vst [vmem:[%s1149_s27 + $0x28] sm:$0xff] %v283_v5  ;;  %v297_v12 = vld [vmem:[%s1144_s26 + $0xc0] sm:$0xff]  ;;  %v299_v13 = vld [vmem:[%s1144_s26 + $0xd0] sm:$0xff] }
  0x16   : > { %286 = vst [vmem:[%s1149_s27 + $0x30] sm:$0xff] %v285_v6  ;;  %v301_v14 = vld [vmem:[%s1144_s26 + $0xe0] sm:$0xff]  ;;  %v303_v15 = vld [vmem:[%s1144_s26 + $0xf0] sm:$0xff] }
  0x17   : > { %288 = vst [vmem:[%s1149_s27 + $0x38] sm:$0xff] %v287_v7  ;;  %v305_v16 = vld [vmem:[%s1144_s26 + $0x100] sm:$0xff]  ;;  %v307_v17 = vld [vmem:[%s1144_s26 + $0x110] sm:$0xff] }
  0x18   : > { %290 = vst [vmem:[%s1149_s27 + $0x40] sm:$0xff] %v289_v8  ;;  %v309_v18 = vld [vmem:[%s1144_s26 + $0x120] sm:$0xff]  ;;  %v311_v19 = vld [vmem:[%s1144_s26 + $0x130] sm:$0xff] }
  0x19   : > { %292 = vst [vmem:[%s1149_s27 + $0x48] sm:$0xff] %v291_v9  ;;  %v313_v20 = vld [vmem:[%s1144_s26 + $0x140] sm:$0xff]  ;;  %v315_v21 = vld [vmem:[%s1144_s26 + $0x150] sm:$0xff] }
  0x1a   : > { %294 = vst [vmem:[%s1149_s27 + $0x50] sm:$0xff] %v293_v10  ;;  %v317_v22 = vld [vmem:[%s1144_s26 + $0x160] sm:$0xff]  ;;  %v319_v23 = vld [vmem:[%s1144_s26 + $0x170] sm:$0xff] }
  0x1b   : > { %296 = vst [vmem:[%s1149_s27 + $0x58] sm:$0xff] %v295_v11  ;;  %v321_v24 = vld [vmem:[%s1144_s26 + $0x180] sm:$0xff]  ;;  %v323_v25 = vld [vmem:[%s1144_s26 + $0x190] sm:$0xff] }
  0x1c   : > { %298 = vst [vmem:[%s1149_s27 + $0x60] sm:$0xff] %v297_v12  ;;  %v325_v26 = vld [vmem:[%s1144_s26 + $0x1a0] sm:$0xff]  ;;  %v327_v27 = vld [vmem:[%s1144_s26 + $0x1b0] sm:$0xff] }
  0x1d   : > { %300 = vst [vmem:[%s1149_s27 + $0x68] sm:$0xff] %v299_v13  ;;  %v329_v28 = vld [vmem:[%s1144_s26 + $0x1c0] sm:$0xff]  ;;  %v331_v29 = vld [vmem:[%s1144_s26 + $0x1d0] sm:$0xff] }
  0x1e   : > { %302 = vst [vmem:[%s1149_s27 + $0x70] sm:$0xff] %v301_v14  ;;  %v333_v30 = vld [vmem:[%s1144_s26 + $0x1e0] sm:$0xff]  ;;  %v335_v31 = vld [vmem:[%s1144_s26 + $0x1f0] sm:$0xff] }
  0x1f   : > { %304 = vst [vmem:[%s1149_s27 + $0x78] sm:$0xff] %v303_v15 }
  0x20   : > { %306 = vst [vmem:[%s1149_s27 + $0x80] sm:$0xff] %v305_v16 }
  0x21   : > { %308 = vst [vmem:[%s1149_s27 + $0x88] sm:$0xff] %v307_v17 }
  0x22   : > { %310 = vst [vmem:[%s1149_s27 + $0x90] sm:$0xff] %v309_v18 }
  0x23   : > { %312 = vst [vmem:[%s1149_s27 + $0x98] sm:$0xff] %v311_v19 }
  0x24   : > { %314 = vst [vmem:[%s1149_s27 + $0xa0] sm:$0xff] %v313_v20 }
  0x25   : > { %316 = vst [vmem:[%s1149_s27 + $0xa8] sm:$0xff] %v315_v21 }
  0x26   : > { %318 = vst [vmem:[%s1149_s27 + $0xb0] sm:$0xff] %v317_v22 }
  0x27   : > { %320 = vst [vmem:[%s1149_s27 + $0xb8] sm:$0xff] %v319_v23 }
  0x28   : > { %322 = vst [vmem:[%s1149_s27 + $0xc0] sm:$0xff] %v321_v24 }
  0x29   : > { %324 = vst [vmem:[%s1149_s27 + $0xc8] sm:$0xff] %v323_v25 }
  0x2a   : > { %326 = vst [vmem:[%s1149_s27 + $0xd0] sm:$0xff] %v325_v26 }
  0x2b   : > { %328 = vst [vmem:[%s1149_s27 + $0xd8] sm:$0xff] %v327_v27 }
  0x2c   : > { %330 = vst [vmem:[%s1149_s27 + $0xe0] sm:$0xff] %v329_v28 }
  0x2d   : > { %332 = vst [vmem:[%s1149_s27 + $0xe8] sm:$0xff] %v331_v29 }
  0x2e   : > { %334 = vst [vmem:[%s1149_s27 + $0xf0] sm:$0xff] %v333_v30 }
  0x2f   : > { %336 = vst [vmem:[%s1149_s27 + $0xf8] sm:$0xff] %v335_v31 }
  0x30 PF: > { %p833_p6 = scmp.ge.s32.totalorder %s1079_s16, 1  ;;  %p349_p7 = scmp.lt.s32.totalorder %s1079_s16, 3 }
  0x32   : > { %p350_p8 = pnand %p833_p6, %p349_p7 }
  0x33   : > { %s356_s28 = sand.u32 (!%p350_p8), 1, %s1063_s12   ;;  %s835_s6 = sshll.u32 (!%p350_p8), %s1071_s14, 1 }
  0x34   : > { %353 = sbr.rel (%p350_p8) target bundleno = 233 (0xe9), region = 66  ;;  %s834_s29 = sshll.u32 (!%p350_p8), %s356_s28, 8 }
  0x35   : > { %s1215_s30 = scalar_lea.vmem (!%p350_p8), [#allocation3], %s834_s29  ;;  %p409_p9 = scmp.lt.s32.totalorder (!%p350_p8), %s835_s6, 3 }
  0x39   : > { %v896_v32 = vld [vmem:[%s1215_s30 + $0x70] sm:$0xf]  ;;  %v984_v33 = vld [vmem:[%s1215_s30 + $0x74] sm:$0xf0]  ;;  %v983_v37 = vld [vmem:[%s1215_s30 + $0x74] sm:$0xf] }
  0x3a   : > { %v960_v34 = vld [vmem:[%s1215_s30 + $0xf0] sm:$0xf]  ;;  %v897_v35 = vor.u32 %v984_v33, %v896_v32  ;;  %v1000_v36 = vld [vmem:[%s1215_s30 + $0xf4] sm:$0xf0]  ;;  %v898_v38 = vld [vmem:[%s1215_s30 + $0x78] sm:$0xf0] }
  0x3b   : > { %v961_v39 = vor.u32 %v1000_v36, %v960_v34  ;;  %v901_v40 = vor.u32 %v983_v37, %v898_v38  ;;  %v999_v41 = vld [vmem:[%s1215_s30 + $0xf4] sm:$0xf]  ;;  %v962_v42 = vld [vmem:[%s1215_s30 + $0xf8] sm:$0xf0]  ;;  %v888_v43 = vld [vmem:[%s1215_s30 + $0x60] sm:$0xf] }
  0x3c   : > { %631 = vmatpush.bf16.msra.mxu0 %v897_v35  ;;  %v965_v44 = vor.u32 %v999_v41, %v962_v42  ;;  %v982_v45 = vld [vmem:[%s1215_s30 + $0x64] sm:$0xf0]  ;;  %v952_v46 = vld [vmem:[%s1215_s30 + $0xe0] sm:$0xf]  ;;  %v981_v50 = vld [vmem:[%s1215_s30 + $0x64] sm:$0xf] }
  0x3d   : > { %v998_v47 = vld [vmem:[%s1215_s30 + $0xe4] sm:$0xf0]  ;;  %644 = vmatpush.bf16.msra.mxu1 %v961_v39  ;;  %657 = vmatpush.bf16.msra.mxu2 %v901_v40  ;;  %v889_v48 = vor.u32 %v982_v45, %v888_v43  ;;  %v890_v51 = vld [vmem:[%s1215_s30 + $0x68] sm:$0xf0]  ;;  %v997_v52 = vld [vmem:[%s1215_s30 + $0xe4] sm:$0xf] }
  0x3e   : > { %v953_v49 = vor.u32 %v998_v47, %v952_v46  ;;  %670 = vmatpush.bf16.msra.mxu3 %v965_v44  ;;  %v893_v53 = vor.u32 %v981_v50, %v890_v51  ;;  %v954_v54 = vld [vmem:[%s1215_s30 + $0xe8] sm:$0xf0]  ;;  %v880_v55 = vld [vmem:[%s1215_s30 + $0x50] sm:$0xf]  ;;  %v980_v56 = vld [vmem:[%s1215_s30 + $0x54] sm:$0xf0] }
  0x3f   : > { %v957_v57 = vor.u32 %v997_v52, %v954_v54  ;;  %v944_v58 = vld [vmem:[%s1215_s30 + $0xd0] sm:$0xf]  ;;  %v996_v59 = vld [vmem:[%s1215_s30 + $0xd4] sm:$0xf0]  ;;  %v979_v60 = vld [vmem:[%s1215_s30 + $0x54] sm:$0xf]  ;;  %v881_v61 = vor.u32 %v980_v56, %v880_v55 }
  0x40   : > { %632 = vmatpush.bf16.msra.mxu0 %v889_v48  ;;  %v882_v62 = vld [vmem:[%s1215_s30 + $0x58] sm:$0xf0]  ;;  %v995_v63 = vld [vmem:[%s1215_s30 + $0xd4] sm:$0xf]  ;;  %v945_v1 = vor.u32 %v996_v59, %v944_v58  ;;  %v872_v3 = vld [vmem:[%s1215_s30 + $0x40] sm:$0xf] }
  0x41   : > { %v946_v0 = vld [vmem:[%s1215_s30 + $0xd8] sm:$0xf0]  ;;  %645 = vmatpush.bf16.msra.mxu1 %v953_v49  ;;  %658 = vmatpush.bf16.msra.mxu2 %v893_v53  ;;  %v885_v2 = vor.u32 %v979_v60, %v882_v62  ;;  %v978_v4 = vld [vmem:[%s1215_s30 + $0x44] sm:$0xf0]  ;;  %v936_v5 = vld [vmem:[%s1215_s30 + $0xc0] sm:$0xf] }
  0x42   : > { %671 = vmatpush.bf16.msra.mxu3 %v957_v57  ;;  %v949_v6 = vor.u32 %v995_v63, %v946_v0  ;;  %v994_v7 = vld [vmem:[%s1215_s30 + $0xc4] sm:$0xf0]  ;;  %v977_v8 = vld [vmem:[%s1215_s30 + $0x44] sm:$0xf]  ;;  %v874_v9 = vld [vmem:[%s1215_s30 + $0x48] sm:$0xf0]  ;;  %v873_v12 = vor.u32 %v978_v4, %v872_v3 }
  0x43   : > { %v993_v10 = vld [vmem:[%s1215_s30 + $0xc4] sm:$0xf]  ;;  %v938_v11 = vld [vmem:[%s1215_s30 + $0xc8] sm:$0xf0]  ;;  %v937_v13 = vor.u32 %v994_v7, %v936_v5  ;;  %v877_v14 = vor.u32 %v977_v8, %v874_v9  ;;  %v864_v15 = vld [vmem:[%s1215_s30 + $0x30] sm:$0xf] }
  0x44   : > { %633 = vmatpush.bf16.msra.mxu0 %v881_v61  ;;  %v976_v16 = vld [vmem:[%s1215_s30 + $0x34] sm:$0xf0]  ;;  %v928_v17 = vld [vmem:[%s1215_s30 + $0xb0] sm:$0xf]  ;;  %v941_v18 = vor.u32 %v993_v10, %v938_v11  ;;  %v975_v20 = vld [vmem:[%s1215_s30 + $0x34] sm:$0xf] }
  0x45   : > { %646 = vmatpush.bf16.msra.mxu1 %v945_v1  ;;  %659 = vmatpush.bf16.msra.mxu2 %v885_v2  ;;  %v992_v19 = vld [vmem:[%s1215_s30 + $0xb4] sm:$0xf0]  ;;  %v866_v21 = vld [vmem:[%s1215_s30 + $0x38] sm:$0xf0]  ;;  %v991_v22 = vld [vmem:[%s1215_s30 + $0xb4] sm:$0xf]  ;;  %v865_v24 = vor.u32 %v976_v16, %v864_v15 }
  0x46   : > { %672 = vmatpush.bf16.msra.mxu3 %v949_v6  ;;  %v930_v23 = vld [vmem:[%s1215_s30 + $0xb8] sm:$0xf0]  ;;  %v929_v25 = vor.u32 %v992_v19, %v928_v17  ;;  %v869_v26 = vor.u32 %v975_v20, %v866_v21  ;;  %v856_v27 = vld [vmem:[%s1215_s30 + $0x20] sm:$0xf]  ;;  %v974_v28 = vld [vmem:[%s1215_s30 + $0x24] sm:$0xf0] }
  0x47   : > { %v920_v29 = vld [vmem:[%s1215_s30 + $0xa0] sm:$0xf]  ;;  %v933_v30 = vor.u32 %v991_v22, %v930_v23  ;;  %v990_v31 = vld [vmem:[%s1215_s30 + $0xa4] sm:$0xf0]  ;;  %v973_v32 = vld [vmem:[%s1215_s30 + $0x24] sm:$0xf]  ;;  %v857_v36 = vor.u32 %v974_v28, %v856_v27 }
  0x48   : > { %634 = vmatpush.bf16.msra.mxu0 %v873_v12  ;;  %v858_v33 = vld [vmem:[%s1215_s30 + $0x28] sm:$0xf0]  ;;  %v989_v34 = vld [vmem:[%s1215_s30 + $0xa4] sm:$0xf]  ;;  %v921_v37 = vor.u32 %v990_v31, %v920_v29  ;;  %v848_v39 = vld [vmem:[%s1215_s30 + $0x10] sm:$0xf] }
  0x49   : > { %647 = vmatpush.bf16.msra.mxu1 %v937_v13  ;;  %660 = vmatpush.bf16.msra.mxu2 %v877_v14  ;;  %v922_v35 = vld [vmem:[%s1215_s30 + $0xa8] sm:$0xf0]  ;;  %v861_v38 = vor.u32 %v973_v32, %v858_v33  ;;  %v972_v40 = vld [vmem:[%s1215_s30 + $0x14] sm:$0xf0]  ;;  %v912_v41 = vld [vmem:[%s1215_s30 + $0x90] sm:$0xf] }
  0x4a   : > { %673 = vmatpush.bf16.msra.mxu3 %v941_v18  ;;  %v925_v42 = vor.u32 %v989_v34, %v922_v35  ;;  %v988_v43 = vld [vmem:[%s1215_s30 + $0x94] sm:$0xf0]  ;;  %v971_v44 = vld [vmem:[%s1215_s30 + $0x14] sm:$0xf]  ;;  %v850_v45 = vld [vmem:[%s1215_s30 + $0x18] sm:$0xf0]  ;;  %v849_v48 = vor.u32 %v972_v40, %v848_v39 }
  0x4b   : > { %v987_v46 = vld [vmem:[%s1215_s30 + $0x94] sm:$0xf]  ;;  %v914_v47 = vld [vmem:[%s1215_s30 + $0x98] sm:$0xf0]  ;;  %v431_v49 = vld [vmem:[%s1306_s0] sm:$0xff]  ;;  %v913_v50 = vor.u32 %v988_v43, %v912_v41  ;;  %v853_v51 = vor.u32 %v971_v44, %v850_v45  ;;  %s1317_s6 = smov (!%p409_p9, %s835_s6), 3 }
  0x4c   : > { %635 = vmatpush.bf16.msra.mxu0 %v865_v24  ;;  %v840_v52 = vld [vmem:[%s1215_s30] sm:$0xf]  ;;  %v970_v53 = vld [vmem:[%s1215_s30 + $0x4] sm:$0xf0]  ;;  %v917_v55 = vor.u32 %v987_v46, %v914_v47  ;;  %v969_v57 = vld [vmem:[%s1215_s30 + $0x4] sm:$0xf]  ;;  %v465_v61 = vunpack.c.l.b16 %v431_v49  ;;  %v466_v63 = vunpack.c.h.b16 %v431_v49  ;;  %s411_s9 = scalar_lea.vmem %s1308_s2, %s1317_s6 }
  0x4d   : > { %648 = vmatpush.bf16.msra.mxu1 %v929_v25  ;;  %661 = vmatpush.bf16.msra.mxu2 %v869_v26  ;;  %v904_v54 = vld [vmem:[%s1215_s30 + $0x80] sm:$0xf]  ;;  %v986_v56 = vld [vmem:[%s1215_s30 + $0x84] sm:$0xf0]  ;;  %v842_v58 = vld [vmem:[%s1215_s30 + $0x8] sm:$0xf0]  ;;  %v841_v62 = vor.u32 %v970_v53, %v840_v52 }
  0x4e   : > { %674 = vmatpush.bf16.msra.mxu3 %v933_v30  ;;  %v985_v59 = vld [vmem:[%s1215_s30 + $0x84] sm:$0xf]  ;;  %v906_v60 = vld [vmem:[%s1215_s30 + $0x88] sm:$0xf0]  ;;  %v905_v0 = vor.u32 %v986_v56, %v904_v54  ;;  %v845_v1 = vor.u32 %v969_v57, %v842_v58  ;;  %v467_v3 = vpack.c.b16 %v465_v61, %v465_v61  ;;  %v468_v4 = vpack.c.b16 %v466_v63, %v466_v63  ;;  %v692_v7 = vld [vmem:[%s411_s9] sm:$0x3] }
  0x4f   : > { %v909_v2 = vor.u32 %v985_v59, %v906_v60  ;;  %v694_v9 = vperm.slane %v692_v7, 0  ;;  %v695_v11 = vperm.slane %v692_v7, 1  ;;  %s837_s10 = sshll.u32 %s1317_s6, 2 }
  0x50   : > { %636 = vmatpush.bf16.msra.mxu0 %v857_v36  ;;  %s421_s14 = scalar_lea.vmem %s1309_s3, %s837_s10 }
  0x51   : > { %649 = vmatpush.bf16.msra.mxu1 %v921_v37  ;;  %662 = vmatpush.bf16.msra.mxu2 %v861_v38 }
  0x52   : > { %675 = vmatpush.bf16.msra.mxu3 %v925_v42 }
  0x54   : > { %637 = vmatpush.bf16.msra.mxu0 %v849_v48 }
  0x55   : > { %650 = vmatpush.bf16.msra.mxu1 %v913_v50  ;;  %663 = vmatpush.bf16.msra.mxu2 %v853_v51 }
  0x56   : > { %676 = vmatpush.bf16.msra.mxu3 %v917_v55 }
  0x58   : > { %638 = vmatpush.bf16.msra.mxu0 %v841_v62 }
  0x59   : > { %651 = vmatpush.bf16.msra.mxu1 %v905_v0  ;;  %664 = vmatpush.bf16.msra.mxu2 %v845_v1 }
  0x5a   : > { %677 = vmatpush.bf16.msra.mxu3 %v909_v2 }
  0x5b   : > { %639 = vmatmul.bf16.vlgmr.msra.gmra.mxu0 %v467_v3 }
  0x5c   : > { %652 = vmatmul.bf16.vlgmr.msra.gmra.mxu1 %v468_v4  ;;  %665 = vmatmul.bf16.vlgmr.msra.gmra.mxu2 %v467_v3 }
  0x5d   : > { %678 = vmatmul.bf16.vlgmr.msra.gmra.mxu3 %v468_v4 }
  0xd8   : > { %v640_v5 = vpop.f32.mrf.mxu0 }
  0xd9   : > { %v653_v6 = vpop.f32.mrf.mxu1 }
  0xda   : > { %v654_v8 = vadd.f32 %v653_v6, %v640_v5 }
  0xdc   : > { %v698_v14 = vadd.f32 %v694_v9, %v654_v8 }
  0xdf   : > { %v666_v10 = vpop.f32.mrf.mxu2 }
  0xe0   : > { %v679_v12 = vpop.f32.mrf.mxu3  ;;  %v642_v13 = vpop.f32.mrf.mxu0 }
  0xe1   : > { %v680_v15 = vadd.f32 %v679_v12, %v666_v10  ;;  %v655_v16 = vpop.f32.mrf.mxu1 }
  0xe3   : > { %v699_v17 = vadd.f32 %v695_v11, %v680_v15 }
  0xe5   : > { %v700_v18 = vpack.c.bf16 %v699_v17, %v698_v14 }
  0xe7   : > { %701 = vst [vmem:[%s421_s14] sm:$0xff] %v700_v18  ;;  %v668_v19 = vpop.f32.mrf.mxu2 }
  0xe8   : > { %v681_v20 = vpop.f32.mrf.mxu3 }
  0xe9 PF: > { %s13_s16 = sadd.s32 1, %s1079_s16   ;;  %s1310_s12 = smov %s1067_s13 }
  0xea   : > { %p10_p10 = scmp.ge.s32.totalorder %s13_s16, 4   ;;  %s1311_s13 = smov %s1136_s20 }
  0xeb   : > { %s1312_s14 = smov %s1075_s15  ;;  %s1313_s15 = smov %s1315_s17 }
  0xec   :  { %12 = sbr.rel (!%p10_p10) target bundleno = 3 (0x3), region = 119 }

// kernel: forward.38
= control target key start
LH: loop header
LB: loop body
LE: loop exit
PB: predicated region body
PF: predicated region fallthrough
CT: control target
= control target key end

     0   :  { %s2314_s15 = smov 0   ;;  %s2316_s16 = smov 0   ;;  %s2848_s0 = inlined_call_operand.vmem [shape: bf16[8,4608], index: 0, kind: input, shape index: {}]   ;;  %s2849_s1 = inlined_call_operand.vmem [shape: bf16[4608,512], index: 1, kind: input, shape index: {}]   ;;  %s2850_s2 = inlined_call_operand.vmem [shape: f32[1,512], index: 2, kind: input, shape index: {}]   ;;  %s2851_s3 = inlined_call_operand.vmem [shape: bf16[8,512], index: 3, kind: input, shape index: {}]   ;;  %s2852_s4 = inlined_call_operand.vmem [shape: bf16[8,512], index: 4, kind: output, shape index: {}]  }
   0x1   :  { %s2318_s17 = smov 0   ;;  %s2320_s18 = smov 0  }
   0x2   :  { %s2322_s19 = smov 0   ;;  %s2324_s20 = smov 0  }
   0x3   :  { %s2326_s21 = smov 0  }
   0x4 LB: > { %s26_s22 = sadd.s32 1, %s2278_s19  ;;  %s29_s23 = sadd.s32 1, %s2282_s20  ;;  %s2286_s21 = sphi %s2326_s21, %s14_s21   ;;  %s2282_s20 = sphi %s2324_s20, %s2858_s20   ;;  %s2278_s19 = sphi %s2322_s19, %s2857_s19   ;;  %s2274_s18 = sphi %s2320_s18, %s2856_s18   ;;  %s2270_s17 = sphi %s2318_s17, %s2855_s17   ;;  %s2266_s16 = sphi %s2316_s16, %s2854_s16   ;;  %s2262_s15 = sphi %s2314_s15, %s2853_s15  }
   0x5   : > { %p27_p0 = scmp.ge.s32.totalorder %s26_s22, 6  ;;  %p77_p1 = scmp.ne.s32.totalorder %s2266_s16, %s2262_s15 }
   0x6   : > { %p78_p2 = scmp.eq.s32.totalorder %s2286_s21, 0  ;;  %s70_s27 = sadd.s32 1, %s2266_s16 }
   0x7   : > { %s2860_s22 = smov (%p27_p0, %s26_s22), 0  ;;  %s2862_s23 = smov (!%p27_p0, %s29_s23), %s2282_s20 }
   0x8   : > { %p79_p3 = por %p78_p2, %p77_p1  ;;  %p31_p4 = scmp.ge.s32.totalorder %s2862_s23, 2 }
   0x9   : > { %s65_s24 = ssub.s32 %s2278_s19, %s2860_s22  ;;  %p1677_p6 = scmp.ge.s32.totalorder %s2286_s21, 12 }
   0xa   : > { %s2864_s23 = smov (%p31_p4, %s2862_s23), 0 }
   0xb   : > { %s66_s25 = ssub.s32 %s2282_s20, %s2864_s23  ;;  %185 = sbr.rel (%p1677_p6) target bundleno = 120 (0x78), region = 16 }
   0xc   : > { %s67_s26 = sor.u32 %s66_s25, %s65_s24 }
   0xd   : > { %p68_p5 = scmp.eq.s32.totalorder %s67_s26, 0 }
   0xf   : > { %s2365_s28 = scalar_select %p68_p5, %s2266_s16, %s70_s27  }
  0x10   : > { %201 = sbr.rel (!%p79_p3) target bundleno = 120 (0x78), region = 24  ;;  %s203_s29 = sand.u32 (%p79_p3), 1, %s2266_s16  }
  0x11   : > { %s2173_s30 = smul.u32 (%p79_p3), 768, %s203_s29  ;;  %s1678_s5 = sshll.u32 (%p79_p3), %s2282_s20, 1 }
  0x12   : > { %s2076_s6 = smul.u32 (%p79_p3), 384, %s2278_s19 }
  0x13   : > { %s2379_s12 = scalar_lea.vmem (%p79_p3), [#allocation3], %s2173_s30 }
  0x14   : > { %s209_s7 = sadd.s32 (%p79_p3), %s2076_s6, %s1678_s5 }
  0x15   : > { %s1680_s8 = sshll.u32 %s209_s7, 2 }
  0x16   : > { %s2374_s11 = scalar_lea.vmem %s2849_s1, %s1680_s8 }
  0x17   : > { %v430_v0 = vld [vmem:[%s2374_s11] sm:$0xff]  ;;  %v432_v1 = vld [vmem:[%s2374_s11 + $0x10] sm:$0xff] }
  0x18   : > { %v434_v2 = vld [vmem:[%s2374_s11 + $0x20] sm:$0xff]  ;;  %431 = vst [vmem:[%s2379_s12] sm:$0xff] %v430_v0  ;;  %v436_v3 = vld [vmem:[%s2374_s11 + $0x30] sm:$0xff] }
  0x19   : > { %433 = vst [vmem:[%s2379_s12 + $0x8] sm:$0xff] %v432_v1  ;;  %v438_v4 = vld [vmem:[%s2374_s11 + $0x40] sm:$0xff]  ;;  %v440_v5 = vld [vmem:[%s2374_s11 + $0x50] sm:$0xff] }
  0x1a   : > { %435 = vst [vmem:[%s2379_s12 + $0x10] sm:$0xff] %v434_v2  ;;  %v442_v6 = vld [vmem:[%s2374_s11 + $0x60] sm:$0xff]  ;;  %v444_v7 = vld [vmem:[%s2374_s11 + $0x70] sm:$0xff] }
  0x1b   : > { %437 = vst [vmem:[%s2379_s12 + $0x18] sm:$0xff] %v436_v3  ;;  %v446_v8 = vld [vmem:[%s2374_s11 + $0x80] sm:$0xff]  ;;  %v448_v9 = vld [vmem:[%s2374_s11 + $0x90] sm:$0xff] }
  0x1c   : > { %439 = vst [vmem:[%s2379_s12 + $0x20] sm:$0xff] %v438_v4  ;;  %v450_v10 = vld [vmem:[%s2374_s11 + $0xa0] sm:$0xff]  ;;  %v452_v11 = vld [vmem:[%s2374_s11 + $0xb0] sm:$0xff] }
  0x1d   : > { %441 = vst [vmem:[%s2379_s12 + $0x28] sm:$0xff] %v440_v5  ;;  %v454_v12 = vld [vmem:[%s2374_s11 + $0xc0] sm:$0xff]  ;;  %v456_v13 = vld [vmem:[%s2374_s11 + $0xd0] sm:$0xff] }
  0x1e   : > { %443 = vst [vmem:[%s2379_s12 + $0x30] sm:$0xff] %v442_v6  ;;  %v458_v14 = vld [vmem:[%s2374_s11 + $0xe0] sm:$0xff]  ;;  %v460_v15 = vld [vmem:[%s2374_s11 + $0xf0] sm:$0xff] }
  0x1f   : > { %445 = vst [vmem:[%s2379_s12 + $0x38] sm:$0xff] %v444_v7  ;;  %v462_v16 = vld [vmem:[%s2374_s11 + $0x100] sm:$0xff]  ;;  %v464_v17 = vld [vmem:[%s2374_s11 + $0x110] sm:$0xff] }
  0x20   : > { %447 = vst [vmem:[%s2379_s12 + $0x40] sm:$0xff] %v446_v8  ;;  %v466_v18 = vld [vmem:[%s2374_s11 + $0x120] sm:$0xff]  ;;  %v468_v19 = vld [vmem:[%s2374_s11 + $0x130] sm:$0xff] }
  0x21   : > { %449 = vst [vmem:[%s2379_s12 + $0x48] sm:$0xff] %v448_v9  ;;  %v470_v20 = vld [vmem:[%s2374_s11 + $0x140] sm:$0xff]  ;;  %v472_v21 = vld [vmem:[%s2374_s11 + $0x150] sm:$0xff] }
  0x22   : > { %451 = vst [vmem:[%s2379_s12 + $0x50] sm:$0xff] %v450_v10  ;;  %v474_v22 = vld [vmem:[%s2374_s11 + $0x160] sm:$0xff]  ;;  %v476_v23 = vld [vmem:[%s2374_s11 + $0x170] sm:$0xff] }
  0x23   : > { %453 = vst [vmem:[%s2379_s12 + $0x58] sm:$0xff] %v452_v11  ;;  %v478_v24 = vld [vmem:[%s2374_s11 + $0x180] sm:$0xff]  ;;  %v480_v25 = vld [vmem:[%s2374_s11 + $0x190] sm:$0xff] }
  0x24   : > { %455 = vst [vmem:[%s2379_s12 + $0x60] sm:$0xff] %v454_v12  ;;  %v482_v26 = vld [vmem:[%s2374_s11 + $0x1a0] sm:$0xff]  ;;  %v484_v27 = vld [vmem:[%s2374_s11 + $0x1b0] sm:$0xff] }
  0x25   : > { %457 = vst [vmem:[%s2379_s12 + $0x68] sm:$0xff] %v456_v13  ;;  %v486_v28 = vld [vmem:[%s2374_s11 + $0x1c0] sm:$0xff]  ;;  %v488_v29 = vld [vmem:[%s2374_s11 + $0x1d0] sm:$0xff] }
  0x26   : > { %459 = vst [vmem:[%s2379_s12 + $0x70] sm:$0xff] %v458_v14  ;;  %v490_v30 = vld [vmem:[%s2374_s11 + $0x1e0] sm:$0xff]  ;;  %v492_v31 = vld [vmem:[%s2374_s11 + $0x1f0] sm:$0xff] }
  0x27   : > { %461 = vst [vmem:[%s2379_s12 + $0x78] sm:$0xff] %v460_v15  ;;  %v494_v32 = vld [vmem:[%s2374_s11 + $0x200] sm:$0xff]  ;;  %v496_v33 = vld [vmem:[%s2374_s11 + $0x210] sm:$0xff] }
  0x28   : > { %463 = vst [vmem:[%s2379_s12 + $0x80] sm:$0xff] %v462_v16  ;;  %v498_v34 = vld [vmem:[%s2374_s11 + $0x220] sm:$0xff]  ;;  %v500_v35 = vld [vmem:[%s2374_s11 + $0x230] sm:$0xff] }
  0x29   : > { %465 = vst [vmem:[%s2379_s12 + $0x88] sm:$0xff] %v464_v17  ;;  %v502_v36 = vld [vmem:[%s2374_s11 + $0x240] sm:$0xff]  ;;  %v504_v37 = vld [vmem:[%s2374_s11 + $0x250] sm:$0xff] }
  0x2a   : > { %467 = vst [vmem:[%s2379_s12 + $0x90] sm:$0xff] %v466_v18  ;;  %v506_v38 = vld [vmem:[%s2374_s11 + $0x260] sm:$0xff]  ;;  %v508_v39 = vld [vmem:[%s2374_s11 + $0x270] sm:$0xff] }
  0x2b   : > { %469 = vst [vmem:[%s2379_s12 + $0x98] sm:$0xff] %v468_v19  ;;  %v510_v40 = vld [vmem:[%s2374_s11 + $0x280] sm:$0xff]  ;;  %v512_v41 = vld [vmem:[%s2374_s11 + $0x290] sm:$0xff] }
  0x2c   : > { %471 = vst [vmem:[%s2379_s12 + $0xa0] sm:$0xff] %v470_v20  ;;  %v514_v42 = vld [vmem:[%s2374_s11 + $0x2a0] sm:$0xff]  ;;  %v516_v43 = vld [vmem:[%s2374_s11 + $0x2b0] sm:$0xff] }
  0x2d   : > { %473 = vst [vmem:[%s2379_s12 + $0xa8] sm:$0xff] %v472_v21  ;;  %v518_v44 = vld [vmem:[%s2374_s11 + $0x2c0] sm:$0xff]  ;;  %v520_v45 = vld [vmem:[%s2374_s11 + $0x2d0] sm:$0xff] }
  0x2e   : > { %475 = vst [vmem:[%s2379_s12 + $0xb0] sm:$0xff] %v474_v22  ;;  %v522_v46 = vld [vmem:[%s2374_s11 + $0x2e0] sm:$0xff]  ;;  %v524_v47 = vld [vmem:[%s2374_s11 + $0x2f0] sm:$0xff] }
  0x2f   : > { %477 = vst [vmem:[%s2379_s12 + $0xb8] sm:$0xff] %v476_v23  ;;  %v526_v48 = vld [vmem:[%s2374_s11 + $0x300] sm:$0xff]  ;;  %v528_v49 = vld [vmem:[%s2374_s11 + $0x310] sm:$0xff] }
  0x30   : > { %479 = vst [vmem:[%s2379_s12 + $0xc0] sm:$0xff] %v478_v24  ;;  %v530_v50 = vld [vmem:[%s2374_s11 + $0x320] sm:$0xff]  ;;  %v532_v51 = vld [vmem:[%s2374_s11 + $0x330] sm:$0xff] }
  0x31   : > { %481 = vst [vmem:[%s2379_s12 + $0xc8] sm:$0xff] %v480_v25  ;;  %v534_v52 = vld [vmem:[%s2374_s11 + $0x340] sm:$0xff]  ;;  %v536_v53 = vld [vmem:[%s2374_s11 + $0x350] sm:$0xff] }
  0x32   : > { %483 = vst [vmem:[%s2379_s12 + $0xd0] sm:$0xff] %v482_v26  ;;  %v538_v54 = vld [vmem:[%s2374_s11 + $0x360] sm:$0xff]  ;;  %v540_v55 = vld [vmem:[%s2374_s11 + $0x370] sm:$0xff] }
  0x33   : > { %485 = vst [vmem:[%s2379_s12 + $0xd8] sm:$0xff] %v484_v27  ;;  %v542_v56 = vld [vmem:[%s2374_s11 + $0x380] sm:$0xff]  ;;  %v544_v57 = vld [vmem:[%s2374_s11 + $0x390] sm:$0xff] }
  0x34   : > { %487 = vst [vmem:[%s2379_s12 + $0xe0] sm:$0xff] %v486_v28  ;;  %v546_v58 = vld [vmem:[%s2374_s11 + $0x3a0] sm:$0xff]  ;;  %v548_v59 = vld [vmem:[%s2374_s11 + $0x3b0] sm:$0xff] }
  0x35   : > { %489 = vst [vmem:[%s2379_s12 + $0xe8] sm:$0xff] %v488_v29  ;;  %v550_v60 = vld [vmem:[%s2374_s11 + $0x3c0] sm:$0xff]  ;;  %v552_v61 = vld [vmem:[%s2374_s11 + $0x3d0] sm:$0xff] }
  0x36   : > { %491 = vst [vmem:[%s2379_s12 + $0xf0] sm:$0xff] %v490_v30  ;;  %v554_v62 = vld [vmem:[%s2374_s11 + $0x3e0] sm:$0xff]  ;;  %v556_v63 = vld [vmem:[%s2374_s11 + $0x3f0] sm:$0xff] }
  0x37   : > { %493 = vst [vmem:[%s2379_s12 + $0xf8] sm:$0xff] %v492_v31  ;;  %v558_v0 = vld [vmem:[%s2374_s11 + $0x400] sm:$0xff]  ;;  %v560_v1 = vld [vmem:[%s2374_s11 + $0x410] sm:$0xff] }
  0x38   : > { %495 = vst [vmem:[%s2379_s12 + $0x100] sm:$0xff] %v494_v32  ;;  %v562_v2 = vld [vmem:[%s2374_s11 + $0x420] sm:$0xff]  ;;  %v564_v3 = vld [vmem:[%s2374_s11 + $0x430] sm:$0xff] }
  0x39   : > { %497 = vst [vmem:[%s2379_s12 + $0x108] sm:$0xff] %v496_v33  ;;  %v566_v4 = vld [vmem:[%s2374_s11 + $0x440] sm:$0xff]  ;;  %v568_v5 = vld [vmem:[%s2374_s11 + $0x450] sm:$0xff] }
  0x3a   : > { %499 = vst [vmem:[%s2379_s12 + $0x110] sm:$0xff] %v498_v34  ;;  %v570_v6 = vld [vmem:[%s2374_s11 + $0x460] sm:$0xff]  ;;  %v572_v7 = vld [vmem:[%s2374_s11 + $0x470] sm:$0xff] }
  0x3b   : > { %501 = vst [vmem:[%s2379_s12 + $0x118] sm:$0xff] %v500_v35  ;;  %v574_v8 = vld [vmem:[%s2374_s11 + $0x480] sm:$0xff]  ;;  %v576_v9 = vld [vmem:[%s2374_s11 + $0x490] sm:$0xff] }
  0x3c   : > { %503 = vst [vmem:[%s2379_s12 + $0x120] sm:$0xff] %v502_v36  ;;  %v578_v10 = vld [vmem:[%s2374_s11 + $0x4a0] sm:$0xff]  ;;  %v580_v11 = vld [vmem:[%s2374_s11 + $0x4b0] sm:$0xff] }
  0x3d   : > { %505 = vst [vmem:[%s2379_s12 + $0x128] sm:$0xff] %v504_v37  ;;  %v582_v12 = vld [vmem:[%s2374_s11 + $0x4c0] sm:$0xff]  ;;  %v584_v13 = vld [vmem:[%s2374_s11 + $0x4d0] sm:$0xff] }
  0x3e   : > { %507 = vst [vmem:[%s2379_s12 + $0x130] sm:$0xff] %v506_v38  ;;  %v586_v14 = vld [vmem:[%s2374_s11 + $0x4e0] sm:$0xff]  ;;  %v588_v15 = vld [vmem:[%s2374_s11 + $0x4f0] sm:$0xff] }
  0x3f   : > { %509 = vst [vmem:[%s2379_s12 + $0x138] sm:$0xff] %v508_v39  ;;  %v590_v16 = vld [vmem:[%s2374_s11 + $0x500] sm:$0xff]  ;;  %v592_v17 = vld [vmem:[%s2374_s11 + $0x510] sm:$0xff] }
  0x40   : > { %511 = vst [vmem:[%s2379_s12 + $0x140] sm:$0xff] %v510_v40  ;;  %v594_v18 = vld [vmem:[%s2374_s11 + $0x520] sm:$0xff]  ;;  %v596_v19 = vld [vmem:[%s2374_s11 + $0x530] sm:$0xff] }
  0x41   : > { %513 = vst [vmem:[%s2379_s12 + $0x148] sm:$0xff] %v512_v41  ;;  %v598_v20 = vld [vmem:[%s2374_s11 + $0x540] sm:$0xff]  ;;  %v600_v21 = vld [vmem:[%s2374_s11 + $0x550] sm:$0xff] }
  0x42   : > { %515 = vst [vmem:[%s2379_s12 + $0x150] sm:$0xff] %v514_v42  ;;  %v602_v22 = vld [vmem:[%s2374_s11 + $0x560] sm:$0xff]  ;;  %v604_v23 = vld [vmem:[%s2374_s11 + $0x570] sm:$0xff] }
  0x43   : > { %517 = vst [vmem:[%s2379_s12 + $0x158] sm:$0xff] %v516_v43  ;;  %v606_v24 = vld [vmem:[%s2374_s11 + $0x580] sm:$0xff]  ;;  %v608_v25 = vld [vmem:[%s2374_s11 + $0x590] sm:$0xff] }
  0x44   : > { %519 = vst [vmem:[%s2379_s12 + $0x160] sm:$0xff] %v518_v44  ;;  %v610_v26 = vld [vmem:[%s2374_s11 + $0x5a0] sm:$0xff]  ;;  %v612_v27 = vld [vmem:[%s2374_s11 + $0x5b0] sm:$0xff] }
  0x45   : > { %521 = vst [vmem:[%s2379_s12 + $0x168] sm:$0xff] %v520_v45  ;;  %v614_v28 = vld [vmem:[%s2374_s11 + $0x5c0] sm:$0xff]  ;;  %v616_v29 = vld [vmem:[%s2374_s11 + $0x5d0] sm:$0xff] }
  0x46   : > { %523 = vst [vmem:[%s2379_s12 + $0x170] sm:$0xff] %v522_v46  ;;  %v618_v30 = vld [vmem:[%s2374_s11 + $0x5e0] sm:$0xff]  ;;  %v620_v31 = vld [vmem:[%s2374_s11 + $0x5f0] sm:$0xff] }
  0x47   : > { %525 = vst [vmem:[%s2379_s12 + $0x178] sm:$0xff] %v524_v47 }
  0x48   : > { %527 = vst [vmem:[%s2379_s12 + $0x180] sm:$0xff] %v526_v48 }
  0x49   : > { %529 = vst [vmem:[%s2379_s12 + $0x188] sm:$0xff] %v528_v49 }
  0x4a   : > { %531 = vst [vmem:[%s2379_s12 + $0x190] sm:$0xff] %v530_v50 }
  0x4b   : > { %533 = vst [vmem:[%s2379_s12 + $0x198] sm:$0xff] %v532_v51 }
  0x4c   : > { %535 = vst [vmem:[%s2379_s12 + $0x1a0] sm:$0xff] %v534_v52 }
  0x4d   : > { %537 = vst [vmem:[%s2379_s12 + $0x1a8] sm:$0xff] %v536_v53 }
  0x4e   : > { %539 = vst [vmem:[%s2379_s12 + $0x1b0] sm:$0xff] %v538_v54 }
  0x4f   : > { %541 = vst [vmem:[%s2379_s12 + $0x1b8] sm:$0xff] %v540_v55 }
  0x50   : > { %543 = vst [vmem:[%s2379_s12 + $0x1c0] sm:$0xff] %v542_v56 }
  0x51   : > { %545 = vst [vmem:[%s2379_s12 + $0x1c8] sm:$0xff] %v544_v57 }
  0x52   : > { %547 = vst [vmem:[%s2379_s12 + $0x1d0] sm:$0xff] %v546_v58 }
  0x53   : > { %549 = vst [vmem:[%s2379_s12 + $0x1d8] sm:$0xff] %v548_v59 }
  0x54   : > { %551 = vst [vmem:[%s2379_s12 + $0x1e0] sm:$0xff] %v550_v60 }
  0x55   : > { %553 = vst [vmem:[%s2379_s12 + $0x1e8] sm:$0xff] %v552_v61 }
  0x56   : > { %555 = vst [vmem:[%s2379_s12 + $0x1f0] sm:$0xff] %v554_v62 }
  0x57   : > { %557 = vst [vmem:[%s2379_s12 + $0x1f8] sm:$0xff] %v556_v63 }
  0x58   : > { %559 = vst [vmem:[%s2379_s12 + $0x200] sm:$0xff] %v558_v0 }
  0x59   : > { %561 = vst [vmem:[%s2379_s12 + $0x208] sm:$0xff] %v560_v1 }
  0x5a   : > { %563 = vst [vmem:[%s2379_s12 + $0x210] sm:$0xff] %v562_v2 }
  0x5b   : > { %565 = vst [vmem:[%s2379_s12 + $0x218] sm:$0xff] %v564_v3 }
  0x5c   : > { %567 = vst [vmem:[%s2379_s12 + $0x220] sm:$0xff] %v566_v4 }
  0x5d   : > { %569 = vst [vmem:[%s2379_s12 + $0x228] sm:$0xff] %v568_v5 }
  0x5e   : > { %571 = vst [vmem:[%s2379_s12 + $0x230] sm:$0xff] %v570_v6 }
  0x5f   : > { %573 = vst [vmem:[%s2379_s12 + $0x238] sm:$0xff] %v572_v7 }
  0x60   : > { %575 = vst [vmem:[%s2379_s12 + $0x240] sm:$0xff] %v574_v8 }
  0x61   : > { %577 = vst [vmem:[%s2379_s12 + $0x248] sm:$0xff] %v576_v9 }
  0x62   : > { %579 = vst [vmem:[%s2379_s12 + $0x250] sm:$0xff] %v578_v10 }
  0x63   : > { %581 = vst [vmem:[%s2379_s12 + $0x258] sm:$0xff] %v580_v11 }
  0x64   : > { %583 = vst [vmem:[%s2379_s12 + $0x260] sm:$0xff] %v582_v12 }
  0x65   : > { %585 = vst [vmem:[%s2379_s12 + $0x268] sm:$0xff] %v584_v13 }
  0x66   : > { %587 = vst [vmem:[%s2379_s12 + $0x270] sm:$0xff] %v586_v14 }
  0x67   : > { %589 = vst [vmem:[%s2379_s12 + $0x278] sm:$0xff] %v588_v15 }
  0x68   : > { %591 = vst [vmem:[%s2379_s12 + $0x280] sm:$0xff] %v590_v16 }
  0x69   : > { %593 = vst [vmem:[%s2379_s12 + $0x288] sm:$0xff] %v592_v17 }
  0x6a   : > { %595 = vst [vmem:[%s2379_s12 + $0x290] sm:$0xff] %v594_v18 }
  0x6b   : > { %597 = vst [vmem:[%s2379_s12 + $0x298] sm:$0xff] %v596_v19 }
  0x6c   : > { %599 = vst [vmem:[%s2379_s12 + $0x2a0] sm:$0xff] %v598_v20 }
  0x6d   : > { %601 = vst [vmem:[%s2379_s12 + $0x2a8] sm:$0xff] %v600_v21 }
  0x6e   : > { %603 = vst [vmem:[%s2379_s12 + $0x2b0] sm:$0xff] %v602_v22 }
  0x6f   : > { %605 = vst [vmem:[%s2379_s12 + $0x2b8] sm:$0xff] %v604_v23 }
  0x70   : > { %607 = vst [vmem:[%s2379_s12 + $0x2c0] sm:$0xff] %v606_v24 }
  0x71   : > { %609 = vst [vmem:[%s2379_s12 + $0x2c8] sm:$0xff] %v608_v25 }
  0x72   : > { %611 = vst [vmem:[%s2379_s12 + $0x2d0] sm:$0xff] %v610_v26 }
  0x73   : > { %613 = vst [vmem:[%s2379_s12 + $0x2d8] sm:$0xff] %v612_v27 }
  0x74   : > { %615 = vst [vmem:[%s2379_s12 + $0x2e0] sm:$0xff] %v614_v28 }
  0x75   : > { %617 = vst [vmem:[%s2379_s12 + $0x2e8] sm:$0xff] %v616_v29 }
  0x76   : > { %619 = vst [vmem:[%s2379_s12 + $0x2f0] sm:$0xff] %v618_v30 }
  0x77   : > { %621 = vst [vmem:[%s2379_s12 + $0x2f8] sm:$0xff] %v620_v31 }
  0x78 PF: > { %p1681_p7 = scmp.ge.s32.totalorder %s2286_s21, 1  ;;  %p647_p8 = scmp.lt.s32.totalorder %s2286_s21, 13 }
  0x7a   : > { %p648_p9 = pnand %p1681_p7, %p647_p8 }
  0x7b   : > { %s654_s13 = sand.u32 (!%p648_p9), 1, %s2262_s15   ;;  %s705_s14 = smul.u32 (!%p648_p9), 6, %s2270_s17 }
  0x7c   : > { %651 = sbr.rel (%p648_p9) target bundleno = 396 (0x18c), region = 70  ;;  %s1683_s25 = sshll.u32 (!%p648_p9), %s2274_s18, 1 }
  0x7d   : > { %s2174_s24 = smul.u32 (!%p648_p9), 768, %s654_s13  ;;  %p708_p10 = scmp.lt.s32.totalorder (!%p648_p9), %s705_s14, 35 }
  0x7e   : > { %p718_p11 = scmp.lt.s32.totalorder (!%p648_p9), %s1683_s25, 3  ;;  %p1688_p12 = scmp.ne.s32.totalorder (!%p648_p9), %s2270_s17, 0 }
  0x7f   : > { %s2597_s13 = scalar_lea.vmem (!%p648_p9), [#allocation3], %s2174_s24 }
  0x81   : > { %s2866_s14 = smov (!%p708_p10, %s705_s14), 35  ;;  %s2868_s25 = smov (!%p718_p11, %s1683_s25), 3 }
  0x82   : > { %s1682_s26 = sshll.u32 %s2866_s14, 2  ;;  %s720_s15 = scalar_lea.vmem %s2850_s2, %s2868_s25 }
  0x83   : > { %s2580_s30 = scalar_lea.vmem %s2848_s0, %s1682_s26  ;;  %s1685_s7 = sshll.u32 %s2868_s25, 2 }
  0x84   : > { %s2590_s9 = scalar_lea.vmem %s2851_s3, %s1685_s7  ;;  %s2595_s12 = scalar_lea.vmem %s2852_s4, %s1685_s7 }
  0x85   : > { %745 = sbr.rel (%p1688_p12) target bundleno = 141 (0x8d), region = 78 }
  0x8a   : > { %v2288_v32 = vmov 0.0  }
  0x8b   : > { %746 = vst [vmem:[#allocation2] sm:$0xff] %v2288_v32 }
  0x8c   : > { %747 = vst [vmem:[#allocation2 + $0x8] sm:$0xff] %v2288_v32 }
  0x8d PF: > { %v1747_v33 = vld [vmem:[%s2597_s13 + $0x70] sm:$0xf]  ;;  %v2092_v34 = vld [vmem:[%s2597_s13 + $0x74] sm:$0xf0]  ;;  %v1739_v44 = vld [vmem:[%s2597_s13 + $0x60] sm:$0xf] }
  0x8e   : > { %v1811_v35 = vld [vmem:[%s2597_s13 + $0xf0] sm:$0xf]  ;;  %v1748_v36 = vor.u32 %v2092_v34, %v1747_v33  ;;  %v2108_v37 = vld [vmem:[%s2597_s13 + $0xf4] sm:$0xf0]  ;;  %v2090_v46 = vld [vmem:[%s2597_s13 + $0x64] sm:$0xf0] }
  0x8f   : > { %v1875_v38 = vld [vmem:[%s2597_s13 + $0x170] sm:$0xf]  ;;  %v2124_v39 = vld [vmem:[%s2597_s13 + $0x174] sm:$0xf0]  ;;  %v1812_v40 = vor.u32 %v2108_v37, %v1811_v35  ;;  %v1803_v47 = vld [vmem:[%s2597_s13 + $0xe0] sm:$0xf]  ;;  %v1740_v49 = vor.u32 %v2090_v46, %v1739_v44 }
  0x90   : > { %v1876_v41 = vor.u32 %v2124_v39, %v1875_v38  ;;  %v1939_v42 = vld [vmem:[%s2597_s13 + $0x1f0] sm:$0xf]  ;;  %v2140_v43 = vld [vmem:[%s2597_s13 + $0x1f4] sm:$0xf0]  ;;  %1350 = vmatpush.bf16.msra.mxu0 %v1748_v36  ;;  %v2106_v48 = vld [vmem:[%s2597_s13 + $0xe4] sm:$0xf0] }
  0x91   : > { %v1940_v45 = vor.u32 %v2140_v43, %v1939_v42  ;;  %1363 = vmatpush.bf16.msra.mxu1 %v1812_v40  ;;  %v1804_v50 = vor.u32 %v2106_v48, %v1803_v47  ;;  %v1867_v51 = vld [vmem:[%s2597_s13 + $0x160] sm:$0xf]  ;;  %v2122_v52 = vld [vmem:[%s2597_s13 + $0x164] sm:$0xf0]  ;;  %v1731_v56 = vld [vmem:[%s2597_s13 + $0x50] sm:$0xf] }
  0x92   : > { %1376 = vmatpush.bf16.msra.mxu2 %v1876_v41  ;;  %v1931_v53 = vld [vmem:[%s2597_s13 + $0x1e0] sm:$0xf]  ;;  %v1868_v54 = vor.u32 %v2122_v52, %v1867_v51  ;;  %v2138_v55 = vld [vmem:[%s2597_s13 + $0x1e4] sm:$0xf0]  ;;  %v2088_v57 = vld [vmem:[%s2597_s13 + $0x54] sm:$0xf0] }
  0x93   : > { %1389 = vmatpush.bf16.msra.mxu3 %v1940_v45  ;;  %v1932_v58 = vor.u32 %v2138_v55, %v1931_v53  ;;  %v1795_v59 = vld [vmem:[%s2597_s13 + $0xd0] sm:$0xf]  ;;  %v2104_v60 = vld [vmem:[%s2597_s13 + $0xd4] sm:$0xf0]  ;;  %v1732_v62 = vor.u32 %v2088_v57, %v1731_v56  ;;  %v1723_v4 = vld [vmem:[%s2597_s13 + $0x40] sm:$0xf] }
  0x94   : > { %v1859_v61 = vld [vmem:[%s2597_s13 + $0x150] sm:$0xf]  ;;  %1351 = vmatpush.bf16.msra.mxu0 %v1740_v49  ;;  %v2120_v63 = vld [vmem:[%s2597_s13 + $0x154] sm:$0xf0]  ;;  %v1796_v2 = vor.u32 %v2104_v60, %v1795_v59  ;;  %v2086_v5 = vld [vmem:[%s2597_s13 + $0x44] sm:$0xf0] }
  0x95   : > { %v1923_v0 = vld [vmem:[%s2597_s13 + $0x1d0] sm:$0xf]  ;;  %v2136_v1 = vld [vmem:[%s2597_s13 + $0x1d4] sm:$0xf0]  ;;  %1364 = vmatpush.bf16.msra.mxu1 %v1804_v50  ;;  %v1860_v3 = vor.u32 %v2120_v63, %v1859_v61  ;;  %v1787_v6 = vld [vmem:[%s2597_s13 + $0xc0] sm:$0xf]  ;;  %v1724_v13 = vor.u32 %v2086_v5, %v1723_v4 }
  0x96   : > { %1377 = vmatpush.bf16.msra.mxu2 %v1868_v54  ;;  %v1924_v7 = vor.u32 %v2136_v1, %v1923_v0  ;;  %v2102_v8 = vld [vmem:[%s2597_s13 + $0xc4] sm:$0xf0]  ;;  %v1851_v9 = vld [vmem:[%s2597_s13 + $0x140] sm:$0xf]  ;;  %v1715_v16 = vld [vmem:[%s2597_s13 + $0x30] sm:$0xf] }
  0x97   : > { %1390 = vmatpush.bf16.msra.mxu3 %v1932_v58  ;;  %v2118_v10 = vld [vmem:[%s2597_s13 + $0x144] sm:$0xf0]  ;;  %v1915_v11 = vld [vmem:[%s2597_s13 + $0x1c0] sm:$0xf]  ;;  %v1788_v14 = vor.u32 %v2102_v8, %v1787_v6  ;;  %v2084_v17 = vld [vmem:[%s2597_s13 + $0x34] sm:$0xf0] }
  0x98   : > { %v2134_v12 = vld [vmem:[%s2597_s13 + $0x1c4] sm:$0xf0]  ;;  %1352 = vmatpush.bf16.msra.mxu0 %v1732_v62  ;;  %v1852_v15 = vor.u32 %v2118_v10, %v1851_v9  ;;  %v1779_v18 = vld [vmem:[%s2597_s13 + $0xb0] sm:$0xf]  ;;  %v2100_v20 = vld [vmem:[%s2597_s13 + $0xb4] sm:$0xf0]  ;;  %v1716_v25 = vor.u32 %v2084_v17, %v1715_v16 }
  0x99   : > { %1365 = vmatpush.bf16.msra.mxu1 %v1796_v2  ;;  %v1916_v19 = vor.u32 %v2134_v12, %v1915_v11  ;;  %v1843_v21 = vld [vmem:[%s2597_s13 + $0x130] sm:$0xf]  ;;  %v2116_v22 = vld [vmem:[%s2597_s13 + $0x134] sm:$0xf0]  ;;  %v1780_v26 = vor.u32 %v2100_v20, %v1779_v18  ;;  %v1707_v28 = vld [vmem:[%s2597_s13 + $0x20] sm:$0xf] }
  0x9a   : > { %1378 = vmatpush.bf16.msra.mxu2 %v1860_v3  ;;  %v1907_v23 = vld [vmem:[%s2597_s13 + $0x1b0] sm:$0xf]  ;;  %v2132_v24 = vld [vmem:[%s2597_s13 + $0x1b4] sm:$0xf0]  ;;  %v1844_v27 = vor.u32 %v2116_v22, %v1843_v21  ;;  %v2082_v29 = vld [vmem:[%s2597_s13 + $0x24] sm:$0xf0] }
  0x9b   : > { %1391 = vmatpush.bf16.msra.mxu3 %v1924_v7  ;;  %v1771_v30 = vld [vmem:[%s2597_s13 + $0xa0] sm:$0xf]  ;;  %v1908_v31 = vor.u32 %v2132_v24, %v1907_v23  ;;  %v2098_v32 = vld [vmem:[%s2597_s13 + $0xa4] sm:$0xf0]  ;;  %v1708_v37 = vor.u32 %v2082_v29, %v1707_v28  ;;  %v1699_v40 = vld [vmem:[%s2597_s13 + $0x10] sm:$0xf] }
  0x9c   : > { %1353 = vmatpush.bf16.msra.mxu0 %v1724_v13  ;;  %v1835_v33 = vld [vmem:[%s2597_s13 + $0x120] sm:$0xf]  ;;  %v2114_v34 = vld [vmem:[%s2597_s13 + $0x124] sm:$0xf0]  ;;  %v1772_v38 = vor.u32 %v2098_v32, %v1771_v30  ;;  %v2080_v41 = vld [vmem:[%s2597_s13 + $0x14] sm:$0xf0] }
  0x9d   : > { %1366 = vmatpush.bf16.msra.mxu1 %v1788_v14  ;;  %v1899_v35 = vld [vmem:[%s2597_s13 + $0x1a0] sm:$0xf]  ;;  %v2130_v36 = vld [vmem:[%s2597_s13 + $0x1a4] sm:$0xf0]  ;;  %v1836_v39 = vor.u32 %v2114_v34, %v1835_v33  ;;  %v1763_v42 = vld [vmem:[%s2597_s13 + $0x90] sm:$0xf]  ;;  %v1700_v49 = vor.u32 %v2080_v41, %v1699_v40 }
  0x9e   : > { %1379 = vmatpush.bf16.msra.mxu2 %v1852_v15  ;;  %v1900_v43 = vor.u32 %v2130_v36, %v1899_v35  ;;  %v2096_v44 = vld [vmem:[%s2597_s13 + $0x94] sm:$0xf0]  ;;  %v1827_v45 = vld [vmem:[%s2597_s13 + $0x110] sm:$0xf]  ;;  %v1691_v50 = vld [vmem:[%s2597_s13] sm:$0xf] }
  0x9f   : > { %1392 = vmatpush.bf16.msra.mxu3 %v1916_v19  ;;  %v2112_v46 = vld [vmem:[%s2597_s13 + $0x114] sm:$0xf0]  ;;  %v1891_v47 = vld [vmem:[%s2597_s13 + $0x190] sm:$0xf]  ;;  %v2078_v51 = vld [vmem:[%s2597_s13 + $0x4] sm:$0xf0]  ;;  %v1764_v52 = vor.u32 %v2096_v44, %v1763_v42 }
  0xa0   : > { %1354 = vmatpush.bf16.msra.mxu0 %v1716_v25  ;;  %v2128_v48 = vld [vmem:[%s2597_s13 + $0x194] sm:$0xf0]  ;;  %v1828_v53 = vor.u32 %v2112_v46, %v1827_v45  ;;  %v1755_v54 = vld [vmem:[%s2597_s13 + $0x80] sm:$0xf]  ;;  %v2094_v55 = vld [vmem:[%s2597_s13 + $0x84] sm:$0xf0]  ;;  %v1692_v0 = vor.u32 %v2078_v51, %v1691_v50 }
  0xa1   : > { %1367 = vmatpush.bf16.msra.mxu1 %v1780_v26  ;;  %v1819_v56 = vld [vmem:[%s2597_s13 + $0x100] sm:$0xf]  ;;  %v1892_v57 = vor.u32 %v2128_v48, %v1891_v47  ;;  %v2110_v58 = vld [vmem:[%s2597_s13 + $0x104] sm:$0xf0]  ;;  %v2003_v61 = vld [vmem:[%s2597_s13 + $0x270] sm:$0xf]  ;;  %v1756_v4 = vor.u32 %v2094_v55, %v1755_v54 }
  0xa2   : > { %1380 = vmatpush.bf16.msra.mxu2 %v1844_v27  ;;  %v1883_v59 = vld [vmem:[%s2597_s13 + $0x180] sm:$0xf]  ;;  %v2126_v60 = vld [vmem:[%s2597_s13 + $0x184] sm:$0xf0]  ;;  %v2156_v62 = vld [vmem:[%s2597_s13 + $0x274] sm:$0xf0]  ;;  %v1820_v5 = vor.u32 %v2110_v58, %v1819_v56 }
  0xa3   : > { %1393 = vmatpush.bf16.msra.mxu3 %v1908_v31  ;;  %v2067_v63 = vld [vmem:[%s2597_s13 + $0x2f0] sm:$0xf]  ;;  %v2172_v1 = vld [vmem:[%s2597_s13 + $0x2f4] sm:$0xf0]  ;;  %v2091_v2 = vld [vmem:[%s2597_s13 + $0x74] sm:$0xf]  ;;  %v1884_v8 = vor.u32 %v2126_v60, %v1883_v59  ;;  %v2004_v9 = vor.u32 %v2156_v62, %v2003_v61 }
  0xa4   : > { %1355 = vmatpush.bf16.msra.mxu0 %v1708_v37  ;;  %v1749_v3 = vld [vmem:[%s2597_s13 + $0x78] sm:$0xf0]  ;;  %v2107_v6 = vld [vmem:[%s2597_s13 + $0xf4] sm:$0xf]  ;;  %v2068_v10 = vor.u32 %v2172_v1, %v2067_v63  ;;  %v1995_v12 = vld [vmem:[%s2597_s13 + $0x260] sm:$0xf] }
  0xa5   : > { %1368 = vmatpush.bf16.msra.mxu1 %v1772_v38  ;;  %v1813_v7 = vld [vmem:[%s2597_s13 + $0xf8] sm:$0xf0]  ;;  %v1752_v11 = vor.u32 %v2091_v2, %v1749_v3  ;;  %v2154_v13 = vld [vmem:[%s2597_s13 + $0x264] sm:$0xf0]  ;;  %v2059_v14 = vld [vmem:[%s2597_s13 + $0x2e0] sm:$0xf] }
  0xa6   : > { %1381 = vmatpush.bf16.msra.mxu2 %v1836_v39  ;;  %v1816_v15 = vor.u32 %v2107_v6, %v1813_v7  ;;  %v2170_v16 = vld [vmem:[%s2597_s13 + $0x2e4] sm:$0xf0]  ;;  %v2089_v17 = vld [vmem:[%s2597_s13 + $0x64] sm:$0xf]  ;;  %v1741_v18 = vld [vmem:[%s2597_s13 + $0x68] sm:$0xf0]  ;;  %v1996_v21 = vor.u32 %v2154_v13, %v1995_v12 }
  0xa7   : > { %1394 = vmatpush.bf16.msra.mxu3 %v1900_v43  ;;  %v2105_v19 = vld [vmem:[%s2597_s13 + $0xe4] sm:$0xf]  ;;  %v1805_v20 = vld [vmem:[%s2597_s13 + $0xe8] sm:$0xf0]  ;;  %v1987_v22 = vld [vmem:[%s2597_s13 + $0x250] sm:$0xf]  ;;  %v2060_v24 = vor.u32 %v2170_v16, %v2059_v14  ;;  %v1744_v25 = vor.u32 %v2089_v17, %v1741_v18 }
  0xa8   : > { %1356 = vmatpush.bf16.msra.mxu0 %v1700_v49  ;;  %v2152_v23 = vld [vmem:[%s2597_s13 + $0x254] sm:$0xf0]  ;;  %v2051_v26 = vld [vmem:[%s2597_s13 + $0x2d0] sm:$0xf]  ;;  %v1808_v29 = vor.u32 %v2105_v19, %v1805_v20  ;;  %v2087_v30 = vld [vmem:[%s2597_s13 + $0x54] sm:$0xf] }
  0xa9   : > { %1369 = vmatpush.bf16.msra.mxu1 %v1764_v52  ;;  %v2168_v27 = vld [vmem:[%s2597_s13 + $0x2d4] sm:$0xf0]  ;;  %v750_v28 = vld [vmem:[%s2580_s30] sm:$0xff]  ;;  %v1733_v31 = vld [vmem:[%s2597_s13 + $0x58] sm:$0xf0]  ;;  %v1988_v39 = vor.u32 %v2152_v23, %v1987_v22  ;;  %p2073_p13 = scmp.ne.s32.totalorder %s2270_s17, 5 }
  0xaa   : > { %1382 = vmatpush.bf16.msra.mxu2 %v1828_v53  ;;  %v852_v32 = vunpack.c.l.b16 %v750_v28  ;;  %v751_v33 = vld [vmem:[%s2580_s30 + $0x8] sm:$0xff]  ;;  %v853_v34 = vunpack.c.h.b16 %v750_v28  ;;  %v2103_v35 = vld [vmem:[%s2597_s13 + $0xd4] sm:$0xf]  ;;  %v2052_v40 = vor.u32 %v2168_v27, %v2051_v26  ;;  %v1736_v43 = vor.u32 %v2087_v30, %v1733_v31  ;;  %v1979_v44 = vld [vmem:[%s2597_s13 + $0x240] sm:$0xf] }
  0xab   : > { %1395 = vmatpush.bf16.msra.mxu3 %v1892_v57  ;;  %v1797_v36 = vld [vmem:[%s2597_s13 + $0xd8] sm:$0xf0]  ;;  %v854_v37 = vunpack.c.l.b16 %v751_v33  ;;  %v855_v38 = vunpack.c.h.b16 %v751_v33  ;;  %v2150_v45 = vld [vmem:[%s2597_s13 + $0x244] sm:$0xf0]  ;;  %v2043_v46 = vld [vmem:[%s2597_s13 + $0x2c0] sm:$0xf] }
  0xac   : > { %1357 = vmatpush.bf16.msra.mxu0 %v1692_v0  ;;  %v2690_v41 = vpack.c.b16 %v852_v32, %v852_v32  ;;  %v2692_v42 = vpack.c.b16 %v853_v34, %v853_v34  ;;  %v1800_v49 = vor.u32 %v2103_v35, %v1797_v36  ;;  %v2166_v50 = vld [vmem:[%s2597_s13 + $0x2c4] sm:$0xf0]  ;;  %v2085_v51 = vld [vmem:[%s2597_s13 + $0x44] sm:$0xf]  ;;  %v1725_v52 = vld [vmem:[%s2597_s13 + $0x48] sm:$0xf0]  ;;  %v1980_v55 = vor.u32 %v2150_v45, %v1979_v44 }
  0xad   : > { %1370 = vmatpush.bf16.msra.mxu1 %v1756_v4  ;;  %v2697_v47 = vpack.c.b16 %v854_v37, %v854_v37  ;;  %v2699_v48 = vpack.c.b16 %v855_v38, %v855_v38  ;;  %v2101_v53 = vld [vmem:[%s2597_s13 + $0xc4] sm:$0xf]  ;;  %v1789_v54 = vld [vmem:[%s2597_s13 + $0xc8] sm:$0xf0]  ;;  %v2044_v56 = vor.u32 %v2166_v50, %v2043_v46  ;;  %v1728_v57 = vor.u32 %v2085_v51, %v1725_v52  ;;  %v1971_v58 = vld [vmem:[%s2597_s13 + $0x230] sm:$0xf] }
  0xae   : > { %1383 = vmatpush.bf16.msra.mxu2 %v1820_v5  ;;  %v2148_v59 = vld [vmem:[%s2597_s13 + $0x234] sm:$0xf0]  ;;  %v2035_v60 = vld [vmem:[%s2597_s13 + $0x2b0] sm:$0xf]  ;;  %v1792_v61 = vor.u32 %v2101_v53, %v1789_v54  ;;  %v2083_v63 = vld [vmem:[%s2597_s13 + $0x34] sm:$0xf] }
  0xaf   : > { %1396 = vmatpush.bf16.msra.mxu3 %v1884_v8  ;;  %1358 = vmatmul.bf16.vlgmr.msra.gmra.mxu0 %v2690_v41  ;;  %v2164_v62 = vld [vmem:[%s2597_s13 + $0x2b4] sm:$0xf0]  ;;  %v1717_v0 = vld [vmem:[%s2597_s13 + $0x38] sm:$0xf0]  ;;  %v2099_v1 = vld [vmem:[%s2597_s13 + $0xb4] sm:$0xf]  ;;  %v1972_v3 = vor.u32 %v2148_v59, %v1971_v58 }
  0xb0   : > { %1402 = vmatpush.bf16.msrb.mxu0 %v2004_v9  ;;  %1371 = vmatmul.bf16.vlgmr.msra.gmra.mxu1 %v2692_v42  ;;  %v1781_v2 = vld [vmem:[%s2597_s13 + $0xb8] sm:$0xf0]  ;;  %v2036_v4 = vor.u32 %v2164_v62, %v2035_v60  ;;  %v1720_v5 = vor.u32 %v2083_v63, %v1717_v0  ;;  %v1963_v6 = vld [vmem:[%s2597_s13 + $0x220] sm:$0xf]  ;;  %v2146_v7 = vld [vmem:[%s2597_s13 + $0x224] sm:$0xf0] }
  0xb1   : > { %1415 = vmatpush.bf16.msrb.mxu1 %v2068_v10  ;;  %1384 = vmatmul.bf16.vlgmr.msra.gmra.mxu2 %v2697_v47  ;;  %v2027_v8 = vld [vmem:[%s2597_s13 + $0x2a0] sm:$0xf]  ;;  %v1784_v9 = vor.u32 %v2099_v1, %v1781_v2  ;;  %v2162_v10 = vld [vmem:[%s2597_s13 + $0x2a4] sm:$0xf0]  ;;  %v1709_v12 = vld [vmem:[%s2597_s13 + $0x28] sm:$0xf0] }
  0xb2   : > { %1428 = vmatpush.bf16.msrb.mxu2 %v1752_v11  ;;  %1397 = vmatmul.bf16.vlgmr.msra.gmra.mxu3 %v2699_v48  ;;  %v2081_v11 = vld [vmem:[%s2597_s13 + $0x24] sm:$0xf]  ;;  %v1773_v14 = vld [vmem:[%s2597_s13 + $0xa8] sm:$0xf0]  ;;  %v2028_v16 = vor.u32 %v2162_v10, %v2027_v8  ;;  %v1955_v18 = vld [vmem:[%s2597_s13 + $0x210] sm:$0xf] }
  0xb3   : > { %1441 = vmatpush.bf16.msrb.mxu3 %v1816_v15  ;;  %v2097_v13 = vld [vmem:[%s2597_s13 + $0xa4] sm:$0xf]  ;;  %v1964_v15 = vor.u32 %v2146_v7, %v1963_v6  ;;  %v1712_v17 = vor.u32 %v2081_v11, %v1709_v12  ;;  %v2144_v19 = vld [vmem:[%s2597_s13 + $0x214] sm:$0xf0]  ;;  %v2019_v20 = vld [vmem:[%s2597_s13 + $0x290] sm:$0xf] }
  0xb4   : > { %1403 = vmatpush.bf16.msrb.mxu0 %v1996_v21  ;;  %v1776_v21 = vor.u32 %v2097_v13, %v1773_v14  ;;  %v2160_v22 = vld [vmem:[%s2597_s13 + $0x294] sm:$0xf0]  ;;  %v2079_v23 = vld [vmem:[%s2597_s13 + $0x14] sm:$0xf]  ;;  %v1765_v26 = vld [vmem:[%s2597_s13 + $0x98] sm:$0xf0]  ;;  %v1956_v27 = vor.u32 %v2144_v19, %v1955_v18 }
  0xb5   : > { %1416 = vmatpush.bf16.msrb.mxu1 %v2060_v24  ;;  %v1701_v24 = vld [vmem:[%s2597_s13 + $0x18] sm:$0xf0]  ;;  %v1947_v28 = vld [vmem:[%s2597_s13 + $0x200] sm:$0xf]  ;;  %v2020_v31 = vor.u32 %v2160_v22, %v2019_v20  ;;  %v2158_v33 = vld [vmem:[%s2597_s13 + $0x284] sm:$0xf0] }
  0xb6   : > { %1429 = vmatpush.bf16.msrb.mxu2 %v1744_v25  ;;  %v2095_v25 = vld [vmem:[%s2597_s13 + $0x94] sm:$0xf]  ;;  %v2011_v30 = vld [vmem:[%s2597_s13 + $0x280] sm:$0xf]  ;;  %v1704_v32 = vor.u32 %v2079_v23, %v1701_v24  ;;  %v2077_v34 = vld [vmem:[%s2597_s13 + $0x4] sm:$0xf] }
  0xb7   : > { %1442 = vmatpush.bf16.msrb.mxu3 %v1808_v29  ;;  %v2142_v29 = vld [vmem:[%s2597_s13 + $0x204] sm:$0xf0]  ;;  %v752_v35 = vld [vmem:[%s2580_s30 + $0x10] sm:$0xff]  ;;  %v1768_v36 = vor.u32 %v2095_v25, %v1765_v26  ;;  %v1693_v37 = vld [vmem:[%s2597_s13 + $0x8] sm:$0xf0]  ;;  %v2012_v52 = vor.u32 %v2158_v33, %v2011_v30 }
  0xb8   : > { %1404 = vmatpush.bf16.msrb.mxu0 %v1988_v39  ;;  %v2093_v38 = vld [vmem:[%s2597_s13 + $0x84] sm:$0xf]  ;;  %v1757_v39 = vld [vmem:[%s2597_s13 + $0x88] sm:$0xf0]  ;;  %v2139_v44 = vld [vmem:[%s2597_s13 + $0x1f4] sm:$0xf]  ;;  %v1948_v45 = vor.u32 %v2142_v29, %v1947_v28  ;;  %v856_v51 = vunpack.c.l.b16 %v752_v35  ;;  %v1696_v53 = vor.u32 %v2077_v34, %v1693_v37  ;;  %v857_v58 = vunpack.c.h.b16 %v752_v35 }
  0xb9   : > { %1417 = vmatpush.bf16.msrb.mxu1 %v2052_v40  ;;  %v2123_v40 = vld [vmem:[%s2597_s13 + $0x174] sm:$0xf]  ;;  %v1941_v46 = vld [vmem:[%s2597_s13 + $0x1f8] sm:$0xf0]  ;;  %v1869_v62 = vld [vmem:[%s2597_s13 + $0x168] sm:$0xf0] }
  0xba   : > { %1430 = vmatpush.bf16.msrb.mxu2 %v1736_v43  ;;  %v1877_v43 = vld [vmem:[%s2597_s13 + $0x178] sm:$0xf0]  ;;  %v2171_v54 = vld [vmem:[%s2597_s13 + $0x2f4] sm:$0xf]  ;;  %v1944_v59 = vor.u32 %v2139_v44, %v1941_v46  ;;  %v2137_v63 = vld [vmem:[%s2597_s13 + $0x1e4] sm:$0xf]  ;;  %v2761_v8 = vpack.c.b16 %v857_v58, %v857_v58 }
  0xbb   : > { %1443 = vmatpush.bf16.msrb.mxu3 %v1800_v49  ;;  %v2155_v49 = vld [vmem:[%s2597_s13 + $0x274] sm:$0xf]  ;;  %v2005_v50 = vld [vmem:[%s2597_s13 + $0x278] sm:$0xf0]  ;;  %v1933_v1 = vld [vmem:[%s2597_s13 + $0x1e8] sm:$0xf0] }
  0xbc   : > { %1405 = vmatpush.bf16.msrb.mxu0 %v1980_v55  ;;  %v2069_v55 = vld [vmem:[%s2597_s13 + $0x2f8] sm:$0xf0]  ;;  %v2008_v60 = vor.u32 %v2155_v49, %v2005_v50  ;;  %v2153_v2 = vld [vmem:[%s2597_s13 + $0x264] sm:$0xf]  ;;  %v2061_v6 = vld [vmem:[%s2597_s13 + $0x2e8] sm:$0xf0] }
  0xbd   : > { %1418 = vmatpush.bf16.msrb.mxu1 %v2044_v56  ;;  %v1760_v56 = vor.u32 %v2093_v38, %v1757_v39  ;;  %v2072_v0 = vor.u32 %v2171_v54, %v2069_v55  ;;  %v2119_v11 = vld [vmem:[%s2597_s13 + $0x154] sm:$0xf]  ;;  %v1861_v12 = vld [vmem:[%s2597_s13 + $0x158] sm:$0xf0]  ;;  %v2117_v23 = vld [vmem:[%s2597_s13 + $0x144] sm:$0xf] }
  0xbe   : > { %1431 = vmatpush.bf16.msrb.mxu2 %v1728_v57  ;;  %v1880_v57 = vor.u32 %v2123_v40, %v1877_v43  ;;  %v2135_v13 = vld [vmem:[%s2597_s13 + $0x1d4] sm:$0xf]  ;;  %v2053_v19 = vld [vmem:[%s2597_s13 + $0x2d8] sm:$0xf0]  ;;  %v1864_v20 = vor.u32 %v2119_v11, %v1861_v12  ;;  %v2133_v24 = vld [vmem:[%s2597_s13 + $0x1c4] sm:$0xf] }
  0xbf   : > { %1444 = vmatpush.bf16.msrb.mxu3 %v1792_v61  ;;  %v2121_v61 = vld [vmem:[%s2597_s13 + $0x164] sm:$0xf]  ;;  %v2167_v18 = vld [vmem:[%s2597_s13 + $0x2d4] sm:$0xf]  ;;  %v1917_v25 = vld [vmem:[%s2597_s13 + $0x1c8] sm:$0xf0] }
  0xc0   : > { %1406 = vmatpush.bf16.msrb.mxu0 %v1972_v3  ;;  %v1997_v3 = vld [vmem:[%s2597_s13 + $0x268] sm:$0xf0]  ;;  %v1872_v7 = vor.u32 %v2121_v61, %v1869_v62  ;;  %v2149_v26 = vld [vmem:[%s2597_s13 + $0x244] sm:$0xf]  ;;  %v2115_v33 = vld [vmem:[%s2597_s13 + $0x134] sm:$0xf] }
  0xc1   : > { %1419 = vmatpush.bf16.msrb.mxu1 %v2036_v4  ;;  %v2757_v4 = vpack.c.b16 %v856_v51, %v856_v51  ;;  %v2000_v10 = vor.u32 %v2153_v2, %v1997_v3  ;;  %v2165_v28 = vld [vmem:[%s2597_s13 + $0x2c4] sm:$0xf]  ;;  %v2045_v29 = vld [vmem:[%s2597_s13 + $0x2c8] sm:$0xf0]  ;;  %v1845_v34 = vld [vmem:[%s2597_s13 + $0x138] sm:$0xf0] }
  0xc2   : > { %1432 = vmatpush.bf16.msrb.mxu2 %v1720_v5  ;;  %v2169_v5 = vld [vmem:[%s2597_s13 + $0x2e4] sm:$0xf]  ;;  %v2131_v35 = vld [vmem:[%s2597_s13 + $0x1b4] sm:$0xf]  ;;  %v1909_v37 = vld [vmem:[%s2597_s13 + $0x1b8] sm:$0xf0]  ;;  %v1848_v44 = vor.u32 %v2115_v33, %v1845_v34 }
  0xc3   : > { %1445 = vmatpush.bf16.msrb.mxu3 %v1784_v9  ;;  %v1936_v9 = vor.u32 %v2137_v63, %v1933_v1  ;;  %v2064_v14 = vor.u32 %v2169_v5, %v2061_v6  ;;  %v2147_v38 = vld [vmem:[%s2597_s13 + $0x234] sm:$0xf]  ;;  %v1973_v39 = vld [vmem:[%s2597_s13 + $0x238] sm:$0xf0]  ;;  %v2113_v49 = vld [vmem:[%s2597_s13 + $0x124] sm:$0xf] }
  0xc4   : > { %1407 = vmatpush.bf16.msrb.mxu0 %v1964_v15  ;;  %v1925_v15 = vld [vmem:[%s2597_s13 + $0x1d8] sm:$0xf0]  ;;  %v2163_v40 = vld [vmem:[%s2597_s13 + $0x2b4] sm:$0xf]  ;;  %v1976_v46 = vor.u32 %v2147_v38, %v1973_v39  ;;  %v1837_v50 = vld [vmem:[%s2597_s13 + $0x128] sm:$0xf0] }
  0xc5   : > { %1420 = vmatpush.bf16.msrb.mxu1 %v2028_v16  ;;  %v2151_v16 = vld [vmem:[%s2597_s13 + $0x254] sm:$0xf]  ;;  %v2037_v43 = vld [vmem:[%s2597_s13 + $0x2b8] sm:$0xf0]  ;;  %v2129_v51 = vld [vmem:[%s2597_s13 + $0x1a4] sm:$0xf]  ;;  %v1840_v58 = vor.u32 %v2113_v49, %v1837_v50 }
  0xc6   : > { %1433 = vmatpush.bf16.msrb.mxu2 %v1712_v17  ;;  %v1989_v17 = vld [vmem:[%s2597_s13 + $0x258] sm:$0xf0]  ;;  %v2145_v54 = vld [vmem:[%s2597_s13 + $0x224] sm:$0xf]  ;;  %v1965_v55 = vld [vmem:[%s2597_s13 + $0x228] sm:$0xf0] }
  0xc7   : > { %1446 = vmatpush.bf16.msrb.mxu3 %v1776_v21  ;;  %v1928_v21 = vor.u32 %v2135_v13, %v1925_v15  ;;  %v1992_v22 = vor.u32 %v2151_v16, %v1989_v17  ;;  %v2111_v61 = vld [vmem:[%s2597_s13 + $0x114] sm:$0xf]  ;;  %v1829_v62 = vld [vmem:[%s2597_s13 + $0x118] sm:$0xf0]  ;;  %v2109_v11 = vld [vmem:[%s2597_s13 + $0x104] sm:$0xf] }
  0xc8   : > { %1408 = vmatpush.bf16.msrb.mxu0 %v1956_v27  ;;  %v1981_v27 = vld [vmem:[%s2597_s13 + $0x248] sm:$0xf0]  ;;  %v2127_v63 = vld [vmem:[%s2597_s13 + $0x194] sm:$0xf]  ;;  %v1893_v1 = vld [vmem:[%s2597_s13 + $0x198] sm:$0xf0] }
  0xc9   : > { %1421 = vmatpush.bf16.msrb.mxu1 %v2020_v31  ;;  %v1920_v31 = vor.u32 %v2133_v24, %v1917_v25  ;;  %v2143_v2 = vld [vmem:[%s2597_s13 + $0x214] sm:$0xf]  ;;  %v1957_v3 = vld [vmem:[%s2597_s13 + $0x218] sm:$0xf0]  ;;  %v1821_v12 = vld [vmem:[%s2597_s13 + $0x108] sm:$0xf0] }
  0xca   : > { %1434 = vmatpush.bf16.msrb.mxu2 %v1704_v32  ;;  %v1984_v32 = vor.u32 %v2149_v26, %v1981_v27  ;;  %v2159_v5 = vld [vmem:[%s2597_s13 + $0x294] sm:$0xf]  ;;  %v2021_v6 = vld [vmem:[%s2597_s13 + $0x298] sm:$0xf0]  ;;  %v2125_v13 = vld [vmem:[%s2597_s13 + $0x184] sm:$0xf] }
  0xcb   : > { %1447 = vmatpush.bf16.msrb.mxu3 %v1768_v36  ;;  %v2048_v36 = vor.u32 %v2165_v28, %v2045_v29  ;;  %v1885_v15 = vld [vmem:[%s2597_s13 + $0x188] sm:$0xf0]  ;;  %v2141_v16 = vld [vmem:[%s2597_s13 + $0x204] sm:$0xf] }
  0xcc   : > { %1409 = vmatpush.bf16.msrb.mxu0 %v1948_v45  ;;  %v1912_v45 = vor.u32 %v2131_v35, %v1909_v37  ;;  %v1949_v17 = vld [vmem:[%s2597_s13 + $0x208] sm:$0xf0] }
  0xcd   : > { %1422 = vmatpush.bf16.msrb.mxu1 %v2012_v52  ;;  %v2040_v52 = vor.u32 %v2163_v40, %v2037_v43 }
  0xce   : > { %1435 = vmatpush.bf16.msrb.mxu2 %v1696_v53  ;;  %v1901_v53 = vld [vmem:[%s2597_s13 + $0x1a8] sm:$0xf0] }
  0xcf   : > { %1448 = vmatpush.bf16.msrb.mxu3 %v1760_v56  ;;  %1410 = vmatmul.bf16.vlgmr.msrb.gmra.mxu0 %v2757_v4  ;;  %v2161_v56 = vld [vmem:[%s2597_s13 + $0x2a4] sm:$0xf] }
  0xd0   : > { %1454 = vmatpush.bf16.msra.mxu0 %v1880_v57  ;;  %1423 = vmatmul.bf16.vlgmr.msrb.gmra.mxu1 %v2761_v8  ;;  %v2029_v57 = vld [vmem:[%s2597_s13 + $0x2a8] sm:$0xf0] }
  0xd1   : > { %1467 = vmatpush.bf16.msra.mxu1 %v1944_v59  ;;  %1436 = vmatmul.bf16.vlgmr.msrb.gmra.mxu2 %v2690_v41  ;;  %v1853_v41 = vld [vmem:[%s2597_s13 + $0x148] sm:$0xf0]  ;;  %v1904_v59 = vor.u32 %v2129_v51, %v1901_v53 }
  0xd2   : > { %1480 = vmatpush.bf16.msra.mxu2 %v2008_v60  ;;  %1449 = vmatmul.bf16.vlgmr.msrb.gmra.mxu3 %v2692_v42  ;;  %v2056_v42 = vor.u32 %v2167_v18, %v2053_v19  ;;  %v1856_v30 = vor.u32 %v2117_v23, %v1853_v41  ;;  %v1968_v60 = vor.u32 %v2145_v54, %v1965_v55  ;;  %v2157_v18 = vld [vmem:[%s2597_s13 + $0x284] sm:$0xf]  ;;  %v2013_v19 = vld [vmem:[%s2597_s13 + $0x288] sm:$0xf0]  ;;  %v749_v54 = vld [vmem:[#allocation2 + $0x8] sm:$0xff] }
  0xd3   : > { %1493 = vmatpush.bf16.msra.mxu3 %v2072_v0  ;;  %v2032_v0 = vor.u32 %v2161_v56, %v2029_v57  ;;  %v2016_v23 = vor.u32 %v2157_v18, %v2013_v19 }
  0xd4   : > { %1455 = vmatpush.bf16.msra.mxu0 %v1872_v7  ;;  %v1832_v7 = vor.u32 %v2111_v61, %v1829_v62 }
  0xd5   : > { %1468 = vmatpush.bf16.msra.mxu1 %v1936_v9  ;;  %v1896_v9 = vor.u32 %v2127_v63, %v1893_v1 }
  0xd6   : > { %1481 = vmatpush.bf16.msra.mxu2 %v2000_v10  ;;  %v1960_v10 = vor.u32 %v2143_v2, %v1957_v3 }
  0xd7   : > { %1494 = vmatpush.bf16.msra.mxu3 %v2064_v14  ;;  %v2024_v14 = vor.u32 %v2159_v5, %v2021_v6 }
  0xd8   : > { %1456 = vmatpush.bf16.msra.mxu0 %v1864_v20  ;;  %v1824_v20 = vor.u32 %v2109_v11, %v1821_v12 }
  0xd9   : > { %1469 = vmatpush.bf16.msra.mxu1 %v1928_v21  ;;  %v1888_v21 = vor.u32 %v2125_v13, %v1885_v15 }
  0xda   : > { %1482 = vmatpush.bf16.msra.mxu2 %v1992_v22  ;;  %v1952_v22 = vor.u32 %v2141_v16, %v1949_v17 }
  0xdb   : > { %1495 = vmatpush.bf16.msra.mxu3 %v2056_v42 }
  0xdc   : > { %1457 = vmatpush.bf16.msra.mxu0 %v1856_v30 }
  0xdd   : > { %1470 = vmatpush.bf16.msra.mxu1 %v1920_v31 }
  0xde   : > { %1483 = vmatpush.bf16.msra.mxu2 %v1984_v32 }
  0xdf   : > { %1496 = vmatpush.bf16.msra.mxu3 %v2048_v36 }
  0xe0   : > { %1458 = vmatpush.bf16.msra.mxu0 %v1848_v44 }
  0xe1   : > { %1471 = vmatpush.bf16.msra.mxu1 %v1912_v45 }
  0xe2   : > { %1484 = vmatpush.bf16.msra.mxu2 %v1976_v46 }
  0xe3   : > { %1497 = vmatpush.bf16.msra.mxu3 %v2040_v52 }
  0xe4   : > { %1459 = vmatpush.bf16.msra.mxu0 %v1840_v58 }
  0xe5   : > { %1472 = vmatpush.bf16.msra.mxu1 %v1904_v59 }
  0xe6   : > { %1485 = vmatpush.bf16.msra.mxu2 %v1968_v60 }
  0xe7   : > { %1498 = vmatpush.bf16.msra.mxu3 %v2032_v0 }
  0xe8   : > { %1460 = vmatpush.bf16.msra.mxu0 %v1832_v7 }
  0xe9   : > { %1473 = vmatpush.bf16.msra.mxu1 %v1896_v9 }
  0xea   : > { %1486 = vmatpush.bf16.msra.mxu2 %v1960_v10 }
  0xeb   : > { %1499 = vmatpush.bf16.msra.mxu3 %v2024_v14 }
  0xec   : > { %1461 = vmatpush.bf16.msra.mxu0 %v1824_v20 }
  0xed   : > { %1474 = vmatpush.bf16.msra.mxu1 %v1888_v21 }
  0xee   : > { %1487 = vmatpush.bf16.msra.mxu2 %v1952_v22 }
  0xef   : > { %1500 = vmatpush.bf16.msra.mxu3 %v2016_v23  ;;  %1462 = vmatmul.bf16.vlgmr.msra.gmra.mxu0 %v2697_v47  ;;  %v748_v47 = vld [vmem:[#allocation2] sm:$0xff] }
  0xf0   : > { %1475 = vmatmul.bf16.vlgmr.msra.gmra.mxu1 %v2699_v48 }
  0xf1   : > { %1488 = vmatmul.bf16.vlgmr.msra.gmra.mxu2 %v2757_v4 }
  0xf2   : > { %1501 = vmatmul.bf16.vlgmr.msra.gmra.mxu3 %v2761_v8 }
 0x12c   : > { %v1359_v41 = vpop.f32.mrf.mxu0 }
 0x12d   : > { %v1372_v24 = vpop.f32.mrf.mxu1 }
 0x12e   : > { %v1373_v28 = vadd.f32 %v1372_v24, %v1359_v41 }
 0x134   : > { %v1385_v42 = vpop.f32.mrf.mxu2  ;;  %v1361_v26 = vpop.f32.mrf.mxu0 }
 0x135   : > { %v1398_v25 = vpop.f32.mrf.mxu3  ;;  %v1374_v27 = vpop.f32.mrf.mxu1  ;;  %v1386_v31 = vadd.f32 %v1385_v42, %v1373_v28 }
 0x137   : > { %v1399_v32 = vadd.f32 %v1398_v25, %v1386_v31 }
 0x13c   : > { %v1387_v29 = vpop.f32.mrf.mxu2 }
 0x13d   : > { %v1400_v30 = vpop.f32.mrf.mxu3 }
 0x14c   : > { %v1411_v33 = vpop.f32.mrf.mxu0 }
 0x14d   : > { %v1412_v34 = vadd.f32 %v1411_v33, %v1399_v32  ;;  %v1424_v35 = vpop.f32.mrf.mxu1 }
 0x14f   : > { %v1425_v48 = vadd.f32 %v1424_v35, %v1412_v34 }
 0x151   : > { %v1506_v36 = vadd.f32 %v1425_v48, %v748_v47 }
 0x153   : > { %1508 = vst [vmem:[#allocation2] sm:$0xff] %v1506_v36 }
 0x154   : > { %v1437_v4 = vpop.f32.mrf.mxu2  ;;  %v1413_v37 = vpop.f32.mrf.mxu0 }
 0x155   : > { %v1450_v8 = vpop.f32.mrf.mxu3  ;;  %v1426_v38 = vpop.f32.mrf.mxu1 }
 0x156   : > { %v1451_v43 = vadd.f32 %v1450_v8, %v1437_v4 }
 0x15c   : > { %v1439_v39 = vpop.f32.mrf.mxu2 }
 0x15d   : > { %v1452_v40 = vpop.f32.mrf.mxu3 }
 0x16c   : > { %v1463_v44 = vpop.f32.mrf.mxu0 }
 0x16d   : > { %v1476_v45 = vpop.f32.mrf.mxu1  ;;  %v1464_v46 = vadd.f32 %v1463_v44, %v1451_v43 }
 0x16f   : > { %v1477_v49 = vadd.f32 %v1476_v45, %v1464_v46 }
 0x174   : > { %v1489_v50 = vpop.f32.mrf.mxu2  ;;  %v1465_v53 = vpop.f32.mrf.mxu0 }
 0x175   : > { %v1490_v51 = vadd.f32 %v1489_v50, %v1477_v49  ;;  %v1502_v52 = vpop.f32.mrf.mxu3  ;;  %v1478_v55 = vpop.f32.mrf.mxu1 }
 0x177   : > { %v1503_v56 = vadd.f32 %v1502_v52, %v1490_v51 }
 0x179   : > { %v1507_v57 = vadd.f32 %v1503_v56, %v749_v54  ;;  %1513 = sbr.rel (%p2073_p13) target bundleno = 396 (0x18c), region = 82 }
 0x17b   : > { %1509 = vst [vmem:[#allocation2 + $0x8] sm:$0xff] %v1507_v57 }
 0x17c   : > { %v1491_v58 = vpop.f32.mrf.mxu2 }
 0x17d   : > { %v1504_v59 = vpop.f32.mrf.mxu3 }
 0x17e   : > { %v1514_v60 = vld [vmem:[#allocation2] sm:$0xff] }
 0x17f   : > { %v1516_v62 = vld [vmem:[%s720_s15] sm:$0x3] }
 0x180   : > { %v1518_v63 = vperm.slane %v1516_v62, 0  ;;  %v1519_v0 = vperm.slane %v1516_v62, 1  ;;  %v1524_v1 = vld [vmem:[%s2590_s9] sm:$0xff] }
 0x181   : > { %v1525_v2 = vunpack.c.l.bf16 %v1524_v1  ;;  %v1526_v3 = vunpack.c.h.bf16 %v1524_v1 }
 0x182   : > { %v1515_v61 = vld [vmem:[#allocation2 + $0x8] sm:$0xff]  ;;  %v1522_v5 = vadd.f32 %v1518_v63, %v1514_v60 }
 0x183   : > { %v1523_v6 = vadd.f32 %v1519_v0, %v1515_v61 }
 0x184   : > { %v1527_v7 = vadd.f32 %v1525_v2, %v1522_v5 }
 0x185   : > { %v1528_v9 = vadd.f32 %v1526_v3, %v1523_v6 }
 0x186   : > { %v1529_v10 = vmax.f32 %v1527_v7, 0.0 }
 0x187   : > { %v1530_v11 = vmax.f32 %v1528_v9, 0.0 }
 0x189   : > { %v1531_v12 = vpack.c.bf16 %v1530_v11, %v1529_v10 }
 0x18b   : > { %1532 = vst [vmem:[%s2595_s12] sm:$0xff] %v1531_v12 }
 0x18c PF: > { %s14_s21 = sadd.s32 1, %s2286_s21   ;;  %s2853_s15 = smov %s2266_s16 }
 0x18d   : > { %p11_p0 = scmp.ge.s32.totalorder %s14_s21, 14   ;;  %s2854_s16 = smov %s2365_s28 }
 0x18e   : > { %s2855_s17 = smov %s2278_s19  ;;  %s2856_s18 = smov %s2282_s20 }
 0x18f   : > { %s2857_s19 = smov %s2860_s22  ;;  %s2858_s20 = smov %s2864_s23 }
 0x190   :  { %13 = sbr.rel (!%p11_p0) target bundleno = 4 (0x4), region = 126 }

// kernel: forward.39
= control target key start
LH: loop header
LB: loop body
LE: loop exit
PB: predicated region body
PF: predicated region fallthrough
CT: control target
= control target key end

     0   :  { %s2221_s12 = smov 0   ;;  %s2223_s13 = smov 0   ;;  %s2749_s0 = inlined_call_operand.vmem [shape: bf16[8,4608], index: 0, kind: input, shape index: {}]   ;;  %s2750_s1 = inlined_call_operand.vmem [shape: bf16[4608,512], index: 1, kind: input, shape index: {}]   ;;  %s2751_s2 = inlined_call_operand.vmem [shape: f32[1,512], index: 2, kind: input, shape index: {}]   ;;  %s2752_s3 = inlined_call_operand.vmem [shape: bf16[8,512], index: 3, kind: output, shape index: {}]  }
   0x1   :  { %s2225_s14 = smov 0   ;;  %s2227_s15 = smov 0  }
   0x2   :  { %s2229_s16 = smov 0   ;;  %s2231_s17 = smov 0  }
   0x3   :  { %s2233_s18 = smov 0  }
   0x4 LB: > { %s25_s19 = sadd.s32 1, %s2190_s16  ;;  %s28_s20 = sadd.s32 1, %s2194_s17  ;;  %s2198_s18 = sphi %s2233_s18, %s13_s18   ;;  %s2194_s17 = sphi %s2231_s17, %s2758_s17   ;;  %s2190_s16 = sphi %s2229_s16, %s2757_s16   ;;  %s2186_s15 = sphi %s2227_s15, %s2756_s15   ;;  %s2182_s14 = sphi %s2225_s14, %s2755_s14   ;;  %s2178_s13 = sphi %s2223_s13, %s2754_s13   ;;  %s2174_s12 = sphi %s2221_s12, %s2753_s12  }
   0x5   : > { %p26_p0 = scmp.ge.s32.totalorder %s25_s19, 6  ;;  %p76_p1 = scmp.ne.s32.totalorder %s2178_s13, %s2174_s12 }
   0x6   : > { %p77_p2 = scmp.eq.s32.totalorder %s2198_s18, 0  ;;  %s69_s24 = sadd.s32 1, %s2178_s13 }
   0x7   : > { %s2760_s19 = smov (%p26_p0, %s25_s19), 0  ;;  %s2762_s20 = smov (!%p26_p0, %s28_s20), %s2194_s17 }
   0x8   : > { %p78_p3 = por %p77_p2, %p76_p1  ;;  %p30_p4 = scmp.ge.s32.totalorder %s2762_s20, 2 }
   0x9   : > { %s64_s21 = ssub.s32 %s2190_s16, %s2760_s19  ;;  %p1591_p6 = scmp.ge.s32.totalorder %s2198_s18, 12 }
   0xa   : > { %s2764_s20 = smov (%p30_p4, %s2762_s20), 0 }
   0xb   : > { %s65_s22 = ssub.s32 %s2194_s17, %s2764_s20  ;;  %156 = sbr.rel (%p1591_p6) target bundleno = 120 (0x78), region = 16 }
   0xc   : > { %s66_s23 = sor.u32 %s65_s22, %s64_s21 }
   0xd   : > { %p67_p5 = scmp.eq.s32.totalorder %s66_s23, 0 }
   0xf   : > { %s2272_s25 = scalar_select %p67_p5, %s2178_s13, %s69_s24  }
  0x10   : > { %172 = sbr.rel (!%p78_p3) target bundleno = 120 (0x78), region = 24  ;;  %s174_s26 = sand.u32 (%p78_p3), 1, %s2178_s13  }
  0x11   : > { %s2085_s27 = smul.u32 (%p78_p3), 768, %s174_s26  ;;  %s1592_s28 = sshll.u32 (%p78_p3), %s2194_s17, 1 }
  0x12   : > { %s1988_s29 = smul.u32 (%p78_p3), 384, %s2190_s16 }
  0x13   : > { %s2286_s8 = scalar_lea.vmem (%p78_p3), [#allocation3], %s2085_s27 }
  0x14   : > { %s180_s30 = sadd.s32 (%p78_p3), %s1988_s29, %s1592_s28 }
  0x15   : > { %s1594_s4 = sshll.u32 %s180_s30, 2 }
  0x16   : > { %s2281_s7 = scalar_lea.vmem %s2750_s1, %s1594_s4 }
  0x17   : > { %v401_v0 = vld [vmem:[%s2281_s7] sm:$0xff]  ;;  %v403_v1 = vld [vmem:[%s2281_s7 + $0x10] sm:$0xff] }
  0x18   : > { %v405_v2 = vld [vmem:[%s2281_s7 + $0x20] sm:$0xff]  ;;  %402 = vst [vmem:[%s2286_s8] sm:$0xff] %v401_v0  ;;  %v407_v3 = vld [vmem:[%s2281_s7 + $0x30] sm:$0xff] }
  0x19   : > { %404 = vst [vmem:[%s2286_s8 + $0x8] sm:$0xff] %v403_v1  ;;  %v409_v4 = vld [vmem:[%s2281_s7 + $0x40] sm:$0xff]  ;;  %v411_v5 = vld [vmem:[%s2281_s7 + $0x50] sm:$0xff] }
  0x1a   : > { %406 = vst [vmem:[%s2286_s8 + $0x10] sm:$0xff] %v405_v2  ;;  %v413_v6 = vld [vmem:[%s2281_s7 + $0x60] sm:$0xff]  ;;  %v415_v7 = vld [vmem:[%s2281_s7 + $0x70] sm:$0xff] }
  0x1b   : > { %408 = vst [vmem:[%s2286_s8 + $0x18] sm:$0xff] %v407_v3  ;;  %v417_v8 = vld [vmem:[%s2281_s7 + $0x80] sm:$0xff]  ;;  %v419_v9 = vld [vmem:[%s2281_s7 + $0x90] sm:$0xff] }
  0x1c   : > { %410 = vst [vmem:[%s2286_s8 + $0x20] sm:$0xff] %v409_v4  ;;  %v421_v10 = vld [vmem:[%s2281_s7 + $0xa0] sm:$0xff]  ;;  %v423_v11 = vld [vmem:[%s2281_s7 + $0xb0] sm:$0xff] }
  0x1d   : > { %412 = vst [vmem:[%s2286_s8 + $0x28] sm:$0xff] %v411_v5  ;;  %v425_v12 = vld [vmem:[%s2281_s7 + $0xc0] sm:$0xff]  ;;  %v427_v13 = vld [vmem:[%s2281_s7 + $0xd0] sm:$0xff] }
  0x1e   : > { %414 = vst [vmem:[%s2286_s8 + $0x30] sm:$0xff] %v413_v6  ;;  %v429_v14 = vld [vmem:[%s2281_s7 + $0xe0] sm:$0xff]  ;;  %v431_v15 = vld [vmem:[%s2281_s7 + $0xf0] sm:$0xff] }
  0x1f   : > { %416 = vst [vmem:[%s2286_s8 + $0x38] sm:$0xff] %v415_v7  ;;  %v433_v16 = vld [vmem:[%s2281_s7 + $0x100] sm:$0xff]  ;;  %v435_v17 = vld [vmem:[%s2281_s7 + $0x110] sm:$0xff] }
  0x20   : > { %418 = vst [vmem:[%s2286_s8 + $0x40] sm:$0xff] %v417_v8  ;;  %v437_v18 = vld [vmem:[%s2281_s7 + $0x120] sm:$0xff]  ;;  %v439_v19 = vld [vmem:[%s2281_s7 + $0x130] sm:$0xff] }
  0x21   : > { %420 = vst [vmem:[%s2286_s8 + $0x48] sm:$0xff] %v419_v9  ;;  %v441_v20 = vld [vmem:[%s2281_s7 + $0x140] sm:$0xff]  ;;  %v443_v21 = vld [vmem:[%s2281_s7 + $0x150] sm:$0xff] }
  0x22   : > { %422 = vst [vmem:[%s2286_s8 + $0x50] sm:$0xff] %v421_v10  ;;  %v445_v22 = vld [vmem:[%s2281_s7 + $0x160] sm:$0xff]  ;;  %v447_v23 = vld [vmem:[%s2281_s7 + $0x170] sm:$0xff] }
  0x23   : > { %424 = vst [vmem:[%s2286_s8 + $0x58] sm:$0xff] %v423_v11  ;;  %v449_v24 = vld [vmem:[%s2281_s7 + $0x180] sm:$0xff]  ;;  %v451_v25 = vld [vmem:[%s2281_s7 + $0x190] sm:$0xff] }
  0x24   : > { %426 = vst [vmem:[%s2286_s8 + $0x60] sm:$0xff] %v425_v12  ;;  %v453_v26 = vld [vmem:[%s2281_s7 + $0x1a0] sm:$0xff]  ;;  %v455_v27 = vld [vmem:[%s2281_s7 + $0x1b0] sm:$0xff] }
  0x25   : > { %428 = vst [vmem:[%s2286_s8 + $0x68] sm:$0xff] %v427_v13  ;;  %v457_v28 = vld [vmem:[%s2281_s7 + $0x1c0] sm:$0xff]  ;;  %v459_v29 = vld [vmem:[%s2281_s7 + $0x1d0] sm:$0xff] }
  0x26   : > { %430 = vst [vmem:[%s2286_s8 + $0x70] sm:$0xff] %v429_v14  ;;  %v461_v30 = vld [vmem:[%s2281_s7 + $0x1e0] sm:$0xff]  ;;  %v463_v31 = vld [vmem:[%s2281_s7 + $0x1f0] sm:$0xff] }
  0x27   : > { %432 = vst [vmem:[%s2286_s8 + $0x78] sm:$0xff] %v431_v15  ;;  %v465_v32 = vld [vmem:[%s2281_s7 + $0x200] sm:$0xff]  ;;  %v467_v33 = vld [vmem:[%s2281_s7 + $0x210] sm:$0xff] }
  0x28   : > { %434 = vst [vmem:[%s2286_s8 + $0x80] sm:$0xff] %v433_v16  ;;  %v469_v34 = vld [vmem:[%s2281_s7 + $0x220] sm:$0xff]  ;;  %v471_v35 = vld [vmem:[%s2281_s7 + $0x230] sm:$0xff] }
  0x29   : > { %436 = vst [vmem:[%s2286_s8 + $0x88] sm:$0xff] %v435_v17  ;;  %v473_v36 = vld [vmem:[%s2281_s7 + $0x240] sm:$0xff]  ;;  %v475_v37 = vld [vmem:[%s2281_s7 + $0x250] sm:$0xff] }
  0x2a   : > { %438 = vst [vmem:[%s2286_s8 + $0x90] sm:$0xff] %v437_v18  ;;  %v477_v38 = vld [vmem:[%s2281_s7 + $0x260] sm:$0xff]  ;;  %v479_v39 = vld [vmem:[%s2281_s7 + $0x270] sm:$0xff] }
  0x2b   : > { %440 = vst [vmem:[%s2286_s8 + $0x98] sm:$0xff] %v439_v19  ;;  %v481_v40 = vld [vmem:[%s2281_s7 + $0x280] sm:$0xff]  ;;  %v483_v41 = vld [vmem:[%s2281_s7 + $0x290] sm:$0xff] }
  0x2c   : > { %442 = vst [vmem:[%s2286_s8 + $0xa0] sm:$0xff] %v441_v20  ;;  %v485_v42 = vld [vmem:[%s2281_s7 + $0x2a0] sm:$0xff]  ;;  %v487_v43 = vld [vmem:[%s2281_s7 + $0x2b0] sm:$0xff] }
  0x2d   : > { %444 = vst [vmem:[%s2286_s8 + $0xa8] sm:$0xff] %v443_v21  ;;  %v489_v44 = vld [vmem:[%s2281_s7 + $0x2c0] sm:$0xff]  ;;  %v491_v45 = vld [vmem:[%s2281_s7 + $0x2d0] sm:$0xff] }
  0x2e   : > { %446 = vst [vmem:[%s2286_s8 + $0xb0] sm:$0xff] %v445_v22  ;;  %v493_v46 = vld [vmem:[%s2281_s7 + $0x2e0] sm:$0xff]  ;;  %v495_v47 = vld [vmem:[%s2281_s7 + $0x2f0] sm:$0xff] }
  0x2f   : > { %448 = vst [vmem:[%s2286_s8 + $0xb8] sm:$0xff] %v447_v23  ;;  %v497_v48 = vld [vmem:[%s2281_s7 + $0x300] sm:$0xff]  ;;  %v499_v49 = vld [vmem:[%s2281_s7 + $0x310] sm:$0xff] }
  0x30   : > { %450 = vst [vmem:[%s2286_s8 + $0xc0] sm:$0xff] %v449_v24  ;;  %v501_v50 = vld [vmem:[%s2281_s7 + $0x320] sm:$0xff]  ;;  %v503_v51 = vld [vmem:[%s2281_s7 + $0x330] sm:$0xff] }
  0x31   : > { %452 = vst [vmem:[%s2286_s8 + $0xc8] sm:$0xff] %v451_v25  ;;  %v505_v52 = vld [vmem:[%s2281_s7 + $0x340] sm:$0xff]  ;;  %v507_v53 = vld [vmem:[%s2281_s7 + $0x350] sm:$0xff] }
  0x32   : > { %454 = vst [vmem:[%s2286_s8 + $0xd0] sm:$0xff] %v453_v26  ;;  %v509_v54 = vld [vmem:[%s2281_s7 + $0x360] sm:$0xff]  ;;  %v511_v55 = vld [vmem:[%s2281_s7 + $0x370] sm:$0xff] }
  0x33   : > { %456 = vst [vmem:[%s2286_s8 + $0xd8] sm:$0xff] %v455_v27  ;;  %v513_v56 = vld [vmem:[%s2281_s7 + $0x380] sm:$0xff]  ;;  %v515_v57 = vld [vmem:[%s2281_s7 + $0x390] sm:$0xff] }
  0x34   : > { %458 = vst [vmem:[%s2286_s8 + $0xe0] sm:$0xff] %v457_v28  ;;  %v517_v58 = vld [vmem:[%s2281_s7 + $0x3a0] sm:$0xff]  ;;  %v519_v59 = vld [vmem:[%s2281_s7 + $0x3b0] sm:$0xff] }
  0x35   : > { %460 = vst [vmem:[%s2286_s8 + $0xe8] sm:$0xff] %v459_v29  ;;  %v521_v60 = vld [vmem:[%s2281_s7 + $0x3c0] sm:$0xff]  ;;  %v523_v61 = vld [vmem:[%s2281_s7 + $0x3d0] sm:$0xff] }
  0x36   : > { %462 = vst [vmem:[%s2286_s8 + $0xf0] sm:$0xff] %v461_v30  ;;  %v525_v62 = vld [vmem:[%s2281_s7 + $0x3e0] sm:$0xff]  ;;  %v527_v63 = vld [vmem:[%s2281_s7 + $0x3f0] sm:$0xff] }
  0x37   : > { %464 = vst [vmem:[%s2286_s8 + $0xf8] sm:$0xff] %v463_v31  ;;  %v529_v0 = vld [vmem:[%s2281_s7 + $0x400] sm:$0xff]  ;;  %v531_v1 = vld [vmem:[%s2281_s7 + $0x410] sm:$0xff] }
  0x38   : > { %466 = vst [vmem:[%s2286_s8 + $0x100] sm:$0xff] %v465_v32  ;;  %v533_v2 = vld [vmem:[%s2281_s7 + $0x420] sm:$0xff]  ;;  %v535_v3 = vld [vmem:[%s2281_s7 + $0x430] sm:$0xff] }
  0x39   : > { %468 = vst [vmem:[%s2286_s8 + $0x108] sm:$0xff] %v467_v33  ;;  %v537_v4 = vld [vmem:[%s2281_s7 + $0x440] sm:$0xff]  ;;  %v539_v5 = vld [vmem:[%s2281_s7 + $0x450] sm:$0xff] }
  0x3a   : > { %470 = vst [vmem:[%s2286_s8 + $0x110] sm:$0xff] %v469_v34  ;;  %v541_v6 = vld [vmem:[%s2281_s7 + $0x460] sm:$0xff]  ;;  %v543_v7 = vld [vmem:[%s2281_s7 + $0x470] sm:$0xff] }
  0x3b   : > { %472 = vst [vmem:[%s2286_s8 + $0x118] sm:$0xff] %v471_v35  ;;  %v545_v8 = vld [vmem:[%s2281_s7 + $0x480] sm:$0xff]  ;;  %v547_v9 = vld [vmem:[%s2281_s7 + $0x490] sm:$0xff] }
  0x3c   : > { %474 = vst [vmem:[%s2286_s8 + $0x120] sm:$0xff] %v473_v36  ;;  %v549_v10 = vld [vmem:[%s2281_s7 + $0x4a0] sm:$0xff]  ;;  %v551_v11 = vld [vmem:[%s2281_s7 + $0x4b0] sm:$0xff] }
  0x3d   : > { %476 = vst [vmem:[%s2286_s8 + $0x128] sm:$0xff] %v475_v37  ;;  %v553_v12 = vld [vmem:[%s2281_s7 + $0x4c0] sm:$0xff]  ;;  %v555_v13 = vld [vmem:[%s2281_s7 + $0x4d0] sm:$0xff] }
  0x3e   : > { %478 = vst [vmem:[%s2286_s8 + $0x130] sm:$0xff] %v477_v38  ;;  %v557_v14 = vld [vmem:[%s2281_s7 + $0x4e0] sm:$0xff]  ;;  %v559_v15 = vld [vmem:[%s2281_s7 + $0x4f0] sm:$0xff] }
  0x3f   : > { %480 = vst [vmem:[%s2286_s8 + $0x138] sm:$0xff] %v479_v39  ;;  %v561_v16 = vld [vmem:[%s2281_s7 + $0x500] sm:$0xff]  ;;  %v563_v17 = vld [vmem:[%s2281_s7 + $0x510] sm:$0xff] }
  0x40   : > { %482 = vst [vmem:[%s2286_s8 + $0x140] sm:$0xff] %v481_v40  ;;  %v565_v18 = vld [vmem:[%s2281_s7 + $0x520] sm:$0xff]  ;;  %v567_v19 = vld [vmem:[%s2281_s7 + $0x530] sm:$0xff] }
  0x41   : > { %484 = vst [vmem:[%s2286_s8 + $0x148] sm:$0xff] %v483_v41  ;;  %v569_v20 = vld [vmem:[%s2281_s7 + $0x540] sm:$0xff]  ;;  %v571_v21 = vld [vmem:[%s2281_s7 + $0x550] sm:$0xff] }
  0x42   : > { %486 = vst [vmem:[%s2286_s8 + $0x150] sm:$0xff] %v485_v42  ;;  %v573_v22 = vld [vmem:[%s2281_s7 + $0x560] sm:$0xff]  ;;  %v575_v23 = vld [vmem:[%s2281_s7 + $0x570] sm:$0xff] }
  0x43   : > { %488 = vst [vmem:[%s2286_s8 + $0x158] sm:$0xff] %v487_v43  ;;  %v577_v24 = vld [vmem:[%s2281_s7 + $0x580] sm:$0xff]  ;;  %v579_v25 = vld [vmem:[%s2281_s7 + $0x590] sm:$0xff] }
  0x44   : > { %490 = vst [vmem:[%s2286_s8 + $0x160] sm:$0xff] %v489_v44  ;;  %v581_v26 = vld [vmem:[%s2281_s7 + $0x5a0] sm:$0xff]  ;;  %v583_v27 = vld [vmem:[%s2281_s7 + $0x5b0] sm:$0xff] }
  0x45   : > { %492 = vst [vmem:[%s2286_s8 + $0x168] sm:$0xff] %v491_v45  ;;  %v585_v28 = vld [vmem:[%s2281_s7 + $0x5c0] sm:$0xff]  ;;  %v587_v29 = vld [vmem:[%s2281_s7 + $0x5d0] sm:$0xff] }
  0x46   : > { %494 = vst [vmem:[%s2286_s8 + $0x170] sm:$0xff] %v493_v46  ;;  %v589_v30 = vld [vmem:[%s2281_s7 + $0x5e0] sm:$0xff]  ;;  %v591_v31 = vld [vmem:[%s2281_s7 + $0x5f0] sm:$0xff] }
  0x47   : > { %496 = vst [vmem:[%s2286_s8 + $0x178] sm:$0xff] %v495_v47 }
  0x48   : > { %498 = vst [vmem:[%s2286_s8 + $0x180] sm:$0xff] %v497_v48 }
  0x49   : > { %500 = vst [vmem:[%s2286_s8 + $0x188] sm:$0xff] %v499_v49 }
  0x4a   : > { %502 = vst [vmem:[%s2286_s8 + $0x190] sm:$0xff] %v501_v50 }
  0x4b   : > { %504 = vst [vmem:[%s2286_s8 + $0x198] sm:$0xff] %v503_v51 }
  0x4c   : > { %506 = vst [vmem:[%s2286_s8 + $0x1a0] sm:$0xff] %v505_v52 }
  0x4d   : > { %508 = vst [vmem:[%s2286_s8 + $0x1a8] sm:$0xff] %v507_v53 }
  0x4e   : > { %510 = vst [vmem:[%s2286_s8 + $0x1b0] sm:$0xff] %v509_v54 }
  0x4f   : > { %512 = vst [vmem:[%s2286_s8 + $0x1b8] sm:$0xff] %v511_v55 }
  0x50   : > { %514 = vst [vmem:[%s2286_s8 + $0x1c0] sm:$0xff] %v513_v56 }
  0x51   : > { %516 = vst [vmem:[%s2286_s8 + $0x1c8] sm:$0xff] %v515_v57 }
  0x52   : > { %518 = vst [vmem:[%s2286_s8 + $0x1d0] sm:$0xff] %v517_v58 }
  0x53   : > { %520 = vst [vmem:[%s2286_s8 + $0x1d8] sm:$0xff] %v519_v59 }
  0x54   : > { %522 = vst [vmem:[%s2286_s8 + $0x1e0] sm:$0xff] %v521_v60 }
  0x55   : > { %524 = vst [vmem:[%s2286_s8 + $0x1e8] sm:$0xff] %v523_v61 }
  0x56   : > { %526 = vst [vmem:[%s2286_s8 + $0x1f0] sm:$0xff] %v525_v62 }
  0x57   : > { %528 = vst [vmem:[%s2286_s8 + $0x1f8] sm:$0xff] %v527_v63 }
  0x58   : > { %530 = vst [vmem:[%s2286_s8 + $0x200] sm:$0xff] %v529_v0 }
  0x59   : > { %532 = vst [vmem:[%s2286_s8 + $0x208] sm:$0xff] %v531_v1 }
  0x5a   : > { %534 = vst [vmem:[%s2286_s8 + $0x210] sm:$0xff] %v533_v2 }
  0x5b   : > { %536 = vst [vmem:[%s2286_s8 + $0x218] sm:$0xff] %v535_v3 }
  0x5c   : > { %538 = vst [vmem:[%s2286_s8 + $0x220] sm:$0xff] %v537_v4 }
  0x5d   : > { %540 = vst [vmem:[%s2286_s8 + $0x228] sm:$0xff] %v539_v5 }
  0x5e   : > { %542 = vst [vmem:[%s2286_s8 + $0x230] sm:$0xff] %v541_v6 }
  0x5f   : > { %544 = vst [vmem:[%s2286_s8 + $0x238] sm:$0xff] %v543_v7 }
  0x60   : > { %546 = vst [vmem:[%s2286_s8 + $0x240] sm:$0xff] %v545_v8 }
  0x61   : > { %548 = vst [vmem:[%s2286_s8 + $0x248] sm:$0xff] %v547_v9 }
  0x62   : > { %550 = vst [vmem:[%s2286_s8 + $0x250] sm:$0xff] %v549_v10 }
  0x63   : > { %552 = vst [vmem:[%s2286_s8 + $0x258] sm:$0xff] %v551_v11 }
  0x64   : > { %554 = vst [vmem:[%s2286_s8 + $0x260] sm:$0xff] %v553_v12 }
  0x65   : > { %556 = vst [vmem:[%s2286_s8 + $0x268] sm:$0xff] %v555_v13 }
  0x66   : > { %558 = vst [vmem:[%s2286_s8 + $0x270] sm:$0xff] %v557_v14 }
  0x67   : > { %560 = vst [vmem:[%s2286_s8 + $0x278] sm:$0xff] %v559_v15 }
  0x68   : > { %562 = vst [vmem:[%s2286_s8 + $0x280] sm:$0xff] %v561_v16 }
  0x69   : > { %564 = vst [vmem:[%s2286_s8 + $0x288] sm:$0xff] %v563_v17 }
  0x6a   : > { %566 = vst [vmem:[%s2286_s8 + $0x290] sm:$0xff] %v565_v18 }
  0x6b   : > { %568 = vst [vmem:[%s2286_s8 + $0x298] sm:$0xff] %v567_v19 }
  0x6c   : > { %570 = vst [vmem:[%s2286_s8 + $0x2a0] sm:$0xff] %v569_v20 }
  0x6d   : > { %572 = vst [vmem:[%s2286_s8 + $0x2a8] sm:$0xff] %v571_v21 }
  0x6e   : > { %574 = vst [vmem:[%s2286_s8 + $0x2b0] sm:$0xff] %v573_v22 }
  0x6f   : > { %576 = vst [vmem:[%s2286_s8 + $0x2b8] sm:$0xff] %v575_v23 }
  0x70   : > { %578 = vst [vmem:[%s2286_s8 + $0x2c0] sm:$0xff] %v577_v24 }
  0x71   : > { %580 = vst [vmem:[%s2286_s8 + $0x2c8] sm:$0xff] %v579_v25 }
  0x72   : > { %582 = vst [vmem:[%s2286_s8 + $0x2d0] sm:$0xff] %v581_v26 }
  0x73   : > { %584 = vst [vmem:[%s2286_s8 + $0x2d8] sm:$0xff] %v583_v27 }
  0x74   : > { %586 = vst [vmem:[%s2286_s8 + $0x2e0] sm:$0xff] %v585_v28 }
  0x75   : > { %588 = vst [vmem:[%s2286_s8 + $0x2e8] sm:$0xff] %v587_v29 }
  0x76   : > { %590 = vst [vmem:[%s2286_s8 + $0x2f0] sm:$0xff] %v589_v30 }
  0x77   : > { %592 = vst [vmem:[%s2286_s8 + $0x2f8] sm:$0xff] %v591_v31 }
  0x78 PF: > { %p1595_p7 = scmp.ge.s32.totalorder %s2198_s18, 1  ;;  %p605_p8 = scmp.lt.s32.totalorder %s2198_s18, 13 }
  0x7a   : > { %p606_p9 = pnand %p1595_p7, %p605_p8 }
  0x7b   : > { %s612_s9 = sand.u32 (!%p606_p9), 1, %s2174_s12   ;;  %s652_s10 = smul.u32 (!%p606_p9), 6, %s2182_s14 }
  0x7c   : > { %609 = sbr.rel (%p606_p9) target bundleno = 393 (0x189), region = 66  ;;  %s1597_s21 = sshll.u32 (!%p606_p9), %s2186_s15, 1 }
  0x7d   : > { %s2086_s11 = smul.u32 (!%p606_p9), 768, %s612_s9  ;;  %p655_p10 = scmp.lt.s32.totalorder (!%p606_p9), %s652_s10, 35 }
  0x7e   : > { %p665_p11 = scmp.lt.s32.totalorder (!%p606_p9), %s1597_s21, 3  ;;  %p1600_p12 = scmp.ne.s32.totalorder (!%p606_p9), %s2182_s14, 0 }
  0x7f   : > { %s2499_s5 = scalar_lea.vmem (!%p606_p9), [#allocation3], %s2086_s11 }
  0x81   : > { %s2766_s10 = smov (!%p655_p10, %s652_s10), 35  ;;  %s2768_s21 = smov (!%p665_p11, %s1597_s21), 3 }
  0x82   : > { %s1596_s22 = sshll.u32 %s2766_s10, 2  ;;  %s667_s12 = scalar_lea.vmem %s2751_s2, %s2768_s21 }
  0x83   : > { %s2487_s26 = scalar_lea.vmem %s2749_s0, %s1596_s22  ;;  %s1599_s29 = sshll.u32 %s2768_s21, 2 }
  0x84   : > { %s2497_s4 = scalar_lea.vmem %s2752_s3, %s1599_s29  ;;  %682 = sbr.rel (%p1600_p12) target bundleno = 140 (0x8c), region = 74 }
  0x89   : > { %v2200_v32 = vmov 0.0  }
  0x8a   : > { %683 = vst [vmem:[#allocation2] sm:$0xff] %v2200_v32 }
  0x8b   : > { %684 = vst [vmem:[#allocation2 + $0x8] sm:$0xff] %v2200_v32 }
  0x8c PF: > { %v1659_v33 = vld [vmem:[%s2499_s5 + $0x70] sm:$0xf]  ;;  %v2004_v34 = vld [vmem:[%s2499_s5 + $0x74] sm:$0xf0]  ;;  %v1651_v44 = vld [vmem:[%s2499_s5 + $0x60] sm:$0xf] }
  0x8d   : > { %v1723_v35 = vld [vmem:[%s2499_s5 + $0xf0] sm:$0xf]  ;;  %v1660_v36 = vor.u32 %v2004_v34, %v1659_v33  ;;  %v2020_v37 = vld [vmem:[%s2499_s5 + $0xf4] sm:$0xf0]  ;;  %v2002_v46 = vld [vmem:[%s2499_s5 + $0x64] sm:$0xf0] }
  0x8e   : > { %v1787_v38 = vld [vmem:[%s2499_s5 + $0x170] sm:$0xf]  ;;  %v2036_v39 = vld [vmem:[%s2499_s5 + $0x174] sm:$0xf0]  ;;  %v1724_v40 = vor.u32 %v2020_v37, %v1723_v35  ;;  %v1715_v47 = vld [vmem:[%s2499_s5 + $0xe0] sm:$0xf]  ;;  %v1652_v49 = vor.u32 %v2002_v46, %v1651_v44 }
  0x8f   : > { %v1788_v41 = vor.u32 %v2036_v39, %v1787_v38  ;;  %v1851_v42 = vld [vmem:[%s2499_s5 + $0x1f0] sm:$0xf]  ;;  %v2052_v43 = vld [vmem:[%s2499_s5 + $0x1f4] sm:$0xf0]  ;;  %1287 = vmatpush.bf16.msra.mxu0 %v1660_v36  ;;  %v2018_v48 = vld [vmem:[%s2499_s5 + $0xe4] sm:$0xf0] }
  0x90   : > { %v1852_v45 = vor.u32 %v2052_v43, %v1851_v42  ;;  %1300 = vmatpush.bf16.msra.mxu1 %v1724_v40  ;;  %v1716_v50 = vor.u32 %v2018_v48, %v1715_v47  ;;  %v1779_v51 = vld [vmem:[%s2499_s5 + $0x160] sm:$0xf]  ;;  %v2034_v52 = vld [vmem:[%s2499_s5 + $0x164] sm:$0xf0]  ;;  %v1643_v56 = vld [vmem:[%s2499_s5 + $0x50] sm:$0xf] }
  0x91   : > { %1313 = vmatpush.bf16.msra.mxu2 %v1788_v41  ;;  %v1843_v53 = vld [vmem:[%s2499_s5 + $0x1e0] sm:$0xf]  ;;  %v1780_v54 = vor.u32 %v2034_v52, %v1779_v51  ;;  %v2050_v55 = vld [vmem:[%s2499_s5 + $0x1e4] sm:$0xf0]  ;;  %v2000_v57 = vld [vmem:[%s2499_s5 + $0x54] sm:$0xf0] }
  0x92   : > { %1326 = vmatpush.bf16.msra.mxu3 %v1852_v45  ;;  %v1844_v58 = vor.u32 %v2050_v55, %v1843_v53  ;;  %v1707_v59 = vld [vmem:[%s2499_s5 + $0xd0] sm:$0xf]  ;;  %v2016_v60 = vld [vmem:[%s2499_s5 + $0xd4] sm:$0xf0]  ;;  %v1644_v62 = vor.u32 %v2000_v57, %v1643_v56  ;;  %v1635_v4 = vld [vmem:[%s2499_s5 + $0x40] sm:$0xf] }
  0x93   : > { %v1771_v61 = vld [vmem:[%s2499_s5 + $0x150] sm:$0xf]  ;;  %1288 = vmatpush.bf16.msra.mxu0 %v1652_v49  ;;  %v2032_v63 = vld [vmem:[%s2499_s5 + $0x154] sm:$0xf0]  ;;  %v1708_v2 = vor.u32 %v2016_v60, %v1707_v59  ;;  %v1998_v5 = vld [vmem:[%s2499_s5 + $0x44] sm:$0xf0] }
  0x94   : > { %v1835_v0 = vld [vmem:[%s2499_s5 + $0x1d0] sm:$0xf]  ;;  %v2048_v1 = vld [vmem:[%s2499_s5 + $0x1d4] sm:$0xf0]  ;;  %1301 = vmatpush.bf16.msra.mxu1 %v1716_v50  ;;  %v1772_v3 = vor.u32 %v2032_v63, %v1771_v61  ;;  %v1699_v6 = vld [vmem:[%s2499_s5 + $0xc0] sm:$0xf]  ;;  %v1636_v13 = vor.u32 %v1998_v5, %v1635_v4 }
  0x95   : > { %1314 = vmatpush.bf16.msra.mxu2 %v1780_v54  ;;  %v1836_v7 = vor.u32 %v2048_v1, %v1835_v0  ;;  %v2014_v8 = vld [vmem:[%s2499_s5 + $0xc4] sm:$0xf0]  ;;  %v1763_v9 = vld [vmem:[%s2499_s5 + $0x140] sm:$0xf]  ;;  %v1627_v16 = vld [vmem:[%s2499_s5 + $0x30] sm:$0xf] }
  0x96   : > { %1327 = vmatpush.bf16.msra.mxu3 %v1844_v58  ;;  %v2030_v10 = vld [vmem:[%s2499_s5 + $0x144] sm:$0xf0]  ;;  %v1827_v11 = vld [vmem:[%s2499_s5 + $0x1c0] sm:$0xf]  ;;  %v1700_v14 = vor.u32 %v2014_v8, %v1699_v6  ;;  %v1996_v17 = vld [vmem:[%s2499_s5 + $0x34] sm:$0xf0] }
  0x97   : > { %v2046_v12 = vld [vmem:[%s2499_s5 + $0x1c4] sm:$0xf0]  ;;  %1289 = vmatpush.bf16.msra.mxu0 %v1644_v62  ;;  %v1764_v15 = vor.u32 %v2030_v10, %v1763_v9  ;;  %v1691_v18 = vld [vmem:[%s2499_s5 + $0xb0] sm:$0xf]  ;;  %v2012_v20 = vld [vmem:[%s2499_s5 + $0xb4] sm:$0xf0]  ;;  %v1628_v25 = vor.u32 %v1996_v17, %v1627_v16 }
  0x98   : > { %1302 = vmatpush.bf16.msra.mxu1 %v1708_v2  ;;  %v1828_v19 = vor.u32 %v2046_v12, %v1827_v11  ;;  %v1755_v21 = vld [vmem:[%s2499_s5 + $0x130] sm:$0xf]  ;;  %v2028_v22 = vld [vmem:[%s2499_s5 + $0x134] sm:$0xf0]  ;;  %v1692_v26 = vor.u32 %v2012_v20, %v1691_v18  ;;  %v1619_v28 = vld [vmem:[%s2499_s5 + $0x20] sm:$0xf] }
  0x99   : > { %1315 = vmatpush.bf16.msra.mxu2 %v1772_v3  ;;  %v1819_v23 = vld [vmem:[%s2499_s5 + $0x1b0] sm:$0xf]  ;;  %v2044_v24 = vld [vmem:[%s2499_s5 + $0x1b4] sm:$0xf0]  ;;  %v1756_v27 = vor.u32 %v2028_v22, %v1755_v21  ;;  %v1994_v29 = vld [vmem:[%s2499_s5 + $0x24] sm:$0xf0] }
  0x9a   : > { %1328 = vmatpush.bf16.msra.mxu3 %v1836_v7  ;;  %v1683_v30 = vld [vmem:[%s2499_s5 + $0xa0] sm:$0xf]  ;;  %v1820_v31 = vor.u32 %v2044_v24, %v1819_v23  ;;  %v2010_v32 = vld [vmem:[%s2499_s5 + $0xa4] sm:$0xf0]  ;;  %v1620_v37 = vor.u32 %v1994_v29, %v1619_v28  ;;  %v1611_v40 = vld [vmem:[%s2499_s5 + $0x10] sm:$0xf] }
  0x9b   : > { %1290 = vmatpush.bf16.msra.mxu0 %v1636_v13  ;;  %v1747_v33 = vld [vmem:[%s2499_s5 + $0x120] sm:$0xf]  ;;  %v2026_v34 = vld [vmem:[%s2499_s5 + $0x124] sm:$0xf0]  ;;  %v1684_v38 = vor.u32 %v2010_v32, %v1683_v30  ;;  %v1992_v41 = vld [vmem:[%s2499_s5 + $0x14] sm:$0xf0] }
  0x9c   : > { %1303 = vmatpush.bf16.msra.mxu1 %v1700_v14  ;;  %v1811_v35 = vld [vmem:[%s2499_s5 + $0x1a0] sm:$0xf]  ;;  %v2042_v36 = vld [vmem:[%s2499_s5 + $0x1a4] sm:$0xf0]  ;;  %v1748_v39 = vor.u32 %v2026_v34, %v1747_v33  ;;  %v1675_v42 = vld [vmem:[%s2499_s5 + $0x90] sm:$0xf]  ;;  %v1612_v49 = vor.u32 %v1992_v41, %v1611_v40 }
  0x9d   : > { %1316 = vmatpush.bf16.msra.mxu2 %v1764_v15  ;;  %v1812_v43 = vor.u32 %v2042_v36, %v1811_v35  ;;  %v2008_v44 = vld [vmem:[%s2499_s5 + $0x94] sm:$0xf0]  ;;  %v1739_v45 = vld [vmem:[%s2499_s5 + $0x110] sm:$0xf]  ;;  %v1603_v50 = vld [vmem:[%s2499_s5] sm:$0xf] }
  0x9e   : > { %1329 = vmatpush.bf16.msra.mxu3 %v1828_v19  ;;  %v2024_v46 = vld [vmem:[%s2499_s5 + $0x114] sm:$0xf0]  ;;  %v1803_v47 = vld [vmem:[%s2499_s5 + $0x190] sm:$0xf]  ;;  %v1990_v51 = vld [vmem:[%s2499_s5 + $0x4] sm:$0xf0]  ;;  %v1676_v52 = vor.u32 %v2008_v44, %v1675_v42 }
  0x9f   : > { %1291 = vmatpush.bf16.msra.mxu0 %v1628_v25  ;;  %v2040_v48 = vld [vmem:[%s2499_s5 + $0x194] sm:$0xf0]  ;;  %v1740_v53 = vor.u32 %v2024_v46, %v1739_v45  ;;  %v1667_v54 = vld [vmem:[%s2499_s5 + $0x80] sm:$0xf]  ;;  %v2006_v55 = vld [vmem:[%s2499_s5 + $0x84] sm:$0xf0]  ;;  %v1604_v0 = vor.u32 %v1990_v51, %v1603_v50 }
  0xa0   : > { %1304 = vmatpush.bf16.msra.mxu1 %v1692_v26  ;;  %v1731_v56 = vld [vmem:[%s2499_s5 + $0x100] sm:$0xf]  ;;  %v1804_v57 = vor.u32 %v2040_v48, %v1803_v47  ;;  %v2022_v58 = vld [vmem:[%s2499_s5 + $0x104] sm:$0xf0]  ;;  %v1915_v61 = vld [vmem:[%s2499_s5 + $0x270] sm:$0xf]  ;;  %v1668_v4 = vor.u32 %v2006_v55, %v1667_v54 }
  0xa1   : > { %1317 = vmatpush.bf16.msra.mxu2 %v1756_v27  ;;  %v1795_v59 = vld [vmem:[%s2499_s5 + $0x180] sm:$0xf]  ;;  %v2038_v60 = vld [vmem:[%s2499_s5 + $0x184] sm:$0xf0]  ;;  %v2068_v62 = vld [vmem:[%s2499_s5 + $0x274] sm:$0xf0]  ;;  %v1732_v5 = vor.u32 %v2022_v58, %v1731_v56 }
  0xa2   : > { %1330 = vmatpush.bf16.msra.mxu3 %v1820_v31  ;;  %v1979_v63 = vld [vmem:[%s2499_s5 + $0x2f0] sm:$0xf]  ;;  %v2084_v1 = vld [vmem:[%s2499_s5 + $0x2f4] sm:$0xf0]  ;;  %v2003_v2 = vld [vmem:[%s2499_s5 + $0x74] sm:$0xf]  ;;  %v1796_v8 = vor.u32 %v2038_v60, %v1795_v59  ;;  %v1916_v9 = vor.u32 %v2068_v62, %v1915_v61 }
  0xa3   : > { %1292 = vmatpush.bf16.msra.mxu0 %v1620_v37  ;;  %v1661_v3 = vld [vmem:[%s2499_s5 + $0x78] sm:$0xf0]  ;;  %v2019_v6 = vld [vmem:[%s2499_s5 + $0xf4] sm:$0xf]  ;;  %v1980_v10 = vor.u32 %v2084_v1, %v1979_v63  ;;  %v1907_v12 = vld [vmem:[%s2499_s5 + $0x260] sm:$0xf] }
  0xa4   : > { %1305 = vmatpush.bf16.msra.mxu1 %v1684_v38  ;;  %v1725_v7 = vld [vmem:[%s2499_s5 + $0xf8] sm:$0xf0]  ;;  %v1664_v11 = vor.u32 %v2003_v2, %v1661_v3  ;;  %v2066_v13 = vld [vmem:[%s2499_s5 + $0x264] sm:$0xf0]  ;;  %v1971_v14 = vld [vmem:[%s2499_s5 + $0x2e0] sm:$0xf] }
  0xa5   : > { %1318 = vmatpush.bf16.msra.mxu2 %v1748_v39  ;;  %v1728_v15 = vor.u32 %v2019_v6, %v1725_v7  ;;  %v2082_v16 = vld [vmem:[%s2499_s5 + $0x2e4] sm:$0xf0]  ;;  %v2001_v17 = vld [vmem:[%s2499_s5 + $0x64] sm:$0xf]  ;;  %v1653_v18 = vld [vmem:[%s2499_s5 + $0x68] sm:$0xf0]  ;;  %v1908_v21 = vor.u32 %v2066_v13, %v1907_v12 }
  0xa6   : > { %1331 = vmatpush.bf16.msra.mxu3 %v1812_v43  ;;  %v2017_v19 = vld [vmem:[%s2499_s5 + $0xe4] sm:$0xf]  ;;  %v1717_v20 = vld [vmem:[%s2499_s5 + $0xe8] sm:$0xf0]  ;;  %v1899_v22 = vld [vmem:[%s2499_s5 + $0x250] sm:$0xf]  ;;  %v1972_v24 = vor.u32 %v2082_v16, %v1971_v14  ;;  %v1656_v25 = vor.u32 %v2001_v17, %v1653_v18 }
  0xa7   : > { %1293 = vmatpush.bf16.msra.mxu0 %v1612_v49  ;;  %v2064_v23 = vld [vmem:[%s2499_s5 + $0x254] sm:$0xf0]  ;;  %v1963_v26 = vld [vmem:[%s2499_s5 + $0x2d0] sm:$0xf]  ;;  %v1720_v29 = vor.u32 %v2017_v19, %v1717_v20  ;;  %v1999_v30 = vld [vmem:[%s2499_s5 + $0x54] sm:$0xf] }
  0xa8   : > { %1306 = vmatpush.bf16.msra.mxu1 %v1676_v52  ;;  %v2080_v27 = vld [vmem:[%s2499_s5 + $0x2d4] sm:$0xf0]  ;;  %v687_v28 = vld [vmem:[%s2487_s26] sm:$0xff]  ;;  %v1645_v31 = vld [vmem:[%s2499_s5 + $0x58] sm:$0xf0]  ;;  %v1900_v39 = vor.u32 %v2064_v23, %v1899_v22  ;;  %p1985_p13 = scmp.ne.s32.totalorder %s2182_s14, 5 }
  0xa9   : > { %1319 = vmatpush.bf16.msra.mxu2 %v1740_v53  ;;  %v789_v32 = vunpack.c.l.b16 %v687_v28  ;;  %v688_v33 = vld [vmem:[%s2487_s26 + $0x8] sm:$0xff]  ;;  %v790_v34 = vunpack.c.h.b16 %v687_v28  ;;  %v2015_v35 = vld [vmem:[%s2499_s5 + $0xd4] sm:$0xf]  ;;  %v1964_v40 = vor.u32 %v2080_v27, %v1963_v26  ;;  %v1648_v43 = vor.u32 %v1999_v30, %v1645_v31  ;;  %v1891_v44 = vld [vmem:[%s2499_s5 + $0x240] sm:$0xf] }
  0xaa   : > { %1332 = vmatpush.bf16.msra.mxu3 %v1804_v57  ;;  %v1709_v36 = vld [vmem:[%s2499_s5 + $0xd8] sm:$0xf0]  ;;  %v791_v37 = vunpack.c.l.b16 %v688_v33  ;;  %v792_v38 = vunpack.c.h.b16 %v688_v33  ;;  %v2062_v45 = vld [vmem:[%s2499_s5 + $0x244] sm:$0xf0]  ;;  %v1955_v46 = vld [vmem:[%s2499_s5 + $0x2c0] sm:$0xf] }
  0xab   : > { %1294 = vmatpush.bf16.msra.mxu0 %v1604_v0  ;;  %v2592_v41 = vpack.c.b16 %v789_v32, %v789_v32  ;;  %v2594_v42 = vpack.c.b16 %v790_v34, %v790_v34  ;;  %v1712_v49 = vor.u32 %v2015_v35, %v1709_v36  ;;  %v2078_v50 = vld [vmem:[%s2499_s5 + $0x2c4] sm:$0xf0]  ;;  %v1997_v51 = vld [vmem:[%s2499_s5 + $0x44] sm:$0xf]  ;;  %v1637_v52 = vld [vmem:[%s2499_s5 + $0x48] sm:$0xf0]  ;;  %v1892_v55 = vor.u32 %v2062_v45, %v1891_v44 }
  0xac   : > { %1307 = vmatpush.bf16.msra.mxu1 %v1668_v4  ;;  %v2599_v47 = vpack.c.b16 %v791_v37, %v791_v37  ;;  %v2601_v48 = vpack.c.b16 %v792_v38, %v792_v38  ;;  %v2013_v53 = vld [vmem:[%s2499_s5 + $0xc4] sm:$0xf]  ;;  %v1701_v54 = vld [vmem:[%s2499_s5 + $0xc8] sm:$0xf0]  ;;  %v1956_v56 = vor.u32 %v2078_v50, %v1955_v46  ;;  %v1640_v57 = vor.u32 %v1997_v51, %v1637_v52  ;;  %v1883_v58 = vld [vmem:[%s2499_s5 + $0x230] sm:$0xf] }
  0xad   : > { %1320 = vmatpush.bf16.msra.mxu2 %v1732_v5  ;;  %v2060_v59 = vld [vmem:[%s2499_s5 + $0x234] sm:$0xf0]  ;;  %v1947_v60 = vld [vmem:[%s2499_s5 + $0x2b0] sm:$0xf]  ;;  %v1704_v61 = vor.u32 %v2013_v53, %v1701_v54  ;;  %v1995_v63 = vld [vmem:[%s2499_s5 + $0x34] sm:$0xf] }
  0xae   : > { %1333 = vmatpush.bf16.msra.mxu3 %v1796_v8  ;;  %1295 = vmatmul.bf16.vlgmr.msra.gmra.mxu0 %v2592_v41  ;;  %v2076_v62 = vld [vmem:[%s2499_s5 + $0x2b4] sm:$0xf0]  ;;  %v1629_v0 = vld [vmem:[%s2499_s5 + $0x38] sm:$0xf0]  ;;  %v2011_v1 = vld [vmem:[%s2499_s5 + $0xb4] sm:$0xf]  ;;  %v1884_v3 = vor.u32 %v2060_v59, %v1883_v58 }
  0xaf   : > { %1339 = vmatpush.bf16.msrb.mxu0 %v1916_v9  ;;  %1308 = vmatmul.bf16.vlgmr.msra.gmra.mxu1 %v2594_v42  ;;  %v1693_v2 = vld [vmem:[%s2499_s5 + $0xb8] sm:$0xf0]  ;;  %v1948_v4 = vor.u32 %v2076_v62, %v1947_v60  ;;  %v1632_v5 = vor.u32 %v1995_v63, %v1629_v0  ;;  %v1875_v6 = vld [vmem:[%s2499_s5 + $0x220] sm:$0xf]  ;;  %v2058_v7 = vld [vmem:[%s2499_s5 + $0x224] sm:$0xf0] }
  0xb0   : > { %1352 = vmatpush.bf16.msrb.mxu1 %v1980_v10  ;;  %1321 = vmatmul.bf16.vlgmr.msra.gmra.mxu2 %v2599_v47  ;;  %v1939_v8 = vld [vmem:[%s2499_s5 + $0x2a0] sm:$0xf]  ;;  %v1696_v9 = vor.u32 %v2011_v1, %v1693_v2  ;;  %v2074_v10 = vld [vmem:[%s2499_s5 + $0x2a4] sm:$0xf0]  ;;  %v1621_v12 = vld [vmem:[%s2499_s5 + $0x28] sm:$0xf0] }
  0xb1   : > { %1365 = vmatpush.bf16.msrb.mxu2 %v1664_v11  ;;  %1334 = vmatmul.bf16.vlgmr.msra.gmra.mxu3 %v2601_v48  ;;  %v1993_v11 = vld [vmem:[%s2499_s5 + $0x24] sm:$0xf]  ;;  %v1685_v14 = vld [vmem:[%s2499_s5 + $0xa8] sm:$0xf0]  ;;  %v1940_v16 = vor.u32 %v2074_v10, %v1939_v8  ;;  %v1867_v18 = vld [vmem:[%s2499_s5 + $0x210] sm:$0xf] }
  0xb2   : > { %1378 = vmatpush.bf16.msrb.mxu3 %v1728_v15  ;;  %v2009_v13 = vld [vmem:[%s2499_s5 + $0xa4] sm:$0xf]  ;;  %v1876_v15 = vor.u32 %v2058_v7, %v1875_v6  ;;  %v1624_v17 = vor.u32 %v1993_v11, %v1621_v12  ;;  %v2056_v19 = vld [vmem:[%s2499_s5 + $0x214] sm:$0xf0]  ;;  %v1931_v20 = vld [vmem:[%s2499_s5 + $0x290] sm:$0xf] }
  0xb3   : > { %1340 = vmatpush.bf16.msrb.mxu0 %v1908_v21  ;;  %v1688_v21 = vor.u32 %v2009_v13, %v1685_v14  ;;  %v2072_v22 = vld [vmem:[%s2499_s5 + $0x294] sm:$0xf0]  ;;  %v1991_v23 = vld [vmem:[%s2499_s5 + $0x14] sm:$0xf]  ;;  %v1677_v26 = vld [vmem:[%s2499_s5 + $0x98] sm:$0xf0]  ;;  %v1868_v27 = vor.u32 %v2056_v19, %v1867_v18 }
  0xb4   : > { %1353 = vmatpush.bf16.msrb.mxu1 %v1972_v24  ;;  %v1613_v24 = vld [vmem:[%s2499_s5 + $0x18] sm:$0xf0]  ;;  %v1859_v28 = vld [vmem:[%s2499_s5 + $0x200] sm:$0xf]  ;;  %v1932_v31 = vor.u32 %v2072_v22, %v1931_v20  ;;  %v2070_v33 = vld [vmem:[%s2499_s5 + $0x284] sm:$0xf0] }
  0xb5   : > { %1366 = vmatpush.bf16.msrb.mxu2 %v1656_v25  ;;  %v2007_v25 = vld [vmem:[%s2499_s5 + $0x94] sm:$0xf]  ;;  %v1923_v30 = vld [vmem:[%s2499_s5 + $0x280] sm:$0xf]  ;;  %v1616_v32 = vor.u32 %v1991_v23, %v1613_v24  ;;  %v1989_v34 = vld [vmem:[%s2499_s5 + $0x4] sm:$0xf] }
  0xb6   : > { %1379 = vmatpush.bf16.msrb.mxu3 %v1720_v29  ;;  %v2054_v29 = vld [vmem:[%s2499_s5 + $0x204] sm:$0xf0]  ;;  %v689_v35 = vld [vmem:[%s2487_s26 + $0x10] sm:$0xff]  ;;  %v1680_v36 = vor.u32 %v2007_v25, %v1677_v26  ;;  %v1605_v37 = vld [vmem:[%s2499_s5 + $0x8] sm:$0xf0]  ;;  %v1924_v52 = vor.u32 %v2070_v33, %v1923_v30 }
  0xb7   : > { %1341 = vmatpush.bf16.msrb.mxu0 %v1900_v39  ;;  %v2005_v38 = vld [vmem:[%s2499_s5 + $0x84] sm:$0xf]  ;;  %v1669_v39 = vld [vmem:[%s2499_s5 + $0x88] sm:$0xf0]  ;;  %v2051_v44 = vld [vmem:[%s2499_s5 + $0x1f4] sm:$0xf]  ;;  %v1860_v45 = vor.u32 %v2054_v29, %v1859_v28  ;;  %v793_v51 = vunpack.c.l.b16 %v689_v35  ;;  %v1608_v53 = vor.u32 %v1989_v34, %v1605_v37  ;;  %v794_v58 = vunpack.c.h.b16 %v689_v35 }
  0xb8   : > { %1354 = vmatpush.bf16.msrb.mxu1 %v1964_v40  ;;  %v2035_v40 = vld [vmem:[%s2499_s5 + $0x174] sm:$0xf]  ;;  %v1853_v46 = vld [vmem:[%s2499_s5 + $0x1f8] sm:$0xf0]  ;;  %v1781_v62 = vld [vmem:[%s2499_s5 + $0x168] sm:$0xf0] }
  0xb9   : > { %1367 = vmatpush.bf16.msrb.mxu2 %v1648_v43  ;;  %v1789_v43 = vld [vmem:[%s2499_s5 + $0x178] sm:$0xf0]  ;;  %v2083_v54 = vld [vmem:[%s2499_s5 + $0x2f4] sm:$0xf]  ;;  %v1856_v59 = vor.u32 %v2051_v44, %v1853_v46  ;;  %v2049_v63 = vld [vmem:[%s2499_s5 + $0x1e4] sm:$0xf]  ;;  %v2663_v8 = vpack.c.b16 %v794_v58, %v794_v58 }
  0xba   : > { %1380 = vmatpush.bf16.msrb.mxu3 %v1712_v49  ;;  %v2067_v49 = vld [vmem:[%s2499_s5 + $0x274] sm:$0xf]  ;;  %v1917_v50 = vld [vmem:[%s2499_s5 + $0x278] sm:$0xf0]  ;;  %v1845_v1 = vld [vmem:[%s2499_s5 + $0x1e8] sm:$0xf0] }
  0xbb   : > { %1342 = vmatpush.bf16.msrb.mxu0 %v1892_v55  ;;  %v1981_v55 = vld [vmem:[%s2499_s5 + $0x2f8] sm:$0xf0]  ;;  %v1920_v60 = vor.u32 %v2067_v49, %v1917_v50  ;;  %v2065_v2 = vld [vmem:[%s2499_s5 + $0x264] sm:$0xf]  ;;  %v1973_v6 = vld [vmem:[%s2499_s5 + $0x2e8] sm:$0xf0] }
  0xbc   : > { %1355 = vmatpush.bf16.msrb.mxu1 %v1956_v56  ;;  %v1672_v56 = vor.u32 %v2005_v38, %v1669_v39  ;;  %v1984_v0 = vor.u32 %v2083_v54, %v1981_v55  ;;  %v2031_v11 = vld [vmem:[%s2499_s5 + $0x154] sm:$0xf]  ;;  %v1773_v12 = vld [vmem:[%s2499_s5 + $0x158] sm:$0xf0]  ;;  %v2029_v23 = vld [vmem:[%s2499_s5 + $0x144] sm:$0xf] }
  0xbd   : > { %1368 = vmatpush.bf16.msrb.mxu2 %v1640_v57  ;;  %v1792_v57 = vor.u32 %v2035_v40, %v1789_v43  ;;  %v2047_v13 = vld [vmem:[%s2499_s5 + $0x1d4] sm:$0xf]  ;;  %v1965_v19 = vld [vmem:[%s2499_s5 + $0x2d8] sm:$0xf0]  ;;  %v1776_v20 = vor.u32 %v2031_v11, %v1773_v12  ;;  %v2045_v24 = vld [vmem:[%s2499_s5 + $0x1c4] sm:$0xf] }
  0xbe   : > { %1381 = vmatpush.bf16.msrb.mxu3 %v1704_v61  ;;  %v2033_v61 = vld [vmem:[%s2499_s5 + $0x164] sm:$0xf]  ;;  %v2079_v18 = vld [vmem:[%s2499_s5 + $0x2d4] sm:$0xf]  ;;  %v1829_v25 = vld [vmem:[%s2499_s5 + $0x1c8] sm:$0xf0] }
  0xbf   : > { %1343 = vmatpush.bf16.msrb.mxu0 %v1884_v3  ;;  %v1909_v3 = vld [vmem:[%s2499_s5 + $0x268] sm:$0xf0]  ;;  %v1784_v7 = vor.u32 %v2033_v61, %v1781_v62  ;;  %v2061_v26 = vld [vmem:[%s2499_s5 + $0x244] sm:$0xf]  ;;  %v2027_v33 = vld [vmem:[%s2499_s5 + $0x134] sm:$0xf] }
  0xc0   : > { %1356 = vmatpush.bf16.msrb.mxu1 %v1948_v4  ;;  %v2659_v4 = vpack.c.b16 %v793_v51, %v793_v51  ;;  %v1912_v10 = vor.u32 %v2065_v2, %v1909_v3  ;;  %v2077_v28 = vld [vmem:[%s2499_s5 + $0x2c4] sm:$0xf]  ;;  %v1957_v29 = vld [vmem:[%s2499_s5 + $0x2c8] sm:$0xf0]  ;;  %v1757_v34 = vld [vmem:[%s2499_s5 + $0x138] sm:$0xf0] }
  0xc1   : > { %1369 = vmatpush.bf16.msrb.mxu2 %v1632_v5  ;;  %v2081_v5 = vld [vmem:[%s2499_s5 + $0x2e4] sm:$0xf]  ;;  %v2043_v35 = vld [vmem:[%s2499_s5 + $0x1b4] sm:$0xf]  ;;  %v1821_v37 = vld [vmem:[%s2499_s5 + $0x1b8] sm:$0xf0]  ;;  %v1760_v44 = vor.u32 %v2027_v33, %v1757_v34 }
  0xc2   : > { %1382 = vmatpush.bf16.msrb.mxu3 %v1696_v9  ;;  %v1848_v9 = vor.u32 %v2049_v63, %v1845_v1  ;;  %v1976_v14 = vor.u32 %v2081_v5, %v1973_v6  ;;  %v2059_v38 = vld [vmem:[%s2499_s5 + $0x234] sm:$0xf]  ;;  %v1885_v39 = vld [vmem:[%s2499_s5 + $0x238] sm:$0xf0]  ;;  %v2025_v49 = vld [vmem:[%s2499_s5 + $0x124] sm:$0xf] }
  0xc3   : > { %1344 = vmatpush.bf16.msrb.mxu0 %v1876_v15  ;;  %v1837_v15 = vld [vmem:[%s2499_s5 + $0x1d8] sm:$0xf0]  ;;  %v2075_v40 = vld [vmem:[%s2499_s5 + $0x2b4] sm:$0xf]  ;;  %v1888_v46 = vor.u32 %v2059_v38, %v1885_v39  ;;  %v1749_v50 = vld [vmem:[%s2499_s5 + $0x128] sm:$0xf0] }
  0xc4   : > { %1357 = vmatpush.bf16.msrb.mxu1 %v1940_v16  ;;  %v2063_v16 = vld [vmem:[%s2499_s5 + $0x254] sm:$0xf]  ;;  %v1949_v43 = vld [vmem:[%s2499_s5 + $0x2b8] sm:$0xf0]  ;;  %v2041_v51 = vld [vmem:[%s2499_s5 + $0x1a4] sm:$0xf]  ;;  %v1752_v58 = vor.u32 %v2025_v49, %v1749_v50 }
  0xc5   : > { %1370 = vmatpush.bf16.msrb.mxu2 %v1624_v17  ;;  %v1901_v17 = vld [vmem:[%s2499_s5 + $0x258] sm:$0xf0]  ;;  %v2057_v54 = vld [vmem:[%s2499_s5 + $0x224] sm:$0xf]  ;;  %v1877_v55 = vld [vmem:[%s2499_s5 + $0x228] sm:$0xf0] }
  0xc6   : > { %1383 = vmatpush.bf16.msrb.mxu3 %v1688_v21  ;;  %v1840_v21 = vor.u32 %v2047_v13, %v1837_v15  ;;  %v1904_v22 = vor.u32 %v2063_v16, %v1901_v17  ;;  %v2023_v61 = vld [vmem:[%s2499_s5 + $0x114] sm:$0xf]  ;;  %v1741_v62 = vld [vmem:[%s2499_s5 + $0x118] sm:$0xf0]  ;;  %v2021_v11 = vld [vmem:[%s2499_s5 + $0x104] sm:$0xf] }
  0xc7   : > { %1345 = vmatpush.bf16.msrb.mxu0 %v1868_v27  ;;  %v1893_v27 = vld [vmem:[%s2499_s5 + $0x248] sm:$0xf0]  ;;  %v2039_v63 = vld [vmem:[%s2499_s5 + $0x194] sm:$0xf]  ;;  %v1805_v1 = vld [vmem:[%s2499_s5 + $0x198] sm:$0xf0] }
  0xc8   : > { %1358 = vmatpush.bf16.msrb.mxu1 %v1932_v31  ;;  %v1832_v31 = vor.u32 %v2045_v24, %v1829_v25  ;;  %v2055_v2 = vld [vmem:[%s2499_s5 + $0x214] sm:$0xf]  ;;  %v1869_v3 = vld [vmem:[%s2499_s5 + $0x218] sm:$0xf0]  ;;  %v1733_v12 = vld [vmem:[%s2499_s5 + $0x108] sm:$0xf0] }
  0xc9   : > { %1371 = vmatpush.bf16.msrb.mxu2 %v1616_v32  ;;  %v1896_v32 = vor.u32 %v2061_v26, %v1893_v27  ;;  %v2071_v5 = vld [vmem:[%s2499_s5 + $0x294] sm:$0xf]  ;;  %v1933_v6 = vld [vmem:[%s2499_s5 + $0x298] sm:$0xf0]  ;;  %v2037_v13 = vld [vmem:[%s2499_s5 + $0x184] sm:$0xf] }
  0xca   : > { %1384 = vmatpush.bf16.msrb.mxu3 %v1680_v36  ;;  %v1960_v36 = vor.u32 %v2077_v28, %v1957_v29  ;;  %v1797_v15 = vld [vmem:[%s2499_s5 + $0x188] sm:$0xf0]  ;;  %v2053_v16 = vld [vmem:[%s2499_s5 + $0x204] sm:$0xf] }
  0xcb   : > { %1346 = vmatpush.bf16.msrb.mxu0 %v1860_v45  ;;  %v1824_v45 = vor.u32 %v2043_v35, %v1821_v37  ;;  %v1861_v17 = vld [vmem:[%s2499_s5 + $0x208] sm:$0xf0] }
  0xcc   : > { %1359 = vmatpush.bf16.msrb.mxu1 %v1924_v52  ;;  %v1952_v52 = vor.u32 %v2075_v40, %v1949_v43 }
  0xcd   : > { %1372 = vmatpush.bf16.msrb.mxu2 %v1608_v53  ;;  %v1813_v53 = vld [vmem:[%s2499_s5 + $0x1a8] sm:$0xf0] }
  0xce   : > { %1385 = vmatpush.bf16.msrb.mxu3 %v1672_v56  ;;  %1347 = vmatmul.bf16.vlgmr.msrb.gmra.mxu0 %v2659_v4  ;;  %v2073_v56 = vld [vmem:[%s2499_s5 + $0x2a4] sm:$0xf] }
  0xcf   : > { %1391 = vmatpush.bf16.msra.mxu0 %v1792_v57  ;;  %1360 = vmatmul.bf16.vlgmr.msrb.gmra.mxu1 %v2663_v8  ;;  %v1941_v57 = vld [vmem:[%s2499_s5 + $0x2a8] sm:$0xf0] }
  0xd0   : > { %1404 = vmatpush.bf16.msra.mxu1 %v1856_v59  ;;  %1373 = vmatmul.bf16.vlgmr.msrb.gmra.mxu2 %v2592_v41  ;;  %v1765_v41 = vld [vmem:[%s2499_s5 + $0x148] sm:$0xf0]  ;;  %v1816_v59 = vor.u32 %v2041_v51, %v1813_v53 }
  0xd1   : > { %1417 = vmatpush.bf16.msra.mxu2 %v1920_v60  ;;  %1386 = vmatmul.bf16.vlgmr.msrb.gmra.mxu3 %v2594_v42  ;;  %v1968_v42 = vor.u32 %v2079_v18, %v1965_v19  ;;  %v1768_v30 = vor.u32 %v2029_v23, %v1765_v41  ;;  %v1880_v60 = vor.u32 %v2057_v54, %v1877_v55  ;;  %v2069_v18 = vld [vmem:[%s2499_s5 + $0x284] sm:$0xf]  ;;  %v1925_v19 = vld [vmem:[%s2499_s5 + $0x288] sm:$0xf0]  ;;  %v686_v54 = vld [vmem:[#allocation2 + $0x8] sm:$0xff] }
  0xd2   : > { %1430 = vmatpush.bf16.msra.mxu3 %v1984_v0  ;;  %v1944_v0 = vor.u32 %v2073_v56, %v1941_v57  ;;  %v1928_v23 = vor.u32 %v2069_v18, %v1925_v19 }
  0xd3   : > { %1392 = vmatpush.bf16.msra.mxu0 %v1784_v7  ;;  %v1744_v7 = vor.u32 %v2023_v61, %v1741_v62 }
  0xd4   : > { %1405 = vmatpush.bf16.msra.mxu1 %v1848_v9  ;;  %v1808_v9 = vor.u32 %v2039_v63, %v1805_v1 }
  0xd5   : > { %1418 = vmatpush.bf16.msra.mxu2 %v1912_v10  ;;  %v1872_v10 = vor.u32 %v2055_v2, %v1869_v3 }
  0xd6   : > { %1431 = vmatpush.bf16.msra.mxu3 %v1976_v14  ;;  %v1936_v14 = vor.u32 %v2071_v5, %v1933_v6 }
  0xd7   : > { %1393 = vmatpush.bf16.msra.mxu0 %v1776_v20  ;;  %v1736_v20 = vor.u32 %v2021_v11, %v1733_v12 }
  0xd8   : > { %1406 = vmatpush.bf16.msra.mxu1 %v1840_v21  ;;  %v1800_v21 = vor.u32 %v2037_v13, %v1797_v15 }
  0xd9   : > { %1419 = vmatpush.bf16.msra.mxu2 %v1904_v22  ;;  %v1864_v22 = vor.u32 %v2053_v16, %v1861_v17 }
  0xda   : > { %1432 = vmatpush.bf16.msra.mxu3 %v1968_v42 }
  0xdb   : > { %1394 = vmatpush.bf16.msra.mxu0 %v1768_v30 }
  0xdc   : > { %1407 = vmatpush.bf16.msra.mxu1 %v1832_v31 }
  0xdd   : > { %1420 = vmatpush.bf16.msra.mxu2 %v1896_v32 }
  0xde   : > { %1433 = vmatpush.bf16.msra.mxu3 %v1960_v36 }
  0xdf   : > { %1395 = vmatpush.bf16.msra.mxu0 %v1760_v44 }
  0xe0   : > { %1408 = vmatpush.bf16.msra.mxu1 %v1824_v45 }
  0xe1   : > { %1421 = vmatpush.bf16.msra.mxu2 %v1888_v46 }
  0xe2   : > { %1434 = vmatpush.bf16.msra.mxu3 %v1952_v52 }
  0xe3   : > { %1396 = vmatpush.bf16.msra.mxu0 %v1752_v58 }
  0xe4   : > { %1409 = vmatpush.bf16.msra.mxu1 %v1816_v59 }
  0xe5   : > { %1422 = vmatpush.bf16.msra.mxu2 %v1880_v60 }
  0xe6   : > { %1435 = vmatpush.bf16.msra.mxu3 %v1944_v0 }
  0xe7   : > { %1397 = vmatpush.bf16.msra.mxu0 %v1744_v7 }
  0xe8   : > { %1410 = vmatpush.bf16.msra.mxu1 %v1808_v9 }
  0xe9   : > { %1423 = vmatpush.bf16.msra.mxu2 %v1872_v10 }
  0xea   : > { %1436 = vmatpush.bf16.msra.mxu3 %v1936_v14 }
  0xeb   : > { %1398 = vmatpush.bf16.msra.mxu0 %v1736_v20 }
  0xec   : > { %1411 = vmatpush.bf16.msra.mxu1 %v1800_v21 }
  0xed   : > { %1424 = vmatpush.bf16.msra.mxu2 %v1864_v22 }
  0xee   : > { %1437 = vmatpush.bf16.msra.mxu3 %v1928_v23  ;;  %1399 = vmatmul.bf16.vlgmr.msra.gmra.mxu0 %v2599_v47  ;;  %v685_v47 = vld [vmem:[#allocation2] sm:$0xff] }
  0xef   : > { %1412 = vmatmul.bf16.vlgmr.msra.gmra.mxu1 %v2601_v48 }
  0xf0   : > { %1425 = vmatmul.bf16.vlgmr.msra.gmra.mxu2 %v2659_v4 }
  0xf1   : > { %1438 = vmatmul.bf16.vlgmr.msra.gmra.mxu3 %v2663_v8 }
 0x12b   : > { %v1296_v41 = vpop.f32.mrf.mxu0 }
 0x12c   : > { %v1309_v24 = vpop.f32.mrf.mxu1 }
 0x12d   : > { %v1310_v28 = vadd.f32 %v1309_v24, %v1296_v41 }
 0x133   : > { %v1322_v42 = vpop.f32.mrf.mxu2  ;;  %v1298_v26 = vpop.f32.mrf.mxu0 }
 0x134   : > { %v1335_v25 = vpop.f32.mrf.mxu3  ;;  %v1311_v27 = vpop.f32.mrf.mxu1  ;;  %v1323_v31 = vadd.f32 %v1322_v42, %v1310_v28 }
 0x136   : > { %v1336_v32 = vadd.f32 %v1335_v25, %v1323_v31 }
 0x13b   : > { %v1324_v29 = vpop.f32.mrf.mxu2 }
 0x13c   : > { %v1337_v30 = vpop.f32.mrf.mxu3 }
 0x14b   : > { %v1348_v33 = vpop.f32.mrf.mxu0 }
 0x14c   : > { %v1349_v34 = vadd.f32 %v1348_v33, %v1336_v32  ;;  %v1361_v35 = vpop.f32.mrf.mxu1 }
 0x14e   : > { %v1362_v48 = vadd.f32 %v1361_v35, %v1349_v34 }
 0x150   : > { %v1443_v36 = vadd.f32 %v1362_v48, %v685_v47 }
 0x152   : > { %1445 = vst [vmem:[#allocation2] sm:$0xff] %v1443_v36 }
 0x153   : > { %v1374_v4 = vpop.f32.mrf.mxu2  ;;  %v1350_v37 = vpop.f32.mrf.mxu0 }
 0x154   : > { %v1387_v8 = vpop.f32.mrf.mxu3  ;;  %v1363_v38 = vpop.f32.mrf.mxu1 }
 0x155   : > { %v1388_v43 = vadd.f32 %v1387_v8, %v1374_v4 }
 0x15b   : > { %v1376_v39 = vpop.f32.mrf.mxu2 }
 0x15c   : > { %v1389_v40 = vpop.f32.mrf.mxu3 }
 0x16b   : > { %v1400_v44 = vpop.f32.mrf.mxu0 }
 0x16c   : > { %v1413_v45 = vpop.f32.mrf.mxu1  ;;  %v1401_v46 = vadd.f32 %v1400_v44, %v1388_v43 }
 0x16e   : > { %v1414_v49 = vadd.f32 %v1413_v45, %v1401_v46 }
 0x173   : > { %v1426_v50 = vpop.f32.mrf.mxu2  ;;  %v1402_v53 = vpop.f32.mrf.mxu0 }
 0x174   : > { %v1427_v51 = vadd.f32 %v1426_v50, %v1414_v49  ;;  %v1439_v52 = vpop.f32.mrf.mxu3  ;;  %v1415_v55 = vpop.f32.mrf.mxu1 }
 0x176   : > { %v1440_v56 = vadd.f32 %v1439_v52, %v1427_v51 }
 0x178   : > { %v1444_v57 = vadd.f32 %v1440_v56, %v686_v54  ;;  %1450 = sbr.rel (%p1985_p13) target bundleno = 393 (0x189), region = 78 }
 0x17a   : > { %1446 = vst [vmem:[#allocation2 + $0x8] sm:$0xff] %v1444_v57 }
 0x17b   : > { %v1428_v58 = vpop.f32.mrf.mxu2 }
 0x17c   : > { %v1441_v59 = vpop.f32.mrf.mxu3 }
 0x17d   : > { %v1451_v60 = vld [vmem:[#allocation2] sm:$0xff] }
 0x17e   : > { %v1453_v62 = vld [vmem:[%s667_s12] sm:$0x3] }
 0x17f   : > { %v1455_v63 = vperm.slane %v1453_v62, 0  ;;  %v1456_v0 = vperm.slane %v1453_v62, 1 }
 0x181   : > { %v1452_v61 = vld [vmem:[#allocation2 + $0x8] sm:$0xff]  ;;  %v1459_v1 = vadd.f32 %v1455_v63, %v1451_v60 }
 0x182   : > { %v1460_v2 = vadd.f32 %v1456_v0, %v1452_v61 }
 0x183   : > { %v1461_v3 = vmax.f32 %v1459_v1, 0.0 }
 0x184   : > { %v1462_v5 = vmax.f32 %v1460_v2, 0.0 }
 0x186   : > { %v1463_v6 = vpack.c.bf16 %v1462_v5, %v1461_v3 }
 0x188   : > { %1464 = vst [vmem:[%s2497_s4] sm:$0xff] %v1463_v6 }
 0x189 PF: > { %s13_s18 = sadd.s32 1, %s2198_s18   ;;  %s2753_s12 = smov %s2178_s13 }
 0x18a   : > { %p10_p0 = scmp.ge.s32.totalorder %s13_s18, 14   ;;  %s2754_s13 = smov %s2272_s25 }
 0x18b   : > { %s2755_s14 = smov %s2190_s16  ;;  %s2756_s15 = smov %s2194_s17 }
 0x18c   : > { %s2757_s16 = smov %s2760_s19  ;;  %s2758_s17 = smov %s2764_s20 }
 0x18d   :  { %12 = sbr.rel (!%p10_p0) target bundleno = 4 (0x4), region = 119 }

// kernel: forward.41
= control target key start
LH: loop header
LB: loop body
LE: loop exit
PB: predicated region body
PF: predicated region fallthrough
CT: control target
= control target key end

     0   :  { %s649_s1 = inlined_call_operand.vmem [shape: bf16[512,128], index: 1, kind: input, shape index: {}]   ;;  %s650_s0 = inlined_call_operand.vmem [shape: bf16[8,512], index: 0, kind: input, shape index: {}]   ;;  %s651_s2 = inlined_call_operand.vmem [shape: f32[1,128], index: 2, kind: input, shape index: {}]   ;;  %s652_s3 = inlined_call_operand.vmem [shape: f32[8,128], index: 3, kind: output, shape index: {}]  }
   0x1   :  { %v495_v0 = vld [vmem:[%s649_s1 + $0x38] sm:$0xff]  ;;  %v494_v4 = vld [vmem:[%s649_s1 + $0x30] sm:$0xff]  ;;  %v493_v8 = vld [vmem:[%s649_s1 + $0x28] sm:$0xff] }
   0x2   :  { %v503_v1 = vld [vmem:[%s649_s1 + $0x78] sm:$0xff]  ;;  %292 = vmatpush.bf16.msra.mxu0 %v495_v0  ;;  %v502_v5 = vld [vmem:[%s649_s1 + $0x70] sm:$0xff]  ;;  %v501_v9 = vld [vmem:[%s649_s1 + $0x68] sm:$0xff] }
   0x3   :  { %v511_v2 = vld [vmem:[%s649_s1 + $0xb8] sm:$0xff]  ;;  %305 = vmatpush.bf16.msra.mxu1 %v503_v1  ;;  %v510_v6 = vld [vmem:[%s649_s1 + $0xb0] sm:$0xff]  ;;  %v509_v10 = vld [vmem:[%s649_s1 + $0xa8] sm:$0xff] }
   0x4   :  { %v519_v3 = vld [vmem:[%s649_s1 + $0xf8] sm:$0xff]  ;;  %318 = vmatpush.bf16.msra.mxu2 %v511_v2  ;;  %v518_v7 = vld [vmem:[%s649_s1 + $0xf0] sm:$0xff]  ;;  %v517_v11 = vld [vmem:[%s649_s1 + $0xe8] sm:$0xff] }
   0x5   :  { %331 = vmatpush.bf16.msra.mxu3 %v519_v3  ;;  %v492_v12 = vld [vmem:[%s649_s1 + $0x20] sm:$0xff]  ;;  %v491_v16 = vld [vmem:[%s649_s1 + $0x18] sm:$0xff]  ;;  %v490_v20 = vld [vmem:[%s649_s1 + $0x10] sm:$0xff] }
   0x6   :  { %293 = vmatpush.bf16.msra.mxu0 %v494_v4  ;;  %v500_v13 = vld [vmem:[%s649_s1 + $0x60] sm:$0xff]  ;;  %v499_v17 = vld [vmem:[%s649_s1 + $0x58] sm:$0xff]  ;;  %v498_v21 = vld [vmem:[%s649_s1 + $0x50] sm:$0xff] }
   0x7   :  { %306 = vmatpush.bf16.msra.mxu1 %v502_v5  ;;  %v508_v14 = vld [vmem:[%s649_s1 + $0xa0] sm:$0xff]  ;;  %v507_v18 = vld [vmem:[%s649_s1 + $0x98] sm:$0xff]  ;;  %v506_v22 = vld [vmem:[%s649_s1 + $0x90] sm:$0xff] }
   0x8   :  { %319 = vmatpush.bf16.msra.mxu2 %v510_v6  ;;  %v516_v15 = vld [vmem:[%s649_s1 + $0xe0] sm:$0xff]  ;;  %v515_v19 = vld [vmem:[%s649_s1 + $0xd8] sm:$0xff]  ;;  %v514_v23 = vld [vmem:[%s649_s1 + $0xd0] sm:$0xff] }
   0x9   :  { %332 = vmatpush.bf16.msra.mxu3 %v518_v7  ;;  %v489_v24 = vld [vmem:[%s649_s1 + $0x8] sm:$0xff]  ;;  %v20_v26 = vld [vmem:[%s650_s0] sm:$0xff] }
   0xa   :  { %294 = vmatpush.bf16.msra.mxu0 %v493_v8  ;;  %v497_v25 = vld [vmem:[%s649_s1 + $0x48] sm:$0xff]  ;;  %v88_v30 = vunpack.c.l.b16 %v20_v26  ;;  %v89_v31 = vunpack.c.h.b16 %v20_v26  ;;  %v488_v32 = vld [vmem:[%s649_s1] sm:$0xff] }
   0xb   :  { %307 = vmatpush.bf16.msra.mxu1 %v501_v9  ;;  %v505_v27 = vld [vmem:[%s649_s1 + $0x88] sm:$0xff]  ;;  %v496_v33 = vld [vmem:[%s649_s1 + $0x40] sm:$0xff] }
   0xc   :  { %320 = vmatpush.bf16.msra.mxu2 %v509_v10  ;;  %v513_v28 = vld [vmem:[%s649_s1 + $0xc8] sm:$0xff]  ;;  %v504_v36 = vld [vmem:[%s649_s1 + $0x80] sm:$0xff]  ;;  %v92_v38 = vpack.c.b16 %v88_v30, %v88_v30  ;;  %v93_v39 = vpack.c.b16 %v89_v31, %v89_v31 }
   0xd   :  { %333 = vmatpush.bf16.msra.mxu3 %v517_v11  ;;  %v21_v29 = vld [vmem:[%s650_s0 + $0x8] sm:$0xff]  ;;  %v512_v37 = vld [vmem:[%s649_s1 + $0xc0] sm:$0xff] }
   0xe   :  { %295 = vmatpush.bf16.msra.mxu0 %v492_v12  ;;  %v90_v34 = vunpack.c.l.b16 %v21_v29  ;;  %v91_v35 = vunpack.c.h.b16 %v21_v29  ;;  %v520_v48 = vld [vmem:[%s651_s2] ss:$0 sm:$0xff] }
   0xf   :  { %308 = vmatpush.bf16.msra.mxu1 %v500_v13 }
  0x10   :  { %321 = vmatpush.bf16.msra.mxu2 %v508_v14  ;;  %v94_v40 = vpack.c.b16 %v90_v34, %v90_v34  ;;  %v95_v41 = vpack.c.b16 %v91_v35, %v91_v35 }
  0x11   :  { %334 = vmatpush.bf16.msra.mxu3 %v516_v15 }
  0x12   :  { %296 = vmatpush.bf16.msra.mxu0 %v491_v16 }
  0x13   :  { %309 = vmatpush.bf16.msra.mxu1 %v499_v17 }
  0x14   :  { %322 = vmatpush.bf16.msra.mxu2 %v507_v18 }
  0x15   :  { %335 = vmatpush.bf16.msra.mxu3 %v515_v19 }
  0x16   :  { %297 = vmatpush.bf16.msra.mxu0 %v490_v20 }
  0x17   :  { %310 = vmatpush.bf16.msra.mxu1 %v498_v21 }
  0x18   :  { %323 = vmatpush.bf16.msra.mxu2 %v506_v22 }
  0x19   :  { %336 = vmatpush.bf16.msra.mxu3 %v514_v23 }
  0x1a   :  { %298 = vmatpush.bf16.msra.mxu0 %v489_v24 }
  0x1b   :  { %311 = vmatpush.bf16.msra.mxu1 %v497_v25 }
  0x1c   :  { %324 = vmatpush.bf16.msra.mxu2 %v505_v27 }
  0x1d   :  { %337 = vmatpush.bf16.msra.mxu3 %v513_v28 }
  0x1e   :  { %299 = vmatpush.bf16.msra.mxu0 %v488_v32 }
  0x1f   :  { %312 = vmatpush.bf16.msra.mxu1 %v496_v33 }
  0x20   :  { %325 = vmatpush.bf16.msra.mxu2 %v504_v36 }
  0x21   :  { %338 = vmatpush.bf16.msra.mxu3 %v512_v37  ;;  %300 = vmatmul.bf16.vlgmr.msra.gmra.mxu0 %v92_v38 }
  0x22   :  { %313 = vmatmul.bf16.vlgmr.msra.gmra.mxu1 %v93_v39 }
  0x23   :  { %326 = vmatmul.bf16.vlgmr.msra.gmra.mxu2 %v94_v40 }
  0x24   :  { %339 = vmatmul.bf16.vlgmr.msra.gmra.mxu3 %v95_v41 }
  0x9e   :  { %v301_v42 = vpop.f32.mrf.mxu0 }
  0x9f   :  { %v314_v43 = vpop.f32.mrf.mxu1 }
  0xa0   :  { %v315_v44 = vadd.f32 %v314_v43, %v301_v42 }
  0xa6   :  { %v327_v45 = vpop.f32.mrf.mxu2  ;;  %v303_v49 = vpop.f32.mrf.mxu0 }
  0xa7   :  { %v340_v46 = vpop.f32.mrf.mxu3  ;;  %v328_v47 = vadd.f32 %v327_v45, %v315_v44  ;;  %v316_v50 = vpop.f32.mrf.mxu1 }
  0xa9   :  { %v341_v51 = vadd.f32 %v340_v46, %v328_v47 }
  0xab   :  { %v354_v52 = vadd.f32 %v520_v48, %v341_v51 }
  0xad   :  { %355 = vst [vmem:[%s652_s3] sm:$0xff] %v354_v52 }
  0xae   :  { %v329_v53 = vpop.f32.mrf.mxu2 }
  0xaf   :  { %v342_v54 = vpop.f32.mrf.mxu3 }

</bundles_post_ra>
